<compile_context>
chip_gen: v7x
topology: tpu7x:2x2x1
jax: 0.10.0
libtpu: 0.0.40
codegen_flags: <defaults>
</compile_context>

<pallas_src>
import functools

import jax
import jax.numpy as jnp
from jax.experimental import pallas as pl
from jax.experimental.pallas import tpu as pltpu

BN_EPS = 1e-5
BN_SCALE = float(1.0 / (1.0 + BN_EPS) ** 0.5)  # eval BN with default running stats


def _ru(x, m):
    return (x + m - 1) // m * m


# ---------------------------------------------------------------------------
# Fused kernel: GAP -> folded bn1/1x1/BN/ReLU -> x + c1 -> in-VMEM zero pad -> 3x3 conv
# ---------------------------------------------------------------------------

def _ceb_fused_kernel(x_ref, w1_ref, b_ref, w2_ref, o_ref,
                      pad_ref, col_ref, acc_ref, *, h, w):
    # x_ref:  (1, Cin, H*W)  f32     w1_ref: (Cin, Cin) f32 (BN-folded, transposed)
    # b_ref:  (Cin, 1)       f32     w2_ref: (3, TCo, 3*Cin) bf16 (kw-grouped)
    # o_ref:  (1, TCo, H*W)  f32
    # pad_ref:(Cin, flat)    bf16    col_ref: (3*Cin, H*Wp) bf16   acc_ref: (TCo, H*Wp) f32
    cin = x_ref.shape[1]
    hw = h * w
    wp = w + 2
    hwp = h * wp

    # ---- global average pool (lane reduction, f32) ----
    xf = x_ref[0]                                                   # (Cin, H*W) f32
    gap = jnp.sum(xf, axis=1, keepdims=True) * (1.0 / hw)           # (Cin, 1)   f32

    # ---- folded bn1 -> 1x1 conv -> BN -> ReLU (tiny path, kept f32) ----
    # Broadcast gap along lanes so the MXU sees a standard (Cin, H*W) RHS; every output
    # column is identical, which is exactly the broadcast of c1 over spatial positions.
    gap_b = jnp.broadcast_to(gap, (cin, hw))
    c1 = jnp.dot(w1_ref[...], gap_b, preferred_element_type=jnp.float32) + b_ref[...]
    c1 = jnp.maximum(c1, 0.0)                                       # (Cin, H*W) f32

    # ---- feat = x + c1, cast to bf16 for the MXU ----
    feat = (xf + c1).astype(jnp.bfloat16)                           # (Cin, H*W) bf16

    # ---- zero-padded flat spatial buffer built in VMEM (no HBM pad round trip) ----
    pad_ref[...] = jnp.zeros_like(pad_ref)
    for i in range(h):
        pad_ref[:, (i + 1) * wp + 1:(i + 1) * wp + 1 + w] = feat[:, i * w:(i + 1) * w]

    # ---- 3x3 conv: per kh, stack the 3 kw taps (contiguous offset slices of the flat
    #      buffer) into an im2col scratch -> one K = 3*Cin matmul, f32 VMEM accumulator.
    for kh in range(3):
        for kw in range(3):
            off = kh * wp + kw
            col_ref[kw * cin:(kw + 1) * cin, :] = pad_ref[:, off:off + hwp]
        part = jnp.dot(w2_ref[kh], col_ref[...],
                       preferred_element_type=jnp.float32)          # (TCo, H*Wp) f32
        if kh == 0:
            acc_ref[...] = part
        else:
            acc_ref[...] += part

    # ---- drop the 2 junk pad columns per output row; output block stays lane-dense ----
    for i in range(h):
        o_ref[0, :, i * w:(i + 1) * w] = acc_ref[:, i * wp:i * wp + w]


def ceb_fused(x_cm, w1f, bf, w2g, h, w, tco):
    n, cp, hw = x_cm.shape
    coutp = w2g.shape[1]
    wp = w + 2
    flat_alloc = (h + 2) * wp + wp          # covers max tap offset (2*wp+2) + h*wp
    kernel = functools.partial(_ceb_fused_kernel, h=h, w=w)
    return pl.pallas_call(
        kernel,
        out_shape=jax.ShapeDtypeStruct((n, coutp, hw), jnp.float32),
        grid=(n, coutp // tco),
        in_specs=[
            pl.BlockSpec((1, cp, hw), lambda i, j: (i, 0, 0)),       # x (channel-major)
            pl.BlockSpec((cp, cp), lambda i, j: (0, 0)),             # folded 1x1 weight
            pl.BlockSpec((cp, 1), lambda i, j: (0, 0)),              # folded 1x1 bias
            pl.BlockSpec((3, tco, 3 * cp), lambda i, j: (0, j, 0)),  # kw-grouped 3x3 w
        ],
        out_specs=pl.BlockSpec((1, tco, hw), lambda i, j: (i, j, 0)),
        scratch_shapes=[
            pltpu.VMEM((cp, flat_alloc), jnp.bfloat16),   # padded flat feature
            pltpu.VMEM((3 * cp, h * wp), jnp.bfloat16),   # per-kh im2col (K = 3*Cin)
            pltpu.VMEM((tco, h * wp), jnp.float32),       # f32 accumulator
        ],
        compiler_params=pltpu.CompilerParams(
            dimension_semantics=("parallel", "parallel")),
    )(x_cm, w1f, bf, w2g)


# ---------------------------------------------------------------------------
# One-time weight prep (hoisted out of the per-forward path)
# ---------------------------------------------------------------------------

def prepare_weights(w1, w2, bn1=None, conv1_bn=None, eps=BN_EPS):
    """Fold eval-mode BatchNorms into the 1x1 conv and pack weights for the kernel.
      w1 : (Cin, Cout) 1x1 conv weight, indexed [in, out], no bias.
      w2 : (3, 3, Cin, Cout) HWIO 3x3 conv weight, no bias.
      bn1 / conv1_bn: optional (gamma, beta, running_mean, running_var) tuples;
      default None == fresh-init stats (gamma=1, beta=0, mean=0, var=1).
    Returns (w1t_fold f32 (Cp,Cp), b_fold f32 (Cp,1), w2g bf16 (3,Cp,3*Cp)).
    """
    cin, cout = w1.shape
    assert cout == cin and w2.shape == (3, 3, cin, cin)

    def _bn(p):
        if p is None:
            g = jnp.ones((cin,), jnp.float32); b = jnp.zeros((cin,), jnp.float32)
            m = jnp.zeros((cin,), jnp.float32); v = jnp.ones((cin,), jnp.float32)
        else:
            g, b, m, v = [jnp.asarray(t, jnp.float32) for t in p]
        return g / jnp.sqrt(v + eps), b, m

    s1, b1, m1 = _bn(bn1)        # bn1 applied to gap
    s2, b2, m2 = _bn(conv1_bn)   # conv1's BN applied to the 1x1 output
    w1t = w1.T.astype(jnp.float32)                             # (out, in)
    w1t_fold = s2[:, None] * w1t * s1[None, :]
    b_fold = s2 * (w1t @ (b1 - m1 * s1)) - s2 * m2 + b2        # (out,)

    cp = _ru(cin, 128)                                         # lane-dense channels
    w1f = jnp.zeros((cp, cp), jnp.float32).at[:cin, :cin].set(w1t_fold)
    bf = jnp.zeros((cp, 1), jnp.float32).at[:cin, 0].set(b_fold)
    w2p = jnp.zeros((3, 3, cp, cp), jnp.float32).at[:, :, :cin, :cin].set(w2)
    # (kh, kw, ci, co) -> (kh, co, kw*Cp + ci): matches the kernel's im2col row order.
    w2g = jnp.transpose(w2p, (0, 3, 1, 2)).reshape(3, cp, 3 * cp).astype(jnp.bfloat16)
    return w1f, bf, w2g


# ---------------------------------------------------------------------------
# Module forward (eval mode) — NCHW in, NCHW out, no transposes
# ---------------------------------------------------------------------------

def context_embedding_block_forward(x_nchw, w1f, bf, w2g):
    n, c, h, w = x_nchw.shape
    cp = w1f.shape[0]
    x = x_nchw.reshape(n, c, h * w).astype(jnp.float32)   # free trailing-dim merge
    if cp != c:
        x = jnp.pad(x, ((0, 0), (0, cp - c), (0, 0)))
    tco = 256 if (cp % 256 == 0) else 128
    tco = min(tco, cp)
    res = ceb_fused(x, w1f, bf, w2g, h, w, tco)           # (N, Cp, H*W) f32
    if cp != c:
        res = res[:, :c, :]
    return res.reshape(n, c, h, w)                        # already NCHW


# ---------------------------------------------------------------------------
# Pure-JAX reference (f32, default-stats eval BN) for validation
# ---------------------------------------------------------------------------

def reference_forward(x_nchw, w1, w2):
    x = jnp.transpose(x_nchw, (0, 2, 3, 1)).astype(jnp.float32)
    gap = jnp.mean(x, axis=(1, 2), keepdims=True)                 # AdaptiveAvgPool2d(1)
    bn = gap * BN_SCALE                                           # bn1 (eval, default stats)
    c1 = jnp.maximum(jnp.einsum("nijc,cd->nijd", bn, w1) * BN_SCALE, 0.0)
    feat = x + c1
    res = jax.lax.conv_general_dilated(
        feat, w2, window_strides=(1, 1), padding=((1, 1), (1, 1)),
        dimension_numbers=("NHWC", "HWIO", "NHWC"))
    return jnp.transpose(res, (0, 3, 1, 2))


# ---------------------------------------------------------------------------

if __name__ == "__main__":
    in_dim, N, H, W = 128, 2, 16, 16          # CEB is used with 128 channels in BiSeNetV

    key = jax.random.PRNGKey(0)
    k1, k2, kx = jax.random.split(key, 3)
    w1 = jax.random.normal(k1, (in_dim, in_dim), jnp.float32) * (2.0 / in_dim) ** 0.5
    w2 = jax.random.normal(k2, (3, 3, in_dim, in_dim), jnp.float32) * (2.0 / (9 * in_dim)) ** 0.5
    x = jax.random.normal(kx, (N, in_dim, H, W), jnp.float32)     # NCHW like PyTorch

    packed = prepare_weights(w1, w2)          # once, outside the per-forward jit path
    packed = tuple(jax.block_until_ready(p) for p in packed)

    fwd = jax.jit(context_embedding_block_forward)
    out = jax.block_until_ready(fwd(x, *packed))

    assert out.shape == (N, in_dim, H, W), out.shape
    assert bool(jnp.all(jnp.isfinite(out)))

    ref = jax.block_until_ready(reference_forward(x, w1, w2))
    err = float(jnp.max(jnp.abs(out - ref)))
    assert err < 0.15, f"max abs error vs reference: {err}"

    print("KERNEL_OK")
</pallas_src>

<mosaic_0001>
module attributes {stable_mosaic.version = 11 : i64} {
  func.func @_ceb_fused_kernel(%arg0: i32, %arg1: i32, %arg2: memref<1x128x256xf32, #tpu.memory_space<vmem>>, %arg3: memref<128x128xf32, #tpu.memory_space<vmem>>, %arg4: memref<128x1xf32, #tpu.memory_space<vmem>>, %arg5: memref<3x128x384xbf16, #tpu.memory_space<vmem>>, %arg6: memref<1x128x256xf32, #tpu.memory_space<vmem>>, %arg7: memref<128x342xbf16, #tpu.memory_space<vmem>>, %arg8: memref<384x288xbf16, #tpu.memory_space<vmem>>, %arg9: memref<128x288xf32, #tpu.memory_space<vmem>>) attributes {dimension_semantics = [#tpu.dimension_semantics<parallel>, #tpu.dimension_semantics<parallel>], iteration_bounds = array<i64: 2, 1>, scalar_prefetch = 0 : i64, scratch_operands = 3 : i64, tpu.core_type = #tpu.core_type<tc>, window_params = [{transform_indices = @transform_0, window_bounds = array<i64: 1, 128, 256>}, {pipeline_mode = #tpu.pipeline_mode<synchronous>, transform_indices = @transform_1, window_bounds = array<i64: 128, 128>}, {pipeline_mode = #tpu.pipeline_mode<synchronous>, transform_indices = @transform_2, window_bounds = array<i64: 128, 1>}, {transform_indices = @transform_3, window_bounds = array<i64: 3, 128, 384>}, {transform_indices = @transform_4, window_bounds = array<i64: 1, 128, 256>}]} {
    %c0 = arith.constant 0 : index
    %c0_0 = arith.constant 0 : index
    %c0_1 = arith.constant 0 : index
    %0 = vector.load %arg2[%c0, %c0_0, %c0_1] : memref<1x128x256xf32, #tpu.memory_space<vmem>>, vector<1x128x256xf32>
    %1 = vector.shape_cast %0 : vector<1x128x256xf32> to vector<128x256xf32>
    %cst = arith.constant dense<0.000000e+00> : vector<128xf32>
    %2 = vector.multi_reduction <add>, %1, %cst [1] : vector<128x256xf32> to vector<128xf32>
    %3 = vector.shape_cast %2 : vector<128xf32> to vector<128x1xf32>
    %cst_2 = arith.constant 3.906250e-03 : f32
    %4 = vector.broadcast %cst_2 : f32 to vector<128x1xf32>
    %5 = arith.mulf %3, %4 : vector<128x1xf32>
    %6 = vector.shape_cast %5 : vector<128x1xf32> to vector<128x1xf32>
    %7 = vector.broadcast %6 : vector<128x1xf32> to vector<128x256xf32>
    %c0_3 = arith.constant 0 : index
    %c0_4 = arith.constant 0 : index
    %8 = vector.load %arg3[%c0_3, %c0_4] : memref<128x128xf32, #tpu.memory_space<vmem>>, vector<128x128xf32>
    %cst_5 = arith.constant dense<0.000000e+00> : vector<128x256xf32>
    %9 = tpu.matmul %8, %7, %cst_5 {dimension_numbers = #tpu.dot_dimension_numbers<[1], [0], [0], [1], [0, 0, 1, 1], [], []>} : vector<128x128xf32>, vector<128x256xf32>, vector<128x256xf32> -> vector<128x256xf32>
    %c0_6 = arith.constant 0 : index
    %c0_7 = arith.constant 0 : index
    %10 = vector.load %arg4[%c0_6, %c0_7] : memref<128x1xf32, #tpu.memory_space<vmem>>, vector<128x1xf32>
    %11 = vector.broadcast %10 : vector<128x1xf32> to vector<128x256xf32>
    %12 = arith.addf %9, %11 : vector<128x256xf32>
    %cst_8 = arith.constant 0.000000e+00 : f32
    %13 = vector.broadcast %cst_8 : f32 to vector<128x256xf32>
    %14 = arith.maximumf %12, %13 : vector<128x256xf32>
    %15 = arith.addf %1, %14 : vector<128x256xf32>
    %16 = arith.truncf %15 : vector<128x256xf32> to vector<128x256xbf16>
    %cst_9 = arith.constant 0.000000e+00 : bf16
    %17 = vector.broadcast %cst_9 : bf16 to vector<128x342xbf16>
    %c0_10 = arith.constant 0 : index
    %c0_11 = arith.constant 0 : index
    %18 = vector.load %arg7[%c0_10, %c0_11] : memref<128x342xbf16, #tpu.memory_space<vmem>>, vector<128x342xbf16>
    tpu.vector_store %arg7[%c0_10, %c0_11], %17 {strides = array<i32>} : memref<128x342xbf16, #tpu.memory_space<vmem>>, vector<128x342xbf16>,
    %19 = vector.extract_strided_slice %16 {offsets = [0, 0], sizes = [128, 16], strides = [1, 1]} : vector<128x256xbf16> to vector<128x16xbf16>
    %c0_12 = arith.constant 0 : index
    %c19 = arith.constant 19 : index
    %20 = vector.load %arg7[%c0_12, %c19] : memref<128x342xbf16, #tpu.memory_space<vmem>>, vector<128x16xbf16>
    tpu.vector_store %arg7[%c0_12, %c19], %19 {strides = array<i32>} : memref<128x342xbf16, #tpu.memory_space<vmem>>, vector<128x16xbf16>,
    %21 = vector.extract_strided_slice %16 {offsets = [0, 16], sizes = [128, 16], strides = [1, 1]} : vector<128x256xbf16> to vector<128x16xbf16>
    %c0_13 = arith.constant 0 : index
    %c37 = arith.constant 37 : index
    %22 = vector.load %arg7[%c0_13, %c37] : memref<128x342xbf16, #tpu.memory_space<vmem>>, vector<128x16xbf16>
    tpu.vector_store %arg7[%c0_13, %c37], %21 {strides = array<i32>} : memref<128x342xbf16, #tpu.memory_space<vmem>>, vector<128x16xbf16>,
    %23 = vector.extract_strided_slice %16 {offsets = [0, 32], sizes = [128, 16], strides = [1, 1]} : vector<128x256xbf16> to vector<128x16xbf16>
    %c0_14 = arith.constant 0 : index
    %c55 = arith.constant 55 : index
    %24 = vector.load %arg7[%c0_14, %c55] : memref<128x342xbf16, #tpu.memory_space<vmem>>, vector<128x16xbf16>
    tpu.vector_store %arg7[%c0_14, %c55], %23 {strides = array<i32>} : memref<128x342xbf16, #tpu.memory_space<vmem>>, vector<128x16xbf16>,
    %25 = vector.extract_strided_slice %16 {offsets = [0, 48], sizes = [128, 16], strides = [1, 1]} : vector<128x256xbf16> to vector<128x16xbf16>
    %c0_15 = arith.constant 0 : index
    %c73 = arith.constant 73 : index
    %26 = vector.load %arg7[%c0_15, %c73] : memref<128x342xbf16, #tpu.memory_space<vmem>>, vector<128x16xbf16>
    tpu.vector_store %arg7[%c0_15, %c73], %25 {strides = array<i32>} : memref<128x342xbf16, #tpu.memory_space<vmem>>, vector<128x16xbf16>,
    %27 = vector.extract_strided_slice %16 {offsets = [0, 64], sizes = [128, 16], strides = [1, 1]} : vector<128x256xbf16> to vector<128x16xbf16>
    %c0_16 = arith.constant 0 : index
    %c91 = arith.constant 91 : index
    %28 = vector.load %arg7[%c0_16, %c91] : memref<128x342xbf16, #tpu.memory_space<vmem>>, vector<128x16xbf16>
    tpu.vector_store %arg7[%c0_16, %c91], %27 {strides = array<i32>} : memref<128x342xbf16, #tpu.memory_space<vmem>>, vector<128x16xbf16>,
    %29 = vector.extract_strided_slice %16 {offsets = [0, 80], sizes = [128, 16], strides = [1, 1]} : vector<128x256xbf16> to vector<128x16xbf16>
    %c0_17 = arith.constant 0 : index
    %c109 = arith.constant 109 : index
    %30 = vector.load %arg7[%c0_17, %c109] : memref<128x342xbf16, #tpu.memory_space<vmem>>, vector<128x16xbf16>
    tpu.vector_store %arg7[%c0_17, %c109], %29 {strides = array<i32>} : memref<128x342xbf16, #tpu.memory_space<vmem>>, vector<128x16xbf16>,
    %31 = vector.extract_strided_slice %16 {offsets = [0, 96], sizes = [128, 16], strides = [1, 1]} : vector<128x256xbf16> to vector<128x16xbf16>
    %c0_18 = arith.constant 0 : index
    %c127 = arith.constant 127 : index
    %32 = vector.load %arg7[%c0_18, %c127] : memref<128x342xbf16, #tpu.memory_space<vmem>>, vector<128x16xbf16>
    tpu.vector_store %arg7[%c0_18, %c127], %31 {strides = array<i32>} : memref<128x342xbf16, #tpu.memory_space<vmem>>, vector<128x16xbf16>,
    %33 = vector.extract_strided_slice %16 {offsets = [0, 112], sizes = [128, 16], strides = [1, 1]} : vector<128x256xbf16> to vector<128x16xbf16>
    %c0_19 = arith.constant 0 : index
    %c145 = arith.constant 145 : index
    %34 = vector.load %arg7[%c0_19, %c145] : memref<128x342xbf16, #tpu.memory_space<vmem>>, vector<128x16xbf16>
    tpu.vector_store %arg7[%c0_19, %c145], %33 {strides = array<i32>} : memref<128x342xbf16, #tpu.memory_space<vmem>>, vector<128x16xbf16>,
    %35 = vector.extract_strided_slice %16 {offsets = [0, 128], sizes = [128, 16], strides = [1, 1]} : vector<128x256xbf16> to vector<128x16xbf16>
    %c0_20 = arith.constant 0 : index
    %c163 = arith.constant 163 : index
    %36 = vector.load %arg7[%c0_20, %c163] : memref<128x342xbf16, #tpu.memory_space<vmem>>, vector<128x16xbf16>
    tpu.vector_store %arg7[%c0_20, %c163], %35 {strides = array<i32>} : memref<128x342xbf16, #tpu.memory_space<vmem>>, vector<128x16xbf16>,
    %37 = vector.extract_strided_slice %16 {offsets = [0, 144], sizes = [128, 16], strides = [1, 1]} : vector<128x256xbf16> to vector<128x16xbf16>
    %c0_21 = arith.constant 0 : index
    %c181 = arith.constant 181 : index
    %38 = vector.load %arg7[%c0_21, %c181] : memref<128x342xbf16, #tpu.memory_space<vmem>>, vector<128x16xbf16>
    tpu.vector_store %arg7[%c0_21, %c181], %37 {strides = array<i32>} : memref<128x342xbf16, #tpu.memory_space<vmem>>, vector<128x16xbf16>,
    %39 = vector.extract_strided_slice %16 {offsets = [0, 160], sizes = [128, 16], strides = [1, 1]} : vector<128x256xbf16> to vector<128x16xbf16>
    %c0_22 = arith.constant 0 : index
    %c199 = arith.constant 199 : index
    %40 = vector.load %arg7[%c0_22, %c199] : memref<128x342xbf16, #tpu.memory_space<vmem>>, vector<128x16xbf16>
    tpu.vector_store %arg7[%c0_22, %c199], %39 {strides = array<i32>} : memref<128x342xbf16, #tpu.memory_space<vmem>>, vector<128x16xbf16>,
    %41 = vector.extract_strided_slice %16 {offsets = [0, 176], sizes = [128, 16], strides = [1, 1]} : vector<128x256xbf16> to vector<128x16xbf16>
    %c0_23 = arith.constant 0 : index
    %c217 = arith.constant 217 : index
    %42 = vector.load %arg7[%c0_23, %c217] : memref<128x342xbf16, #tpu.memory_space<vmem>>, vector<128x16xbf16>
    tpu.vector_store %arg7[%c0_23, %c217], %41 {strides = array<i32>} : memref<128x342xbf16, #tpu.memory_space<vmem>>, vector<128x16xbf16>,
    %43 = vector.extract_strided_slice %16 {offsets = [0, 192], sizes = [128, 16], strides = [1, 1]} : vector<128x256xbf16> to vector<128x16xbf16>
    %c0_24 = arith.constant 0 : index
    %c235 = arith.constant 235 : index
    %44 = vector.load %arg7[%c0_24, %c235] : memref<128x342xbf16, #tpu.memory_space<vmem>>, vector<128x16xbf16>
    tpu.vector_store %arg7[%c0_24, %c235], %43 {strides = array<i32>} : memref<128x342xbf16, #tpu.memory_space<vmem>>, vector<128x16xbf16>,
    %45 = vector.extract_strided_slice %16 {offsets = [0, 208], sizes = [128, 16], strides = [1, 1]} : vector<128x256xbf16> to vector<128x16xbf16>
    %c0_25 = arith.constant 0 : index
    %c253 = arith.constant 253 : index
    %46 = vector.load %arg7[%c0_25, %c253] : memref<128x342xbf16, #tpu.memory_space<vmem>>, vector<128x16xbf16>
    tpu.vector_store %arg7[%c0_25, %c253], %45 {strides = array<i32>} : memref<128x342xbf16, #tpu.memory_space<vmem>>, vector<128x16xbf16>,
    %47 = vector.extract_strided_slice %16 {offsets = [0, 224], sizes = [128, 16], strides = [1, 1]} : vector<128x256xbf16> to vector<128x16xbf16>
    %c0_26 = arith.constant 0 : index
    %c271 = arith.constant 271 : index
    %48 = vector.load %arg7[%c0_26, %c271] : memref<128x342xbf16, #tpu.memory_space<vmem>>, vector<128x16xbf16>
    tpu.vector_store %arg7[%c0_26, %c271], %47 {strides = array<i32>} : memref<128x342xbf16, #tpu.memory_space<vmem>>, vector<128x16xbf16>,
    %49 = vector.extract_strided_slice %16 {offsets = [0, 240], sizes = [128, 16], strides = [1, 1]} : vector<128x256xbf16> to vector<128x16xbf16>
    %c0_27 = arith.constant 0 : index
    %c289 = arith.constant 289 : index
    %50 = vector.load %arg7[%c0_27, %c289] : memref<128x342xbf16, #tpu.memory_space<vmem>>, vector<128x16xbf16>
    tpu.vector_store %arg7[%c0_27, %c289], %49 {strides = array<i32>} : memref<128x342xbf16, #tpu.memory_space<vmem>>, vector<128x16xbf16>,
    %c0_28 = arith.constant 0 : index
    %c0_29 = arith.constant 0 : index
    %51 = vector.load %arg7[%c0_28, %c0_29] : memref<128x342xbf16, #tpu.memory_space<vmem>>, vector<128x288xbf16>
    %c0_30 = arith.constant 0 : index
    %c0_31 = arith.constant 0 : index
    %52 = vector.load %arg8[%c0_30, %c0_31] : memref<384x288xbf16, #tpu.memory_space<vmem>>, vector<128x288xbf16>
    tpu.vector_store %arg8[%c0_30, %c0_31], %51 {strides = array<i32>} : memref<384x288xbf16, #tpu.memory_space<vmem>>, vector<128x288xbf16>,
    %c0_32 = arith.constant 0 : index
    %c1 = arith.constant 1 : index
    %53 = vector.load %arg7[%c0_32, %c1] : memref<128x342xbf16, #tpu.memory_space<vmem>>, vector<128x288xbf16>
    %c128 = arith.constant 128 : index
    %c0_33 = arith.constant 0 : index
    %54 = vector.load %arg8[%c128, %c0_33] : memref<384x288xbf16, #tpu.memory_space<vmem>>, vector<128x288xbf16>
    tpu.vector_store %arg8[%c128, %c0_33], %53 {strides = array<i32>} : memref<384x288xbf16, #tpu.memory_space<vmem>>, vector<128x288xbf16>,
    %c0_34 = arith.constant 0 : index
    %c2 = arith.constant 2 : index
    %55 = vector.load %arg7[%c0_34, %c2] : memref<128x342xbf16, #tpu.memory_space<vmem>>, vector<128x288xbf16>
    %c256 = arith.constant 256 : index
    %c0_35 = arith.constant 0 : index
    %56 = vector.load %arg8[%c256, %c0_35] : memref<384x288xbf16, #tpu.memory_space<vmem>>, vector<128x288xbf16>
    tpu.vector_store %arg8[%c256, %c0_35], %55 {strides = array<i32>} : memref<384x288xbf16, #tpu.memory_space<vmem>>, vector<128x288xbf16>,
    %c0_36 = arith.constant 0 : index
    %c0_37 = arith.constant 0 : index
    %c0_38 = arith.constant 0 : index
    %57 = vector.load %arg5[%c0_36, %c0_37, %c0_38] : memref<3x128x384xbf16, #tpu.memory_space<vmem>>, vector<1x128x384xbf16>
    %58 = vector.shape_cast %57 : vector<1x128x384xbf16> to vector<128x384xbf16>
    %c0_39 = arith.constant 0 : index
    %c0_40 = arith.constant 0 : index
    %59 = vector.load %arg8[%c0_39, %c0_40] : memref<384x288xbf16, #tpu.memory_space<vmem>>, vector<384x288xbf16>
    %cst_41 = arith.constant dense<0.000000e+00> : vector<128x288xf32>
    %60 = tpu.matmul %58, %59, %cst_41 {dimension_numbers = #tpu.dot_dimension_numbers<[1], [0], [0], [1], [0, 0, 1, 1], [], []>} : vector<128x384xbf16>, vector<384x288xbf16>, vector<128x288xf32> -> vector<128x288xf32>
    %c0_42 = arith.constant 0 : index
    %c0_43 = arith.constant 0 : index
    %61 = vector.load %arg9[%c0_42, %c0_43] : memref<128x288xf32, #tpu.memory_space<vmem>>, vector<128x288xf32>
    tpu.vector_store %arg9[%c0_42, %c0_43], %60 {strides = array<i32>} : memref<128x288xf32, #tpu.memory_space<vmem>>, vector<128x288xf32>,
    %c0_44 = arith.constant 0 : index
    %c18 = arith.constant 18 : index
    %62 = vector.load %arg7[%c0_44, %c18] : memref<128x342xbf16, #tpu.memory_space<vmem>>, vector<128x288xbf16>
    %c0_45 = arith.constant 0 : index
    %c0_46 = arith.constant 0 : index
    %63 = vector.load %arg8[%c0_45, %c0_46] : memref<384x288xbf16, #tpu.memory_space<vmem>>, vector<128x288xbf16>
    tpu.vector_store %arg8[%c0_45, %c0_46], %62 {strides = array<i32>} : memref<384x288xbf16, #tpu.memory_space<vmem>>, vector<128x288xbf16>,
    %c0_47 = arith.constant 0 : index
    %c19_48 = arith.constant 19 : index
    %64 = vector.load %arg7[%c0_47, %c19_48] : memref<128x342xbf16, #tpu.memory_space<vmem>>, vector<128x288xbf16>
    %c128_49 = arith.constant 128 : index
    %c0_50 = arith.constant 0 : index
    %65 = vector.load %arg8[%c128_49, %c0_50] : memref<384x288xbf16, #tpu.memory_space<vmem>>, vector<128x288xbf16>
    tpu.vector_store %arg8[%c128_49, %c0_50], %64 {strides = array<i32>} : memref<384x288xbf16, #tpu.memory_space<vmem>>, vector<128x288xbf16>,
    %c0_51 = arith.constant 0 : index
    %c20 = arith.constant 20 : index
    %66 = vector.load %arg7[%c0_51, %c20] : memref<128x342xbf16, #tpu.memory_space<vmem>>, vector<128x288xbf16>
    %c256_52 = arith.constant 256 : index
    %c0_53 = arith.constant 0 : index
    %67 = vector.load %arg8[%c256_52, %c0_53] : memref<384x288xbf16, #tpu.memory_space<vmem>>, vector<128x288xbf16>
    tpu.vector_store %arg8[%c256_52, %c0_53], %66 {strides = array<i32>} : memref<384x288xbf16, #tpu.memory_space<vmem>>, vector<128x288xbf16>,
    %c1_54 = arith.constant 1 : index
    %c0_55 = arith.constant 0 : index
    %c0_56 = arith.constant 0 : index
    %68 = vector.load %arg5[%c1_54, %c0_55, %c0_56] : memref<3x128x384xbf16, #tpu.memory_space<vmem>>, vector<1x128x384xbf16>
    %69 = vector.shape_cast %68 : vector<1x128x384xbf16> to vector<128x384xbf16>
    %c0_57 = arith.constant 0 : index
    %c0_58 = arith.constant 0 : index
    %70 = vector.load %arg8[%c0_57, %c0_58] : memref<384x288xbf16, #tpu.memory_space<vmem>>, vector<384x288xbf16>
    %cst_59 = arith.constant dense<0.000000e+00> : vector<128x288xf32>
    %71 = tpu.matmul %69, %70, %cst_59 {dimension_numbers = #tpu.dot_dimension_numbers<[1], [0], [0], [1], [0, 0, 1, 1], [], []>} : vector<128x384xbf16>, vector<384x288xbf16>, vector<128x288xf32> -> vector<128x288xf32>
    %c0_60 = arith.constant 0 : index
    %c0_61 = arith.constant 0 : index
    %72 = vector.load %arg9[%c0_60, %c0_61] : memref<128x288xf32, #tpu.memory_space<vmem>>, vector<128x288xf32>
    %73 = arith.addf %72, %71 : vector<128x288xf32>
    %c0_62 = arith.constant 0 : index
    %c0_63 = arith.constant 0 : index
    %74 = vector.load %arg9[%c0_62, %c0_63] : memref<128x288xf32, #tpu.memory_space<vmem>>, vector<128x288xf32>
    tpu.vector_store %arg9[%c0_62, %c0_63], %73 {strides = array<i32>} : memref<128x288xf32, #tpu.memory_space<vmem>>, vector<128x288xf32>,
    %c0_64 = arith.constant 0 : index
    %c36 = arith.constant 36 : index
    %75 = vector.load %arg7[%c0_64, %c36] : memref<128x342xbf16, #tpu.memory_space<vmem>>, vector<128x288xbf16>
    %c0_65 = arith.constant 0 : index
    %c0_66 = arith.constant 0 : index
    %76 = vector.load %arg8[%c0_65, %c0_66] : memref<384x288xbf16, #tpu.memory_space<vmem>>, vector<128x288xbf16>
    tpu.vector_store %arg8[%c0_65, %c0_66], %75 {strides = array<i32>} : memref<384x288xbf16, #tpu.memory_space<vmem>>, vector<128x288xbf16>,
    %c0_67 = arith.constant 0 : index
    %c37_68 = arith.constant 37 : index
    %77 = vector.load %arg7[%c0_67, %c37_68] : memref<128x342xbf16, #tpu.memory_space<vmem>>, vector<128x288xbf16>
    %c128_69 = arith.constant 128 : index
    %c0_70 = arith.constant 0 : index
    %78 = vector.load %arg8[%c128_69, %c0_70] : memref<384x288xbf16, #tpu.memory_space<vmem>>, vector<128x288xbf16>
    tpu.vector_store %arg8[%c128_69, %c0_70], %77 {strides = array<i32>} : memref<384x288xbf16, #tpu.memory_space<vmem>>, vector<128x288xbf16>,
    %c0_71 = arith.constant 0 : index
    %c38 = arith.constant 38 : index
    %79 = vector.load %arg7[%c0_71, %c38] : memref<128x342xbf16, #tpu.memory_space<vmem>>, vector<128x288xbf16>
    %c256_72 = arith.constant 256 : index
    %c0_73 = arith.constant 0 : index
    %80 = vector.load %arg8[%c256_72, %c0_73] : memref<384x288xbf16, #tpu.memory_space<vmem>>, vector<128x288xbf16>
    tpu.vector_store %arg8[%c256_72, %c0_73], %79 {strides = array<i32>} : memref<384x288xbf16, #tpu.memory_space<vmem>>, vector<128x288xbf16>,
    %c2_74 = arith.constant 2 : index
    %c0_75 = arith.constant 0 : index
    %c0_76 = arith.constant 0 : index
    %81 = vector.load %arg5[%c2_74, %c0_75, %c0_76] : memref<3x128x384xbf16, #tpu.memory_space<vmem>>, vector<1x128x384xbf16>
    %82 = vector.shape_cast %81 : vector<1x128x384xbf16> to vector<128x384xbf16>
    %c0_77 = arith.constant 0 : index
    %c0_78 = arith.constant 0 : index
    %83 = vector.load %arg8[%c0_77, %c0_78] : memref<384x288xbf16, #tpu.memory_space<vmem>>, vector<384x288xbf16>
    %cst_79 = arith.constant dense<0.000000e+00> : vector<128x288xf32>
    %84 = tpu.matmul %82, %83, %cst_79 {dimension_numbers = #tpu.dot_dimension_numbers<[1], [0], [0], [1], [0, 0, 1, 1], [], []>} : vector<128x384xbf16>, vector<384x288xbf16>, vector<128x288xf32> -> vector<128x288xf32>
    %c0_80 = arith.constant 0 : index
    %c0_81 = arith.constant 0 : index
    %85 = vector.load %arg9[%c0_80, %c0_81] : memref<128x288xf32, #tpu.memory_space<vmem>>, vector<128x288xf32>
    %86 = arith.addf %85, %84 : vector<128x288xf32>
    %c0_82 = arith.constant 0 : index
    %c0_83 = arith.constant 0 : index
    %87 = vector.load %arg9[%c0_82, %c0_83] : memref<128x288xf32, #tpu.memory_space<vmem>>, vector<128x288xf32>
    tpu.vector_store %arg9[%c0_82, %c0_83], %86 {strides = array<i32>} : memref<128x288xf32, #tpu.memory_space<vmem>>, vector<128x288xf32>,
    %c0_84 = arith.constant 0 : index
    %c0_85 = arith.constant 0 : index
    %88 = vector.load %arg9[%c0_84, %c0_85] : memref<128x288xf32, #tpu.memory_space<vmem>>, vector<128x16xf32>
    %c0_86 = arith.constant 0 : index
    %c0_87 = arith.constant 0 : index
    %c0_88 = arith.constant 0 : index
    %89 = vector.load %arg6[%c0_86, %c0_87, %c0_88] : memref<1x128x256xf32, #tpu.memory_space<vmem>>, vector<1x128x16xf32>
    %90 = vector.shape_cast %89 : vector<1x128x16xf32> to vector<128x16xf32>
    %91 = vector.shape_cast %88 : vector<128x16xf32> to vector<1x128x16xf32>
    tpu.vector_store %arg6[%c0_86, %c0_87, %c0_88], %91 {strides = array<i32>} : memref<1x128x256xf32, #tpu.memory_space<vmem>>, vector<1x128x16xf32>,
    %c0_89 = arith.constant 0 : index
    %c18_90 = arith.constant 18 : index
    %92 = vector.load %arg9[%c0_89, %c18_90] : memref<128x288xf32, #tpu.memory_space<vmem>>, vector<128x16xf32>
    %c0_91 = arith.constant 0 : index
    %c0_92 = arith.constant 0 : index
    %c16 = arith.constant 16 : index
    %93 = vector.load %arg6[%c0_91, %c0_92, %c16] : memref<1x128x256xf32, #tpu.memory_space<vmem>>, vector<1x128x16xf32>
    %94 = vector.shape_cast %93 : vector<1x128x16xf32> to vector<128x16xf32>
    %95 = vector.shape_cast %92 : vector<128x16xf32> to vector<1x128x16xf32>
    tpu.vector_store %arg6[%c0_91, %c0_92, %c16], %95 {strides = array<i32>} : memref<1x128x256xf32, #tpu.memory_space<vmem>>, vector<1x128x16xf32>,
    %c0_93 = arith.constant 0 : index
    %c36_94 = arith.constant 36 : index
    %96 = vector.load %arg9[%c0_93, %c36_94] : memref<128x288xf32, #tpu.memory_space<vmem>>, vector<128x16xf32>
    %c0_95 = arith.constant 0 : index
    %c0_96 = arith.constant 0 : index
    %c32 = arith.constant 32 : index
    %97 = vector.load %arg6[%c0_95, %c0_96, %c32] : memref<1x128x256xf32, #tpu.memory_space<vmem>>, vector<1x128x16xf32>
    %98 = vector.shape_cast %97 : vector<1x128x16xf32> to vector<128x16xf32>
    %99 = vector.shape_cast %96 : vector<128x16xf32> to vector<1x128x16xf32>
    tpu.vector_store %arg6[%c0_95, %c0_96, %c32], %99 {strides = array<i32>} : memref<1x128x256xf32, #tpu.memory_space<vmem>>, vector<1x128x16xf32>,
    %c0_97 = arith.constant 0 : index
    %c54 = arith.constant 54 : index
    %100 = vector.load %arg9[%c0_97, %c54] : memref<128x288xf32, #tpu.memory_space<vmem>>, vector<128x16xf32>
    %c0_98 = arith.constant 0 : index
    %c0_99 = arith.constant 0 : index
    %c48 = arith.constant 48 : index
    %101 = vector.load %arg6[%c0_98, %c0_99, %c48] : memref<1x128x256xf32, #tpu.memory_space<vmem>>, vector<1x128x16xf32>
    %102 = vector.shape_cast %101 : vector<1x128x16xf32> to vector<128x16xf32>
    %103 = vector.shape_cast %100 : vector<128x16xf32> to vector<1x128x16xf32>
    tpu.vector_store %arg6[%c0_98, %c0_99, %c48], %103 {strides = array<i32>} : memref<1x128x256xf32, #tpu.memory_space<vmem>>, vector<1x128x16xf32>,
    %c0_100 = arith.constant 0 : index
    %c72 = arith.constant 72 : index
    %104 = vector.load %arg9[%c0_100, %c72] : memref<128x288xf32, #tpu.memory_space<vmem>>, vector<128x16xf32>
    %c0_101 = arith.constant 0 : index
    %c0_102 = arith.constant 0 : index
    %c64 = arith.constant 64 : index
    %105 = vector.load %arg6[%c0_101, %c0_102, %c64] : memref<1x128x256xf32, #tpu.memory_space<vmem>>, vector<1x128x16xf32>
    %106 = vector.shape_cast %105 : vector<1x128x16xf32> to vector<128x16xf32>
    %107 = vector.shape_cast %104 : vector<128x16xf32> to vector<1x128x16xf32>
    tpu.vector_store %arg6[%c0_101, %c0_102, %c64], %107 {strides = array<i32>} : memref<1x128x256xf32, #tpu.memory_space<vmem>>, vector<1x128x16xf32>,
    %c0_103 = arith.constant 0 : index
    %c90 = arith.constant 90 : index
    %108 = vector.load %arg9[%c0_103, %c90] : memref<128x288xf32, #tpu.memory_space<vmem>>, vector<128x16xf32>
    %c0_104 = arith.constant 0 : index
    %c0_105 = arith.constant 0 : index
    %c80 = arith.constant 80 : index
    %109 = vector.load %arg6[%c0_104, %c0_105, %c80] : memref<1x128x256xf32, #tpu.memory_space<vmem>>, vector<1x128x16xf32>
    %110 = vector.shape_cast %109 : vector<1x128x16xf32> to vector<128x16xf32>
    %111 = vector.shape_cast %108 : vector<128x16xf32> to vector<1x128x16xf32>
    tpu.vector_store %arg6[%c0_104, %c0_105, %c80], %111 {strides = array<i32>} : memref<1x128x256xf32, #tpu.memory_space<vmem>>, vector<1x128x16xf32>,
    %c0_106 = arith.constant 0 : index
    %c108 = arith.constant 108 : index
    %112 = vector.load %arg9[%c0_106, %c108] : memref<128x288xf32, #tpu.memory_space<vmem>>, vector<128x16xf32>
    %c0_107 = arith.constant 0 : index
    %c0_108 = arith.constant 0 : index
    %c96 = arith.constant 96 : index
    %113 = vector.load %arg6[%c0_107, %c0_108, %c96] : memref<1x128x256xf32, #tpu.memory_space<vmem>>, vector<1x128x16xf32>
    %114 = vector.shape_cast %113 : vector<1x128x16xf32> to vector<128x16xf32>
    %115 = vector.shape_cast %112 : vector<128x16xf32> to vector<1x128x16xf32>
    tpu.vector_store %arg6[%c0_107, %c0_108, %c96], %115 {strides = array<i32>} : memref<1x128x256xf32, #tpu.memory_space<vmem>>, vector<1x128x16xf32>,
    %c0_109 = arith.constant 0 : index
    %c126 = arith.constant 126 : index
    %116 = vector.load %arg9[%c0_109, %c126] : memref<128x288xf32, #tpu.memory_space<vmem>>, vector<128x16xf32>
    %c0_110 = arith.constant 0 : index
    %c0_111 = arith.constant 0 : index
    %c112 = arith.constant 112 : index
    %117 = vector.load %arg6[%c0_110, %c0_111, %c112] : memref<1x128x256xf32, #tpu.memory_space<vmem>>, vector<1x128x16xf32>
    %118 = vector.shape_cast %117 : vector<1x128x16xf32> to vector<128x16xf32>
    %119 = vector.shape_cast %116 : vector<128x16xf32> to vector<1x128x16xf32>
    tpu.vector_store %arg6[%c0_110, %c0_111, %c112], %119 {strides = array<i32>} : memref<1x128x256xf32, #tpu.memory_space<vmem>>, vector<1x128x16xf32>,
    %c0_112 = arith.constant 0 : index
    %c144 = arith.constant 144 : index
    %120 = vector.load %arg9[%c0_112, %c144] : memref<128x288xf32, #tpu.memory_space<vmem>>, vector<128x16xf32>
    %c0_113 = arith.constant 0 : index
    %c0_114 = arith.constant 0 : index
    %c128_115 = arith.constant 128 : index
    %121 = vector.load %arg6[%c0_113, %c0_114, %c128_115] : memref<1x128x256xf32, #tpu.memory_space<vmem>>, vector<1x128x16xf32>
    %122 = vector.shape_cast %121 : vector<1x128x16xf32> to vector<128x16xf32>
    %123 = vector.shape_cast %120 : vector<128x16xf32> to vector<1x128x16xf32>
    tpu.vector_store %arg6[%c0_113, %c0_114, %c128_115], %123 {strides = array<i32>} : memref<1x128x256xf32, #tpu.memory_space<vmem>>, vector<1x128x16xf32>,
    %c0_116 = arith.constant 0 : index
    %c162 = arith.constant 162 : index
    %124 = vector.load %arg9[%c0_116, %c162] : memref<128x288xf32, #tpu.memory_space<vmem>>, vector<128x16xf32>
    %c0_117 = arith.constant 0 : index
    %c0_118 = arith.constant 0 : index
    %c144_119 = arith.constant 144 : index
    %125 = vector.load %arg6[%c0_117, %c0_118, %c144_119] : memref<1x128x256xf32, #tpu.memory_space<vmem>>, vector<1x128x16xf32>
    %126 = vector.shape_cast %125 : vector<1x128x16xf32> to vector<128x16xf32>
    %127 = vector.shape_cast %124 : vector<128x16xf32> to vector<1x128x16xf32>
    tpu.vector_store %arg6[%c0_117, %c0_118, %c144_119], %127 {strides = array<i32>} : memref<1x128x256xf32, #tpu.memory_space<vmem>>, vector<1x128x16xf32>,
    %c0_120 = arith.constant 0 : index
    %c180 = arith.constant 180 : index
    %128 = vector.load %arg9[%c0_120, %c180] : memref<128x288xf32, #tpu.memory_space<vmem>>, vector<128x16xf32>
    %c0_121 = arith.constant 0 : index
    %c0_122 = arith.constant 0 : index
    %c160 = arith.constant 160 : index
    %129 = vector.load %arg6[%c0_121, %c0_122, %c160] : memref<1x128x256xf32, #tpu.memory_space<vmem>>, vector<1x128x16xf32>
    %130 = vector.shape_cast %129 : vector<1x128x16xf32> to vector<128x16xf32>
    %131 = vector.shape_cast %128 : vector<128x16xf32> to vector<1x128x16xf32>
    tpu.vector_store %arg6[%c0_121, %c0_122, %c160], %131 {strides = array<i32>} : memref<1x128x256xf32, #tpu.memory_space<vmem>>, vector<1x128x16xf32>,
    %c0_123 = arith.constant 0 : index
    %c198 = arith.constant 198 : index
    %132 = vector.load %arg9[%c0_123, %c198] : memref<128x288xf32, #tpu.memory_space<vmem>>, vector<128x16xf32>
    %c0_124 = arith.constant 0 : index
    %c0_125 = arith.constant 0 : index
    %c176 = arith.constant 176 : index
    %133 = vector.load %arg6[%c0_124, %c0_125, %c176] : memref<1x128x256xf32, #tpu.memory_space<vmem>>, vector<1x128x16xf32>
    %134 = vector.shape_cast %133 : vector<1x128x16xf32> to vector<128x16xf32>
    %135 = vector.shape_cast %132 : vector<128x16xf32> to vector<1x128x16xf32>
    tpu.vector_store %arg6[%c0_124, %c0_125, %c176], %135 {strides = array<i32>} : memref<1x128x256xf32, #tpu.memory_space<vmem>>, vector<1x128x16xf32>,
    %c0_126 = arith.constant 0 : index
    %c216 = arith.constant 216 : index
    %136 = vector.load %arg9[%c0_126, %c216] : memref<128x288xf32, #tpu.memory_space<vmem>>, vector<128x16xf32>
    %c0_127 = arith.constant 0 : index
    %c0_128 = arith.constant 0 : index
    %c192 = arith.constant 192 : index
    %137 = vector.load %arg6[%c0_127, %c0_128, %c192] : memref<1x128x256xf32, #tpu.memory_space<vmem>>, vector<1x128x16xf32>
    %138 = vector.shape_cast %137 : vector<1x128x16xf32> to vector<128x16xf32>
    %139 = vector.shape_cast %136 : vector<128x16xf32> to vector<1x128x16xf32>
    tpu.vector_store %arg6[%c0_127, %c0_128, %c192], %139 {strides = array<i32>} : memref<1x128x256xf32, #tpu.memory_space<vmem>>, vector<1x128x16xf32>,
    %c0_129 = arith.constant 0 : index
    %c234 = arith.constant 234 : index
    %140 = vector.load %arg9[%c0_129, %c234] : memref<128x288xf32, #tpu.memory_space<vmem>>, vector<128x16xf32>
    %c0_130 = arith.constant 0 : index
    %c0_131 = arith.constant 0 : index
    %c208 = arith.constant 208 : index
    %141 = vector.load %arg6[%c0_130, %c0_131, %c208] : memref<1x128x256xf32, #tpu.memory_space<vmem>>, vector<1x128x16xf32>
    %142 = vector.shape_cast %141 : vector<1x128x16xf32> to vector<128x16xf32>
    %143 = vector.shape_cast %140 : vector<128x16xf32> to vector<1x128x16xf32>
    tpu.vector_store %arg6[%c0_130, %c0_131, %c208], %143 {strides = array<i32>} : memref<1x128x256xf32, #tpu.memory_space<vmem>>, vector<1x128x16xf32>,
    %c0_132 = arith.constant 0 : index
    %c252 = arith.constant 252 : index
    %144 = vector.load %arg9[%c0_132, %c252] : memref<128x288xf32, #tpu.memory_space<vmem>>, vector<128x16xf32>
    %c0_133 = arith.constant 0 : index
    %c0_134 = arith.constant 0 : index
    %c224 = arith.constant 224 : index
    %145 = vector.load %arg6[%c0_133, %c0_134, %c224] : memref<1x128x256xf32, #tpu.memory_space<vmem>>, vector<1x128x16xf32>
    %146 = vector.shape_cast %145 : vector<1x128x16xf32> to vector<128x16xf32>
    %147 = vector.shape_cast %144 : vector<128x16xf32> to vector<1x128x16xf32>
    tpu.vector_store %arg6[%c0_133, %c0_134, %c224], %147 {strides = array<i32>} : memref<1x128x256xf32, #tpu.memory_space<vmem>>, vector<1x128x16xf32>,
    %c0_135 = arith.constant 0 : index
    %c270 = arith.constant 270 : index
    %148 = vector.load %arg9[%c0_135, %c270] : memref<128x288xf32, #tpu.memory_space<vmem>>, vector<128x16xf32>
    %c0_136 = arith.constant 0 : index
    %c0_137 = arith.constant 0 : index
    %c240 = arith.constant 240 : index
    %149 = vector.load %arg6[%c0_136, %c0_137, %c240] : memref<1x128x256xf32, #tpu.memory_space<vmem>>, vector<1x128x16xf32>
    %150 = vector.shape_cast %149 : vector<1x128x16xf32> to vector<128x16xf32>
    %151 = vector.shape_cast %148 : vector<128x16xf32> to vector<1x128x16xf32>
    tpu.vector_store %arg6[%c0_136, %c0_137, %c240], %151 {strides = array<i32>} : memref<1x128x256xf32, #tpu.memory_space<vmem>>, vector<1x128x16xf32>,
    return
  }
  func.func @transform_0(%arg0: i32, %arg1: i32) -> (i32, i32, i32) {
    %c0_i32 = arith.constant 0 : i32
    %c0_i32_0 = arith.constant 0 : i32
    %c0_i32_1 = arith.constant 0 : i32
    return %arg0, %c0_i32, %c0_i32_0 : i32, i32, i32
  }
  func.func @transform_1(%arg0: i32, %arg1: i32) -> (i32, i32) {
    %c0_i32 = arith.constant 0 : i32
    %c0_i32_0 = arith.constant 0 : i32
    %c0_i32_1 = arith.constant 0 : i32
    return %c0_i32, %c0_i32_0 : i32, i32
  }
  func.func @transform_2(%arg0: i32, %arg1: i32) -> (i32, i32) {
    %c0_i32 = arith.constant 0 : i32
    %c0_i32_0 = arith.constant 0 : i32
    %c0_i32_1 = arith.constant 0 : i32
    return %c0_i32, %c0_i32_0 : i32, i32
  }
  func.func @transform_3(%arg0: i32, %arg1: i32) -> (i32, i32, i32) {
    %c0_i32 = arith.constant 0 : i32
    %c0_i32_0 = arith.constant 0 : i32
    %c0_i32_1 = arith.constant 0 : i32
    return %c0_i32, %arg1, %c0_i32_0 : i32, i32, i32
  }
  func.func @transform_4(%arg0: i32, %arg1: i32) -> (i32, i32, i32) {
    %c0_i32 = arith.constant 0 : i32
    %c0_i32_0 = arith.constant 0 : i32
    return %arg0, %arg1, %c0_i32 : i32, i32, i32
  }
}

</mosaic_0001>

<bundles_post_ra>
// kernel: context_embedding_block_forward.1
= control target key start
LH: loop header
LB: loop body
LE: loop exit
PB: predicated region body
PF: predicated region fallthrough
CT: control target
= control target key end

     0   :  { %s7522_s15 = smov 0   ;;  %s7524_s16 = smov 0   ;;  %s11561_s0 = inlined_call_operand.vmem [shape: f32[2,128,256], index: 0, kind: input, shape index: {}]   ;;  %s11562_s1 = inlined_call_operand.vmem [shape: f32[128,128], index: 1, kind: input, shape index: {}]   ;;  %s11563_s2 = inlined_call_operand.vmem [shape: f32[128,1], index: 2, kind: input, shape index: {}]   ;;  %s11564_s3 = inlined_call_operand.vmem [shape: bf16[3,128,384], index: 3, kind: input, shape index: {}]   ;;  %s11565_s4 = inlined_call_operand.vmem [shape: f32[2,128,256], index: 4, kind: output, shape index: {}]  }
   0x1   :  { %s7526_s17 = smov 0  }
   0x2 LB: > { %s26_s18 = sadd.s32 1, %s7453_s16  ;;  %p6665_p0 = scmp.ge.s32.totalorder %s7457_s17, 1  ;;  %s7457_s17 = sphi %s7526_s17, %s14_s17   ;;  %s7453_s16 = sphi %s7524_s16, %s11674_s16   ;;  %s7449_s15 = sphi %s7522_s15, %s11673_s15  }
   0x3   : > { %p28_p1 = scmp.ge.s32.totalorder %s26_s18, 2  ;;  %p188_p2 = scmp.lt.s32.totalorder %s7457_s17, 3 }
   0x5   : > { %s11676_s18 = smov (%p28_p1, %s26_s18), 0  ;;  %p189_p3 = pnand %p6665_p0, %p188_p2 }
   0x7   : > { %192 = sbr.rel (%p189_p3) target bundleno = 2192 (0x890), region = 36 }
   0xe   : > { %p225_p4 = scmp.lt.s32.totalorder %s7449_s15, 1  ;;  %v7459_v48 = vmov 0.0   ;;  %v11572_v49 = vmov 0   ;;  %v362_v50 = vld [vmem:[%s11563_s2 + $0x8] sm:$0xff]  ;;  %v363_v51 = vld [vmem:[%s11563_s2 + $0x10] sm:$0xff]  ;;  %v364_v52 = vld [vmem:[%s11563_s2 + $0x18] sm:$0xff] }
   0xf   : > { %521 = vmatprep.mubr.f32.mxu0 %v7459_v48  ;;  %7337 = vset.pattern.permute.xlu1 %v11572_v49  ;;  %698 = vst [vmem:[#allocation2] sm:$0xff] %v11572_v49  ;;  %699 = vst [vmem:[#allocation2 + $0x8] sm:$0xff] %v11572_v49  ;;  %v365_v53 = vld [vmem:[%s11563_s2 + $0x20] sm:$0xff]  ;;  %v366_v54 = vld [vmem:[%s11563_s2 + $0x28] sm:$0xff]  ;;  %s7461_s24 = smov 19   ;;  %s7462_s25 = smov 21  }
  0x10   : > { %s11678_s15 = smov (!%p225_p4, %s7449_s15), 1  ;;  %702 = vst [vmem:[#allocation2 + $0x18] sm:$0xff] %v11572_v49  ;;  %703 = vst [vmem:[#allocation2 + $0x20] sm:$0xff] %v11572_v49  ;;  %7336 = vset.pattern.permute.xlu0 %v11572_v49  ;;  %v361_v55 = vld [vmem:[%s11563_s2] sm:$0xff]  ;;  %v367_v56 = vld [vmem:[%s11563_s2 + $0x30] sm:$0xff]  ;;  %s7463_s26 = smov 23  }
  0x11   : > { %s6808_s19 = sshll.u32 %s11678_s15, 8  ;;  %705 = vst [vmem:[#allocation2 + $0x30] sm:$0xff] %v11572_v49  ;;  %706 = vst [vmem:[#allocation2 + $0x38] sm:$0xff] %v11572_v49  ;;  %v370_v57 = vld [vmem:[%s11563_s2 + $0x48] sm:$0xff]  ;;  %v368_v58 = vld [vmem:[%s11563_s2 + $0x38] sm:$0xff]  ;;  %s7464_s27 = smov 25  }
  0x12   : > { %s7548_s22 = scalar_lea.vmem %s11561_s0, %s6808_s19  ;;  %708 = vst [vmem:[#allocation2 + $0x48] sm:$0xff] %v11572_v49  ;;  %709 = vst [vmem:[#allocation2 + $0x50] sm:$0xff] %v11572_v49  ;;  %v372_v59 = vld [vmem:[%s11563_s2 + $0x58] sm:$0xff]  ;;  %v369_v60 = vld [vmem:[%s11563_s2 + $0x40] sm:$0xff]  ;;  %s7465_s28 = smov 27   ;;  %vm700_vm0 = vcmask 703488  }
  0x13   : > { %v7551_v0 = vld [vmem:[%s7548_s22 + $0x20] sm:$0xff]  ;;  %v7554_v1 = vld [vmem:[%s7548_s22 + $0x28] sm:$0xff]  ;;  %v7565_v5 = vld [vmem:[%s7548_s22 + $0x30] sm:$0xff]  ;;  %711 = vst [vmem:[#allocation2 + $0x60] sm:$0xff] %v11572_v49  ;;  %s7466_s29 = smov 29   ;;  %s7467_s30 = smov 31  }
  0x14   : > { %v7557_v2 = vld [vmem:[%s7548_s22] sm:$0xff]  ;;  %v287_v3 = vadd.f32 %v7554_v1, %v7551_v0  ;;  %v7562_v4 = vld [vmem:[%s7548_s22 + $0x8] sm:$0xff]  ;;  %v7568_v6 = vld [vmem:[%s7548_s22 + $0x38] sm:$0xff]  ;;  %712 = vst [vmem:[#allocation2 + $0x68] sm:$0xff] %v11572_v49  ;;  %s7468_s5 = smov 33   ;;  %s7469_s6 = smov 35  }
  0x15   : > { %v281_v7 = vadd.f32 %v7562_v4, %v7557_v2  ;;  %v7573_v8 = vld [vmem:[%s7548_s22 + $0x10] sm:$0xff]  ;;  %v7576_v9 = vld [vmem:[%s7548_s22 + $0x18] sm:$0xff]  ;;  %v290_v10 = vadd.f32 %v7568_v6, %v7565_v5  ;;  %v7589_v14 = vld [vmem:[%s7548_s22 + $0x40] sm:$0xff]  ;;  %714 = vst [vmem:[#allocation2 + $0x78] sm:$0xff] %v11572_v49  ;;  %s7470_s7 = smov 37   ;;  %s7471_s8 = smov 39  }
  0x16   : > { %288 = vadd.xlane.f32.xlu1 %v287_v3  ;;  %v284_v11 = vadd.f32 %v7576_v9, %v7573_v8  ;;  %v7583_v12 = vld [vmem:[%s7548_s22 + $0x50] sm:$0xff]  ;;  %v7586_v13 = vld [vmem:[%s7548_s22 + $0x58] sm:$0xff]  ;;  %v7592_v15 = vld [vmem:[%s7548_s22 + $0x48] sm:$0xff]  ;;  %715 = vst [vmem:[#allocation2 + $0x80] sm:$0xff] %v11572_v49  ;;  %s7472_s9 = smov 41   ;;  %s7473_s10 = smov 43  }
  0x17   : > { %282 = vadd.xlane.f32.xlu0 %v281_v7  ;;  %v296_v16 = vadd.f32 %v7586_v13, %v7583_v12  ;;  %v293_v17 = vadd.f32 %v7592_v15, %v7589_v14  ;;  %v7599_v18 = vld [vmem:[%s7548_s22 + $0x70] sm:$0xff]  ;;  %v7602_v19 = vld [vmem:[%s7548_s22 + $0x78] sm:$0xff]  ;;  %v7605_v20 = vld [vmem:[%s7548_s22 + $0x60] sm:$0xff]  ;;  %717 = vst [vmem:[#allocation2 + $0x90] sm:$0xff] %v11572_v49  ;;  %s7474_s11 = smov 45   ;;  %s7475_s12 = smov 47  }
  0x18   : > { %v7608_v21 = vld [vmem:[%s7548_s22 + $0x68] sm:$0xff]  ;;  %v7611_v22 = vld [vmem:[%s7548_s22 + $0x90] sm:$0xff]  ;;  %v7614_v23 = vld [vmem:[%s7548_s22 + $0x98] sm:$0xff]  ;;  %v302_v24 = vadd.f32 %v7602_v19, %v7599_v18  ;;  %718 = vst [vmem:[#allocation2 + $0x98] sm:$0xff] %v11572_v49  ;;  %s7476_s13 = smov 49   ;;  %vm755_vm1 = vcmask 285848  }
  0x19   : > { %v7619_v25 = vld [vmem:[%s7548_s22 + $0x80] sm:$0xff]  ;;  %v7622_v26 = vld [vmem:[%s7548_s22 + $0x88] sm:$0xff]  ;;  %v299_v27 = vadd.f32 %v7608_v21, %v7605_v20  ;;  %v7627_v28 = vld [vmem:[%s7548_s22 + $0xb0] sm:$0xff]  ;;  %v308_v30 = vadd.f32 %v7614_v23, %v7611_v22  ;;  %720 = vst [vmem:[#allocation2 + $0xa8] sm:$0xff] %v11572_v49  ;;  %vm788_vm2 = vcmask 433448   ;;  %vm821_vm3 = vcmask 581048  }
  0x1a   : > { %291 = vadd.xlane.f32.xlu1 %v290_v10  ;;  %v7630_v29 = vld [vmem:[%s7548_s22 + $0xb8] sm:$0xff]  ;;  %v7635_v31 = vld [vmem:[%s7548_s22 + $0xa0] sm:$0xff]  ;;  %v7638_v32 = vld [vmem:[%s7548_s22 + $0xa8] sm:$0xff]  ;;  %v305_v33 = vadd.f32 %v7622_v26, %v7619_v25  ;;  %721 = vst [vmem:[#allocation2 + $0xb0] sm:$0xff] %v11572_v49  ;;  %vm854_vm4 = vcmask 728648   ;;  %vm887_vm5 = vcmask 876248  }
  0x1b   : > { %285 = vadd.xlane.f32.xlu0 %v284_v11  ;;  %v7643_v34 = vld [vmem:[%s7548_s22 + $0xd0] sm:$0xff]  ;;  %v7646_v35 = vld [vmem:[%s7548_s22 + $0xd8] sm:$0xff]  ;;  %v314_v36 = vadd.f32 %v7630_v29, %v7627_v28  ;;  %v7651_v37 = vld [vmem:[%s7548_s22 + $0xc0] sm:$0xff]  ;;  %v311_v39 = vadd.f32 %v7638_v32, %v7635_v31  ;;  %701 = vst.msk [vmem:[#allocation2 + $0x10] sm:$0xff] %vm700_vm0, %v11572_v49  ;;  %vm920_vm6 = vcmask 1023848   ;;  %vm953_vm7 = vcmask 1048568  }
  0x1c   : > { %v7654_v38 = vld [vmem:[%s7548_s22 + $0xc8] sm:$0xff]  ;;  %v7659_v40 = vld [vmem:[%s7548_s22 + $0xf0] sm:$0xff]  ;;  %v7662_v41 = vld [vmem:[%s7548_s22 + $0xf8] sm:$0xff]  ;;  %v320_v42 = vadd.f32 %v7646_v35, %v7643_v34  ;;  %704 = vst.msk [vmem:[#allocation2 + $0x28] sm:$0xff] %vm700_vm0, %v11572_v49  ;;  %vm11569_vm8 = vcmask 121856   ;;  %vm11570_vm9 = vcmask 269448  }
  0x1d   : > { %v7667_v43 = vld [vmem:[%s7548_s22 + $0xe0] sm:$0xff]  ;;  %v7670_v44 = vld [vmem:[%s7548_s22 + $0xe8] sm:$0xff]  ;;  %v317_v45 = vadd.f32 %v7654_v38, %v7651_v37  ;;  %v326_v46 = vadd.f32 %v7662_v41, %v7659_v40  ;;  %v371_v62 = vld [vmem:[%s11563_s2 + $0x50] sm:$0xff]  ;;  %707 = vst.msk [vmem:[#allocation2 + $0x40] sm:$0xff] %vm700_vm0, %v11572_v49  ;;  %vm1036_vm10 = vcmask 417048   ;;  %vm11571_vm11 = vcmask 564648  }
  0x1e   : > { %297 = vadd.xlane.f32.xlu1 %v296_v16  ;;  %v323_v47 = vadd.f32 %v7670_v44, %v7667_v43  ;;  %v374_v61 = vld [vmem:[%s11563_s2 + $0x68] sm:$0xff]  ;;  %v376_v63 = vld [vmem:[%s11563_s2 + $0x78] sm:$0xff]  ;;  %v373_v3 = vld [vmem:[%s11563_s2 + $0x60] sm:$0xff]  ;;  %710 = vst.msk [vmem:[#allocation2 + $0x58] sm:$0xff] %vm700_vm0, %v11572_v49  ;;  %vm11566_vm12 = vcmask 712248   ;;  %vm11567_vm13 = vcmask 859848  }
  0x1f   : > { %294 = vadd.xlane.f32.xlu0 %v293_v17  ;;  %v375_v7 = vld [vmem:[%s11563_s2 + $0x70] sm:$0xff]  ;;  %713 = vst.msk [vmem:[#allocation2 + $0x70] sm:$0xff] %vm700_vm0, %v11572_v49  ;;  %716 = vst.msk [vmem:[#allocation2 + $0x88] sm:$0xff] %vm700_vm0, %v11572_v49  ;;  %vm1168_vm14 = vcmask 1007448   ;;  %vm1201_vm15 = vcmask 1048552   ;;  %s7477_s14 = smov 127  }
  0x20   : > { %719 = vst.msk [vmem:[#allocation2 + $0xa0] sm:$0xff] %vm700_vm0, %v11572_v49  ;;  %722 = vst.msk [vmem:[#allocation2 + $0xb8] sm:$0xff] %vm700_vm0, %v11572_v49  ;;  %vm11568_vm0 = vcmask 105472   ;;  %s7478_s20 = smov 126   ;;  %s7479_s21 = smov 110  }
  0x21   : > { %s7480_s22 = smov 109   ;;  %s7481_s23 = smov 108  }
  0x22   : > { %303 = vadd.xlane.f32.xlu1 %v302_v24  ;;  %s7485_s15 = smov 114  }
  0x23   : > { %300 = vadd.xlane.f32.xlu0 %v299_v27 }
  0x26   : > { %309 = vadd.xlane.f32.xlu1 %v308_v30 }
  0x27   : > { %306 = vadd.xlane.f32.xlu0 %v305_v33 }
  0x2a   : > { %315 = vadd.xlane.f32.xlu1 %v314_v36 }
  0x2b   : > { %312 = vadd.xlane.f32.xlu0 %v311_v39 }
  0x2e   : > { %321 = vadd.xlane.f32.xlu1 %v320_v42 }
  0x2f   : > { %318 = vadd.xlane.f32.xlu0 %v317_v45 }
  0x32   : > { %327 = vadd.xlane.f32.xlu1 %v326_v46 }
  0x33   : > { %324 = vadd.xlane.f32.xlu0 %v323_v47 }
  0x43   : > { %384 = vperm.xlu1 %7337, %v362_v50  }
  0x47   : > { %389 = vperm.xlu1 %7337, %v363_v51  }
  0x49   : > { %379 = vperm.xlu0 %7336, %v361_v55  }
  0x4b   : > { %394 = vperm.xlu1 %7337, %v364_v52  }
  0x4d   : > { %424 = vperm.xlu0 %7336, %v370_v57  }
  0x4f   : > { %399 = vperm.xlu1 %7337, %v365_v53  }
  0x51   : > { %434 = vperm.xlu0 %7336, %v372_v59  }
  0x53   : > { %404 = vperm.xlu1 %7337, %v366_v54  }
  0x55   : > { %444 = vperm.xlu0 %7336, %v374_v61  }
  0x57   : > { %409 = vperm.xlu1 %7337, %v367_v56  }
  0x59   : > { %454 = vperm.xlu0 %7336, %v376_v63  }
  0x5b   : > { %414 = vperm.xlu1 %7337, %v368_v58  }
  0x5f   : > { %419 = vperm.xlu1 %7337, %v369_v60  }
  0x63   : > { %429 = vperm.xlu1 %7337, %v371_v62  }
  0x67   : > { %439 = vperm.xlu1 %7337, %v373_v3  }
  0x6b   : > { %449 = vperm.xlu1 %7337, %v375_v7  }
  0xa3   : > { %v289_v10 = vpop.xlane.xlu1 %288 }
  0xa4   : > { %v283_v11 = vpop.xlane.xlu0 %282  ;;  %v331_v24 = vmul.f32 0.00390625, %v289_v10 }
  0xa5   : > { %v329_v27 = vmul.f32 0.00390625, %v283_v11 }
  0xa7   : > { %v292_v16 = vpop.xlane.xlu1 %291 }
  0xa8   : > { %v286_v17 = vpop.xlane.xlu0 %285  ;;  %v332_v30 = vmul.f32 0.00390625, %v292_v16 }
  0xa9   : > { %v330_v33 = vmul.f32 0.00390625, %v286_v17 }
  0xaa   : > { %v7150_v46 = vpack.c.bf16 %v332_v30, %v331_v24 }
  0xab   : > { %v7146_v36 = vpack.c.bf16 %v330_v33, %v329_v27  ;;  %v298_v39 = vpop.xlane.xlu1 %297 }
  0xac   : > { %v334_v42 = vmul.f32 0.00390625, %v298_v39  ;;  %v295_v45 = vpop.xlane.xlu0 %294 }
  0xad   : > { %7147 = vmatprep.subr.bf16.mxu0 %v7146_v36  ;;  %v333_v47 = vmul.f32 0.00390625, %v295_v45  ;;  %v346_v45 = vld [vmem:[%s11562_s1 + $0x8] sm:$0xff] }
  0xae   : > { %7149 = vmatpush1.bf16.msra.mxu0 %v7146_v36 }
  0xaf   : > { %7151 = vmatprep.subr.bf16.mxu0 %v7150_v46  ;;  %v7154_v50 = vpack.c.bf16 %v334_v42, %v333_v47  ;;  %v304_v51 = vpop.xlane.xlu1 %303  ;;  %v345_v42 = vld [vmem:[%s11562_s1] sm:$0xff]  ;;  %v348_v47 = vld [vmem:[%s11562_s1 + $0x18] sm:$0xff] }
  0xb0   : > { %v336_v52 = vmul.f32 0.00390625, %v304_v51  ;;  %v301_v53 = vpop.xlane.xlu0 %300  ;;  %v350_v51 = vld [vmem:[%s11562_s1 + $0x28] sm:$0xff] }
  0xb1   : > { %v335_v54 = vmul.f32 0.00390625, %v301_v53  ;;  %v352_v53 = vld [vmem:[%s11562_s1 + $0x38] sm:$0xff] }
  0xb2   : > { %7153 = vmatpush1.bf16.msra.mxu0 %v7150_v46  ;;  %v347_v46 = vld [vmem:[%s11562_s1 + $0x10] sm:$0xff] }
  0xb3   : > { %v7158_v55 = vpack.c.bf16 %v336_v52, %v335_v54  ;;  %7155 = vmatprep.subr.bf16.mxu0 %v7154_v50  ;;  %v310_v56 = vpop.xlane.xlu1 %309  ;;  %v351_v52 = vld [vmem:[%s11562_s1 + $0x30] sm:$0xff]  ;;  %v353_v54 = vld [vmem:[%s11562_s1 + $0x40] sm:$0xff] }
  0xb4   : > { %v338_v57 = vmul.f32 0.00390625, %v310_v56  ;;  %v307_v58 = vpop.xlane.xlu0 %306  ;;  %v355_v56 = vld [vmem:[%s11562_s1 + $0x50] sm:$0xff] }
  0xb5   : > { %v337_v59 = vmul.f32 0.00390625, %v307_v58  ;;  %v357_v58 = vld [vmem:[%s11562_s1 + $0x60] sm:$0xff] }
  0xb6   : > { %7157 = vmatpush1.bf16.msra.mxu0 %v7154_v50  ;;  %v349_v50 = vld [vmem:[%s11562_s1 + $0x20] sm:$0xff] }
  0xb7   : > { %v7162_v60 = vpack.c.bf16 %v338_v57, %v337_v59  ;;  %7159 = vmatprep.subr.bf16.mxu0 %v7158_v55  ;;  %v316_v61 = vpop.xlane.xlu1 %315  ;;  %v356_v57 = vld [vmem:[%s11562_s1 + $0x58] sm:$0xff]  ;;  %v358_v59 = vld [vmem:[%s11562_s1 + $0x68] sm:$0xff] }
  0xb8   : > { %v340_v62 = vmul.f32 0.00390625, %v316_v61  ;;  %v313_v63 = vpop.xlane.xlu0 %312  ;;  %v360_v61 = vld [vmem:[%s11562_s1 + $0x78] sm:$0xff] }
  0xb9   : > { %v339_v3 = vmul.f32 0.00390625, %v313_v63 }
  0xba   : > { %7161 = vmatpush1.bf16.msra.mxu0 %v7158_v55  ;;  %v354_v55 = vld [vmem:[%s11562_s1 + $0x48] sm:$0xff] }
  0xbb   : > { %v7166_v7 = vpack.c.bf16 %v340_v62, %v339_v3  ;;  %7163 = vmatprep.subr.bf16.mxu0 %v7162_v60  ;;  %v322_v10 = vpop.xlane.xlu1 %321 }
  0xbc   : > { %v342_v11 = vmul.f32 0.00390625, %v322_v10  ;;  %v319_v16 = vpop.xlane.xlu0 %318 }
  0xbd   : > { %v341_v17 = vmul.f32 0.00390625, %v319_v16 }
  0xbe   : > { %7165 = vmatpush1.bf16.msra.mxu0 %v7162_v60  ;;  %v359_v60 = vld [vmem:[%s11562_s1 + $0x70] sm:$0xff] }
  0xbf   : > { %v7170_v24 = vpack.c.bf16 %v342_v11, %v341_v17  ;;  %7167 = vmatprep.subr.bf16.mxu0 %v7166_v7  ;;  %v328_v27 = vpop.xlane.xlu1 %327 }
  0xc0   : > { %v344_v30 = vmul.f32 0.00390625, %v328_v27  ;;  %v325_v33 = vpop.xlane.xlu0 %324 }
  0xc1   : > { %v343_v36 = vmul.f32 0.00390625, %v325_v33 }
  0xc2   : > { %7169 = vmatpush1.bf16.msra.mxu0 %v7166_v7 }
  0xc3   : > { %v7174_v39 = vpack.c.bf16 %v344_v30, %v343_v36  ;;  %7171 = vmatprep.subr.bf16.mxu0 %v7170_v24  ;;  %v385_v62 = vpop.permute.xlu1 %384 }
  0xc6   : > { %7173 = vmatpush1.bf16.msra.mxu0 %v7170_v24 }
  0xc7   : > { %7175 = vmatprep.subr.bf16.mxu0 %v7174_v39  ;;  %v390_v63 = vpop.permute.xlu1 %389 }
  0xc8   : > { %v380_v3 = vpop.permute.xlu0 %379 }
  0xca   : > { %7177 = vmatpush1.bf16.msra.mxu0 %v7174_v39 }
  0xcb   : > { %v395_v16 = vpop.permute.xlu1 %394 }
  0xcd   : > { %522 = vmatmul.mubr.f32.vlgmr.msra.gmra.mrb[0].mxu0 %v345_v42 }
  0xce   : > { %527 = vmatprep.mubr.f32.mxu0 %v7459_v48 }
  0xcf   : > { %v400_v42 = vpop.permute.xlu1 %399 }
  0xd1   : > { %528 = vmatmul.mubr.f32.gmra.mrb[2].mxu0 %v346_v45 }
  0xd2   : > { %533 = vmatprep.mubr.f32.mxu0 %v7459_v48 }
  0xd5   : > { %534 = vmatmul.mubr.f32.gmra.mrb[4].mxu0 %v347_v46 }
  0xd6   : > { %539 = vmatprep.mubr.f32.mxu0 %v7459_v48 }
  0xd9   : > { %540 = vmatmul.mubr.f32.gmra.mrb[6].mxu0 %v348_v47 }
  0xda   : > { %545 = vmatprep.mubr.f32.mxu0 %v7459_v48 }
  0xdd   : > { %546 = vmatmul.mubr.f32.gmra.mrb[8].mxu0 %v349_v50 }
  0xde   : > { %551 = vmatprep.mubr.f32.mxu0 %v7459_v48 }
  0xe1   : > { %552 = vmatmul.mubr.f32.gmra.mrb[10].mxu0 %v350_v51 }
  0xe2   : > { %557 = vmatprep.mubr.f32.mxu0 %v7459_v48 }
  0xe5   : > { %558 = vmatmul.mubr.f32.gmra.mrb[12].mxu0 %v351_v52 }
  0xe6   : > { %563 = vmatprep.mubr.f32.mxu0 %v7459_v48 }
  0xe9   : > { %564 = vmatmul.mubr.f32.gmra.mrb[14].mxu0 %v352_v53 }
  0xea   : > { %569 = vmatprep.mubr.f32.mxu0 %v7459_v48 }
  0xed   : > { %570 = vmatmul.mubr.f32.gmra.mrb[16].mxu0 %v353_v54 }
  0xee   : > { %575 = vmatprep.mubr.f32.mxu0 %v7459_v48 }
  0xf1   : > { %576 = vmatmul.mubr.f32.gmra.mrb[18].mxu0 %v354_v55 }
  0xf2   : > { %581 = vmatprep.mubr.f32.mxu0 %v7459_v48 }
  0xf5   : > { %582 = vmatmul.mubr.f32.gmra.mrb[20].mxu0 %v355_v56 }
  0xf6   : > { %587 = vmatprep.mubr.f32.mxu0 %v7459_v48 }
  0xf9   : > { %588 = vmatmul.mubr.f32.gmra.mrb[22].mxu0 %v356_v57 }
  0xfa   : > { %593 = vmatprep.mubr.f32.mxu0 %v7459_v48 }
  0xfd   : > { %594 = vmatmul.mubr.f32.gmra.mrb[24].mxu0 %v357_v58 }
  0xfe   : > { %599 = vmatprep.mubr.f32.mxu0 %v7459_v48 }
 0x101   : > { %600 = vmatmul.mubr.f32.gmra.mrb[26].mxu0 %v358_v59 }
 0x102   : > { %605 = vmatprep.mubr.f32.mxu0 %v7459_v48 }
 0x105   : > { %606 = vmatmul.mubr.f32.gmra.mrb[28].mxu0 %v359_v60 }
 0x106   : > { %611 = vmatprep.mubr.f32.mxu0 %v7459_v48 }
 0x109   : > { %612 = vmatmul.mubr.f32.gmra.mrb[30].mxu0 %v360_v61 }
 0x1a0   : > { %v523_v7 = vpop.f32.mrb[0].mxu0 }
 0x1a1   : > { %v524_v10 = vadd.f32 %v523_v7, %v380_v3  ;;  %v525_v11 = vpop.f32.mrb[1].mxu0 }
 0x1a2   : > { %v526_v17 = vadd.f32 %v525_v11, %v380_v3 }
 0x1a3   : > { %v618_v27 = vmax.f32 %v524_v10, 0.0 }
 0x1a4   : > { %v529_v24 = vpop.f32.mrb[2].mxu0  ;;  %v619_v36 = vmax.f32 %v526_v17, 0.0 }
 0x1a5   : > { %v530_v30 = vadd.f32 %v529_v24, %v385_v62  ;;  %v531_v33 = vpop.f32.mrb[3].mxu0  ;;  %v650_v47 = vadd.f32 %v618_v27, %v7557_v2  ;;  %v405_v2 = vpop.permute.xlu1 %404 }
 0x1a6   : > { %v532_v39 = vadd.f32 %v531_v33, %v385_v62  ;;  %v651_v53 = vadd.f32 %v619_v36, %v7562_v4 }
 0x1a7   : > { %v620_v48 = vmax.f32 %v530_v30, 0.0 }
 0x1a8   : > { %v621_v45 = vmax.f32 %v532_v39, 0.0  ;;  %v535_v46 = vpop.f32.mrb[4].mxu0 }
 0x1a9   : > { %v652_v50 = vadd.f32 %v620_v48, %v7573_v8  ;;  %v536_v51 = vadd.f32 %v535_v46, %v390_v63  ;;  %v537_v52 = vpop.f32.mrb[5].mxu0 }
 0x1aa   : > { %v653_v54 = vadd.f32 %v621_v45, %v7576_v9  ;;  %v538_v55 = vadd.f32 %v537_v52, %v390_v63 }
 0x1ab   : > { %v7812_v56 = vpack.c.bf16 %v652_v50, %v650_v47  ;;  %v622_v59 = vmax.f32 %v536_v51, 0.0 }
 0x1ac   : > { %v7814_v57 = vpack.c.bf16 %v653_v54, %v651_v53  ;;  %v541_v58 = vpop.f32.mrb[6].mxu0  ;;  %v623_v8 = vmax.f32 %v538_v55, 0.0 }
 0x1ad   : > { %v542_v60 = vadd.f32 %v541_v58, %v395_v16  ;;  %v543_v61 = vpop.f32.mrb[7].mxu0  ;;  %731 = vrot.lane.b32.xlu1 %v7812_v56, %s7461_s24  ;;  %v654_v9 = vadd.f32 %v622_v59, %v7551_v0 }
 0x1ae   : > { %v544_v62 = vadd.f32 %v543_v61, %v395_v16  ;;  %v655_v17 = vadd.f32 %v623_v8, %v7554_v1  ;;  %v410_v16 = vpop.permute.xlu1 %409 }
 0x1af   : > { %v624_v3 = vmax.f32 %v542_v60, 0.0 }
 0x1b0   : > { %v625_v4 = vmax.f32 %v544_v62, 0.0  ;;  %v547_v7 = vpop.f32.mrb[8].mxu0 }
 0x1b1   : > { %v656_v63 = vadd.f32 %v624_v3, %v7565_v5  ;;  %v548_v10 = vadd.f32 %v547_v7, %v400_v42  ;;  %v549_v11 = vpop.f32.mrb[9].mxu0  ;;  %764 = vrot.lane.b32.xlu1 %v7812_v56, %s7462_s25 }
 0x1b2   : > { %v657_v24 = vadd.f32 %v625_v4, %v7568_v6  ;;  %v550_v27 = vadd.f32 %v549_v11, %v400_v42  ;;  %v415_v52 = vpop.permute.xlu1 %414 }
 0x1b3   : > { %v7824_v30 = vpack.c.bf16 %v656_v63, %v654_v9  ;;  %v626_v0 = vmax.f32 %v548_v10, 0.0 }
 0x1b4   : > { %v7826_v33 = vpack.c.bf16 %v657_v24, %v655_v17  ;;  %v553_v36 = vpop.f32.mrb[10].mxu0  ;;  %v627_v1 = vmax.f32 %v550_v27, 0.0  ;;  %v425_v27 = vpop.permute.xlu0 %424 }
 0x1b5   : > { %v554_v39 = vadd.f32 %v553_v36, %v405_v2  ;;  %v555_v5 = vpop.f32.mrb[11].mxu0  ;;  %733 = vrot.lane.b32.xlu0 %v7824_v30, %s7461_s24  ;;  %797 = vrot.lane.b32.xlu1 %v7812_v56, %s7463_s26  ;;  %v658_v46 = vadd.f32 %v626_v0, %v7589_v14 }
 0x1b6   : > { %v556_v48 = vadd.f32 %v555_v5, %v405_v2  ;;  %v659_v53 = vadd.f32 %v627_v1, %v7592_v15 }
 0x1b7   : > { %v628_v6 = vmax.f32 %v554_v39, 0.0 }
 0x1b8   : > { %v629_v42 = vmax.f32 %v556_v48, 0.0  ;;  %v559_v45 = vpop.f32.mrb[12].mxu0 }
 0x1b9   : > { %v660_v47 = vadd.f32 %v628_v6, %v7583_v12  ;;  %v560_v50 = vadd.f32 %v559_v45, %v410_v16  ;;  %v561_v51 = vpop.f32.mrb[13].mxu0  ;;  %766 = vrot.lane.b32.xlu0 %v7824_v30, %s7462_s25  ;;  %830 = vrot.lane.b32.xlu1 %v7812_v56, %s7464_s27 }
 0x1ba   : > { %v661_v54 = vadd.f32 %v629_v42, %v7586_v13  ;;  %v562_v55 = vadd.f32 %v561_v51, %v410_v16  ;;  %v420_v13 = vpop.permute.xlu1 %419 }
 0x1bb   : > { %v7840_v58 = vpack.c.bf16 %v660_v47, %v658_v46  ;;  %v630_v59 = vmax.f32 %v560_v50, 0.0 }
 0x1bc   : > { %v7842_v14 = vpack.c.bf16 %v661_v54, %v659_v53  ;;  %v565_v12 = vpop.f32.mrb[14].mxu0  ;;  %v631_v2 = vmax.f32 %v562_v55, 0.0  ;;  %v435_v53 = vpop.permute.xlu0 %434 }
 0x1bd   : > { %v566_v60 = vadd.f32 %v565_v12, %v415_v52  ;;  %v567_v61 = vpop.f32.mrb[15].mxu0  ;;  %799 = vrot.lane.b32.xlu0 %v7824_v30, %s7463_s26  ;;  %863 = vrot.lane.b32.xlu1 %v7812_v56, %s7465_s28  ;;  %v662_v4 = vadd.f32 %v630_v59, %v7605_v20 }
 0x1be   : > { %v568_v15 = vadd.f32 %v567_v61, %v415_v52  ;;  %v663_v10 = vadd.f32 %v631_v2, %v7608_v21  ;;  %v430_v5 = vpop.permute.xlu1 %429 }
 0x1bf   : > { %v632_v8 = vmax.f32 %v566_v60, 0.0 }
 0x1c0   : > { %v633_v62 = vmax.f32 %v568_v15, 0.0  ;;  %v571_v3 = vpop.f32.mrb[16].mxu0 }
 0x1c1   : > { %v664_v7 = vadd.f32 %v632_v8, %v7599_v18  ;;  %v572_v9 = vadd.f32 %v571_v3, %v420_v13  ;;  %v573_v63 = vpop.f32.mrb[17].mxu0  ;;  %832 = vrot.lane.b32.xlu0 %v7824_v30, %s7464_s27  ;;  %896 = vrot.lane.b32.xlu1 %v7812_v56, %s7466_s29 }
 0x1c2   : > { %v665_v11 = vadd.f32 %v633_v62, %v7602_v19  ;;  %v574_v17 = vadd.f32 %v573_v63, %v420_v13  ;;  %v440_v59 = vpop.permute.xlu1 %439 }
 0x1c3   : > { %v7856_v24 = vpack.c.bf16 %v664_v7, %v662_v4  ;;  %v634_v16 = vmax.f32 %v572_v9, 0.0 }
 0x1c4   : > { %v7858_v20 = vpack.c.bf16 %v665_v11, %v663_v10  ;;  %v577_v18 = vpop.f32.mrb[18].mxu0  ;;  %v635_v21 = vmax.f32 %v574_v17, 0.0 }
 0x1c5   : > { %v578_v36 = vadd.f32 %v577_v18, %v425_v27  ;;  %v579_v0 = vpop.f32.mrb[19].mxu0  ;;  %865 = vrot.lane.b32.xlu0 %v7824_v30, %s7465_s28  ;;  %929 = vrot.lane.b32.xlu1 %v7812_v56, %s7467_s30  ;;  %v666_v6 = vadd.f32 %v634_v16, %v7619_v25 }
 0x1c6   : > { %v580_v39 = vadd.f32 %v579_v0, %v425_v27  ;;  %v667_v47 = vadd.f32 %v635_v21, %v7622_v26  ;;  %v450_v17 = vpop.permute.xlu1 %449 }
 0x1c7   : > { %v636_v19 = vmax.f32 %v578_v36, 0.0 }
 0x1c8   : > { %v637_v1 = vmax.f32 %v580_v39, 0.0  ;;  %v583_v48 = vpop.f32.mrb[20].mxu0 }
 0x1c9   : > { %v668_v42 = vadd.f32 %v636_v19, %v7611_v22  ;;  %v584_v45 = vadd.f32 %v583_v48, %v430_v5  ;;  %v585_v46 = vpop.f32.mrb[21].mxu0  ;;  %898 = vrot.lane.b32.xlu0 %v7824_v30, %s7466_s29  ;;  %971 = vrot.lane.b32.xlu1 %v7812_v56, %s7468_s5 }
 0x1ca   : > { %v669_v50 = vadd.f32 %v637_v1, %v7614_v23  ;;  %v586_v51 = vadd.f32 %v585_v46, %v430_v5 }
 0x1cb   : > { %v7872_v52 = vpack.c.bf16 %v668_v42, %v666_v6  ;;  %v638_v54 = vmax.f32 %v584_v45, 0.0 }
 0x1cc   : > { %v7874_v25 = vpack.c.bf16 %v669_v50, %v667_v47  ;;  %v589_v22 = vpop.f32.mrb[22].mxu0  ;;  %v639_v26 = vmax.f32 %v586_v51, 0.0 }
 0x1cd   : > { %v590_v55 = vadd.f32 %v589_v22, %v435_v53  ;;  %v591_v12 = vpop.f32.mrb[23].mxu0  ;;  %931 = vrot.lane.b32.xlu0 %v7824_v30, %s7467_s30  ;;  %1012 = vrot.lane.b32.xlu1 %v7814_v57, %s7469_s6  ;;  %v670_v2 = vadd.f32 %v638_v54, %v7635_v31 }
 0x1ce   : > { %v592_v56 = vadd.f32 %v591_v12, %v435_v53  ;;  %v671_v62 = vadd.f32 %v639_v26, %v7638_v32 }
 0x1cf   : > { %v640_v23 = vmax.f32 %v590_v55, 0.0 }
 0x1d0   : > { %v641_v60 = vmax.f32 %v592_v56, 0.0  ;;  %v595_v61 = vpop.f32.mrb[24].mxu0 }
 0x1d1   : > { %v672_v15 = vadd.f32 %v640_v23, %v7627_v28  ;;  %v596_v8 = vadd.f32 %v595_v61, %v440_v59  ;;  %v597_v13 = vpop.f32.mrb[25].mxu0  ;;  %973 = vrot.lane.b32.xlu0 %v7824_v30, %s7468_s5  ;;  %1045 = vrot.lane.b32.xlu1 %v7814_v57, %s7470_s7 }
 0x1d2   : > { %v673_v3 = vadd.f32 %v641_v60, %v7630_v29  ;;  %v598_v4 = vadd.f32 %v597_v13, %v440_v59  ;;  %v445_v29 = vpop.permute.xlu0 %444 }
 0x1d3   : > { %v7896_v28 = vpack.c.bf16 %v672_v15, %v670_v2  ;;  %v642_v30 = vmax.f32 %v596_v8, 0.0 }
 0x1d4   : > { %v7898_v31 = vpack.c.bf16 %v673_v3, %v671_v62  ;;  %v601_v32 = vpop.f32.mrb[26].mxu0  ;;  %v643_v63 = vmax.f32 %v598_v4, 0.0 }
 0x1d5   : > { %v602_v7 = vadd.f32 %v601_v32, %v445_v29  ;;  %v603_v9 = vpop.f32.mrb[27].mxu0  ;;  %1014 = vrot.lane.b32.xlu0 %v7826_v33, %s7469_s6  ;;  %1078 = vrot.lane.b32.xlu1 %v7814_v57, %s7471_s8  ;;  %v674_v16 = vadd.f32 %v642_v30, %v7651_v37 }
 0x1d6   : > { %v604_v10 = vadd.f32 %v603_v9, %v445_v29  ;;  %v675_v39 = vadd.f32 %v643_v63, %v7654_v38  ;;  %v455_v48 = vpop.permute.xlu0 %454 }
 0x1d7   : > { %v644_v11 = vmax.f32 %v602_v7, 0.0 }
 0x1d8   : > { %v645_v27 = vmax.f32 %v604_v10, 0.0  ;;  %v607_v18 = vpop.f32.mrb[28].mxu0 }
 0x1d9   : > { %v676_v36 = vadd.f32 %v644_v11, %v7643_v34  ;;  %v608_v0 = vadd.f32 %v607_v18, %v450_v17  ;;  %v609_v21 = vpop.f32.mrb[29].mxu0  ;;  %1047 = vrot.lane.b32.xlu0 %v7826_v33, %s7470_s7  ;;  %1111 = vrot.lane.b32.xlu1 %v7814_v57, %s7472_s9 }
 0x1da   : > { %v677_v19 = vadd.f32 %v645_v27, %v7646_v35  ;;  %v610_v5 = vadd.f32 %v609_v21, %v450_v17 }
 0x1db   : > { %v7912_v1 = vpack.c.bf16 %v676_v36, %v674_v16  ;;  %v646_v6 = vmax.f32 %v608_v0, 0.0 }
 0x1dc   : > { %v7914_v37 = vpack.c.bf16 %v677_v19, %v675_v39  ;;  %v613_v34 = vpop.f32.mrb[30].mxu0  ;;  %v647_v38 = vmax.f32 %v610_v5, 0.0 }
 0x1dd   : > { %v614_v42 = vadd.f32 %v613_v34, %v455_v48  ;;  %v615_v45 = vpop.f32.mrb[31].mxu0  ;;  %1080 = vrot.lane.b32.xlu0 %v7826_v33, %s7471_s8  ;;  %1144 = vrot.lane.b32.xlu1 %v7814_v57, %s7473_s10  ;;  %v678_v50 = vadd.f32 %v646_v6, %v7667_v43 }
 0x1de   : > { %v616_v46 = vadd.f32 %v615_v45, %v455_v48  ;;  %v679_v53 = vadd.f32 %v647_v38, %v7670_v44 }
 0x1df   : > { %v648_v35 = vmax.f32 %v614_v42, 0.0 }
 0x1e0   : > { %v649_v47 = vmax.f32 %v616_v46, 0.0 }
 0x1e1   : > { %v680_v51 = vadd.f32 %v648_v35, %v7659_v40  ;;  %1113 = vrot.lane.b32.xlu0 %v7826_v33, %s7472_s9  ;;  %1177 = vrot.lane.b32.xlu1 %v7814_v57, %s7474_s11 }
 0x1e2   : > { %v681_v22 = vadd.f32 %v649_v47, %v7662_v41 }
 0x1e3   : > { %v7928_v54 = vpack.c.bf16 %v680_v51, %v678_v50 }
 0x1e4   : > { %v7930_v55 = vpack.c.bf16 %v681_v22, %v679_v53 }
 0x1e5   : > { %1146 = vrot.lane.b32.xlu0 %v7826_v33, %s7473_s10  ;;  %1219 = vrot.lane.b32.xlu1 %v7814_v57, %s7475_s12 }
 0x1e9   : > { %1179 = vrot.lane.b32.xlu0 %v7826_v33, %s7474_s11  ;;  %1252 = vrot.lane.b32.xlu1 %v7814_v57, %s7476_s13 }
 0x1ed   : > { %1221 = vrot.lane.b32.xlu0 %v7826_v33, %s7475_s12  ;;  %735 = vrot.lane.b32.xlu1 %v7840_v58, %s7461_s24 }
 0x1f1   : > { %1254 = vrot.lane.b32.xlu0 %v7826_v33, %s7476_s13  ;;  %768 = vrot.lane.b32.xlu1 %v7840_v58, %s7462_s25 }
 0x1f5   : > { %737 = vrot.lane.b32.xlu0 %v7856_v24, %s7461_s24  ;;  %801 = vrot.lane.b32.xlu1 %v7840_v58, %s7463_s26 }
 0x1f9   : > { %770 = vrot.lane.b32.xlu0 %v7856_v24, %s7462_s25  ;;  %834 = vrot.lane.b32.xlu1 %v7840_v58, %s7464_s27 }
 0x1fd   : > { %803 = vrot.lane.b32.xlu0 %v7856_v24, %s7463_s26  ;;  %867 = vrot.lane.b32.xlu1 %v7840_v58, %s7465_s28 }
 0x201   : > { %836 = vrot.lane.b32.xlu0 %v7856_v24, %s7464_s27  ;;  %900 = vrot.lane.b32.xlu1 %v7840_v58, %s7466_s29 }
 0x205   : > { %869 = vrot.lane.b32.xlu0 %v7856_v24, %s7465_s28  ;;  %933 = vrot.lane.b32.xlu1 %v7840_v58, %s7467_s30 }
 0x209   : > { %902 = vrot.lane.b32.xlu0 %v7856_v24, %s7466_s29  ;;  %975 = vrot.lane.b32.xlu1 %v7840_v58, %s7468_s5 }
 0x20d   : > { %935 = vrot.lane.b32.xlu0 %v7856_v24, %s7467_s30  ;;  %1016 = vrot.lane.b32.xlu1 %v7842_v14, %s7469_s6 }
 0x211   : > { %977 = vrot.lane.b32.xlu0 %v7856_v24, %s7468_s5  ;;  %1049 = vrot.lane.b32.xlu1 %v7842_v14, %s7470_s7 }
 0x215   : > { %1018 = vrot.lane.b32.xlu0 %v7858_v20, %s7469_s6  ;;  %1082 = vrot.lane.b32.xlu1 %v7842_v14, %s7471_s8 }
 0x219   : > { %1051 = vrot.lane.b32.xlu0 %v7858_v20, %s7470_s7  ;;  %1115 = vrot.lane.b32.xlu1 %v7842_v14, %s7472_s9 }
 0x21d   : > { %1084 = vrot.lane.b32.xlu0 %v7858_v20, %s7471_s8  ;;  %1148 = vrot.lane.b32.xlu1 %v7842_v14, %s7473_s10 }
 0x21f   : > { %v732_v40 = vpop.permute.xlu1 %731 }
 0x220   : > { %756 = vst.msk [vmem:[#allocation2] sm:$0xff] %vm755_vm1, %v732_v40 }
 0x221   : > { %1117 = vrot.lane.b32.xlu0 %v7858_v20, %s7472_s9  ;;  %1181 = vrot.lane.b32.xlu1 %v7842_v14, %s7474_s11 }
 0x223   : > { %v765_v41 = vpop.permute.xlu1 %764 }
 0x224   : > { %789 = vst.msk [vmem:[#allocation2] sm:$0xff] %vm788_vm2, %v765_v41 }
 0x225   : > { %1150 = vrot.lane.b32.xlu0 %v7858_v20, %s7473_s10  ;;  %1223 = vrot.lane.b32.xlu1 %v7842_v14, %s7475_s12 }
 0x227   : > { %v798_v43 = vpop.permute.xlu1 %797  ;;  %v734_v44 = vpop.permute.xlu0 %733 }
 0x228   : > { %822 = vst.msk [vmem:[#allocation2] sm:$0xff] %vm821_vm3, %v798_v43 }
 0x229   : > { %757 = vst.msk [vmem:[#allocation2 + $0x18] sm:$0xff] %vm755_vm1, %v734_v44  ;;  %1183 = vrot.lane.b32.xlu0 %v7858_v20, %s7474_s11  ;;  %1256 = vrot.lane.b32.xlu1 %v7842_v14, %s7476_s13 }
 0x22b   : > { %v831_v57 = vpop.permute.xlu1 %830  ;;  %v767_v33 = vpop.permute.xlu0 %766 }
 0x22c   : > { %855 = vst.msk [vmem:[#allocation2] sm:$0xff] %vm854_vm4, %v831_v57 }
 0x22d   : > { %790 = vst.msk [vmem:[#allocation2 + $0x18] sm:$0xff] %vm788_vm2, %v767_v33  ;;  %1225 = vrot.lane.b32.xlu0 %v7858_v20, %s7475_s12  ;;  %739 = vrot.lane.b32.xlu1 %v7872_v52, %s7461_s24 }
 0x22f   : > { %v864_v58 = vpop.permute.xlu1 %863  ;;  %v800_v24 = vpop.permute.xlu0 %799 }
 0x230   : > { %888 = vst.msk [vmem:[#allocation2] sm:$0xff] %vm887_vm5, %v864_v58 }
 0x231   : > { %823 = vst.msk [vmem:[#allocation2 + $0x18] sm:$0xff] %vm821_vm3, %v800_v24  ;;  %1258 = vrot.lane.b32.xlu0 %v7858_v20, %s7476_s13  ;;  %772 = vrot.lane.b32.xlu1 %v7872_v52, %s7462_s25 }
 0x233   : > { %v897_v14 = vpop.permute.xlu1 %896  ;;  %v833_v12 = vpop.permute.xlu0 %832 }
 0x234   : > { %921 = vst.msk [vmem:[#allocation2] sm:$0xff] %vm920_vm6, %v897_v14 }
 0x235   : > { %856 = vst.msk [vmem:[#allocation2 + $0x18] sm:$0xff] %vm854_vm4, %v833_v12  ;;  %805 = vrot.lane.b32.xlu1 %v7872_v52, %s7463_s26  ;;  %741 = vrot.lane.b32.xlu0 %v7896_v28, %s7461_s24 }
 0x237   : > { %v930_v26 = vpop.permute.xlu1 %929  ;;  %v866_v20 = vpop.permute.xlu0 %865 }
 0x238   : > { %954 = vst.msk [vmem:[#allocation2] sm:$0xff] %vm953_vm7, %v930_v26 }
 0x239   : > { %956 = vst.msk [vmem:[#allocation2 + $0x8] sm:$0xff] %vm11569_vm8, %v930_v26  ;;  %838 = vrot.lane.b32.xlu1 %v7872_v52, %s7464_s27  ;;  %774 = vrot.lane.b32.xlu0 %v7896_v28, %s7462_s25 }
 0x23a   : > { %889 = vst.msk [vmem:[#allocation2 + $0x18] sm:$0xff] %vm887_vm5, %v866_v20 }
 0x23b   : > { %v972_v56 = vpop.permute.xlu1 %971  ;;  %v899_v23 = vpop.permute.xlu0 %898 }
 0x23c   : > { %996 = vst.msk [vmem:[#allocation2 + $0x8] sm:$0xff] %vm11570_vm9, %v972_v56 }
 0x23d   : > { %922 = vst.msk [vmem:[#allocation2 + $0x18] sm:$0xff] %vm920_vm6, %v899_v23  ;;  %871 = vrot.lane.b32.xlu1 %v7872_v52, %s7465_s28  ;;  %807 = vrot.lane.b32.xlu0 %v7896_v28, %s7463_s26 }
 0x23f   : > { %v1013_v59 = vpop.permute.xlu1 %1012  ;;  %v932_v60 = vpop.permute.xlu0 %931  ;;  %v8093_v63 = vld [vmem:[#allocation2] sm:$0xff] }
 0x240   : > { %1037 = vst.msk [vmem:[#allocation2 + $0x8] sm:$0xff] %vm1036_vm10, %v1013_v59 }
 0x241   : > { %957 = vst.msk [vmem:[#allocation2 + $0x18] sm:$0xff] %vm953_vm7, %v932_v60  ;;  %904 = vrot.lane.b32.xlu1 %v7872_v52, %s7466_s29  ;;  %840 = vrot.lane.b32.xlu0 %v7896_v28, %s7464_s27 }
 0x242   : > { %958 = vst.msk [vmem:[#allocation2 + $0x20] sm:$0xff] %vm11569_vm8, %v932_v60 }
 0x243   : > { %v1046_v61 = vpop.permute.xlu1 %1045  ;;  %v974_v2 = vpop.permute.xlu0 %973 }
 0x244   : > { %1070 = vst.msk [vmem:[#allocation2 + $0x8] sm:$0xff] %vm11571_vm11, %v1046_v61 }
 0x245   : > { %997 = vst.msk [vmem:[#allocation2 + $0x20] sm:$0xff] %vm11570_vm9, %v974_v2  ;;  %937 = vrot.lane.b32.xlu1 %v7872_v52, %s7467_s30  ;;  %873 = vrot.lane.b32.xlu0 %v7896_v28, %s7465_s28 }
 0x247   : > { %v1079_v15 = vpop.permute.xlu1 %1078  ;;  %v1015_v8 = vpop.permute.xlu0 %1014 }
 0x248   : > { %1103 = vst.msk [vmem:[#allocation2 + $0x8] sm:$0xff] %vm11566_vm12, %v1079_v15  ;;  %v8115_v36 = vld [vmem:[#allocation2 + $0x18] sm:$0xff] }
 0x249   : > { %1038 = vst.msk [vmem:[#allocation2 + $0x20] sm:$0xff] %vm1036_vm10, %v1015_v8  ;;  %979 = vrot.lane.b32.xlu1 %v7872_v52, %s7468_s5  ;;  %906 = vrot.lane.b32.xlu0 %v7896_v28, %s7466_s29 }
 0x24b   : > { %v1112_v13 = vpop.permute.xlu1 %1111  ;;  %v1048_v62 = vpop.permute.xlu0 %1047 }
 0x24c   : > { %1136 = vst.msk [vmem:[#allocation2 + $0x8] sm:$0xff] %vm11567_vm13, %v1112_v13 }
 0x24d   : > { %1071 = vst.msk [vmem:[#allocation2 + $0x20] sm:$0xff] %vm11571_vm11, %v1048_v62  ;;  %1020 = vrot.lane.b32.xlu1 %v7874_v25, %s7469_s6  ;;  %939 = vrot.lane.b32.xlu0 %v7896_v28, %s7467_s30 }
 0x24f   : > { %v1145_v3 = vpop.permute.xlu1 %1144  ;;  %v1081_v4 = vpop.permute.xlu0 %1080 }
 0x250   : > { %1169 = vst.msk [vmem:[#allocation2 + $0x8] sm:$0xff] %vm1168_vm14, %v1145_v3 }
 0x251   : > { %1104 = vst.msk [vmem:[#allocation2 + $0x20] sm:$0xff] %vm11566_vm12, %v1081_v4  ;;  %1053 = vrot.lane.b32.xlu1 %v7874_v25, %s7470_s7  ;;  %981 = vrot.lane.b32.xlu0 %v7896_v28, %s7468_s5  ;;  %vm1243_vm12 = vcmask 253048  }
 0x253   : > { %v1178_v52 = vpop.permute.xlu1 %1177  ;;  %v1114_v29 = vpop.permute.xlu0 %1113 }
 0x254   : > { %1202 = vst.msk [vmem:[#allocation2 + $0x8] sm:$0xff] %vm1201_vm15, %v1178_v52 }
 0x255   : > { %1204 = vst.msk [vmem:[#allocation2 + $0x10] sm:$0xff] %vm11568_vm0, %v1178_v52  ;;  %1086 = vrot.lane.b32.xlu1 %v7874_v25, %s7471_s8  ;;  %1022 = vrot.lane.b32.xlu0 %v7898_v31, %s7469_s6 }
 0x256   : > { %1137 = vst.msk [vmem:[#allocation2 + $0x20] sm:$0xff] %vm11567_vm13, %v1114_v29  ;;  %vm1276_vm13 = vcmask 400648  }
 0x257   : > { %v1220_v32 = vpop.permute.xlu1 %1219  ;;  %v1147_v30 = vpop.permute.xlu0 %1146 }
 0x258   : > { %1244 = vst.msk [vmem:[#allocation2 + $0x10] sm:$0xff] %vm1243_vm12, %v1220_v32 }
 0x259   : > { %1170 = vst.msk [vmem:[#allocation2 + $0x20] sm:$0xff] %vm1168_vm14, %v1147_v30  ;;  %1119 = vrot.lane.b32.xlu1 %v7874_v25, %s7472_s9  ;;  %1055 = vrot.lane.b32.xlu0 %v7898_v31, %s7470_s7 }
 0x25b   : > { %v1253_v28 = vpop.permute.xlu1 %1252  ;;  %v1180_v7 = vpop.permute.xlu0 %1179  ;;  %v8083_v9 = vld [vmem:[#allocation2 + $0x8] sm:$0xff] }
 0x25c   : > { %1277 = vst.msk [vmem:[#allocation2 + $0x10] sm:$0xff] %vm1276_vm13, %v1253_v28  ;;  %1888 = vmatprep.subr.bf16.mxu1 %v8083_v9 }
 0x25d   : > { %1205 = vst.msk [vmem:[#allocation2 + $0x20] sm:$0xff] %vm1201_vm15, %v1180_v7  ;;  %1152 = vrot.lane.b32.xlu1 %v7874_v25, %s7473_s10  ;;  %1088 = vrot.lane.b32.xlu0 %v7898_v31, %s7471_s8 }
 0x25e   : > { %1206 = vst.msk [vmem:[#allocation2 + $0x28] sm:$0xff] %vm11568_vm0, %v1180_v7  ;;  %1889 = vmatpush1.bf16.msra.mxu1 %v8093_v63  ;;  %vm1311_vm0 = vcmask 261120  }
 0x25f   : > { %v736_v10 = vpop.permute.xlu1 %735  ;;  %v1222_v11 = vpop.permute.xlu0 %1221 }
 0x260   : > { %758 = vst.msk [vmem:[#allocation2 + $0x30] sm:$0xff] %vm755_vm1, %v736_v10 }
 0x261   : > { %1245 = vst.msk [vmem:[#allocation2 + $0x28] sm:$0xff] %vm1243_vm12, %v1222_v11  ;;  %1185 = vrot.lane.b32.xlu1 %v7874_v25, %s7474_s11  ;;  %1121 = vrot.lane.b32.xlu0 %v7898_v31, %s7472_s9 }
 0x263   : > { %v769_v17 = vpop.permute.xlu1 %768  ;;  %v1255_v27 = vpop.permute.xlu0 %1254  ;;  %v8104_v16 = vld [vmem:[#allocation2 + $0x10] sm:$0xff] }
 0x264   : > { %v8102_v18 = vld [vmem:[#allocation2 + $0x20] sm:$0xff]  ;;  %791 = vst.msk [vmem:[#allocation2 + $0x30] sm:$0xff] %vm788_vm2, %v769_v17 }
 0x265   : > { %1278 = vst.msk [vmem:[#allocation2 + $0x28] sm:$0xff] %vm1276_vm13, %v1255_v27  ;;  %1890 = vmatprep.subr.bf16.mxu1 %v8102_v18  ;;  %1227 = vrot.lane.b32.xlu1 %v7874_v25, %s7475_s12 }
 0x266   : > { %1312 = vst.msk [vmem:[#allocation3 + $0x10] sm:$0xff] %vm1311_vm0, %v8104_v16  ;;  %1154 = vrot.lane.b32.xlu0 %v7898_v31, %s7473_s10  ;;  %1891 = vmatpush1.bf16.msra.mxu1 %v8115_v36 }
 0x267   : > { %v802_v0 = vpop.permute.xlu1 %801  ;;  %v738_v21 = vpop.permute.xlu0 %737 }
 0x268   : > { %824 = vst.msk [vmem:[#allocation2 + $0x30] sm:$0xff] %vm821_vm3, %v802_v0 }
 0x269   : > { %759 = vst.msk [vmem:[#allocation2 + $0x48] sm:$0xff] %vm755_vm1, %v738_v21  ;;  %1260 = vrot.lane.b32.xlu1 %v7874_v25, %s7476_s13 }
 0x26a   : > { %1187 = vrot.lane.b32.xlu0 %v7898_v31, %s7474_s11 }
 0x26b   : > { %v835_v39 = vpop.permute.xlu1 %834  ;;  %v771_v19 = vpop.permute.xlu0 %770 }
 0x26c   : > { %v8124_v5 = vld [vmem:[#allocation2 + $0x28] sm:$0xff]  ;;  %857 = vst.msk [vmem:[#allocation2 + $0x30] sm:$0xff] %vm854_vm4, %v835_v39 }
 0x26d   : > { %792 = vst.msk [vmem:[#allocation2 + $0x48] sm:$0xff] %vm788_vm2, %v771_v19  ;;  %743 = vrot.lane.b32.xlu1 %v7912_v1, %s7461_s24 }
 0x26e   : > { %1315 = vst.msk [vmem:[#allocation3 + $0x28] sm:$0xff] %vm1311_vm0, %v8124_v5  ;;  %1229 = vrot.lane.b32.xlu0 %v7898_v31, %s7475_s12 }
 0x26f   : > { %v868_v25 = vpop.permute.xlu1 %867  ;;  %v804_v48 = vpop.permute.xlu0 %803 }
 0x270   : > { %890 = vst.msk [vmem:[#allocation2 + $0x30] sm:$0xff] %vm887_vm5, %v868_v25 }
 0x271   : > { %825 = vst.msk [vmem:[#allocation2 + $0x48] sm:$0xff] %vm821_vm3, %v804_v48  ;;  %776 = vrot.lane.b32.xlu1 %v7912_v1, %s7462_s25 }
 0x272   : > { %1262 = vrot.lane.b32.xlu0 %v7898_v31, %s7476_s13 }
 0x273   : > { %v901_v34 = vpop.permute.xlu1 %900  ;;  %v837_v6 = vpop.permute.xlu0 %836 }
 0x274   : > { %923 = vst.msk [vmem:[#allocation2 + $0x30] sm:$0xff] %vm920_vm6, %v901_v34 }
 0x275   : > { %858 = vst.msk [vmem:[#allocation2 + $0x48] sm:$0xff] %vm854_vm4, %v837_v6  ;;  %809 = vrot.lane.b32.xlu1 %v7912_v1, %s7463_s26 }
 0x276   : > { %745 = vrot.lane.b32.xlu0 %v7928_v54, %s7461_s24  ;;  %s7482_s24 = smov 92  }
 0x277   : > { %v934_v42 = vpop.permute.xlu1 %933  ;;  %v870_v45 = vpop.permute.xlu0 %869 }
 0x278   : > { %959 = vst.msk [vmem:[#allocation2 + $0x30] sm:$0xff] %vm953_vm7, %v934_v42 }
 0x279   : > { %960 = vst.msk [vmem:[#allocation2 + $0x38] sm:$0xff] %vm11569_vm8, %v934_v42  ;;  %842 = vrot.lane.b32.xlu1 %v7912_v1, %s7464_s27 }
 0x27a   : > { %891 = vst.msk [vmem:[#allocation2 + $0x48] sm:$0xff] %vm887_vm5, %v870_v45  ;;  %778 = vrot.lane.b32.xlu0 %v7928_v54, %s7462_s25  ;;  %s7494_s25 = smov 102  }
 0x27b   : > { %v976_v31 = vpop.permute.xlu1 %975  ;;  %v903_v38 = vpop.permute.xlu0 %902 }
 0x27c   : > { %998 = vst.msk [vmem:[#allocation2 + $0x38] sm:$0xff] %vm11570_vm9, %v976_v31 }
 0x27d   : > { %924 = vst.msk [vmem:[#allocation2 + $0x48] sm:$0xff] %vm920_vm6, %v903_v38  ;;  %875 = vrot.lane.b32.xlu1 %v7912_v1, %s7465_s28 }
 0x27e   : > { %811 = vrot.lane.b32.xlu0 %v7928_v54, %s7463_s26  ;;  %s7495_s26 = smov 100  }
 0x27f   : > { %v1017_v46 = vpop.permute.xlu1 %1016  ;;  %v936_v35 = vpop.permute.xlu0 %935  ;;  %v8213_v14 = vld [vmem:[#allocation2 + $0x30] sm:$0xff] }
 0x280   : > { %1039 = vst.msk [vmem:[#allocation2 + $0x38] sm:$0xff] %vm1036_vm10, %v1017_v46  ;;  %v8846_v49 = vld [vmem:[#allocation2 + $0x30] sm:$0xff] }
 0x281   : > { %961 = vst.msk [vmem:[#allocation2 + $0x48] sm:$0xff] %vm953_vm7, %v936_v35  ;;  %908 = vrot.lane.b32.xlu1 %v7912_v1, %s7466_s29 }
 0x282   : > { %962 = vst.msk [vmem:[#allocation2 + $0x50] sm:$0xff] %vm11569_vm8, %v936_v35  ;;  %844 = vrot.lane.b32.xlu0 %v7928_v54, %s7464_s27  ;;  %vm11593_vm8 = vcmask 712248   ;;  %s7483_s27 = smov 91  }
 0x283   : > { %v1050_v47 = vpop.permute.xlu1 %1049  ;;  %v978_v50 = vpop.permute.xlu0 %977 }
 0x284   : > { %1072 = vst.msk [vmem:[#allocation2 + $0x38] sm:$0xff] %vm11571_vm11, %v1050_v47 }
 0x285   : > { %999 = vst.msk [vmem:[#allocation2 + $0x50] sm:$0xff] %vm11570_vm9, %v978_v50  ;;  %941 = vrot.lane.b32.xlu1 %v7912_v1, %s7467_s30  ;;  %vm11594_vm9 = vcmask 859848  }
 0x286   : > { %877 = vrot.lane.b32.xlu0 %v7928_v54, %s7465_s28  ;;  %s7484_s28 = smov 90  }
 0x287   : > { %v1083_v51 = vpop.permute.xlu1 %1082  ;;  %v1019_v53 = vpop.permute.xlu0 %1018 }
 0x288   : > { %1105 = vst.msk [vmem:[#allocation2 + $0x38] sm:$0xff] %vm11593_vm8, %v1083_v51  ;;  %v8235_v60 = vld [vmem:[#allocation2 + $0x48] sm:$0xff] }
 0x289   : > { %1040 = vst.msk [vmem:[#allocation2 + $0x50] sm:$0xff] %vm1036_vm10, %v1019_v53  ;;  %983 = vrot.lane.b32.xlu1 %v7912_v1, %s7468_s5 }
 0x28a   : > { %910 = vrot.lane.b32.xlu0 %v7928_v54, %s7466_s29 }
 0x28b   : > { %v1116_v22 = vpop.permute.xlu1 %1115  ;;  %v1052_v40 = vpop.permute.xlu0 %1051 }
 0x28c   : > { %1138 = vst.msk [vmem:[#allocation2 + $0x38] sm:$0xff] %vm11594_vm9, %v1116_v22  ;;  %vm11595_vm9 = vcmask 105472  }
 0x28d   : > { %1073 = vst.msk [vmem:[#allocation2 + $0x50] sm:$0xff] %vm11571_vm11, %v1052_v40  ;;  %1024 = vrot.lane.b32.xlu1 %v7914_v37, %s7469_s6  ;;  %vm11596_vm11 = vcmask 859848  }
 0x28e   : > { %943 = vrot.lane.b32.xlu0 %v7928_v54, %s7467_s30 }
 0x28f   : > { %v1149_v41 = vpop.permute.xlu1 %1148  ;;  %v1085_v43 = vpop.permute.xlu0 %1084 }
 0x290   : > { %1171 = vst.msk [vmem:[#allocation2 + $0x38] sm:$0xff] %vm1168_vm14, %v1149_v41 }
 0x291   : > { %1106 = vst.msk [vmem:[#allocation2 + $0x50] sm:$0xff] %vm11593_vm8, %v1085_v43  ;;  %1057 = vrot.lane.b32.xlu1 %v7914_v37, %s7470_s7  ;;  %vm11598_vm8 = vcmask 121856  }
 0x292   : > { %985 = vrot.lane.b32.xlu0 %v7928_v54, %s7468_s5 }
 0x293   : > { %v1182_v1 = vpop.permute.xlu1 %1181  ;;  %v1118_v44 = vpop.permute.xlu0 %1117 }
 0x294   : > { %1207 = vst.msk [vmem:[#allocation2 + $0x38] sm:$0xff] %vm1201_vm15, %v1182_v1 }
 0x295   : > { %1208 = vst.msk [vmem:[#allocation2 + $0x40] sm:$0xff] %vm11595_vm9, %v1182_v1  ;;  %1090 = vrot.lane.b32.xlu1 %v7914_v37, %s7471_s8 }
 0x296   : > { %1139 = vst.msk [vmem:[#allocation2 + $0x50] sm:$0xff] %vm11596_vm11, %v1118_v44  ;;  %1026 = vrot.lane.b32.xlu0 %v7930_v55, %s7469_s6  ;;  %vm11597_vm11 = vmmov %vm11595_vm9  ;;  %vm11599_vm9 = vcmask 269448  }
 0x297   : > { %v1224_v57 = vpop.permute.xlu1 %1223  ;;  %v1151_v33 = vpop.permute.xlu0 %1150 }
 0x298   : > { %1246 = vst.msk [vmem:[#allocation2 + $0x40] sm:$0xff] %vm1243_vm12, %v1224_v57 }
 0x299   : > { %1172 = vst.msk [vmem:[#allocation2 + $0x50] sm:$0xff] %vm1168_vm14, %v1151_v33  ;;  %1123 = vrot.lane.b32.xlu1 %v7914_v37, %s7472_s9 }
 0x29a   : > { %1059 = vrot.lane.b32.xlu0 %v7930_v55, %s7470_s7 }
 0x29b   : > { %v1257_v54 = vpop.permute.xlu1 %1256  ;;  %v1184_v58 = vpop.permute.xlu0 %1183  ;;  %v8203_v24 = vld [vmem:[#allocation2 + $0x38] sm:$0xff] }
 0x29c   : > { %1279 = vst.msk [vmem:[#allocation2 + $0x40] sm:$0xff] %vm1276_vm13, %v1257_v54  ;;  %1892 = vmatprep.subr.bf16.mxu1 %v8203_v24 }
 0x29d   : > { %1209 = vst.msk [vmem:[#allocation2 + $0x50] sm:$0xff] %vm1201_vm15, %v1184_v58  ;;  %1156 = vrot.lane.b32.xlu1 %v7914_v37, %s7473_s10  ;;  %1893 = vmatpush1.bf16.msra.mxu1 %v8213_v14 }
 0x29e   : > { %1210 = vst.msk [vmem:[#allocation2 + $0x58] sm:$0xff] %vm11597_vm11, %v1184_v58  ;;  %1092 = vrot.lane.b32.xlu0 %v7930_v55, %s7471_s8  ;;  %vm11600_vm11 = vmmov %vm11598_vm8 }
 0x29f   : > { %v740_v12 = vpop.permute.xlu1 %739  ;;  %v1226_v26 = vpop.permute.xlu0 %1225 }
 0x2a0   : > { %760 = vst.msk [vmem:[#allocation2 + $0x60] sm:$0xff] %vm755_vm1, %v740_v12 }
 0x2a1   : > { %1247 = vst.msk [vmem:[#allocation2 + $0x58] sm:$0xff] %vm1243_vm12, %v1226_v26  ;;  %1189 = vrot.lane.b32.xlu1 %v7914_v37, %s7474_s11 }
 0x2a2   : > { %1125 = vrot.lane.b32.xlu0 %v7930_v55, %s7472_s9 }
 0x2a3   : > { %v773_v20 = vpop.permute.xlu1 %772  ;;  %v1259_v56 = vpop.permute.xlu0 %1258  ;;  %v8224_v59 = vld [vmem:[#allocation2 + $0x40] sm:$0xff] }
 0x2a4   : > { %v8222_v23 = vld [vmem:[#allocation2 + $0x50] sm:$0xff]  ;;  %793 = vst.msk [vmem:[#allocation2 + $0x60] sm:$0xff] %vm788_vm2, %v773_v20 }
 0x2a5   : > { %1280 = vst.msk [vmem:[#allocation2 + $0x58] sm:$0xff] %vm1276_vm13, %v1259_v56  ;;  %1894 = vmatprep.subr.bf16.mxu1 %v8222_v23  ;;  %1231 = vrot.lane.b32.xlu1 %v7914_v37, %s7475_s12 }
 0x2a6   : > { %1318 = vst.msk [vmem:[#allocation3 + $0x40] sm:$0xff] %vm1311_vm0, %v8224_v59  ;;  %1158 = vrot.lane.b32.xlu0 %v7930_v55, %s7473_s10  ;;  %1895 = vmatpush1.bf16.msra.mxu1 %v8235_v60  ;;  %s10237_s10 = scalar_lea.vmem %s11565_s4, %s6808_s19  ;;  %s7486_s19 = smov 124  }
 0x2a7   : > { %v806_v61 = vpop.permute.xlu1 %805  ;;  %v742_v2 = vpop.permute.xlu0 %741 }
 0x2a8   : > { %826 = vst.msk [vmem:[#allocation2 + $0x60] sm:$0xff] %vm821_vm3, %v806_v61 }
 0x2a9   : > { %761 = vst.msk [vmem:[#allocation2 + $0x78] sm:$0xff] %vm755_vm1, %v742_v2  ;;  %1264 = vrot.lane.b32.xlu1 %v7914_v37, %s7476_s13 }
 0x2aa   : > { %1191 = vrot.lane.b32.xlu0 %v7930_v55, %s7474_s11  ;;  %s7487_s11 = smov 122  }
 0x2ab   : > { %v839_v15 = vpop.permute.xlu1 %838  ;;  %v775_v8 = vpop.permute.xlu0 %774 }
 0x2ac   : > { %v8244_v13 = vld [vmem:[#allocation2 + $0x58] sm:$0xff]  ;;  %859 = vst.msk [vmem:[#allocation2 + $0x60] sm:$0xff] %vm854_vm4, %v839_v15 }
 0x2ad   : > { %794 = vst.msk [vmem:[#allocation2 + $0x78] sm:$0xff] %vm788_vm2, %v775_v8  ;;  %1386 = vrot.lane.b32.xlu1 %v8104_v16, %s7477_s14 }
 0x2ae   : > { %1321 = vst.msk [vmem:[#allocation3 + $0x58] sm:$0xff] %vm1311_vm0, %v8244_v13  ;;  %1233 = vrot.lane.b32.xlu0 %v7930_v55, %s7475_s12  ;;  %s7488_s12 = smov 120  }
 0x2af   : > { %v872_v37 = vpop.permute.xlu1 %871  ;;  %v808_v62 = vpop.permute.xlu0 %807 }
 0x2b0   : > { %892 = vst.msk [vmem:[#allocation2 + $0x60] sm:$0xff] %vm887_vm5, %v872_v37 }
 0x2b1   : > { %827 = vst.msk [vmem:[#allocation2 + $0x78] sm:$0xff] %vm821_vm3, %v808_v62  ;;  %1547 = vrot.lane.b32.xlu1 %v8104_v16, %s7478_s20 }
 0x2b2   : > { %1266 = vrot.lane.b32.xlu0 %v7930_v55, %s7476_s13  ;;  %s7489_s13 = smov 118  }
 0x2b3   : > { %v905_v3 = vpop.permute.xlu1 %904  ;;  %v841_v4 = vpop.permute.xlu0 %840 }
 0x2b4   : > { %925 = vst.msk [vmem:[#allocation2 + $0x60] sm:$0xff] %vm920_vm6, %v905_v3 }
 0x2b5   : > { %860 = vst.msk [vmem:[#allocation2 + $0x78] sm:$0xff] %vm854_vm4, %v841_v4  ;;  %2408 = vrot.lane.b32.xlu1 %v8104_v16, %s7479_s21 }
 0x2b6   : > { %1384 = vrot.lane.b32.xlu0 %v8083_v9, %s7477_s14 }
 0x2b7   : > { %v938_v52 = vpop.permute.xlu1 %937  ;;  %v874_v29 = vpop.permute.xlu0 %873 }
 0x2b8   : > { %963 = vst.msk [vmem:[#allocation2 + $0x60] sm:$0xff] %vm953_vm7, %v938_v52 }
 0x2b9   : > { %964 = vst.msk [vmem:[#allocation2 + $0x68] sm:$0xff] %vm11598_vm8, %v938_v52  ;;  %2569 = vrot.lane.b32.xlu1 %v8104_v16, %s7480_s22  ;;  %vm11601_vm8 = vcmask 564648  }
 0x2ba   : > { %893 = vst.msk [vmem:[#allocation2 + $0x78] sm:$0xff] %vm887_vm5, %v874_v29  ;;  %1545 = vrot.lane.b32.xlu0 %v8083_v9, %s7478_s20 }
 0x2bb   : > { %v980_v55 = vpop.permute.xlu1 %979  ;;  %v907_v32 = vpop.permute.xlu0 %906 }
 0x2bc   : > { %1000 = vst.msk [vmem:[#allocation2 + $0x68] sm:$0xff] %vm11599_vm9, %v980_v55 }
 0x2bd   : > { %926 = vst.msk [vmem:[#allocation2 + $0x78] sm:$0xff] %vm920_vm6, %v907_v32  ;;  %2730 = vrot.lane.b32.xlu1 %v8104_v16, %s7481_s23 }
 0x2be   : > { %2406 = vrot.lane.b32.xlu0 %v8083_v9, %s7479_s21 }
 0x2bf   : > { %v1021_v30 = vpop.permute.xlu1 %1020  ;;  %v940_v28 = vpop.permute.xlu0 %939 }
 0x2c0   : > { %1041 = vst.msk [vmem:[#allocation2 + $0x68] sm:$0xff] %vm1036_vm10, %v1021_v30 }
 0x2c1   : > { %965 = vst.msk [vmem:[#allocation2 + $0x78] sm:$0xff] %vm953_vm7, %v940_v28  ;;  %3688 = vrot.lane.b32.xlu1 %v8104_v16, %s7482_s24 }
 0x2c2   : > { %966 = vst.msk [vmem:[#allocation2 + $0x80] sm:$0xff] %vm11600_vm11, %v940_v28  ;;  %2567 = vrot.lane.b32.xlu0 %v8083_v9, %s7480_s22  ;;  %vm11602_vm11 = vcmask 712248  }
 0x2c3   : > { %v1054_v7 = vpop.permute.xlu1 %1053  ;;  %v982_v10 = vpop.permute.xlu0 %981 }
 0x2c4   : > { %1074 = vst.msk [vmem:[#allocation2 + $0x68] sm:$0xff] %vm11601_vm8, %v1054_v7  ;;  %vm11603_vm8 = vcmask 859848  }
 0x2c5   : > { %1001 = vst.msk [vmem:[#allocation2 + $0x80] sm:$0xff] %vm11599_vm9, %v982_v10  ;;  %1382 = vrot.lane.b32.xlu1 %v8093_v63, %s7477_s14  ;;  %vm11604_vm9 = vcmask 564648  }
 0x2c6   : > { %2728 = vrot.lane.b32.xlu0 %v8083_v9, %s7481_s23 }
 0x2c7   : > { %v1087_v11 = vpop.permute.xlu1 %1086  ;;  %v1023_v17 = vpop.permute.xlu0 %1022 }
 0x2c8   : > { %1107 = vst.msk [vmem:[#allocation2 + $0x68] sm:$0xff] %vm11602_vm11, %v1087_v11  ;;  %v1690_v11 = vld [vmem:[#allocation3 + $0x10] sm:$0xff] }
 0x2c9   : > { %1042 = vst.msk [vmem:[#allocation2 + $0x80] sm:$0xff] %vm1036_vm10, %v1023_v17  ;;  %1543 = vrot.lane.b32.xlu1 %v8093_v63, %s7478_s20 }
 0x2ca   : > { %3686 = vrot.lane.b32.xlu0 %v8083_v9, %s7482_s24 }
 0x2cb   : > { %v1120_v27 = vpop.permute.xlu1 %1119  ;;  %v1056_v16 = vpop.permute.xlu0 %1055 }
 0x2cc   : > { %1140 = vst.msk [vmem:[#allocation2 + $0x68] sm:$0xff] %vm11603_vm8, %v1120_v27  ;;  %vm11605_vm8 = vcmask 105472  }
 0x2cd   : > { %1075 = vst.msk [vmem:[#allocation2 + $0x80] sm:$0xff] %vm11604_vm9, %v1056_v16  ;;  %2404 = vrot.lane.b32.xlu1 %v8093_v63, %s7479_s21  ;;  %vm11606_vm9 = vcmask 859848  }
 0x2ce   : > { %1392 = vrot.lane.b32.xlu0 %v8124_v5, %s7477_s14 }
 0x2cf   : > { %v1153_v0 = vpop.permute.xlu1 %1152  ;;  %v1089_v21 = vpop.permute.xlu0 %1088 }
 0x2d0   : > { %1173 = vst.msk [vmem:[#allocation2 + $0x68] sm:$0xff] %vm1168_vm14, %v1153_v0 }
 0x2d1   : > { %1108 = vst.msk [vmem:[#allocation2 + $0x80] sm:$0xff] %vm11602_vm11, %v1089_v21  ;;  %2565 = vrot.lane.b32.xlu1 %v8093_v63, %s7480_s22  ;;  %vm11607_vm11 = vmmov %vm11605_vm8 }
 0x2d2   : > { %1553 = vrot.lane.b32.xlu0 %v8124_v5, %s7478_s20 }
 0x2d3   : > { %v1186_v9 = vpop.permute.xlu1 %1185  ;;  %v1122_v39 = vpop.permute.xlu0 %1121 }
 0x2d4   : > { %1211 = vst.msk [vmem:[#allocation2 + $0x68] sm:$0xff] %vm1201_vm15, %v1186_v9 }
 0x2d5   : > { %1212 = vst.msk [vmem:[#allocation2 + $0x70] sm:$0xff] %vm11605_vm8, %v1186_v9  ;;  %2726 = vrot.lane.b32.xlu1 %v8093_v63, %s7481_s23 }
 0x2d6   : > { %1141 = vst.msk [vmem:[#allocation2 + $0x80] sm:$0xff] %vm11606_vm9, %v1122_v39  ;;  %2414 = vrot.lane.b32.xlu0 %v8124_v5, %s7479_s21 }
 0x2d7   : > { %v1228_v19 = vpop.permute.xlu1 %1227 }
 0x2d8   : > { %v1155_v25 = vpop.permute.xlu0 %1154  ;;  %1248 = vst.msk [vmem:[#allocation2 + $0x70] sm:$0xff] %vm1243_vm12, %v1228_v19 }
 0x2d9   : > { %1174 = vst.msk [vmem:[#allocation2 + $0x80] sm:$0xff] %vm1168_vm14, %v1155_v25  ;;  %3684 = vrot.lane.b32.xlu1 %v8093_v63, %s7482_s24  ;;  %v8333_v63 = vld [vmem:[#allocation2 + $0x60] sm:$0xff] }
 0x2da   : > { %2575 = vrot.lane.b32.xlu0 %v8124_v5, %s7480_s22 }
 0x2db   : > { %v1261_v48 = vpop.permute.xlu1 %1260  ;;  %v8323_v6 = vld [vmem:[#allocation2 + $0x68] sm:$0xff] }
 0x2dc   : > { %v1188_v34 = vpop.permute.xlu0 %1187  ;;  %1281 = vst.msk [vmem:[#allocation2 + $0x70] sm:$0xff] %vm1276_vm13, %v1261_v48  ;;  %1896 = vmatprep.subr.bf16.mxu1 %v8323_v6 }
 0x2dd   : > { %1213 = vst.msk [vmem:[#allocation2 + $0x80] sm:$0xff] %vm1201_vm15, %v1188_v34  ;;  %1390 = vrot.lane.b32.xlu1 %v8102_v18, %s7477_s14  ;;  %1897 = vmatpush1.bf16.msra.mxu1 %v8333_v63 }
 0x2de   : > { %1214 = vst.msk [vmem:[#allocation2 + $0x88] sm:$0xff] %vm11607_vm11, %v1188_v34  ;;  %2736 = vrot.lane.b32.xlu0 %v8124_v5, %s7481_s23 }
 0x2df   : > { %v744_v42 = vpop.permute.xlu1 %743 }
 0x2e0   : > { %v1230_v45 = vpop.permute.xlu0 %1229  ;;  %762 = vst.msk [vmem:[#allocation2 + $0x90] sm:$0xff] %vm755_vm1, %v744_v42 }
 0x2e1   : > { %1249 = vst.msk [vmem:[#allocation2 + $0x88] sm:$0xff] %vm1243_vm12, %v1230_v45  ;;  %1551 = vrot.lane.b32.xlu1 %v8102_v18, %s7478_s20 }
 0x2e2   : > { %3694 = vrot.lane.b32.xlu0 %v8124_v5, %s7482_s24  ;;  %v8355_v5 = vld [vmem:[#allocation2 + $0x78] sm:$0xff] }
 0x2e3   : > { %v777_v31 = vpop.permute.xlu1 %776  ;;  %v8344_v35 = vld [vmem:[#allocation2 + $0x70] sm:$0xff] }
 0x2e4   : > { %v1263_v38 = vpop.permute.xlu0 %1262  ;;  %v8342_v46 = vld [vmem:[#allocation2 + $0x80] sm:$0xff]  ;;  %795 = vst.msk [vmem:[#allocation2 + $0x90] sm:$0xff] %vm788_vm2, %v777_v31 }
 0x2e5   : > { %1282 = vst.msk [vmem:[#allocation2 + $0x88] sm:$0xff] %vm1276_vm13, %v1263_v38  ;;  %1898 = vmatprep.subr.bf16.mxu1 %v8342_v46  ;;  %2412 = vrot.lane.b32.xlu1 %v8102_v18, %s7479_s21 }
 0x2e6   : > { %1324 = vst.msk [vmem:[#allocation3 + $0x70] sm:$0xff] %vm1311_vm0, %v8344_v35  ;;  %1388 = vrot.lane.b32.xlu0 %v8115_v36, %s7477_s14  ;;  %1899 = vmatpush1.bf16.msra.mxu1 %v8355_v5 }
 0x2e7   : > { %v810_v47 = vpop.permute.xlu1 %809 }
 0x2e8   : > { %v746_v50 = vpop.permute.xlu0 %745  ;;  %828 = vst.msk [vmem:[#allocation2 + $0x90] sm:$0xff] %vm821_vm3, %v810_v47 }
 0x2e9   : > { %763 = vst.msk [vmem:[#allocation2 + $0xa8] sm:$0xff] %vm755_vm1, %v746_v50  ;;  %2573 = vrot.lane.b32.xlu1 %v8102_v18, %s7480_s22  ;;  %vm11608_vm1 = vcmask 121856  }
 0x2ea   : > { %1549 = vrot.lane.b32.xlu0 %v8115_v36, %s7478_s20 }
 0x2eb   : > { %v843_v51 = vpop.permute.xlu1 %842 }
 0x2ec   : > { %v779_v53 = vpop.permute.xlu0 %778  ;;  %v8364_v22 = vld [vmem:[#allocation2 + $0x88] sm:$0xff]  ;;  %861 = vst.msk [vmem:[#allocation2 + $0x90] sm:$0xff] %vm854_vm4, %v843_v51 }
 0x2ed   : > { %796 = vst.msk [vmem:[#allocation2 + $0xa8] sm:$0xff] %vm788_vm2, %v779_v53  ;;  %2734 = vrot.lane.b32.xlu1 %v8102_v18, %s7481_s23  ;;  %vm11609_vm2 = vcmask 269448  }
 0x2ee   : > { %1327 = vst.msk [vmem:[#allocation3 + $0x88] sm:$0xff] %vm1311_vm0, %v8364_v22  ;;  %2410 = vrot.lane.b32.xlu0 %v8115_v36, %s7479_s21 }
 0x2ef   : > { %v876_v40 = vpop.permute.xlu1 %875 }
 0x2f0   : > { %v812_v41 = vpop.permute.xlu0 %811  ;;  %894 = vst.msk [vmem:[#allocation2 + $0x90] sm:$0xff] %vm887_vm5, %v876_v40 }
 0x2f1   : > { %829 = vst.msk [vmem:[#allocation2 + $0xa8] sm:$0xff] %vm821_vm3, %v812_v41  ;;  %3692 = vrot.lane.b32.xlu1 %v8102_v18, %s7482_s24  ;;  %vm11610_vm3 = vmmov %vm11608_vm1 }
 0x2f2   : > { %2571 = vrot.lane.b32.xlu0 %v8115_v36, %s7480_s22 }
 0x2f3   : > { %v909_v43 = vpop.permute.xlu1 %908 }
 0x2f4   : > { %v845_v1 = vpop.permute.xlu0 %844  ;;  %927 = vst.msk [vmem:[#allocation2 + $0x90] sm:$0xff] %vm920_vm6, %v909_v43 }
 0x2f5   : > { %862 = vst.msk [vmem:[#allocation2 + $0xa8] sm:$0xff] %vm854_vm4, %v845_v1  ;;  %1398 = vrot.lane.b32.xlu1 %v8224_v59, %s7477_s14  ;;  %vm11611_vm4 = vcmask 564648  }
 0x2f6   : > { %2732 = vrot.lane.b32.xlu0 %v8115_v36, %s7481_s23  ;;  %vm11615_vm8 = vmmov %vm11611_vm4 }
 0x2f7   : > { %v942_v44 = vpop.permute.xlu1 %941 }
 0x2f8   : > { %v878_v57 = vpop.permute.xlu0 %877  ;;  %967 = vst.msk [vmem:[#allocation2 + $0x90] sm:$0xff] %vm953_vm7, %v942_v44 }
 0x2f9   : > { %968 = vst.msk [vmem:[#allocation2 + $0x98] sm:$0xff] %vm11608_vm1, %v942_v44  ;;  %1559 = vrot.lane.b32.xlu1 %v8224_v59, %s7478_s20 }
 0x2fa   : > { %895 = vst.msk [vmem:[#allocation2 + $0xa8] sm:$0xff] %vm887_vm5, %v878_v57  ;;  %3690 = vrot.lane.b32.xlu0 %v8115_v36, %s7482_s24  ;;  %vm11612_vm5 = vmmov %vm11609_vm2 }
 0x2fb   : > { %v984_v18 = vpop.permute.xlu1 %983 }
 0x2fc   : > { %v911_v33 = vpop.permute.xlu0 %910  ;;  %1002 = vst.msk [vmem:[#allocation2 + $0x98] sm:$0xff] %vm11609_vm2, %v984_v18  ;;  %vm3732_vm2 = vcmask 752640  }
 0x2fd   : > { %928 = vst.msk [vmem:[#allocation2 + $0xa8] sm:$0xff] %vm920_vm6, %v911_v33  ;;  %2420 = vrot.lane.b32.xlu1 %v8224_v59, %s7479_s21  ;;  %vm11613_vm6 = vcmask 712248  }
 0x2fe   : > { %1396 = vrot.lane.b32.xlu0 %v8203_v24, %s7477_s14 }
 0x2ff   : > { %v1025_v54 = vpop.permute.xlu1 %1024  ;;  %v8453_v29 = vld [vmem:[#allocation2 + $0x90] sm:$0xff] }
 0x300   : > { %v944_v58 = vpop.permute.xlu0 %943  ;;  %1043 = vst.msk [vmem:[#allocation2 + $0x98] sm:$0xff] %vm1036_vm10, %v1025_v54 }
 0x301   : > { %969 = vst.msk [vmem:[#allocation2 + $0xa8] sm:$0xff] %vm953_vm7, %v944_v58  ;;  %2581 = vrot.lane.b32.xlu1 %v8224_v59, %s7480_s22  ;;  %vm11614_vm7 = vmmov %vm11606_vm9 }
 0x302   : > { %970 = vst.msk [vmem:[#allocation2 + $0xb0] sm:$0xff] %vm11610_vm3, %v944_v58  ;;  %1557 = vrot.lane.b32.xlu0 %v8203_v24, %s7478_s20  ;;  %vm11617_vm9 = vmmov %vm11607_vm11  ;;  %vm3893_vm3 = vcmask 744448  }
 0x303   : > { %v1058_v36 = vpop.permute.xlu1 %1057  ;;  %vm11618_vm11 = vmmov %vm11614_vm7 }
 0x304   : > { %v986_v12 = vpop.permute.xlu0 %985  ;;  %1076 = vst.msk [vmem:[#allocation2 + $0x98] sm:$0xff] %vm11611_vm4, %v1058_v36  ;;  %vm11619_vm1 = vmmov %vm11617_vm9  ;;  %v1693_v36 = vld [vmem:[#allocation3 + $0x28] sm:$0xff]  ;;  %vm4054_vm4 = vcmask 736256  }
 0x305   : > { %1003 = vst.msk [vmem:[#allocation2 + $0xb0] sm:$0xff] %vm11612_vm5, %v986_v12  ;;  %2742 = vrot.lane.b32.xlu1 %v8224_v59, %s7481_s23  ;;  %vm2774_vm5 = vcmask 883712  }
 0x306   : > { %2418 = vrot.lane.b32.xlu0 %v8203_v24, %s7479_s21 }
 0x307   : > { %v1091_v26 = vpop.permute.xlu1 %1090 }
 0x308   : > { %v1027_v20 = vpop.permute.xlu0 %1026  ;;  %1109 = vst.msk [vmem:[#allocation2 + $0x98] sm:$0xff] %vm11613_vm6, %v1091_v26  ;;  %v8475_v10 = vld [vmem:[#allocation2 + $0xa8] sm:$0xff] }
 0x309   : > { %1044 = vst.msk [vmem:[#allocation2 + $0xb0] sm:$0xff] %vm1036_vm10, %v1027_v20  ;;  %1394 = vrot.lane.b32.xlu1 %v8213_v14, %s7477_s14  ;;  %vm11616_vm10 = vmmov %vm11613_vm6  ;;  %vm4932_vm6 = vcmask 130048  }
 0x30a   : > { %2579 = vrot.lane.b32.xlu0 %v8203_v24, %s7480_s22 }
 0x30b   : > { %v1124_v56 = vpop.permute.xlu1 %1123 }
 0x30c   : > { %v1060_v61 = vpop.permute.xlu0 %1059  ;;  %1142 = vst.msk [vmem:[#allocation2 + $0x98] sm:$0xff] %vm11614_vm7, %v1124_v56  ;;  %vm5126_vm7 = vcmask 392448  }
 0x30d   : > { %1077 = vst.msk [vmem:[#allocation2 + $0xb0] sm:$0xff] %vm11615_vm8, %v1060_v61  ;;  %1555 = vrot.lane.b32.xlu1 %v8213_v14, %s7478_s20  ;;  %vm5223_vm8 = vcmask 523648  }
 0x30e   : > { %2740 = vrot.lane.b32.xlu0 %v8203_v24, %s7481_s23 }
 0x30f   : > { %v1157_v2 = vpop.permute.xlu1 %1156 }
 0x310   : > { %v1093_v15 = vpop.permute.xlu0 %1092  ;;  %1175 = vst.msk [vmem:[#allocation2 + $0x98] sm:$0xff] %vm1168_vm14, %v1157_v2 }
 0x311   : > { %1110 = vst.msk [vmem:[#allocation2 + $0xb0] sm:$0xff] %vm11616_vm10, %v1093_v15  ;;  %2416 = vrot.lane.b32.xlu1 %v8213_v14, %s7479_s21  ;;  %vm5320_vm10 = vcmask 654848  }
 0x312   : > { %1404 = vrot.lane.b32.xlu0 %v8244_v13, %s7477_s14 }
 0x313   : > { %v1190_v8 = vpop.permute.xlu1 %1189 }
 0x314   : > { %v1126_v37 = vpop.permute.xlu0 %1125  ;;  %1215 = vst.msk [vmem:[#allocation2 + $0x98] sm:$0xff] %vm1201_vm15, %v1190_v8 }
 0x315   : > { %1216 = vst.msk [vmem:[#allocation2 + $0xa0] sm:$0xff] %vm11617_vm9, %v1190_v8  ;;  %2577 = vrot.lane.b32.xlu1 %v8213_v14, %s7480_s22  ;;  %vm5417_vm9 = vcmask 786048  }
 0x316   : > { %1143 = vst.msk [vmem:[#allocation2 + $0xb0] sm:$0xff] %vm11618_vm11, %v1126_v37  ;;  %1565 = vrot.lane.b32.xlu0 %v8244_v13, %s7478_s20  ;;  %vm5514_vm11 = vcmask 917248  }
 0x317   : > { %v1232_v24 = vpop.permute.xlu1 %1231 }
 0x318   : > { %v1159_v62 = vpop.permute.xlu0 %1158  ;;  %1250 = vst.msk [vmem:[#allocation2 + $0xa0] sm:$0xff] %vm1243_vm12, %v1232_v24 }
 0x319   : > { %1176 = vst.msk [vmem:[#allocation2 + $0xb0] sm:$0xff] %vm1168_vm14, %v1159_v62  ;;  %2738 = vrot.lane.b32.xlu1 %v8213_v14, %s7481_s23  ;;  %vm2452_vm14 = vcmask 900096  }
 0x31a   : > { %2426 = vrot.lane.b32.xlu0 %v8244_v13, %s7479_s21 }
 0x31b   : > { %v1265_v3 = vpop.permute.xlu1 %1264  ;;  %v8443_v52 = vld [vmem:[#allocation2 + $0x98] sm:$0xff] }
 0x31c   : > { %v1192_v4 = vpop.permute.xlu0 %1191  ;;  %1283 = vst.msk [vmem:[#allocation2 + $0xa0] sm:$0xff] %vm1276_vm13, %v1265_v3  ;;  %1900 = vmatprep.subr.bf16.mxu1 %v8443_v52 }
 0x31d   : > { %1217 = vst.msk [vmem:[#allocation2 + $0xb0] sm:$0xff] %vm1201_vm15, %v1192_v4  ;;  %3696 = vrot.lane.b32.xlu1 %v8213_v14, %s7482_s24  ;;  %1901 = vmatpush1.bf16.msra.mxu1 %v8453_v29  ;;  %vm2613_vm15 = vcmask 891904  }
 0x31e   : > { %1218 = vst.msk [vmem:[#allocation2 + $0xb8] sm:$0xff] %vm11619_vm1, %v1192_v4  ;;  %2587 = vrot.lane.b32.xlu0 %v8244_v13, %s7480_s22  ;;  %vm5659_vm1 = vcmask 932864  }
 0x31f   : > { %v1387_v55 = vpop.permute.xlu1 %1386 }
 0x320   : > { %v1234_v32 = vpop.permute.xlu0 %1233  ;;  %1473 = vst.msk [vmem:[#allocation3 + $0xd0] sm:$0xff] %vm1311_vm0, %v1387_v55 }
 0x321   : > { %1251 = vst.msk [vmem:[#allocation2 + $0xb8] sm:$0xff] %vm1243_vm12, %v1234_v32  ;;  %1402 = vrot.lane.b32.xlu1 %v8222_v23, %s7477_s14  ;;  %vm1430_vm12 = vcmask 1039360  }
 0x322   : > { %2748 = vrot.lane.b32.xlu0 %v8244_v13, %s7481_s23 }
 0x323   : > { %v1548_v14 = vpop.permute.xlu1 %1547  ;;  %v8464_v7 = vld [vmem:[#allocation2 + $0xa0] sm:$0xff] }
 0x324   : > { %v1267_v30 = vpop.permute.xlu0 %1266  ;;  %v8462_v28 = vld [vmem:[#allocation2 + $0xb0] sm:$0xff]  ;;  %1634 = vst.msk [vmem:[#allocation3 + $0x190] sm:$0xff] %vm1311_vm0, %v1548_v14  ;;  %1330 = vst.msk [vmem:[#allocation3 + $0xa0] sm:$0xff] %vm1311_vm0, %v8464_v7 }
 0x325   : > { %1284 = vst.msk [vmem:[#allocation2 + $0xb8] sm:$0xff] %vm1276_vm13, %v1267_v30  ;;  %1902 = vmatprep.subr.bf16.mxu1 %v8462_v28  ;;  %1563 = vrot.lane.b32.xlu1 %v8222_v23, %s7478_s20  ;;  %vm1591_vm13 = vcmask 1031168  }
 0x326   : > { %1400 = vrot.lane.b32.xlu0 %v8235_v60, %s7477_s14  ;;  %1903 = vmatpush1.bf16.msra.mxu1 %v8475_v10 }
 0x327   : > { %v2409_v17 = vpop.permute.xlu1 %2408  ;;  %v1714_v16 = vld [vmem:[#allocation3 + $0xd0] sm:$0xff] }
 0x328   : > { %v1385_v27 = vpop.permute.xlu0 %1384  ;;  %2495 = vst.msk [vmem:[#allocation3 + $0x10] sm:$0xff] %vm1311_vm0, %v2409_v17  ;;  %6810 = vmatprep.subr.bf16.mxu0 %v1714_v16 }
 0x329   : > { %v1432_v0 = vsel %vm1430_vm12, %v1385_v27, %v1387_v55  ;;  %6811 = vmatpush3.bf16.msra.mxu0 %v1690_v11  ;;  %2424 = vrot.lane.b32.xlu1 %v8222_v23, %s7479_s21 }
 0x32a   : > { %1561 = vrot.lane.b32.xlu0 %v8235_v60, %s7478_s20  ;;  %1904 = vmatprep.subr.bf16.mxu1 %v1432_v0 }
 0x32b   : > { %v2570_v21 = vpop.permute.xlu1 %2569  ;;  %v8496_v34 = vld [vmem:[#allocation3 + $0x190] sm:$0xff] }
 0x32c   : > { %v1546_v9 = vpop.permute.xlu0 %1545  ;;  %v8484_v39 = vld [vmem:[#allocation2 + $0xb8] sm:$0xff]  ;;  %2656 = vst.msk [vmem:[#allocation3 + $0xd0] sm:$0xff] %vm1311_vm0, %v2570_v21 }
 0x32d   : > { %v1593_v19 = vsel %vm1591_vm13, %v1546_v9, %v1548_v14  ;;  %1333 = vst.msk [vmem:[#allocation3 + $0xb8] sm:$0xff] %vm1311_vm0, %v8484_v39  ;;  %2585 = vrot.lane.b32.xlu1 %v8222_v23, %s7480_s22 }
 0x32e   : > { %1633 = vst [vmem:[#allocation3 + $0x188] sm:$0xff] %v1593_v19  ;;  %2422 = vrot.lane.b32.xlu0 %v8235_v60, %s7479_s21 }
 0x32f   : > { %v8494_v25 = vpop.permute.xlu1 %2730  ;;  %v8505_v45 = vld [vmem:[#allocation3 + $0x10] sm:$0xff] }
 0x330   : > { %v2407_v48 = vpop.permute.xlu0 %2406  ;;  %2817 = vst.msk [vmem:[#allocation3 + $0x190] sm:$0xff] %vm1311_vm0, %v8494_v25 }
 0x331   : > { %v2454_v42 = vsel %vm2452_vm14, %v2407_v48, %v2409_v17  ;;  %2746 = vrot.lane.b32.xlu1 %v8222_v23, %s7481_s23 }
 0x332   : > { %2494 = vst [vmem:[#allocation3 + $0x8] sm:$0xff] %v2454_v42  ;;  %2583 = vrot.lane.b32.xlu0 %v8235_v60, %s7480_s22 }
 0x333   : > { %v3689_v31 = vpop.permute.xlu1 %3688 }
 0x334   : > { %v2568_v38 = vpop.permute.xlu0 %2567  ;;  %3775 = vst.msk [vmem:[#allocation3 + $0x10] sm:$0xff] %vm1311_vm0, %v3689_v31 }
 0x335   : > { %v2615_v47 = vsel %vm2613_vm15, %v2568_v38, %v2570_v21  ;;  %1410 = vrot.lane.b32.xlu1 %v8344_v35, %s7477_s14 }
 0x336   : > { %2655 = vst [vmem:[#allocation3 + $0xc8] sm:$0xff] %v2615_v47  ;;  %2744 = vrot.lane.b32.xlu0 %v8235_v60, %s7481_s23 }
 0x337   : > { %v1383_v23 = vpop.permute.xlu1 %1382 }
 0x338   : > { %v8513_v50 = vpop.permute.xlu0 %2728  ;;  %v1431_v51 = vsel %vm1430_vm12, %v1383_v23, %v1385_v27 }
 0x339   : > { %1571 = vrot.lane.b32.xlu1 %v8344_v35, %s7478_s20  ;;  %1905 = vmatpush1.bf16.msra.mxu1 %v1431_v51  ;;  %v8522_v60 = vld [vmem:[#allocation3 + $0x8] sm:$0xff] }
 0x33a   : > { %1408 = vrot.lane.b32.xlu0 %v8323_v6, %s7477_s14 }
 0x33b   : > { %v1544_v53 = vpop.permute.xlu1 %1543 }
 0x33c   : > { %v3687_v40 = vpop.permute.xlu0 %3686  ;;  %v1592_v41 = vsel %vm1591_vm13, %v1544_v53, %v1546_v9 }
 0x33d   : > { %v3734_v43 = vsel %vm3732_vm2, %v3687_v40, %v3689_v31  ;;  %1632 = vst [vmem:[#allocation3 + $0x180] sm:$0xff] %v1592_v41  ;;  %2432 = vrot.lane.b32.xlu1 %v8344_v35, %s7479_s21  ;;  %v1696_v41 = vld [vmem:[#allocation3 + $0x40] sm:$0xff] }
 0x33e   : > { %3774 = vst [vmem:[#allocation3 + $0x8] sm:$0xff] %v3734_v43  ;;  %1569 = vrot.lane.b32.xlu0 %v8323_v6, %s7478_s20 }
 0x33f   : > { %v2405_v1 = vpop.permute.xlu1 %2404 }
 0x340   : > { %v1393_v44 = vpop.permute.xlu0 %1392  ;;  %v2453_v57 = vsel %vm2452_vm14, %v2405_v1, %v2407_v48 }
 0x341   : > { %1476 = vst.msk [vmem:[#allocation3 + $0xe8] sm:$0xff] %vm1311_vm0, %v1393_v44  ;;  %2493 = vst [vmem:[#allocation3] sm:$0xff] %v2453_v57  ;;  %2593 = vrot.lane.b32.xlu1 %v8344_v35, %s7480_s22 }
 0x342   : > { %2430 = vrot.lane.b32.xlu0 %v8323_v6, %s7479_s21 }
 0x343   : > { %v2566_v18 = vpop.permute.xlu1 %2565 }
 0x344   : > { %v1554_v33 = vpop.permute.xlu0 %1553  ;;  %v2614_v54 = vsel %vm2613_vm15, %v2566_v18, %v2568_v38 }
 0x345   : > { %1637 = vst.msk [vmem:[#allocation3 + $0x1a8] sm:$0xff] %vm1311_vm0, %v1554_v33  ;;  %2654 = vst [vmem:[#allocation3 + $0xc0] sm:$0xff] %v2614_v54  ;;  %2754 = vrot.lane.b32.xlu1 %v8344_v35, %s7481_s23 }
 0x346   : > { %2591 = vrot.lane.b32.xlu0 %v8323_v6, %s7480_s22 }
 0x347   : > { %v8540_v58 = vpop.permute.xlu1 %2726 }
 0x348   : > { %v2415_v12 = vpop.permute.xlu0 %2414  ;;  %v1717_v26 = vld [vmem:[#allocation3 + $0xe8] sm:$0xff]  ;;  %v8549_v2 = vld [vmem:[#allocation3] sm:$0xff] }
 0x349   : > { %2498 = vst.msk [vmem:[#allocation3 + $0x28] sm:$0xff] %vm1311_vm0, %v2415_v12  ;;  %6812 = vmatprep.subr.bf16.mxu0 %v1717_v26  ;;  %1406 = vrot.lane.b32.xlu1 %v8333_v63, %s7477_s14 }
 0x34a   : > { %6813 = vmatpush3.bf16.msra.mxu0 %v1693_v36  ;;  %2752 = vrot.lane.b32.xlu0 %v8323_v6, %s7481_s23 }
 0x34b   : > { %v3685_v20 = vpop.permute.xlu1 %3684 }
 0x34c   : > { %v2576_v56 = vpop.permute.xlu0 %2575  ;;  %v3733_v61 = vsel %vm3732_vm2, %v3685_v20, %v3687_v40  ;;  %v8557_v37 = vld [vmem:[#allocation3 + $0x1a8] sm:$0xff] }
 0x34d   : > { %2659 = vst.msk [vmem:[#allocation3 + $0xe8] sm:$0xff] %vm1311_vm0, %v2576_v56  ;;  %1567 = vrot.lane.b32.xlu1 %v8333_v63, %s7478_s20  ;;  %3773 = vst [vmem:[#allocation3] sm:$0xff] %v3733_v61 }
 0x34e   : > { %1416 = vrot.lane.b32.xlu0 %v8364_v22, %s7477_s14 }
 0x34f   : > { %v1391_v15 = vpop.permute.xlu1 %1390 }
 0x350   : > { %v8555_v8 = vpop.permute.xlu0 %2736  ;;  %v1434_v6 = vsel %vm1430_vm12, %v1391_v15, %v1393_v44  ;;  %v8566_v62 = vld [vmem:[#allocation3 + $0x28] sm:$0xff] }
 0x351   : > { %2820 = vst.msk [vmem:[#allocation3 + $0x1a8] sm:$0xff] %vm1311_vm0, %v8555_v8  ;;  %2428 = vrot.lane.b32.xlu1 %v8333_v63, %s7479_s21  ;;  %1906 = vmatprep.subr.bf16.mxu1 %v1434_v6 }
 0x352   : > { %1577 = vrot.lane.b32.xlu0 %v8364_v22, %s7478_s20 }
 0x353   : > { %v1552_v24 = vpop.permute.xlu1 %1551 }
 0x354   : > { %v3695_v3 = vpop.permute.xlu0 %3694  ;;  %v1595_v4 = vsel %vm1591_vm13, %v1552_v24, %v1554_v33 }
 0x355   : > { %3778 = vst.msk [vmem:[#allocation3 + $0x28] sm:$0xff] %vm1311_vm0, %v3695_v3  ;;  %1636 = vst [vmem:[#allocation3 + $0x1a0] sm:$0xff] %v1595_v4  ;;  %2589 = vrot.lane.b32.xlu1 %v8333_v63, %s7480_s22  ;;  %v7340_v4 = vld [vmem:[%s11564_s3 + $0x4] ss:$12 sps:$4 sm:$0xff]  }
 0x356   : > { %2438 = vrot.lane.b32.xlu0 %v8364_v22, %s7479_s21  ;;  %2146 = vmatprep.mubr.bf16.mxu0 %v7340_v4 }
 0x357   : > { %v2413_v55 = vpop.permute.xlu1 %2412  ;;  %1920 = vmatprep.mubr.bf16.mxu1 %v7340_v4 }
 0x358   : > { %v1389_v32 = vpop.permute.xlu0 %1388  ;;  %v2456_v14 = vsel %vm2452_vm14, %v2413_v55, %v2415_v12 }
 0x359   : > { %v1433_v30 = vsel %vm1430_vm12, %v1389_v32, %v1391_v15  ;;  %2497 = vst [vmem:[#allocation3 + $0x20] sm:$0xff] %v2456_v14  ;;  %2750 = vrot.lane.b32.xlu1 %v8333_v63, %s7481_s23 }
 0x35a   : > { %1907 = vmatpush1.bf16.msra.mxu1 %v1433_v30  ;;  %2599 = vrot.lane.b32.xlu0 %v8364_v22, %s7480_s22 }
 0x35b   : > { %v2574_v11 = vpop.permute.xlu1 %2573 }
 0x35c   : > { %v1550_v17 = vpop.permute.xlu0 %1549  ;;  %v2617_v27 = vsel %vm2613_vm15, %v2574_v11, %v2576_v56 }
 0x35d   : > { %v1594_v16 = vsel %vm1591_vm13, %v1550_v17, %v1552_v24  ;;  %2658 = vst [vmem:[#allocation3 + $0xe0] sm:$0xff] %v2617_v27  ;;  %1414 = vrot.lane.b32.xlu1 %v8342_v46, %s7477_s14 }
 0x35e   : > { %1635 = vst [vmem:[#allocation3 + $0x198] sm:$0xff] %v1594_v16  ;;  %2760 = vrot.lane.b32.xlu0 %v8364_v22, %s7481_s23 }
 0x35f   : > { %v8586_v0 = vpop.permute.xlu1 %2734 }
 0x360   : > { %11620 = vst [vmem:[#allocation5_spill] sm:$0xff] %v8586_v0  ;;  %v2411_v63 = vpop.permute.xlu0 %2410  ;;  %v8595_v31 = vld [vmem:[#allocation3 + $0x20] sm:$0xff] }
 0x361   : > { %v2455_v21 = vsel %vm2452_vm14, %v2411_v63, %v2413_v55  ;;  %1575 = vrot.lane.b32.xlu1 %v8342_v46, %s7478_s20 }
 0x362   : > { %2496 = vst [vmem:[#allocation3 + $0x18] sm:$0xff] %v2455_v21  ;;  %1412 = vrot.lane.b32.xlu0 %v8355_v5, %s7477_s14 }
 0x363   : > { %v3693_v9 = vpop.permute.xlu1 %3692 }
 0x364   : > { %v2572_v19 = vpop.permute.xlu0 %2571  ;;  %v3736_v48 = vsel %vm3732_vm2, %v3693_v9, %v3695_v3 }
 0x365   : > { %v2616_v42 = vsel %vm2613_vm15, %v2572_v19, %v2574_v11  ;;  %2436 = vrot.lane.b32.xlu1 %v8342_v46, %s7479_s21  ;;  %3777 = vst [vmem:[#allocation3 + $0x20] sm:$0xff] %v3736_v48  ;;  %v1699_v11 = vld [vmem:[#allocation3 + $0x58] sm:$0xff] }
 0x366   : > { %2657 = vst [vmem:[#allocation3 + $0xd8] sm:$0xff] %v2616_v42  ;;  %1573 = vrot.lane.b32.xlu0 %v8355_v5, %s7478_s20 }
 0x367   : > { %v1399_v38 = vpop.permute.xlu1 %1398 }
 0x368   : > { %v8601_v47 = vpop.permute.xlu0 %2732  ;;  %1479 = vst.msk [vmem:[#allocation3 + $0x100] sm:$0xff] %vm1311_vm0, %v1399_v38 }
 0x369   : > { %11621 = vst [vmem:[#allocation6_spill] sm:$0xff] %v8601_v47  ;;  %2597 = vrot.lane.b32.xlu1 %v8342_v46, %s7480_s22  ;;  %v8613_v40 = vld [vmem:[#allocation3 + $0x18] sm:$0xff]  ;;  %v8922_v47 = vld [vmem:[#allocation2 + $0xb0] sm:$0xff] }
 0x36a   : > { %2434 = vrot.lane.b32.xlu0 %v8355_v5, %s7479_s21 }
 0x36b   : > { %v8608_v23 = vpop.permute.xlu1 %1559 }
 0x36c   : > { %v3691_v51 = vpop.permute.xlu0 %3690  ;;  %1640 = vst.msk [vmem:[#allocation3 + $0x1c0] sm:$0xff] %vm1311_vm0, %v8608_v23 }
 0x36d   : > { %v3735_v53 = vsel %vm3732_vm2, %v3691_v51, %v3693_v9  ;;  %2758 = vrot.lane.b32.xlu1 %v8342_v46, %s7481_s23 }
 0x36e   : > { %3776 = vst [vmem:[#allocation3 + $0x18] sm:$0xff] %v3735_v53  ;;  %2595 = vrot.lane.b32.xlu0 %v8355_v5, %s7480_s22 }
 0x36f   : > { %v2421_v43 = vpop.permute.xlu1 %2420  ;;  %v1720_v44 = vld [vmem:[#allocation3 + $0x100] sm:$0xff] }
 0x370   : > { %v1397_v1 = vpop.permute.xlu0 %1396  ;;  %2501 = vst.msk [vmem:[#allocation3 + $0x40] sm:$0xff] %vm1311_vm0, %v2421_v43  ;;  %6814 = vmatprep.subr.bf16.mxu0 %v1720_v44 }
 0x371   : > { %v1436_v57 = vsel %vm1430_vm12, %v1397_v1, %v1399_v38  ;;  %1422 = vrot.lane.b32.xlu1 %v8464_v7, %s7477_s14  ;;  %6815 = vmatpush3.bf16.msra.mxu0 %v1696_v41 }
 0x372   : > { %2756 = vrot.lane.b32.xlu0 %v8355_v5, %s7481_s23  ;;  %1908 = vmatprep.subr.bf16.mxu1 %v1436_v57 }
 0x373   : > { %v2582_v46 = vpop.permute.xlu1 %2581  ;;  %v8634_v36 = vld [vmem:[#allocation3 + $0x1c0] sm:$0xff] }
 0x374   : > { %v8625_v18 = vpop.permute.xlu0 %1557  ;;  %2662 = vst.msk [vmem:[#allocation3 + $0x100] sm:$0xff] %vm1311_vm0, %v2582_v46 }
 0x375   : > { %1583 = vrot.lane.b32.xlu1 %v8464_v7, %s7478_s20 }
 0x376   : > { %1420 = vrot.lane.b32.xlu0 %v8443_v52, %s7477_s14 }
 0x377   : > { %v8632_v33 = vpop.permute.xlu1 %2742 }
 0x378   : > { %11622 = vst [vmem:[#allocation7_spill] sm:$0xff] %v8632_v33  ;;  %v2419_v54 = vpop.permute.xlu0 %2418  ;;  %2823 = vst.msk [vmem:[#allocation3 + $0x1c0] sm:$0xff] %vm1311_vm0, %v8632_v33 }
 0x379   : > { %v2458_v12 = vsel %vm2452_vm14, %v2419_v54, %v2421_v43  ;;  %2444 = vrot.lane.b32.xlu1 %v8464_v7, %s7479_s21 }
 0x37a   : > { %2500 = vst [vmem:[#allocation3 + $0x38] sm:$0xff] %v2458_v12  ;;  %1581 = vrot.lane.b32.xlu0 %v8443_v52, %s7478_s20 }
 0x37b   : > { %v1395_v5 = vpop.permute.xlu1 %1394 }
 0x37c   : > { %v2580_v26 = vpop.permute.xlu0 %2579  ;;  %v1435_v20 = vsel %vm1430_vm12, %v1395_v5, %v1397_v1 }
 0x37d   : > { %v2619_v56 = vsel %vm2613_vm15, %v2580_v26, %v2582_v46  ;;  %2605 = vrot.lane.b32.xlu1 %v8464_v7, %s7480_s22  ;;  %1909 = vmatpush1.bf16.msra.mxu1 %v1435_v20 }
 0x37e   : > { %2661 = vst [vmem:[#allocation3 + $0xf8] sm:$0xff] %v2619_v56  ;;  %2442 = vrot.lane.b32.xlu0 %v8443_v52, %s7479_s21 }
 0x37f   : > { %v8649_v61 = vpop.permute.xlu1 %1555 }
 0x380   : > { %v8651_v15 = vpop.permute.xlu0 %2740 }
 0x381   : > { %11623 = vst [vmem:[#allocation8_spill] sm:$0xff] %v8651_v15  ;;  %2766 = vrot.lane.b32.xlu1 %v8464_v7, %s7481_s23 }
 0x382   : > { %2603 = vrot.lane.b32.xlu0 %v8443_v52, %s7480_s22 }
 0x383   : > { %v2417_v6 = vpop.permute.xlu1 %2416 }
 0x384   : > { %v1405_v24 = vpop.permute.xlu0 %1404  ;;  %v2457_v3 = vsel %vm2452_vm14, %v2417_v6, %v2419_v54 }
 0x385   : > { %1482 = vst.msk [vmem:[#allocation3 + $0x118] sm:$0xff] %vm1311_vm0, %v1405_v24  ;;  %2499 = vst [vmem:[#allocation3 + $0x30] sm:$0xff] %v2457_v3  ;;  %1418 = vrot.lane.b32.xlu1 %v8453_v29, %s7477_s14  ;;  %v1702_v3 = vld [vmem:[#allocation3 + $0x70] sm:$0xff] }
 0x386   : > { %2764 = vrot.lane.b32.xlu0 %v8443_v52, %s7481_s23 }
 0x387   : > { %v2578_v55 = vpop.permute.xlu1 %2577 }
 0x388   : > { %v8666_v32 = vpop.permute.xlu0 %1565  ;;  %v2618_v14 = vsel %vm2613_vm15, %v2578_v55, %v2580_v26 }
 0x389   : > { %1643 = vst.msk [vmem:[#allocation3 + $0x1d8] sm:$0xff] %vm1311_vm0, %v8666_v32  ;;  %2660 = vst [vmem:[#allocation3 + $0xf0] sm:$0xff] %v2618_v14  ;;  %1579 = vrot.lane.b32.xlu1 %v8453_v29, %s7478_s20 }
 0x38a   : > { %1428 = vrot.lane.b32.xlu0 %v8484_v39, %s7477_s14 }
 0x38b   : > { %v8675_v30 = vpop.permute.xlu1 %2738 }
 0x38c   : > { %11624 = vst [vmem:[#allocation9_spill] sm:$0xff] %v8675_v30  ;;  %v2427_v17 = vpop.permute.xlu0 %2426  ;;  %v1723_v27 = vld [vmem:[#allocation3 + $0x118] sm:$0xff] }
 0x38d   : > { %2504 = vst.msk [vmem:[#allocation3 + $0x58] sm:$0xff] %vm1311_vm0, %v2427_v17  ;;  %6816 = vmatprep.subr.bf16.mxu0 %v1723_v27  ;;  %2440 = vrot.lane.b32.xlu1 %v8453_v29, %s7479_s21 }
 0x38e   : > { %6817 = vmatpush3.bf16.msra.mxu0 %v1699_v11  ;;  %1589 = vrot.lane.b32.xlu0 %v8484_v39, %s7478_s20  ;;  %v8746_v11 = vld [vmem:[#allocation2 + $0x50] sm:$0xff] }
 0x38f   : > { %v8682_v16 = vpop.permute.xlu1 %3696 }
 0x390   : > { %v2588_v63 = vpop.permute.xlu0 %2587  ;;  %v8691_v19 = vld [vmem:[#allocation3 + $0x1d8] sm:$0xff] }
 0x391   : > { %2665 = vst.msk [vmem:[#allocation3 + $0x118] sm:$0xff] %vm1311_vm0, %v2588_v63  ;;  %2601 = vrot.lane.b32.xlu1 %v8453_v29, %s7480_s22 }
 0x392   : > { %2450 = vrot.lane.b32.xlu0 %v8484_v39, %s7479_s21 }
 0x393   : > { %v1403_v21 = vpop.permute.xlu1 %1402 }
 0x394   : > { %v8689_v9 = vpop.permute.xlu0 %2748  ;;  %v1438_v48 = vsel %vm1430_vm12, %v1403_v21, %v1405_v24 }
 0x395   : > { %11625 = vst [vmem:[#allocation10_spill] sm:$0xff] %v8689_v9  ;;  %2826 = vst.msk [vmem:[#allocation3 + $0x1d8] sm:$0xff] %vm1311_vm0, %v8689_v9  ;;  %2762 = vrot.lane.b32.xlu1 %v8453_v29, %s7481_s23  ;;  %1910 = vmatprep.subr.bf16.mxu1 %v1438_v48  ;;  %v8760_v48 = vld [vmem:[#allocation2 + $0x48] sm:$0xff] }
 0x396   : > { %2611 = vrot.lane.b32.xlu0 %v8484_v39, %s7480_s22 }
 0x397   : > { %v8700_v42 = vpop.permute.xlu1 %1563 }
 0x398   : > { %v1401_v38 = vpop.permute.xlu0 %1400 }
 0x399   : > { %v1437_v51 = vsel %vm1430_vm12, %v1401_v38, %v1403_v21  ;;  %1426 = vrot.lane.b32.xlu1 %v8462_v28, %s7477_s14 }
 0x39a   : > { %1911 = vmatpush1.bf16.msra.mxu1 %v1437_v51  ;;  %2772 = vrot.lane.b32.xlu0 %v8484_v39, %s7481_s23 }
 0x39b   : > { %v2425_v53 = vpop.permute.xlu1 %2424 }
 0x39c   : > { %v2460_v41 = vsel %vm2452_vm14, %v2425_v53, %v2427_v17  ;;  %v8708_v43 = vpop.permute.xlu0 %1561  ;;  %v8750_v17 = vld [vmem:[#allocation2 + $0x38] sm:$0xff] }
 0x39d   : > { %2503 = vst [vmem:[#allocation3 + $0x50] sm:$0xff] %v2460_v41  ;;  %1587 = vrot.lane.b32.xlu1 %v8462_v28, %s7478_s20 }
 0x39e   : > { %1424 = vrot.lane.b32.xlu0 %v8475_v10, %s7477_s14  ;;  %s7491_s14 = smov 112  }
 0x39f   : > { %v2586_v1 = vpop.permute.xlu1 %2585 }
 0x3a0   : > { %v2621_v44 = vsel %vm2613_vm15, %v2586_v1, %v2588_v63  ;;  %v2423_v57 = vpop.permute.xlu0 %2422  ;;  %v8755_v63 = vld [vmem:[#allocation2 + $0x60] sm:$0xff] }
 0x3a1   : > { %2664 = vst [vmem:[#allocation3 + $0x110] sm:$0xff] %v2621_v44  ;;  %v2459_v46 = vsel %vm2452_vm14, %v2423_v57, %v2425_v53  ;;  %2448 = vrot.lane.b32.xlu1 %v8462_v28, %s7479_s21 }
 0x3a2   : > { %2502 = vst [vmem:[#allocation3 + $0x48] sm:$0xff] %v2459_v46  ;;  %1585 = vrot.lane.b32.xlu0 %v8475_v10, %s7478_s20  ;;  %v8778_v46 = vld [vmem:[#allocation2 + $0x80] sm:$0xff] }
 0x3a3   : > { %v8720_v54 = vpop.permute.xlu1 %2746 }
 0x3a4   : > { %11626 = vst [vmem:[#allocation11_spill] sm:$0xff] %v8720_v54  ;;  %v2584_v12 = vpop.permute.xlu0 %2583 }
 0x3a5   : > { %v2620_v5 = vsel %vm2613_vm15, %v2584_v12, %v2586_v1  ;;  %2609 = vrot.lane.b32.xlu1 %v8462_v28, %s7480_s22  ;;  %v8782_v12 = vld [vmem:[#allocation2 + $0x68] sm:$0xff] }
 0x3a6   : > { %2663 = vst [vmem:[#allocation3 + $0x108] sm:$0xff] %v2620_v5  ;;  %2446 = vrot.lane.b32.xlu0 %v8475_v10, %s7479_s21 }
 0x3a7   : > { %v1411_v26 = vpop.permute.xlu1 %1410 }
 0x3a8   : > { %1485 = vst.msk [vmem:[#allocation3 + $0x130] sm:$0xff] %vm1311_vm0, %v1411_v26  ;;  %v8728_v20 = vpop.permute.xlu0 %2744 }
 0x3a9   : > { %11627 = vst [vmem:[#allocation12_spill] sm:$0xff] %v8728_v20  ;;  %2770 = vrot.lane.b32.xlu1 %v8462_v28, %s7481_s23 }
 0x3aa   : > { %2607 = vrot.lane.b32.xlu0 %v8475_v10, %s7480_s22  ;;  %s7492_s22 = smov 106  }
 0x3ab   : > { %v8734_v56 = vpop.permute.xlu1 %1571 }
 0x3ac   : > { %1646 = vst.msk [vmem:[#allocation3 + $0x1f0] sm:$0xff] %vm1311_vm0, %v8734_v56  ;;  %v1409_v6 = vpop.permute.xlu0 %1408 }
 0x3ad   : > { %v1440_v24 = vsel %vm1430_vm12, %v1409_v6, %v1411_v26  ;;  %3700 = vrot.lane.b32.xlu1 %v8224_v59, %s7482_s24 }
 0x3ae   : > { %2768 = vrot.lane.b32.xlu0 %v8475_v10, %s7481_s23  ;;  %1912 = vmatprep.subr.bf16.mxu1 %v1440_v24 }
 0x3af   : > { %v2433_v4 = vpop.permute.xlu1 %2432  ;;  %v1726_v55 = vld [vmem:[#allocation3 + $0x130] sm:$0xff] }
 0x3b0   : > { %2507 = vst.msk [vmem:[#allocation3 + $0x70] sm:$0xff] %vm1311_vm0, %v2433_v4  ;;  %v8744_v14 = vpop.permute.xlu0 %1569  ;;  %6818 = vmatprep.subr.bf16.mxu0 %v1726_v55  ;;  %v1705_v55 = vld [vmem:[#allocation3 + $0x88] sm:$0xff] }
 0x3b1   : > { %3704 = vrot.lane.b32.xlu1 %v8746_v11, %s7482_s24  ;;  %6819 = vmatpush3.bf16.msra.mxu0 %v1702_v3 }
 0x3b2   : > { %3698 = vrot.lane.b32.xlu0 %v8750_v17, %s7482_s24 }
 0x3b3   : > { %v2594_v59 = vpop.permute.xlu1 %2593  ;;  %v8766_v51 = vld [vmem:[#allocation3 + $0x1f0] sm:$0xff] }
 0x3b4   : > { %2668 = vst.msk [vmem:[#allocation3 + $0x130] sm:$0xff] %vm1311_vm0, %v2594_v59  ;;  %v2431_v27 = vpop.permute.xlu0 %2430 }
 0x3b5   : > { %v2462_v21 = vsel %vm2452_vm14, %v2431_v27, %v2433_v4  ;;  %3708 = vrot.lane.b32.xlu1 %v8755_v63, %s7482_s24 }
 0x3b6   : > { %2506 = vst [vmem:[#allocation3 + $0x68] sm:$0xff] %v2462_v21  ;;  %3702 = vrot.lane.b32.xlu0 %v8760_v48, %s7482_s24 }
 0x3b7   : > { %v8764_v38 = vpop.permute.xlu1 %2754 }
 0x3b8   : > { %11628 = vst [vmem:[#allocation13_spill] sm:$0xff] %v8764_v38  ;;  %v2592_v53 = vpop.permute.xlu0 %2591  ;;  %2829 = vst.msk [vmem:[#allocation3 + $0x1f0] sm:$0xff] %vm1311_vm0, %v8764_v38 }
 0x3b9   : > { %v2623_v41 = vsel %vm2613_vm15, %v2592_v53, %v2594_v59  ;;  %3712 = vrot.lane.b32.xlu1 %v8344_v35, %s7482_s24 }
 0x3ba   : > { %2667 = vst [vmem:[#allocation3 + $0x128] sm:$0xff] %v2623_v41  ;;  %3706 = vrot.lane.b32.xlu0 %v8244_v13, %s7482_s24  ;;  %v8791_v13 = vld [vmem:[#allocation2 + $0x78] sm:$0xff] }
 0x3bb   : > { %v1407_v1 = vpop.permute.xlu1 %1406 }
 0x3bc   : > { %v1439_v44 = vsel %vm1430_vm12, %v1407_v1, %v1409_v6  ;;  %v8776_v57 = vpop.permute.xlu0 %2752  ;;  %v8812_v1 = vld [vmem:[#allocation2] sm:$0xff] }
 0x3bd   : > { %11629 = vst [vmem:[#allocation14_spill] sm:$0xff] %v8776_v57  ;;  %3716 = vrot.lane.b32.xlu1 %v8778_v46, %s7482_s24  ;;  %1913 = vmatpush1.bf16.msra.mxu1 %v1439_v44 }
 0x3be   : > { %3710 = vrot.lane.b32.xlu0 %v8782_v12, %s7482_s24 }
 0x3bf   : > { %v8786_v5 = vpop.permute.xlu1 %1567 }
 0x3c0   : > { %v1417_v26 = vpop.permute.xlu0 %1416 }
 0x3c1   : > { %1488 = vst.msk [vmem:[#allocation3 + $0x148] sm:$0xff] %vm1311_vm0, %v1417_v26  ;;  %3720 = vrot.lane.b32.xlu1 %v8453_v29, %s7482_s24 }
 0x3c2   : > { %3714 = vrot.lane.b32.xlu0 %v8791_v13, %s7482_s24 }
 0x3c3   : > { %v2429_v6 = vpop.permute.xlu1 %2428 }
 0x3c4   : > { %v2461_v24 = vsel %vm2452_vm14, %v2429_v6, %v2431_v27  ;;  %v8796_v3 = vpop.permute.xlu0 %1577 }
 0x3c5   : > { %2505 = vst [vmem:[#allocation3 + $0x60] sm:$0xff] %v2461_v24  ;;  %1649 = vst.msk [vmem:[#allocation3 + $0x208] sm:$0xff] %vm1311_vm0, %v8796_v3  ;;  %3724 = vrot.lane.b32.xlu1 %v8464_v7, %s7482_s24 }
 0x3c6   : > { %3718 = vrot.lane.b32.xlu0 %v8364_v22, %s7482_s24 }
 0x3c7   : > { %v2590_v29 = vpop.permute.xlu1 %2589 }
 0x3c8   : > { %v2622_v4 = vsel %vm2613_vm15, %v2590_v29, %v2592_v53  ;;  %v2439_v59 = vpop.permute.xlu0 %2438  ;;  %v1729_v21 = vld [vmem:[#allocation3 + $0x148] sm:$0xff] }
 0x3c9   : > { %2666 = vst [vmem:[#allocation3 + $0x120] sm:$0xff] %v2622_v4  ;;  %2510 = vst.msk [vmem:[#allocation3 + $0x88] sm:$0xff] %vm1311_vm0, %v2439_v59  ;;  %6820 = vmatprep.subr.bf16.mxu0 %v1729_v21  ;;  %3728 = vrot.lane.b32.xlu1 %v8462_v28, %s7482_s24  ;;  %v8839_v4 = vld [vmem:[#allocation2 + $0x8] sm:$0xff] }
 0x3ca   : > { %3722 = vrot.lane.b32.xlu0 %v8443_v52, %s7482_s24  ;;  %6821 = vmatpush3.bf16.msra.mxu0 %v1705_v55  ;;  %v8822_v52 = vld [vmem:[#allocation2 + $0x10] sm:$0xff] }
 0x3cb   : > { %v8810_v27 = vpop.permute.xlu1 %2750 }
 0x3cc   : > { %11630 = vst [vmem:[#allocation15_spill] sm:$0xff] %v8810_v27  ;;  %v2600_v41 = vpop.permute.xlu0 %2599  ;;  %v8824_v6 = vld [vmem:[#allocation3 + $0x208] sm:$0xff]  ;;  %v8855_v27 = vld [vmem:[#allocation2 + $0x40] sm:$0xff] }
 0x3cd   : > { %2671 = vst.msk [vmem:[#allocation3 + $0x148] sm:$0xff] %vm1311_vm0, %v2600_v41  ;;  %3845 = vrot.lane.b32.xlu1 %v8812_v1, %s7483_s27 }
 0x3ce   : > { %3726 = vrot.lane.b32.xlu0 %v8475_v10, %s7482_s24 }
 0x3cf   : > { %v1415_v53 = vpop.permute.xlu1 %1414 }
 0x3d0   : > { %v1442_v28 = vsel %vm1430_vm12, %v1415_v53, %v1417_v26  ;;  %v8820_v44 = vpop.permute.xlu0 %2760  ;;  %v8834_v26 = vld [vmem:[#allocation2 + $0x20] sm:$0xff] }
 0x3d1   : > { %11631 = vst [vmem:[#allocation16_spill] sm:$0xff] %v8820_v44  ;;  %3849 = vrot.lane.b32.xlu1 %v8822_v52, %s7483_s27  ;;  %1914 = vmatprep.subr.bf16.mxu1 %v1442_v28  ;;  %2832 = vst.msk [vmem:[#allocation3 + $0x208] sm:$0xff] %vm1311_vm0, %v8820_v44 }
 0x3d2   : > { %3730 = vrot.lane.b32.xlu0 %v8484_v39, %s7482_s24  ;;  %s7493_s24 = smov 104  }
 0x3d3   : > { %v8832_v10 = vpop.permute.xlu1 %1575 }
 0x3d4   : > { %v1413_v24 = vpop.permute.xlu0 %1412 }
 0x3d5   : > { %v1441_v29 = vsel %vm1430_vm12, %v1413_v24, %v1415_v53  ;;  %3853 = vrot.lane.b32.xlu1 %v8834_v26, %s7483_s27  ;;  %v8850_v53 = vld [vmem:[#allocation2 + $0x18] sm:$0xff] }
 0x3d6   : > { %3847 = vrot.lane.b32.xlu0 %v8839_v4, %s7483_s27  ;;  %1915 = vmatpush1.bf16.msra.mxu1 %v1441_v29 }
 0x3d7   : > { %v2437_v55 = vpop.permute.xlu1 %2436 }
 0x3d8   : > { %v2464_v21 = vsel %vm2452_vm14, %v2437_v55, %v2439_v59  ;;  %v8844_v28 = vpop.permute.xlu0 %1573 }
 0x3d9   : > { %2509 = vst [vmem:[#allocation3 + $0x80] sm:$0xff] %v2464_v21  ;;  %3857 = vrot.lane.b32.xlu1 %v8846_v49, %s7483_s27  ;;  %v8860_v21 = vld [vmem:[#allocation2 + $0x28] sm:$0xff] }
 0x3da   : > { %3851 = vrot.lane.b32.xlu0 %v8850_v53, %s7483_s27 }
 0x3db   : > { %v2598_v24 = vpop.permute.xlu1 %2597 }
 0x3dc   : > { %v2625_v44 = vsel %vm2613_vm15, %v2598_v24, %v2600_v41  ;;  %v2435_v29 = vpop.permute.xlu0 %2434 }
 0x3dd   : > { %2670 = vst [vmem:[#allocation3 + $0x140] sm:$0xff] %v2625_v44  ;;  %v2463_v59 = vsel %vm2452_vm14, %v2435_v29, %v2437_v55  ;;  %3861 = vrot.lane.b32.xlu1 %v8855_v27, %s7483_s27 }
 0x3de   : > { %2508 = vst [vmem:[#allocation3 + $0x78] sm:$0xff] %v2463_v59  ;;  %3855 = vrot.lane.b32.xlu0 %v8860_v21, %s7483_s27  ;;  %v8885_v59 = vld [vmem:[#allocation2 + $0x58] sm:$0xff] }
 0x3df   : > { %v8864_v57 = vpop.permute.xlu1 %2758 }
 0x3e0   : > { %11632 = vst [vmem:[#allocation17_spill] sm:$0xff] %v8864_v57  ;;  %v2596_v38 = vpop.permute.xlu0 %2595 }
 0x3e1   : > { %v2624_v41 = vsel %vm2613_vm15, %v2596_v38, %v2598_v24  ;;  %3865 = vrot.lane.b32.xlu1 %v8746_v11, %s7483_s27 }
 0x3e2   : > { %2669 = vst [vmem:[#allocation3 + $0x138] sm:$0xff] %v2624_v41  ;;  %3859 = vrot.lane.b32.xlu0 %v8750_v17, %s7483_s27  ;;  %v1708_v41 = vld [vmem:[#allocation3 + $0xa0] sm:$0xff] }
 0x3e3   : > { %v1423_v44 = vpop.permute.xlu1 %1422 }
 0x3e4   : > { %1491 = vst.msk [vmem:[#allocation3 + $0x160] sm:$0xff] %vm1311_vm0, %v1423_v44  ;;  %v8872_v55 = vpop.permute.xlu0 %2756 }
 0x3e5   : > { %11633 = vst [vmem:[#allocation18_spill] sm:$0xff] %v8872_v55  ;;  %3869 = vrot.lane.b32.xlu1 %v8755_v63, %s7483_s27 }
 0x3e6   : > { %3863 = vrot.lane.b32.xlu0 %v8760_v48, %s7483_s27 }
 0x3e7   : > { %v8878_v29 = vpop.permute.xlu1 %1583 }
 0x3e8   : > { %1652 = vst.msk [vmem:[#allocation3 + $0x220] sm:$0xff] %vm1311_vm0, %v8878_v29  ;;  %v1421_v38 = vpop.permute.xlu0 %1420 }
 0x3e9   : > { %v1444_v24 = vsel %vm1430_vm12, %v1421_v38, %v1423_v44  ;;  %3873 = vrot.lane.b32.xlu1 %v8344_v35, %s7483_s27 }
 0x3ea   : > { %3867 = vrot.lane.b32.xlu0 %v8885_v59, %s7483_s27  ;;  %1916 = vmatprep.subr.bf16.mxu1 %v1444_v24  ;;  %v8902_v24 = vld [vmem:[#allocation2 + $0x90] sm:$0xff] }
 0x3eb   : > { %v8889_v55 = vpop.permute.xlu1 %2444  ;;  %v1732_v57 = vld [vmem:[#allocation3 + $0x160] sm:$0xff] }
 0x3ec   : > { %2513 = vst.msk [vmem:[#allocation3 + $0xa0] sm:$0xff] %vm1311_vm0, %v8889_v55  ;;  %v8893_v20 = vpop.permute.xlu0 %1581  ;;  %6822 = vmatprep.subr.bf16.mxu0 %v1732_v57 }
 0x3ed   : > { %3877 = vrot.lane.b32.xlu1 %v8778_v46, %s7483_s27  ;;  %6823 = vmatpush3.bf16.msra.mxu0 %v1708_v41 }
 0x3ee   : > { %3871 = vrot.lane.b32.xlu0 %v8782_v12, %s7483_s27 }
 0x3ef   : > { %v2606_v35 = vpop.permute.xlu1 %2605  ;;  %v8910_v54 = vld [vmem:[#allocation3 + $0x220] sm:$0xff] }
 0x3f0   : > { %2674 = vst.msk [vmem:[#allocation3 + $0x160] sm:$0xff] %vm1311_vm0, %v2606_v35  ;;  %v8900_v44 = vpop.permute.xlu0 %2442 }
 0x3f1   : > { %3881 = vrot.lane.b32.xlu1 %v8902_v24, %s7483_s27 }
 0x3f2   : > { %3875 = vrot.lane.b32.xlu0 %v8791_v13, %s7483_s27 }
 0x3f3   : > { %v8908_v57 = vpop.permute.xlu1 %2766 }
 0x3f4   : > { %11634 = vst [vmem:[#allocation19_spill] sm:$0xff] %v8908_v57  ;;  %v2604_v41 = vpop.permute.xlu0 %2603  ;;  %2835 = vst.msk [vmem:[#allocation3 + $0x220] sm:$0xff] %vm1311_vm0, %v8908_v57  ;;  %v8926_v57 = vld [vmem:[#allocation2 + $0x98] sm:$0xff] }
 0x3f5   : > { %v2627_v9 = vsel %vm2613_vm15, %v2604_v41, %v2606_v35  ;;  %3885 = vrot.lane.b32.xlu1 %v8464_v7, %s7483_s27  ;;  %v1711_v35 = vld [vmem:[#allocation3 + $0xb8] sm:$0xff] }
 0x3f6   : > { %2673 = vst [vmem:[#allocation3 + $0x158] sm:$0xff] %v2627_v9  ;;  %3879 = vrot.lane.b32.xlu0 %v8364_v22, %s7483_s27  ;;  %v8935_v22 = vld [vmem:[#allocation2 + $0xa8] sm:$0xff] }
 0x3f7   : > { %v1419_v30 = vpop.permute.xlu1 %1418 }
 0x3f8   : > { %v1443_v15 = vsel %vm1430_vm12, %v1419_v30, %v1421_v38  ;;  %v8920_v33 = vpop.permute.xlu0 %2764 }
 0x3f9   : > { %11635 = vst [vmem:[#allocation20_spill] sm:$0xff] %v8920_v33  ;;  %3889 = vrot.lane.b32.xlu1 %v8922_v47, %s7483_s27  ;;  %1917 = vmatpush1.bf16.msra.mxu1 %v1443_v15 }
 0x3fa   : > { %3883 = vrot.lane.b32.xlu0 %v8926_v57, %s7483_s27 }
 0x3fb   : > { %v8930_v7 = vpop.permute.xlu1 %1579 }
 0x3fc   : > { %v1429_v9 = vpop.permute.xlu0 %1428 }
 0x3fd   : > { %1494 = vst.msk [vmem:[#allocation3 + $0x178] sm:$0xff] %vm1311_vm0, %v1429_v9  ;;  %4006 = vrot.lane.b32.xlu1 %v8812_v1, %s7484_s28 }
 0x3fe   : > { %3887 = vrot.lane.b32.xlu0 %v8935_v22, %s7483_s27 }
 0x3ff   : > { %v8939_v30 = vpop.permute.xlu1 %2440 }
 0x400   : > { %v8941_v15 = vpop.permute.xlu0 %1589 }
 0x401   : > { %1655 = vst.msk [vmem:[#allocation3 + $0x238] sm:$0xff] %vm1311_vm0, %v8941_v15  ;;  %4010 = vrot.lane.b32.xlu1 %v8822_v52, %s7484_s28  ;;  %v7338_v52 = vld [vmem:[%s11564_s3] ss:$12 sps:$4 sm:$0xff]  }
 0x402   : > { %3891 = vrot.lane.b32.xlu0 %v8484_v39, %s7483_s27  ;;  %s7496_s27 = smov 98  }
 0x403   : > { %v2602_v38 = vpop.permute.xlu1 %2601 }
 0x404   : > { %v2626_v1 = vsel %vm2613_vm15, %v2602_v38, %v2604_v41  ;;  %v8950_v33 = vpop.permute.xlu0 %2450  ;;  %v1735_v0 = vld [vmem:[#allocation3 + $0x178] sm:$0xff] }
 0x405   : > { %2672 = vst [vmem:[#allocation3 + $0x150] sm:$0xff] %v2626_v1  ;;  %2516 = vst.msk [vmem:[#allocation3 + $0xb8] sm:$0xff] %vm1311_vm0, %v8950_v33  ;;  %6824 = vmatprep.subr.bf16.mxu0 %v1735_v0  ;;  %4014 = vrot.lane.b32.xlu1 %v8834_v26, %s7484_s28  ;;  %v7341_v41 = vld [vmem:[%s11564_s3 + $0x1c] ss:$12 sps:$4 sm:$0xff]  }
 0x406   : > { %4008 = vrot.lane.b32.xlu0 %v8839_v4, %s7484_s28  ;;  %6825 = vmatpush3.bf16.msra.mxu0 %v1711_v35  ;;  %v1737_v35 = vld [vmem:[#allocation3 + $0x188] sm:$0xff] }
 0x407   : > { %7050 = vmatprep.subr.bf16.mxu0 %v8496_v34  ;;  %v8962_v39 = vpop.permute.xlu1 %2762 }
 0x408   : > { %v8967_v0 = vpop.permute.xlu0 %2611  ;;  %v8980_v1 = vld [vmem:[#allocation3 + $0x238] sm:$0xff] }
 0x409   : > { %2677 = vst.msk [vmem:[#allocation3 + $0x178] sm:$0xff] %vm1311_vm0, %v8967_v0  ;;  %2147 = vmatmul.mubr.bf16.vlgmr.msra.gmra.mrb[32].mxu0 %v7338_v52  ;;  %4018 = vrot.lane.b32.xlu1 %v8846_v49, %s7484_s28  ;;  %v7343_v49 = vld [vmem:[%s11564_s3 + $0x18] ss:$12 sps:$4 sm:$0xff]  }
 0x40a   : > { %4012 = vrot.lane.b32.xlu0 %v8850_v53, %s7484_s28  ;;  %7051 = vmatpush3.bf16.msra.mxu0 %v8496_v34 }
 0x40b   : > { %7052 = vmatprep.subr.bf16.mxu0 %v8557_v37  ;;  %v1427_v26 = vpop.permute.xlu1 %1426  ;;  %2154 = vmatprep.mubr.bf16.mxu0 %v7341_v41 }
 0x40c   : > { %v1446_v4 = vsel %vm1430_vm12, %v1427_v26, %v1429_v9  ;;  %v8978_v38 = vpop.permute.xlu0 %2772 }
 0x40d   : > { %4022 = vrot.lane.b32.xlu1 %v8855_v27, %s7484_s28  ;;  %1918 = vmatprep.subr.bf16.mxu1 %v1446_v4  ;;  %2838 = vst.msk [vmem:[#allocation3 + $0x238] sm:$0xff] %vm1311_vm0, %v8978_v38  ;;  %v7344_v27 = vld [vmem:[%s11564_s3 + $0x34] ss:$12 sps:$4 sm:$0xff]   ;;  %v9027_v4 = vld [vmem:[%s11564_s3 + $0x4c] ss:$12 sps:$4 sm:$0xff]  }
 0x40e   : > { %4016 = vrot.lane.b32.xlu0 %v8860_v21, %s7484_s28  ;;  %7053 = vmatpush3.bf16.msra.mxu0 %v8557_v37 }
 0x40f   : > { %7054 = vmatprep.subr.bf16.mxu0 %v8634_v36  ;;  %v8993_v34 = vpop.permute.xlu1 %1587 }
 0x410   : > { %v1425_v53 = vpop.permute.xlu0 %1424 }
 0x411   : > { %v1445_v9 = vsel %vm1430_vm12, %v1425_v53, %v1427_v26  ;;  %2155 = vmatmul.mubr.bf16.gmra.mrb[36].mxu0 %v7343_v49  ;;  %4026 = vrot.lane.b32.xlu1 %v8746_v11, %s7484_s28  ;;  %v9014_v11 = vld [vmem:[%s11564_s3 + $0x30] ss:$12 sps:$4 sm:$0xff]   ;;  %vm5692_vm12 = vcmask 1048448  }
 0x412   : > { %4020 = vrot.lane.b32.xlu0 %v8750_v17, %s7484_s28  ;;  %7055 = vmatpush3.bf16.msra.mxu0 %v8634_v36  ;;  %v1736_v17 = vld [vmem:[#allocation3 + $0x180] sm:$0xff] }
 0x413   : > { %7056 = vmatprep.subr.bf16.mxu0 %v8691_v19  ;;  %v9005_v37 = vpop.permute.xlu1 %2448  ;;  %2162 = vmatprep.mubr.bf16.mxu0 %v7344_v27 }
 0x414   : > { %v9007_v21 = vpop.permute.xlu0 %1585  ;;  %1919 = vmatpush1.bf16.msra.mxu1 %v1445_v9 }
 0x415   : > { %4030 = vrot.lane.b32.xlu1 %v8755_v63, %s7484_s28  ;;  %2001 = vmatprep.subr.bf16.mxu1 %v1737_v35  ;;  %v3972_v63 = vld [vmem:[#allocation2 + $0x70] sm:$0xff]  ;;  %v1600_v35 = vsel %vm1591_vm13, %v8786_v5, %v8744_v14  ;;  %v1602_v5 = vsel %vm1591_vm13, %v8844_v28, %v8832_v10 }
 0x416   : > { %4024 = vrot.lane.b32.xlu0 %v8760_v48, %s7484_s28  ;;  %7057 = vmatpush3.bf16.msra.mxu0 %v8691_v19  ;;  %v1740_v19 = vld [vmem:[#allocation3 + $0x1a0] sm:$0xff]  ;;  %v9148_v28 = vld [vmem:[#allocation3 + $0x50] sm:$0xff] }
 0x417   : > { %7058 = vmatprep.subr.bf16.mxu0 %v8766_v51  ;;  %v9020_v36 = vpop.permute.xlu1 %2609  ;;  %1921 = vmatmul.mubr.bf16.vlgmr.msra.gmra.mrb[0].mxu1 %v7338_v52  ;;  %v1739_v52 = vld [vmem:[#allocation3 + $0x198] sm:$0xff] }
 0x418   : > { %v9022_v26 = vpop.permute.xlu0 %2446  ;;  %2002 = vmatpush1.bf16.msra.mxu1 %v1736_v17  ;;  %1930 = vmatprep.mubr.bf16.mxu1 %v7341_v41  ;;  %v1597_v41 = vsel %vm1591_vm13, %v8625_v18, %v8608_v23  ;;  %v1596_v23 = vsel %vm1591_vm13, %v8649_v61, %v8625_v18  ;;  %v1599_v18 = vsel %vm1591_vm13, %v8700_v42, %v8666_v32  ;;  %v3975_v32 = vld [vmem:[#allocation2 + $0x88] sm:$0xff] }
 0x419   : > { %2163 = vmatmul.mubr.bf16.gmra.mrb[40].mxu0 %v9014_v11  ;;  %4034 = vrot.lane.b32.xlu1 %v3972_v63, %s7484_s28  ;;  %v1598_v61 = vsel %vm1591_vm13, %v8708_v43, %v8700_v42  ;;  %v9095_v43 = vld [vmem:[%s11564_s3 + $0x60] ss:$12 sps:$4 sm:$0xff]   ;;  %v9112_v63 = vld [vmem:[%s11564_s3 + $0x7c] ss:$12 sps:$4 sm:$0xff]  }
 0x41a   : > { %4028 = vrot.lane.b32.xlu0 %v8885_v59, %s7484_s28  ;;  %7059 = vmatpush3.bf16.msra.mxu0 %v8766_v51  ;;  %v9048_v51 = vld [vmem:[%s11564_s3 + $0x48] ss:$12 sps:$4 sm:$0xff]   ;;  %v9057_v59 = vld [vmem:[#allocation3 + $0x40] sm:$0xff] }
 0x41b   : > { %7060 = vmatprep.subr.bf16.mxu0 %v8824_v6  ;;  %v9035_v48 = vpop.permute.xlu1 %2770  ;;  %2003 = vmatprep.subr.bf16.mxu1 %v1740_v19 }
 0x41c   : > { %v9040_v53 = vpop.permute.xlu0 %2607  ;;  %2170 = vmatprep.mubr.bf16.mxu0 %v9027_v4  ;;  %2004 = vmatpush1.bf16.msra.mxu1 %v1739_v52 }
 0x41d   : > { %4038 = vrot.lane.b32.xlu1 %v8778_v46, %s7484_s28  ;;  %2005 = vmatprep.subr.bf16.mxu1 %v1597_v41 }
 0x41e   : > { %4032 = vrot.lane.b32.xlu0 %v8782_v12, %s7484_s28  ;;  %7061 = vmatpush3.bf16.msra.mxu0 %v8824_v6  ;;  %v9065_v12 = vld [vmem:[%s11564_s3 + $0x64] ss:$12 sps:$4 sm:$0xff]  }
 0x41f   : > { %7062 = vmatprep.subr.bf16.mxu0 %v8910_v54  ;;  %v3701_v46 = vpop.permute.xlu1 %3700  ;;  %1931 = vmatmul.mubr.bf16.gmra.mrb[4].mxu1 %v7343_v49 }
 0x420   : > { %3781 = vst.msk [vmem:[#allocation3 + $0x40] sm:$0xff] %vm1311_vm0, %v3701_v46  ;;  %v9060_v9 = vpop.permute.xlu0 %2768  ;;  %2006 = vmatpush1.bf16.msra.mxu1 %v1596_v23  ;;  %1940 = vmatprep.mubr.bf16.mxu1 %v7344_v27  ;;  %v3978_v27 = vld [vmem:[#allocation2 + $0xa0] sm:$0xff]  ;;  %v1604_v23 = vsel %vm1591_vm13, %v8930_v7, %v8893_v20 }
 0x421   : > { %2171 = vmatmul.mubr.bf16.gmra.mrb[44].mxu0 %v9048_v51  ;;  %4042 = vrot.lane.b32.xlu1 %v8902_v24, %s7484_s28  ;;  %v1601_v24 = vsel %vm1591_vm13, %v8744_v14, %v8734_v56  ;;  %v9097_v56 = vld [vmem:[#allocation3 + $0x38] sm:$0xff]  ;;  %v9124_v14 = vld [vmem:[#allocation3 + $0x48] sm:$0xff]  ;;  %v9172_v7 = vld [vmem:[#allocation3 + $0x60] sm:$0xff] }
 0x422   : > { %4036 = vrot.lane.b32.xlu0 %v8791_v13, %s7484_s28  ;;  %7063 = vmatpush3.bf16.msra.mxu0 %v8910_v54  ;;  %v9099_v13 = vld [vmem:[#allocation3 + $0x30] sm:$0xff] }
 0x423   : > { %7064 = vmatprep.subr.bf16.mxu0 %v8980_v1  ;;  %v3705_v6 = vpop.permute.xlu1 %3704  ;;  %2007 = vmatprep.subr.bf16.mxu1 %v1599_v18  ;;  %v1607_v18 = vsel %vm1591_vm13, %v8993_v34, %v8941_v15  ;;  %v1680_v15 = vld [vmem:[%s11564_s3 + $0x90] sm:$0xff] }
 0x424   : > { %v3699_v49 = vpop.permute.xlu0 %3698  ;;  %2178 = vmatprep.mubr.bf16.mxu0 %v9065_v12  ;;  %2008 = vmatpush1.bf16.msra.mxu1 %v1598_v61 }
 0x425   : > { %v9086_v54 = vsel %vm3732_vm2, %v8682_v16, %v3699_v49  ;;  %v9089_v42 = vsel %vm3732_vm2, %v3699_v49, %v3701_v46  ;;  %4046 = vrot.lane.b32.xlu1 %v3978_v27, %s7484_s28  ;;  %2009 = vmatprep.subr.bf16.mxu1 %v1601_v24  ;;  %v2898_v16 = vld [vmem:[#allocation3 + $0xd0] sm:$0xff]  ;;  %v3981_v24 = vld [vmem:[#allocation2 + $0xb8] sm:$0xff] }
 0x426   : > { %4040 = vrot.lane.b32.xlu0 %v3975_v32, %s7484_s28  ;;  %7065 = vmatpush3.bf16.msra.mxu0 %v8980_v1  ;;  %3780 = vst [vmem:[#allocation3 + $0x38] sm:$0xff] %v9089_v42  ;;  %3779 = vst [vmem:[#allocation3 + $0x30] sm:$0xff] %v9086_v54  ;;  %v1603_v1 = vsel %vm1591_vm13, %v8832_v10, %v8796_v3  ;;  %v9132_v3 = vld [vmem:[#allocation3 + $0x70] sm:$0xff]  ;;  %v7355_v10 = vld [vmem:[%s11564_s3 + $0x78] ss:$12 sps:$4 sm:$0xff]  }
 0x427   : > { %6890 = vmatprep.subr.bf16.mxu0 %v2898_v16  ;;  %v3709_v17 = vpop.permute.xlu1 %3708  ;;  %1941 = vmatmul.mubr.bf16.gmra.mrb[8].mxu1 %v9014_v11 }
 0x428   : > { %v3703_v19 = vpop.permute.xlu0 %3702  ;;  %2010 = vmatpush1.bf16.msra.mxu1 %v1600_v35  ;;  %1950 = vmatprep.mubr.bf16.mxu1 %v9027_v4  ;;  %v9139_v4 = vld [vmem:[#allocation3 + $0x58] sm:$0xff] }
 0x429   : > { %v9119_v52 = vsel %vm3732_vm2, %v3703_v19, %v3705_v6  ;;  %2179 = vmatmul.mubr.bf16.gmra.mrb[48].mxu0 %v9095_v43  ;;  %4050 = vrot.lane.b32.xlu1 %v8922_v47, %s7484_s28  ;;  %v1605_v47 = vsel %vm1591_vm13, %v8893_v20, %v8878_v29  ;;  %v7356_v29 = vld [vmem:[%s11564_s3 + $0x94] ss:$12 sps:$4 sm:$0xff]   ;;  %v9170_v20 = vld [vmem:[#allocation3 + $0x68] sm:$0xff]  ;;  %v9190_v35 = vld [vmem:[#allocation3 + $0x78] sm:$0xff] }
 0x42a   : > { %4044 = vrot.lane.b32.xlu0 %v8926_v57, %s7484_s28  ;;  %2011 = vmatprep.subr.bf16.mxu1 %v1603_v1  ;;  %3782 = vst [vmem:[#allocation3 + $0x48] sm:$0xff] %v9119_v52  ;;  %v9196_v19 = vld [vmem:[#allocation3 + $0xa0] sm:$0xff] }
 0x42b   : > { %v3713_v11 = vpop.permute.xlu1 %3712  ;;  %2186 = vmatprep.mubr.bf16.mxu0 %v9112_v63 }
 0x42c   : > { %3787 = vst.msk [vmem:[#allocation3 + $0x70] sm:$0xff] %vm1311_vm0, %v3713_v11  ;;  %v3707_v57 = vpop.permute.xlu0 %3706  ;;  %2012 = vmatpush1.bf16.msra.mxu1 %v1602_v5  ;;  %v9207_v5 = vld [vmem:[#allocation3 + $0x80] sm:$0xff] }
 0x42d   : > { %v9142_v41 = vsel %vm3732_vm2, %v3705_v6, %v3707_v57  ;;  %3784 = vst.msk [vmem:[#allocation3 + $0x58] sm:$0xff] %vm1311_vm0, %v3707_v57  ;;  %2013 = vmatprep.subr.bf16.mxu1 %v1605_v47 }
 0x42e   : > { %4048 = vrot.lane.b32.xlu0 %v8935_v22, %s7484_s28  ;;  %3783 = vst [vmem:[#allocation3 + $0x50] sm:$0xff] %v9142_v41 }
 0x42f   : > { %v3717_v46 = vpop.permute.xlu1 %3716  ;;  %1951 = vmatmul.mubr.bf16.gmra.mrb[12].mxu1 %v9048_v51  ;;  %v1682_v51 = vld [vmem:[%s11564_s3 + $0x9c] sm:$0xff] }
 0x430   : > { %v3711_v61 = vpop.permute.xlu0 %3710  ;;  %2014 = vmatpush1.bf16.msra.mxu1 %v1604_v23  ;;  %1960 = vmatprep.mubr.bf16.mxu1 %v9065_v12  ;;  %v1606_v12 = vsel %vm1591_vm13, %v9007_v21, %v8993_v34  ;;  %v6688_v16 = vcombine.low %v1680_v15, %v1682_v51  ;;  %v9200_v21 = vld [vmem:[#allocation3 + $0x88] sm:$0xff]  ;;  %v9229_v15 = vld [vmem:[#allocation3 + $0xb8] sm:$0xff]  ;;  %vm6413_vm13 = vcmask 818176  }
 0x431   : > { %v9165_v22 = vsel %vm3732_vm2, %v3709_v17, %v3711_v61  ;;  %v9168_v6 = vsel %vm3732_vm2, %v3711_v61, %v3713_v11  ;;  %2187 = vmatmul.mubr.bf16.gmra.mrb[52].mxu0 %v7355_v10  ;;  %2015 = vmatprep.subr.bf16.mxu1 %v1607_v18  ;;  %v7358_v17 = vld [vmem:[%s11564_s3 + $0xac] ss:$12 sps:$4 sm:$0xff]   ;;  %v9222_v23 = vld [vmem:[%s11564_s3 + $0x8] ss:$12 sps:$4 sm:$0xff]  }
 0x432   : > { %4052 = vrot.lane.b32.xlu0 %v3981_v24, %s7484_s28  ;;  %2194 = vmatprep.mubr.bf16.mxu0 %v7356_v29  ;;  %3786 = vst [vmem:[#allocation3 + $0x68] sm:$0xff] %v9168_v6  ;;  %3785 = vst [vmem:[#allocation3 + $0x60] sm:$0xff] %v9165_v22  ;;  %s7490_s28 = smov 116  }
 0x433   : > { %v3721_v49 = vpop.permute.xlu1 %3720 }
 0x434   : > { %v3715_v27 = vpop.permute.xlu0 %3714  ;;  %2016 = vmatpush1.bf16.msra.mxu1 %v1606_v12 }
 0x435   : > { %v9187_v32 = vsel %vm3732_vm2, %v3715_v27, %v3717_v46  ;;  %3072 = vmatprep.subr.bf16.mxu1 %v8522_v60 }
 0x436   : > { %3788 = vst [vmem:[#allocation3 + $0x78] sm:$0xff] %v9187_v32 }
 0x437   : > { %v3725_v34 = vpop.permute.xlu1 %3724  ;;  %1961 = vmatmul.mubr.bf16.gmra.mrb[16].mxu1 %v9095_v43 }
 0x438   : > { %3793 = vst.msk [vmem:[#allocation3 + $0xa0] sm:$0xff] %vm1311_vm0, %v3725_v34  ;;  %v3719_v1 = vpop.permute.xlu0 %3718  ;;  %1970 = vmatprep.mubr.bf16.mxu1 %v9112_v63  ;;  %v7360_v63 = vld [vmem:[%s11564_s3 + $0xa8] ss:$12 sps:$4 sm:$0xff]  }
 0x439   : > { %v9204_v60 = vsel %vm3732_vm2, %v3717_v46, %v3719_v1  ;;  %3790 = vst.msk [vmem:[#allocation3 + $0x88] sm:$0xff] %vm1311_vm0, %v3719_v1  ;;  %2195 = vmatmul.mubr.bf16.gmra.mrb[56].mxu0 %v6688_v16 }
 0x43a   : > { %2202 = vmatprep.mubr.bf16.mxu0 %v7358_v17  ;;  %3789 = vst [vmem:[#allocation3 + $0x80] sm:$0xff] %v9204_v60 }
 0x43b   : > { %v3729_v11 = vpop.permute.xlu1 %3728 }
 0x43c   : > { %v3723_v43 = vpop.permute.xlu0 %3722 }
 0x43d   : > { %v9211_v47 = vsel %vm3732_vm2, %v3721_v49, %v3723_v43  ;;  %v9214_v57 = vsel %vm3732_vm2, %v3723_v43, %v3725_v34  ;;  %v9254_v43 = vld [vmem:[#allocation3 + $0xc0] sm:$0xff] }
 0x43f   : > { %v3846_v46 = vpop.permute.xlu1 %3845  ;;  %1971 = vmatmul.mubr.bf16.gmra.mrb[20].mxu1 %v7355_v10  ;;  %v9238_v10 = vld [vmem:[%s11564_s3 + $0x20] ss:$12 sps:$4 sm:$0xff]  }
 0x440   : > { %v3727_v18 = vpop.permute.xlu0 %3726  ;;  %1980 = vmatprep.mubr.bf16.mxu1 %v7356_v29  ;;  %v9243_v29 = vld [vmem:[%s11564_s3 + $0x38] ss:$12 sps:$4 sm:$0xff]  }
 0x441   : > { %v9225_v61 = vsel %vm3732_vm2, %v3727_v18, %v3729_v11  ;;  %2203 = vmatmul.mubr.bf16.gmra.mrb[60].mxu0 %v7360_v63  ;;  %v2901_v18 = vld [vmem:[#allocation3 + $0xe8] sm:$0xff] }
 0x442   : > { %11636 = vst [vmem:[#allocation21_spill] sm:$0xff] %v9225_v61  ;;  %7066 = vmatprep.mubr.bf16.mxu0 %v9222_v23 }
 0x443   : > { %v3850_v24 = vpop.permute.xlu1 %3849 }
 0x444   : > { %3936 = vst.msk [vmem:[#allocation3 + $0xd0] sm:$0xff] %vm1311_vm0, %v3850_v24  ;;  %v3731_v51 = vpop.permute.xlu0 %3730 }
 0x445   : > { %v9232_v12 = vsel %vm3732_vm2, %v3729_v11, %v3731_v51  ;;  %3796 = vst.msk [vmem:[#allocation3 + $0xb8] sm:$0xff] %vm1311_vm0, %v3731_v51  ;;  %v9252_v11 = vld [vmem:[#allocation3 + $0xc8] sm:$0xff]  ;;  %v9268_v51 = vld [vmem:[#allocation3 + $0xd8] sm:$0xff] }
 0x446   : > { %11637 = vst [vmem:[#allocation22_spill] sm:$0xff] %v9232_v12  ;;  %v9302_v12 = vld [vmem:[#allocation3 + $0xf0] sm:$0xff] }
 0x447   : > { %v3854_v49 = vpop.permute.xlu1 %3853  ;;  %1981 = vmatmul.mubr.bf16.gmra.mrb[24].mxu1 %v6688_v16 }
 0x448   : > { %v3848_v27 = vpop.permute.xlu0 %3847  ;;  %1990 = vmatprep.mubr.bf16.mxu1 %v7358_v17 }
 0x449   : > { %v9246_v34 = vsel %vm3893_vm3, %v3846_v46, %v3848_v27  ;;  %v9249_v1 = vsel %vm3893_vm3, %v3848_v27, %v3850_v24  ;;  %7067 = vmatmul.mubr.bf16.vlgmr.msra.gmra.mrb[64].mxu0 %v9238_v10  ;;  %v9266_v24 = vld [vmem:[%s11564_s3 + $0x50] ss:$12 sps:$4 sm:$0xff]   ;;  %v9274_v27 = vld [vmem:[%s11564_s3 + $0x68] ss:$12 sps:$4 sm:$0xff]  }
 0x44a   : > { %11638 = vst [vmem:[#allocation23_spill] sm:$0xff] %v9246_v34  ;;  %11639 = vst [vmem:[#allocation24_spill] sm:$0xff] %v9249_v1  ;;  %6891 = vmatpush3.bf16.msra.mxu0 %v8505_v45  ;;  %7070 = vmatprep.mubr.bf16.mxu0 %v9243_v29  ;;  %v2904_v45 = vld [vmem:[#allocation3 + $0x100] sm:$0xff] }
 0x44b   : > { %3935 = vst [vmem:[#allocation3 + $0xc8] sm:$0xff] %v9249_v1  ;;  %3934 = vst [vmem:[#allocation3 + $0xc0] sm:$0xff] %v9246_v34  ;;  %6892 = vmatprep.subr.bf16.mxu0 %v2901_v18  ;;  %v3858_v16 = vpop.permute.xlu1 %3857  ;;  %v11641_v34 = vmov 0  }
 0x44c   : > { %v3852_v17 = vpop.permute.xlu0 %3851 }
 0x44d   : > { %v9261_v46 = vsel %vm3893_vm3, %v3852_v17, %v3854_v49 }
 0x44e   : > { %11640 = vst [vmem:[#allocation25_spill] sm:$0xff] %v9261_v46  ;;  %6893 = vmatpush3.bf16.msra.mxu0 %v8566_v62  ;;  %3937 = vst [vmem:[#allocation3 + $0xd8] sm:$0xff] %v9261_v46  ;;  %v9284_v62 = vld [vmem:[#allocation3 + $0xe0] sm:$0xff]  ;;  %v2907_v46 = vld [vmem:[#allocation3 + $0x118] sm:$0xff] }
 0x44f   : > { %6894 = vmatprep.subr.bf16.mxu0 %v2904_v45  ;;  %v3862_v18 = vpop.permute.xlu1 %3861  ;;  %1991 = vmatmul.mubr.bf16.gmra.mrb[28].mxu1 %v7360_v63 }
 0x450   : > { %3942 = vst.msk [vmem:[#allocation3 + $0x100] sm:$0xff] %vm1311_vm0, %v3862_v18  ;;  %v3856_v17 = vpop.permute.xlu0 %3855  ;;  %2033 = vmatprep.mubr.bf16.mxu1 %v11641_v34 }
 0x451   : > { %v9280_v1 = vsel %vm3893_vm3, %v3854_v49, %v3856_v17  ;;  %3939 = vst.msk [vmem:[#allocation3 + $0xe8] sm:$0xff] %vm1311_vm0, %v3856_v17  ;;  %7071 = vmatmul.mubr.bf16.gmra.mrb[68].mxu0 %v9266_v24  ;;  %v9298_v17 = vld [vmem:[%s11564_s3 + $0x80] ss:$12 sps:$4 sm:$0xff]  }
 0x452   : > { %11642 = vst [vmem:[#allocation26_spill] sm:$0xff] %v9280_v1  ;;  %6895 = vmatpush3.bf16.msra.mxu0 %v9057_v59  ;;  %7074 = vmatprep.mubr.bf16.mxu0 %v9274_v27  ;;  %3938 = vst [vmem:[#allocation3 + $0xe0] sm:$0xff] %v9280_v1  ;;  %v9300_v59 = vld [vmem:[#allocation3 + $0xf8] sm:$0xff]  ;;  %v9320_v1 = vld [vmem:[#allocation3 + $0x108] sm:$0xff] }
 0x453   : > { %6896 = vmatprep.subr.bf16.mxu0 %v2907_v46  ;;  %v3866_v63 = vpop.permute.xlu1 %3865  ;;  %v2910_v46 = vld [vmem:[#allocation3 + $0x130] sm:$0xff] }
 0x454   : > { %v3860_v45 = vpop.permute.xlu0 %3859 }
 0x455   : > { %v9290_v61 = vsel %vm3893_vm3, %v3858_v16, %v3860_v45  ;;  %v9293_v49 = vsel %vm3893_vm3, %v3860_v45, %v3862_v18  ;;  %v9308_v16 = vld [vmem:[%s11564_s3 + $0x98] ss:$12 sps:$4 sm:$0xff]  }
 0x456   : > { %6897 = vmatpush3.bf16.msra.mxu0 %v9139_v4  ;;  %3941 = vst [vmem:[#allocation3 + $0xf8] sm:$0xff] %v9293_v49  ;;  %3940 = vst [vmem:[#allocation3 + $0xf0] sm:$0xff] %v9290_v61 }
 0x457   : > { %6898 = vmatprep.subr.bf16.mxu0 %v2910_v46  ;;  %v3870_v18 = vpop.permute.xlu1 %3869  ;;  %2034 = vmatmul.mubr.bf16.vlgmr.msra.gmra.mrb[0].mxu1 %v9222_v23  ;;  %v2913_v46 = vld [vmem:[#allocation3 + $0x148] sm:$0xff] }
 0x458   : > { %v3864_v45 = vpop.permute.xlu0 %3863  ;;  %3073 = vmatpush1.bf16.msra.mxu1 %v8549_v2  ;;  %2043 = vmatprep.mubr.bf16.mxu1 %v11641_v34 }
 0x459   : > { %v9316_v4 = vsel %vm3893_vm3, %v3864_v45, %v3866_v63  ;;  %7075 = vmatmul.mubr.bf16.gmra.mrb[72].mxu0 %v9298_v17  ;;  %3074 = vmatprep.subr.bf16.mxu1 %v8595_v31  ;;  %v9334_v31 = vld [vmem:[%s11564_s3 + $0xb0] ss:$12 sps:$4 sm:$0xff]  }
 0x45a   : > { %11643 = vst [vmem:[#allocation27_spill] sm:$0xff] %v9316_v4  ;;  %6899 = vmatpush3.bf16.msra.mxu0 %v9132_v3  ;;  %7078 = vmatprep.mubr.bf16.mxu0 %v9308_v16  ;;  %3943 = vst [vmem:[#allocation3 + $0x108] sm:$0xff] %v9316_v4  ;;  %v9337_v3 = vld [vmem:[#allocation3 + $0x110] sm:$0xff]  ;;  %v9357_v4 = vld [vmem:[#allocation3 + $0x128] sm:$0xff] }
 0x45b   : > { %6900 = vmatprep.subr.bf16.mxu0 %v2913_v46  ;;  %v3874_v2 = vpop.permute.xlu1 %3873  ;;  %v2916_v46 = vld [vmem:[#allocation3 + $0x160] sm:$0xff] }
 0x45c   : > { %3948 = vst.msk [vmem:[#allocation3 + $0x130] sm:$0xff] %vm1311_vm0, %v3874_v2  ;;  %v3868_v23 = vpop.permute.xlu0 %3867  ;;  %3075 = vmatpush1.bf16.msra.mxu1 %v8613_v40  ;;  %v9343_v40 = vld [vmem:[%s11564_s3 + $0xc4] ss:$12 sps:$4 sm:$0xff]  }
 0x45d   : > { %v9328_v45 = vsel %vm3893_vm3, %v3866_v63, %v3868_v23  ;;  %3945 = vst.msk [vmem:[#allocation3 + $0x118] sm:$0xff] %vm1311_vm0, %v3868_v23  ;;  %3076 = vmatprep.subr.bf16.mxu1 %v9097_v56 }
 0x45e   : > { %6901 = vmatpush3.bf16.msra.mxu0 %v9200_v21  ;;  %3944 = vst [vmem:[#allocation3 + $0x110] sm:$0xff] %v9328_v45 }
 0x45f   : > { %6902 = vmatprep.subr.bf16.mxu0 %v2916_v46  ;;  %v3878_v63 = vpop.permute.xlu1 %3877  ;;  %2044 = vmatmul.mubr.bf16.gmra.mrb[4].mxu1 %v9238_v10  ;;  %v9359_v46 = vld [vmem:[#allocation3 + $0x120] sm:$0xff]  ;;  %v2919_v10 = vld [vmem:[#allocation3 + $0x178] sm:$0xff] }
 0x460   : > { %v3872_v23 = vpop.permute.xlu0 %3871  ;;  %3077 = vmatpush1.bf16.msra.mxu1 %v9099_v13  ;;  %2053 = vmatprep.mubr.bf16.mxu1 %v11641_v34 }
 0x461   : > { %v9350_v56 = vsel %vm3893_vm3, %v3870_v18, %v3872_v23  ;;  %v9353_v21 = vsel %vm3893_vm3, %v3872_v23, %v3874_v2  ;;  %7079 = vmatmul.mubr.bf16.gmra.mrb[76].mxu0 %v9334_v31  ;;  %3078 = vmatprep.subr.bf16.mxu1 %v9148_v28  ;;  %v9372_v2 = vld [vmem:[%s11564_s3 + $0xc0] ss:$12 sps:$4 sm:$0xff]   ;;  %v2922_v23 = vld [vmem:[#allocation3 + $0x190] sm:$0xff] }
 0x462   : > { %11644 = vst [vmem:[#allocation28_spill] sm:$0xff] %v9350_v56  ;;  %6903 = vmatpush3.bf16.msra.mxu0 %v9196_v19  ;;  %3330 = vmatprep.mubr.bf16.mxu0 %v9343_v40  ;;  %3947 = vst [vmem:[#allocation3 + $0x128] sm:$0xff] %v9353_v21  ;;  %v9375_v19 = vld [vmem:[#allocation3 + $0x138] sm:$0xff] }
 0x463   : > { %3946 = vst [vmem:[#allocation3 + $0x120] sm:$0xff] %v9350_v56  ;;  %6904 = vmatprep.subr.bf16.mxu0 %v2919_v10  ;;  %v3882_v13 = vpop.permute.xlu1 %3881  ;;  %v9381_v10 = vld [vmem:[%s11564_s3 + $0xdc] ss:$12 sps:$4 sm:$0xff]   ;;  %v9415_v56 = vld [vmem:[#allocation3 + $0x150] sm:$0xff] }
 0x464   : > { %v3876_v18 = vpop.permute.xlu0 %3875  ;;  %3079 = vmatpush1.bf16.msra.mxu1 %v9124_v14 }
 0x465   : > { %v9367_v28 = vsel %vm3893_vm3, %v3876_v18, %v3878_v63  ;;  %3080 = vmatprep.subr.bf16.mxu1 %v9170_v20 }
 0x466   : > { %11645 = vst [vmem:[#allocation29_spill] sm:$0xff] %v9367_v28  ;;  %6905 = vmatpush3.bf16.msra.mxu0 %v9229_v15  ;;  %3949 = vst [vmem:[#allocation3 + $0x138] sm:$0xff] %v9367_v28  ;;  %v9394_v15 = vld [vmem:[#allocation3 + $0x140] sm:$0xff] }
 0x467   : > { %7082 = vmatprep.subr.bf16.mxu0 %v2922_v23  ;;  %v3886_v14 = vpop.permute.xlu1 %3885  ;;  %2054 = vmatmul.mubr.bf16.gmra.mrb[8].mxu1 %v9243_v29  ;;  %v2925_v29 = vld [vmem:[#allocation3 + $0x1a8] sm:$0xff] }
 0x468   : > { %3954 = vst.msk [vmem:[#allocation3 + $0x160] sm:$0xff] %vm1311_vm0, %v3886_v14  ;;  %v3880_v18 = vpop.permute.xlu0 %3879  ;;  %3081 = vmatpush1.bf16.msra.mxu1 %v9172_v7  ;;  %2063 = vmatprep.mubr.bf16.mxu1 %v11641_v34 }
 0x469   : > { %v9389_v20 = vsel %vm3893_vm3, %v3878_v63, %v3880_v18  ;;  %3951 = vst.msk [vmem:[#allocation3 + $0x148] sm:$0xff] %vm1311_vm0, %v3880_v18  ;;  %3331 = vmatmul.mubr.bf16.vlgmr.msra.gmra.mrb[80].mxu0 %v9372_v2  ;;  %3082 = vmatprep.subr.bf16.mxu1 %v9207_v5  ;;  %v2466_v63 = vsel %vm2452_vm14, %v8900_v44, %v8889_v55  ;;  %v2928_v55 = vld [vmem:[#allocation3 + $0x1c0] sm:$0xff] }
 0x46a   : > { %11646 = vst [vmem:[#allocation30_spill] sm:$0xff] %v9389_v20  ;;  %7083 = vmatpush3.bf16.msra.mxu0 %v2922_v23  ;;  %3338 = vmatprep.mubr.bf16.mxu0 %v9381_v10  ;;  %3950 = vst [vmem:[#allocation3 + $0x140] sm:$0xff] %v9389_v20  ;;  %v9411_v23 = vld [vmem:[%s11564_s3 + $0xd8] ss:$12 sps:$4 sm:$0xff]  }
 0x46b   : > { %7084 = vmatprep.subr.bf16.mxu0 %v2925_v29  ;;  %v3890_v7 = vpop.permute.xlu1 %3889  ;;  %v9413_v20 = vld [vmem:[#allocation3 + $0x158] sm:$0xff] }
 0x46c   : > { %v3884_v28 = vpop.permute.xlu0 %3883  ;;  %3083 = vmatpush1.bf16.msra.mxu1 %v9190_v35  ;;  %v9420_v35 = vld [vmem:[%s11564_s3 + $0xf4] ss:$12 sps:$4 sm:$0xff]  }
 0x46d   : > { %v9403_v18 = vsel %vm3893_vm3, %v3882_v13, %v3884_v28  ;;  %v9406_v5 = vsel %vm3893_vm3, %v3884_v28, %v3886_v14  ;;  %3084 = vmatprep.subr.bf16.mxu1 %v2466_v63  ;;  %v2465_v13 = vsel %vm2452_vm14, %v8939_v30, %v8900_v44  ;;  %v2468_v14 = vsel %vm2452_vm14, %v9005_v37, %v8950_v33  ;;  %v2931_v44 = vld [vmem:[#allocation3 + $0x1d8] sm:$0xff] }
 0x46e   : > { %7085 = vmatpush3.bf16.msra.mxu0 %v2925_v29  ;;  %3953 = vst [vmem:[#allocation3 + $0x158] sm:$0xff] %v9406_v5  ;;  %3952 = vst [vmem:[#allocation3 + $0x150] sm:$0xff] %v9403_v18  ;;  %v2467_v30 = vsel %vm2452_vm14, %v9022_v26, %v9005_v37  ;;  %v2934_v37 = vld [vmem:[#allocation3 + $0x1f0] sm:$0xff]  ;;  %v9454_v26 = vld [vmem:[%s11564_s3 + $0x10c] ss:$12 sps:$4 sm:$0xff]  }
 0x46f   : > { %7086 = vmatprep.subr.bf16.mxu0 %v2928_v55  ;;  %v4007_v28 = vpop.permute.xlu1 %4006  ;;  %2064 = vmatmul.mubr.bf16.gmra.mrb[12].mxu1 %v9266_v24 }
 0x470   : > { %v3888_v29 = vpop.permute.xlu0 %3887  ;;  %3085 = vmatpush1.bf16.msra.mxu1 %v2465_v13  ;;  %2073 = vmatprep.mubr.bf16.mxu1 %v11641_v34 }
 0x471   : > { %v9433_v63 = vsel %vm3893_vm3, %v3888_v29, %v3890_v7  ;;  %3339 = vmatmul.mubr.bf16.gmra.mrb[84].mxu0 %v9411_v23  ;;  %3086 = vmatprep.subr.bf16.mxu1 %v2468_v14 }
 0x472   : > { %7087 = vmatpush3.bf16.msra.mxu0 %v2928_v55  ;;  %3346 = vmatprep.mubr.bf16.mxu0 %v9420_v35  ;;  %v9448_v55 = vld [vmem:[%s11564_s3 + $0xf0] ss:$12 sps:$4 sm:$0xff]  }
 0x473   : > { %7088 = vmatprep.subr.bf16.mxu0 %v2931_v44  ;;  %v4011_v33 = vpop.permute.xlu1 %4010 }
 0x474   : > { %4097 = vst.msk [vmem:[#allocation3 + $0x190] sm:$0xff] %vm1311_vm0, %v4011_v33  ;;  %v3892_v24 = vpop.permute.xlu0 %3891  ;;  %3087 = vmatpush1.bf16.msra.mxu1 %v2467_v30 }
 0x475   : > { %v9442_v13 = vsel %vm3893_vm3, %v3890_v7, %v3892_v24  ;;  %3957 = vst.msk [vmem:[#allocation3 + $0x178] sm:$0xff] %vm1311_vm0, %v3892_v24  ;;  %3088 = vmatprep.subr.bf16.mxu1 %v9252_v11  ;;  %v2940_v24 = vld [vmem:[#allocation3 + $0x220] sm:$0xff] }
 0x476   : > { %7089 = vmatpush3.bf16.msra.mxu0 %v2931_v44  ;;  %v2937_v44 = vld [vmem:[#allocation3 + $0x208] sm:$0xff] }
 0x477   : > { %7090 = vmatprep.subr.bf16.mxu0 %v2934_v37  ;;  %v4015_v7 = vpop.permute.xlu1 %4014  ;;  %2074 = vmatmul.mubr.bf16.gmra.mrb[16].mxu1 %v9274_v27  ;;  %v6706_v27 = vld [vmem:[%s11564_s3 + $0x108] sm:$0xff] }
 0x478   : > { %v4009_v14 = vpop.permute.xlu0 %4008  ;;  %3089 = vmatpush1.bf16.msra.mxu1 %v9254_v43  ;;  %2083 = vmatprep.mubr.bf16.mxu1 %v11641_v34  ;;  %v6708_v43 = vld [vmem:[%s11564_s3 + $0x114] sm:$0xff] }
 0x479   : > { %v9460_v29 = vsel %vm4054_vm4, %v4007_v28, %v4009_v14  ;;  %v9463_v11 = vsel %vm4054_vm4, %v4009_v14, %v4011_v33  ;;  %3347 = vmatmul.mubr.bf16.gmra.mrb[88].mxu0 %v9448_v55  ;;  %3090 = vmatprep.subr.bf16.mxu1 %v9284_v62  ;;  %v9480_v33 = vcombine.low %v6706_v27, %v6708_v43  ;;  %v9517_v43 = vld [vmem:[%s11564_s3 + $0x13c] ss:$12 sps:$4 sm:$0xff]  }
 0x47a   : > { %7091 = vmatpush3.bf16.msra.mxu0 %v2934_v37  ;;  %3354 = vmatprep.mubr.bf16.mxu0 %v9454_v26  ;;  %4096 = vst [vmem:[#allocation3 + $0x188] sm:$0xff] %v9463_v11  ;;  %4095 = vst [vmem:[#allocation3 + $0x180] sm:$0xff] %v9460_v29  ;;  %v9486_v37 = vld [vmem:[%s11564_s3 + $0x124] ss:$12 sps:$4 sm:$0xff]  }
 0x47b   : > { %7092 = vmatprep.subr.bf16.mxu0 %v2937_v44  ;;  %v4019_v28 = vpop.permute.xlu1 %4018 }
 0x47c   : > { %v4013_v30 = vpop.permute.xlu0 %4012  ;;  %3091 = vmatpush1.bf16.msra.mxu1 %v9268_v51 }
 0x47d   : > { %v9478_v62 = vsel %vm4054_vm4, %v4013_v30, %v4015_v7  ;;  %3092 = vmatprep.subr.bf16.mxu1 %v9300_v59 }
 0x47e   : > { %7093 = vmatpush3.bf16.msra.mxu0 %v2937_v44  ;;  %4098 = vst [vmem:[#allocation3 + $0x198] sm:$0xff] %v9478_v62  ;;  %v2943_v44 = vld [vmem:[#allocation3 + $0x238] sm:$0xff] }
 0x47f   : > { %7094 = vmatprep.subr.bf16.mxu0 %v2940_v24  ;;  %v4023_v14 = vpop.permute.xlu1 %4022  ;;  %2084 = vmatmul.mubr.bf16.gmra.mrb[20].mxu1 %v9298_v17 }
 0x480   : > { %4103 = vst.msk [vmem:[#allocation3 + $0x1c0] sm:$0xff] %vm1311_vm0, %v4023_v14  ;;  %v4017_v51 = vpop.permute.xlu0 %4016  ;;  %3093 = vmatpush1.bf16.msra.mxu1 %v9302_v12  ;;  %2093 = vmatprep.mubr.bf16.mxu1 %v11641_v34 }
 0x481   : > { %v9494_v59 = vsel %vm4054_vm4, %v4015_v7, %v4017_v51  ;;  %4100 = vst.msk [vmem:[#allocation3 + $0x1a8] sm:$0xff] %vm1311_vm0, %v4017_v51  ;;  %3355 = vmatmul.mubr.bf16.gmra.mrb[92].mxu0 %v9480_v33  ;;  %3094 = vmatprep.subr.bf16.mxu1 %v9337_v3  ;;  %v9511_v3 = vld [vmem:[%s11564_s3 + $0x120] ss:$12 sps:$4 sm:$0xff]  }
 0x482   : > { %7095 = vmatpush3.bf16.msra.mxu0 %v2940_v24  ;;  %3362 = vmatprep.mubr.bf16.mxu0 %v9486_v37  ;;  %4099 = vst [vmem:[#allocation3 + $0x1a0] sm:$0xff] %v9494_v59 }
 0x483   : > { %7096 = vmatprep.subr.bf16.mxu0 %v2943_v44  ;;  %v4027_v17 = vpop.permute.xlu1 %4026 }
 0x484   : > { %v4021_v12 = vpop.permute.xlu0 %4020  ;;  %3095 = vmatpush1.bf16.msra.mxu1 %v9320_v1  ;;  %v7431_v1 = vld [vmem:[#allocation3 + $0x8] sm:$0xff] }
 0x485   : > { %v9503_v7 = vsel %vm4054_vm4, %v4019_v28, %v4021_v12  ;;  %v9506_v27 = vsel %vm4054_vm4, %v4021_v12, %v4023_v14  ;;  %3096 = vmatprep.subr.bf16.mxu1 %v9357_v4  ;;  %v2776_v12 = vsel %vm2774_vm5, %v8513_v50, %v8494_v25  ;;  %v11647_v25 = vld [vmem:[#allocation5_spill] sm:$0xff] }
 0x486   : > { %7097 = vmatpush3.bf16.msra.mxu0 %v2943_v44 }
 0x487   : > { %4352 = vmatprep.subr.bf16.mxu0 %v7431_v1  ;;  %v4031_v28 = vpop.permute.xlu1 %4030  ;;  %2094 = vmatmul.mubr.bf16.gmra.mrb[24].mxu1 %v9308_v16 }
 0x488   : > { %v4025_v30 = vpop.permute.xlu0 %4024  ;;  %3097 = vmatpush1.bf16.msra.mxu1 %v9359_v46  ;;  %2103 = vmatprep.mubr.bf16.mxu1 %v11641_v34  ;;  %v9537_v46 = vld [vmem:[%s11564_s3 + $0x138] ss:$12 sps:$4 sm:$0xff]  }
 0x489   : > { %v9523_v24 = vsel %vm4054_vm4, %v4025_v30, %v4027_v17  ;;  %3363 = vmatmul.mubr.bf16.gmra.mrb[96].mxu0 %v9511_v3  ;;  %3098 = vmatprep.subr.bf16.mxu1 %v9394_v15  ;;  %v9543_v15 = vld [vmem:[%s11564_s3 + $0x154] ss:$12 sps:$4 sm:$0xff]  }
 0x48a   : > { %3370 = vmatprep.mubr.bf16.mxu0 %v9517_v43 }
 0x48b   : > { %v4035_v4 = vpop.permute.xlu1 %4034 }
 0x48c   : > { %4109 = vst.msk [vmem:[#allocation3 + $0x1f0] sm:$0xff] %vm1311_vm0, %v4035_v4  ;;  %v4029_v14 = vpop.permute.xlu0 %4028  ;;  %3099 = vmatpush1.bf16.msra.mxu1 %v9375_v19  ;;  %v2629_v19 = vsel %vm2613_vm15, %v9020_v36, %v8967_v0  ;;  %v6720_v0 = vld [vmem:[%s11564_s3 + $0x15c] sm:$0xff] }
 0x48d   : > { %v9531_v16 = vsel %vm4054_vm4, %v4027_v17, %v4029_v14  ;;  %4106 = vst.msk [vmem:[#allocation3 + $0x1d8] sm:$0xff] %vm1311_vm0, %v4029_v14  ;;  %3100 = vmatprep.subr.bf16.mxu1 %v9413_v20  ;;  %v2778_v14 = vsel %vm2774_vm5, %v11647_v25, %v8555_v8  ;;  %v11649_v8 = vld [vmem:[#allocation7_spill] sm:$0xff] }
 0x48f   : > { %v4039_v51 = vpop.permute.xlu1 %4038  ;;  %2104 = vmatmul.mubr.bf16.gmra.mrb[28].mxu1 %v9334_v31  ;;  %v6718_v31 = vld [vmem:[%s11564_s3 + $0x150] sm:$0xff] }
 0x490   : > { %v4033_v44 = vpop.permute.xlu0 %4032  ;;  %3101 = vmatpush1.bf16.msra.mxu1 %v9415_v56  ;;  %3104 = vmatprep.mubr.bf16.mxu1 %v9343_v40  ;;  %v2628_v40 = vsel %vm2613_vm15, %v9040_v53, %v9020_v36  ;;  %v9574_v30 = vcombine.low %v6718_v31, %v6720_v0  ;;  %v2775_v36 = vsel %vm2774_vm5, %v8540_v58, %v8513_v50  ;;  %v11648_v50 = vld [vmem:[#allocation6_spill] sm:$0xff] }
 0x491   : > { %v9552_v20 = vsel %vm4054_vm4, %v4031_v28, %v4033_v44  ;;  %v9555_v17 = vsel %vm4054_vm4, %v4033_v44, %v4035_v4  ;;  %3371 = vmatmul.mubr.bf16.gmra.mrb[100].mxu0 %v9537_v46  ;;  %3102 = vmatprep.subr.bf16.mxu1 %v2629_v19  ;;  %v9579_v4 = vld [vmem:[%s11564_s3 + $0x16c] ss:$12 sps:$4 sm:$0xff]   ;;  %v2777_v58 = vsel %vm2774_vm5, %v11648_v50, %v11647_v25 }
 0x492   : > { %3378 = vmatprep.mubr.bf16.mxu0 %v9543_v15 }
 0x493   : > { %v4043_v56 = vpop.permute.xlu1 %4042 }
 0x494   : > { %v4037_v1 = vpop.permute.xlu0 %4036  ;;  %3103 = vmatpush1.bf16.msra.mxu1 %v2628_v40  ;;  %v9611_v40 = vld [vmem:[%s11564_s3 + $0x168] ss:$12 sps:$4 sm:$0xff]  }
 0x495   : > { %v9572_v28 = vsel %vm4054_vm4, %v4037_v1, %v4039_v51  ;;  %3185 = vmatprep.subr.bf16.mxu1 %v2776_v12  ;;  %v9616_v12 = vld [vmem:[%s11564_s3 + $0xc8] ss:$12 sps:$4 sm:$0xff]   ;;  %v11651_v1 = vld [vmem:[#allocation9_spill] sm:$0xff] }
 0x497   : > { %v4047_v53 = vpop.permute.xlu1 %4046  ;;  %3105 = vmatmul.mubr.bf16.vlgmr.msra.gmra.mrb[32].mxu1 %v9372_v2  ;;  %v11650_v2 = vld [vmem:[#allocation8_spill] sm:$0xff] }
 0x498   : > { %4115 = vst.msk [vmem:[#allocation3 + $0x220] sm:$0xff] %vm1311_vm0, %v4047_v53  ;;  %v4041_v19 = vpop.permute.xlu0 %4040  ;;  %3186 = vmatpush1.bf16.msra.mxu1 %v2775_v36  ;;  %3114 = vmatprep.mubr.bf16.mxu1 %v9381_v10  ;;  %v2780_v31 = vsel %vm2774_vm5, %v11650_v2, %v11649_v8  ;;  %v2779_v36 = vsel %vm2774_vm5, %v11651_v1, %v11650_v2  ;;  %v11655_v8 = vld [vmem:[#allocation13_spill] sm:$0xff]  ;;  %v11656_v2 = vld [vmem:[#allocation14_spill] sm:$0xff] }
 0x499   : > { %v9591_v44 = vsel %vm4054_vm4, %v4039_v51, %v4041_v19  ;;  %4112 = vst.msk [vmem:[#allocation3 + $0x208] sm:$0xff] %vm1311_vm0, %v4041_v19  ;;  %3379 = vmatmul.mubr.bf16.gmra.mrb[104].mxu0 %v9574_v30  ;;  %3187 = vmatprep.subr.bf16.mxu1 %v2778_v14  ;;  %v9644_v1 = vld [vmem:[%s11564_s3 + $0xe0] ss:$12 sps:$4 sm:$0xff]  }
 0x49a   : > { %3386 = vmatprep.mubr.bf16.mxu0 %v9579_v4 }
 0x49b   : > { %v4051_v14 = vpop.permute.xlu1 %4050 }
 0x49c   : > { %v4045_v0 = vpop.permute.xlu0 %4044  ;;  %3188 = vmatpush1.bf16.msra.mxu1 %v2777_v58  ;;  %v11654_v58 = vld [vmem:[#allocation12_spill] sm:$0xff] }
 0x49d   : > { %v9603_v10 = vsel %vm4054_vm4, %v4043_v56, %v4045_v0  ;;  %v9606_v51 = vsel %vm4054_vm4, %v4045_v0, %v4047_v53  ;;  %3189 = vmatprep.subr.bf16.mxu1 %v2780_v31  ;;  %v11652_v56 = vld [vmem:[#allocation10_spill] sm:$0xff]  ;;  %v11653_v53 = vld [vmem:[#allocation11_spill] sm:$0xff]  ;;  %v2784_v31 = vsel %vm2774_vm5, %v11656_v2, %v11655_v8 }
 0x49e   : > { %v2782_v25 = vsel %vm2774_vm5, %v11653_v53, %v11652_v56  ;;  %v11657_v56 = vld [vmem:[#allocation15_spill] sm:$0xff] }
 0x49f   : > { %3115 = vmatmul.mubr.bf16.gmra.mrb[36].mxu1 %v9411_v23  ;;  %v2781_v23 = vsel %vm2774_vm5, %v11654_v58, %v11653_v53  ;;  %v2783_v53 = vsel %vm2774_vm5, %v11657_v56, %v11656_v2  ;;  %v7432_v58 = vld [vmem:[#allocation3] sm:$0xff]  ;;  %v7434_v56 = vld [vmem:[#allocation3 + $0x18] sm:$0xff] }
 0x4a0   : > { %v4049_v19 = vpop.permute.xlu0 %4048  ;;  %3190 = vmatpush1.bf16.msra.mxu1 %v2779_v36  ;;  %3124 = vmatprep.mubr.bf16.mxu1 %v9420_v35  ;;  %v9649_v36 = vld [vmem:[%s11564_s3 + $0xf8] ss:$12 sps:$4 sm:$0xff]  }
 0x4a1   : > { %v9627_v50 = vsel %vm4054_vm4, %v4049_v19, %v4051_v14  ;;  %3387 = vmatmul.mubr.bf16.gmra.mrb[108].mxu0 %v9611_v40  ;;  %3191 = vmatprep.subr.bf16.mxu1 %v2782_v25  ;;  %v11658_v25 = vld [vmem:[#allocation16_spill] sm:$0xff]  ;;  %v7433_v2 = vld [vmem:[#allocation3 + $0x20] sm:$0xff] }
 0x4a2   : > { %7098 = vmatprep.mubr.bf16.mxu0 %v9616_v12 }
 0x4a4   : > { %v4053_v0 = vpop.permute.xlu0 %4052  ;;  %3192 = vmatpush1.bf16.msra.mxu1 %v2781_v23  ;;  %v11660_v23 = vld [vmem:[#allocation18_spill] sm:$0xff] }
 0x4a5   : > { %v9638_v35 = vsel %vm4054_vm4, %v4051_v14, %v4053_v0  ;;  %4118 = vst.msk [vmem:[#allocation3 + $0x238] sm:$0xff] %vm1311_vm0, %v4053_v0  ;;  %3193 = vmatprep.subr.bf16.mxu1 %v2784_v31  ;;  %v11659_v14 = vld [vmem:[#allocation17_spill] sm:$0xff]  ;;  %v11662_v31 = vld [vmem:[#allocation20_spill] sm:$0xff] }
 0x4a6   : > { %v2786_v19 = vsel %vm2774_vm5, %v11659_v14, %v11658_v25  ;;  %v2785_v8 = vsel %vm2774_vm5, %v11660_v23, %v11659_v14  ;;  %v2787_v25 = vsel %vm2774_vm5, %v8962_v39, %v11662_v31  ;;  %v2790_v14 = vsel %vm2774_vm5, %v9035_v48, %v8978_v38  ;;  %v9696_v38 = vld [vmem:[%s11564_s3 + $0x140] ss:$12 sps:$4 sm:$0xff]   ;;  %v4190_v23 = vld [vmem:[#allocation3 + $0x130] sm:$0xff] }
 0x4a7   : > { %3125 = vmatmul.mubr.bf16.gmra.mrb[40].mxu1 %v9448_v55  ;;  %v11661_v55 = vld [vmem:[#allocation19_spill] sm:$0xff]  ;;  %v2789_v39 = vsel %vm2774_vm5, %v9060_v9, %v9035_v48 }
 0x4a8   : > { %3194 = vmatpush1.bf16.msra.mxu1 %v2783_v53  ;;  %3134 = vmatprep.mubr.bf16.mxu1 %v9454_v26  ;;  %v2788_v0 = vsel %vm2774_vm5, %v11662_v31, %v11661_v55  ;;  %v9670_v26 = vld [vmem:[%s11564_s3 + $0x110] ss:$12 sps:$4 sm:$0xff]   ;;  %v9675_v53 = vld [vmem:[%s11564_s3 + $0x128] ss:$12 sps:$4 sm:$0xff]  }
 0x4a9   : > { %7099 = vmatmul.mubr.bf16.vlgmr.msra.gmra.mrb[112].mxu0 %v9644_v1  ;;  %3195 = vmatprep.subr.bf16.mxu1 %v2786_v19  ;;  %v9714_v48 = vld [vmem:[%s11564_s3 + $0x170] ss:$12 sps:$4 sm:$0xff]  }
 0x4aa   : > { %4353 = vmatpush1.bf16.msra.mxu0 %v7432_v58  ;;  %7102 = vmatprep.mubr.bf16.mxu0 %v9649_v36  ;;  %v9720_v9 = vld [vmem:[%s11564_s3 + $0x184] ss:$12 sps:$4 sm:$0xff]   ;;  %v4163_v19 = vld [vmem:[#allocation3 + $0x58] sm:$0xff] }
 0x4ab   : > { %4354 = vmatprep.subr.bf16.mxu0 %v7433_v2  ;;  %v4166_v55 = vld [vmem:[#allocation3 + $0x70] sm:$0xff] }
 0x4ac   : > { %3196 = vmatpush1.bf16.msra.mxu1 %v2785_v8 }
 0x4ad   : > { %3197 = vmatprep.subr.bf16.mxu1 %v2788_v0  ;;  %v4193_v0 = vld [vmem:[#allocation3 + $0x148] sm:$0xff] }
 0x4ae   : > { %4355 = vmatpush1.bf16.msra.mxu0 %v7434_v56 }
 0x4af   : > { %4356 = vmatprep.subr.bf16.mxu0 %v9089_v42  ;;  %3135 = vmatmul.mubr.bf16.gmra.mrb[44].mxu1 %v9480_v33  ;;  %v4178_v42 = vld [vmem:[#allocation3 + $0xd0] sm:$0xff]  ;;  %v4181_v33 = vld [vmem:[#allocation3 + $0xe8] sm:$0xff] }
 0x4b0   : > { %3198 = vmatpush1.bf16.msra.mxu1 %v2787_v25  ;;  %3144 = vmatprep.mubr.bf16.mxu1 %v9486_v37  ;;  %v11671_v37 = vld [vmem:[#allocation30_spill] sm:$0xff]  ;;  %v9782_v25 = vld [vmem:[%s11564_s3 + $0x198] ss:$12 sps:$4 sm:$0xff]  }
 0x4b1   : > { %7103 = vmatmul.mubr.bf16.gmra.mrb[116].mxu0 %v9670_v26  ;;  %3199 = vmatprep.subr.bf16.mxu1 %v2790_v14 }
 0x4b2   : > { %4357 = vmatpush1.bf16.msra.mxu0 %v9086_v54  ;;  %7106 = vmatprep.mubr.bf16.mxu0 %v9675_v53  ;;  %v9702_v54 = vld [vmem:[%s11564_s3 + $0x158] ss:$12 sps:$4 sm:$0xff]  }
 0x4b3   : > { %4358 = vmatprep.subr.bf16.mxu0 %v9142_v41  ;;  %v11664_v41 = vld [vmem:[#allocation21_spill] sm:$0xff] }
 0x4b4   : > { %3200 = vmatpush1.bf16.msra.mxu1 %v2789_v39 }
 0x4b5   : > { %6970 = vmatprep.subr.bf16.mxu1 %v4178_v42  ;;  %v4172_v42 = vld [vmem:[#allocation3 + $0xa0] sm:$0xff] }
 0x4b6   : > { %4359 = vmatpush1.bf16.msra.mxu0 %v9119_v52  ;;  %v11663_v52 = vld [vmem:[#allocation22_spill] sm:$0xff] }
 0x4b7   : > { %4360 = vmatprep.subr.bf16.mxu0 %v9168_v6  ;;  %3145 = vmatmul.mubr.bf16.gmra.mrb[48].mxu1 %v9511_v3  ;;  %v11666_v6 = vld [vmem:[#allocation23_spill] sm:$0xff]  ;;  %v4157_v3 = vld [vmem:[#allocation3 + $0x28] sm:$0xff] }
 0x4b8   : > { %3154 = vmatprep.mubr.bf16.mxu1 %v9517_v43 }
 0x4b9   : > { %7107 = vmatmul.mubr.bf16.gmra.mrb[120].mxu0 %v9696_v38 }
 0x4ba   : > { %4361 = vmatpush1.bf16.msra.mxu0 %v9165_v22  ;;  %7110 = vmatprep.mubr.bf16.mxu0 %v9702_v54  ;;  %v11665_v22 = vld [vmem:[#allocation24_spill] sm:$0xff] }
 0x4bb   : > { %4362 = vmatprep.subr.bf16.mxu0 %v9204_v60  ;;  %v11668_v60 = vld [vmem:[#allocation25_spill] sm:$0xff] }
 0x4be   : > { %4363 = vmatpush1.bf16.msra.mxu0 %v9187_v32  ;;  %v11667_v32 = vld [vmem:[#allocation26_spill] sm:$0xff] }
 0x4bf   : > { %4364 = vmatprep.subr.bf16.mxu0 %v9214_v57  ;;  %3155 = vmatmul.mubr.bf16.gmra.mrb[52].mxu1 %v9537_v46  ;;  %v4154_v57 = vld [vmem:[#allocation3 + $0x10] sm:$0xff]  ;;  %v11672_v46 = vld [vmem:[#allocation29_spill] sm:$0xff] }
 0x4c0   : > { %3164 = vmatprep.mubr.bf16.mxu1 %v9543_v15 }
 0x4c1   : > { %7111 = vmatmul.mubr.bf16.gmra.mrb[124].mxu0 %v9714_v48 }
 0x4c2   : > { %4365 = vmatpush1.bf16.msra.mxu0 %v9211_v47  ;;  %4384 = vmatprep.mubr.bf16.mxu0 %v9720_v9  ;;  %v11669_v47 = vld [vmem:[#allocation27_spill] sm:$0xff] }
 0x4c3   : > { %4366 = vmatprep.subr.bf16.mxu0 %v11663_v52 }
 0x4c6   : > { %4367 = vmatpush1.bf16.msra.mxu0 %v11664_v41  ;;  %v4199_v41 = vld [vmem:[#allocation3 + $0x178] sm:$0xff] }
 0x4c7   : > { %4368 = vmatprep.subr.bf16.mxu0 %v11665_v22  ;;  %3165 = vmatmul.mubr.bf16.gmra.mrb[56].mxu1 %v9574_v30 }
 0x4c8   : > { %3174 = vmatprep.mubr.bf16.mxu1 %v9579_v4  ;;  %v4160_v4 = vld [vmem:[#allocation3 + $0x40] sm:$0xff] }
 0x4ca   : > { %4369 = vmatpush1.bf16.msra.mxu0 %v11666_v6  ;;  %v9806_v6 = vld [vmem:[%s11564_s3 + $0x1b0] ss:$12 sps:$4 sm:$0xff]  }
 0x4cb   : > { %4370 = vmatprep.subr.bf16.mxu0 %v11667_v32 }
 0x4ce   : > { %4371 = vmatpush1.bf16.msra.mxu0 %v11668_v60 }
 0x4cf   : > { %4372 = vmatprep.subr.bf16.mxu0 %v9293_v49  ;;  %3175 = vmatmul.mubr.bf16.gmra.mrb[60].mxu1 %v9611_v40  ;;  %v11670_v49 = vld [vmem:[#allocation28_spill] sm:$0xff] }
 0x4d0   : > { %3217 = vmatprep.mubr.bf16.mxu1 %v11641_v34 }
 0x4d2   : > { %4373 = vmatpush1.bf16.msra.mxu0 %v9290_v61 }
 0x4d3   : > { %4374 = vmatprep.subr.bf16.mxu0 %v9328_v45  ;;  %v4184_v45 = vld [vmem:[#allocation3 + $0x100] sm:$0xff] }
 0x4d6   : > { %4375 = vmatpush1.bf16.msra.mxu0 %v11669_v47 }
 0x4d7   : > { %4376 = vmatprep.subr.bf16.mxu0 %v9353_v21  ;;  %3218 = vmatmul.mubr.bf16.vlgmr.msra.gmra.mrb[32].mxu1 %v9616_v12  ;;  %v4187_v12 = vld [vmem:[#allocation3 + $0x118] sm:$0xff] }
 0x4d8   : > { %6971 = vmatpush3.bf16.msra.mxu1 %v4154_v57  ;;  %3227 = vmatprep.mubr.bf16.mxu1 %v11641_v34 }
 0x4d9   : > { %6972 = vmatprep.subr.bf16.mxu1 %v4181_v33 }
 0x4da   : > { %4377 = vmatpush1.bf16.msra.mxu0 %v11670_v49 }
 0x4db   : > { %4378 = vmatprep.subr.bf16.mxu0 %v11671_v37 }
 0x4dc   : > { %v6826_v61 = vpop.f32.mrb[32].mxu0  ;;  %6973 = vmatpush3.bf16.msra.mxu1 %v4157_v3 }
 0x4dd   : > { %v6827_v43 = vpop.f32.mrb[33].mxu0  ;;  %6974 = vmatprep.subr.bf16.mxu1 %v4184_v45 }
 0x4de   : > { %4379 = vmatpush1.bf16.msra.mxu0 %v11672_v46  ;;  %v9748_v21 = vadd.f32 %v6827_v43, %v6826_v61  ;;  %v6829_v15 = vpop.f32.mrb[34].mxu0  ;;  %v9870_v43 = vld [vmem:[%s11564_s3 + $0x1f8] ss:$12 sps:$4 sm:$0xff]  }
 0x4df   : > { %4380 = vmatprep.subr.bf16.mxu0 %v9406_v5  ;;  %v6830_v30 = vpop.f32.mrb[35].mxu0  ;;  %3228 = vmatmul.mubr.bf16.gmra.mrb[36].mxu1 %v9644_v1  ;;  %v9760_v1 = vld [vmem:[%s11564_s3 + $0x180] ss:$12 sps:$4 sm:$0xff]  }
 0x4e0   : > { %v9752_v40 = vadd.f32 %v6830_v30, %v6829_v15  ;;  %6975 = vmatpush3.bf16.msra.mxu1 %v4160_v4  ;;  %3237 = vmatprep.mubr.bf16.mxu1 %v11641_v34 }
 0x4e1   : > { %6976 = vmatprep.subr.bf16.mxu1 %v4187_v12 }
 0x4e2   : > { %4381 = vmatpush1.bf16.msra.mxu0 %v9403_v18  ;;  %v9768_v18 = vld [vmem:[%s11564_s3 + $0x19c] ss:$12 sps:$4 sm:$0xff]  }
 0x4e3   : > { %4382 = vmatprep.subr.bf16.mxu0 %v9442_v13 }
 0x4e4   : > { %v6832_v58 = vpop.f32.mrb[36].mxu0  ;;  %6977 = vmatpush3.bf16.msra.mxu1 %v4163_v19 }
 0x4e5   : > { %v6833_v5 = vpop.f32.mrb[37].mxu0  ;;  %6978 = vmatprep.subr.bf16.mxu1 %v4190_v23 }
 0x4e6   : > { %4383 = vmatpush1.bf16.msra.mxu0 %v9433_v63  ;;  %v9763_v8 = vadd.f32 %v6833_v5, %v6832_v58  ;;  %v6835_v2 = vpop.f32.mrb[38].mxu0  ;;  %v4169_v63 = vld [vmem:[#allocation3 + $0x88] sm:$0xff]  ;;  %v9888_v58 = vld [vmem:[%s11564_s3 + $0x210] ss:$12 sps:$4 sm:$0xff]  }
 0x4e7   : > { %4465 = vmatprep.subr.bf16.mxu0 %v9463_v11  ;;  %v6836_v13 = vpop.f32.mrb[39].mxu0  ;;  %3238 = vmatmul.mubr.bf16.gmra.mrb[40].mxu1 %v9649_v36  ;;  %v4196_v36 = vld [vmem:[#allocation3 + $0x160] sm:$0xff] }
 0x4e8   : > { %v9772_v31 = vadd.f32 %v6836_v13, %v6835_v2  ;;  %6979 = vmatpush3.bf16.msra.mxu1 %v4166_v55  ;;  %3247 = vmatprep.mubr.bf16.mxu1 %v11641_v34  ;;  %v4205_v13 = vld [vmem:[#allocation3 + $0x1a8] sm:$0xff] }
 0x4e9   : > { %4385 = vmatmul.mubr.bf16.vlgmr.msra.gmra.mrb[128].mxu0 %v9760_v1  ;;  %6980 = vmatprep.subr.bf16.mxu1 %v4193_v0  ;;  %v4208_v0 = vld [vmem:[#allocation3 + $0x1c0] sm:$0xff] }
 0x4ea   : > { %4466 = vmatpush1.bf16.msra.mxu0 %v9460_v29  ;;  %4394 = vmatprep.mubr.bf16.mxu0 %v9768_v18 }
 0x4eb   : > { %4467 = vmatprep.subr.bf16.mxu0 %v9494_v59  ;;  %v9790_v59 = vld [vmem:[%s11564_s3 + $0x1b4] ss:$12 sps:$4 sm:$0xff]  }
 0x4ec   : > { %v6838_v11 = vpop.f32.mrb[40].mxu0  ;;  %6981 = vmatpush3.bf16.msra.mxu1 %v4169_v63 }
 0x4ed   : > { %v6839_v56 = vpop.f32.mrb[41].mxu0  ;;  %6982 = vmatprep.subr.bf16.mxu1 %v4196_v36 }
 0x4ee   : > { %4468 = vmatpush1.bf16.msra.mxu0 %v9478_v62  ;;  %v9785_v14 = vadd.f32 %v6839_v56, %v6838_v11  ;;  %v6841_v29 = vpop.f32.mrb[42].mxu0  ;;  %v4175_v62 = vld [vmem:[#allocation3 + $0xb8] sm:$0xff] }
 0x4ef   : > { %4469 = vmatprep.subr.bf16.mxu0 %v9506_v27  ;;  %v6842_v39 = vpop.f32.mrb[43].mxu0  ;;  %3248 = vmatmul.mubr.bf16.gmra.mrb[44].mxu1 %v9670_v26  ;;  %v9801_v26 = vld [vmem:[#allocation3 + $0x190] sm:$0xff] }
 0x4f0   : > { %v9794_v52 = vadd.f32 %v6842_v39, %v6841_v29  ;;  %6983 = vmatpush3.bf16.msra.mxu1 %v4172_v42  ;;  %3257 = vmatprep.mubr.bf16.mxu1 %v11641_v34  ;;  %v4211_v39 = vld [vmem:[#allocation3 + $0x1d8] sm:$0xff] }
 0x4f1   : > { %4395 = vmatmul.mubr.bf16.gmra.mrb[132].mxu0 %v9782_v25  ;;  %6984 = vmatprep.subr.bf16.mxu1 %v4199_v41 }
 0x4f2   : > { %4470 = vmatpush1.bf16.msra.mxu0 %v9503_v7  ;;  %4404 = vmatprep.mubr.bf16.mxu0 %v9790_v59 }
 0x4f3   : > { %4471 = vmatprep.subr.bf16.mxu0 %v9531_v16  ;;  %v9815_v16 = vld [vmem:[%s11564_s3 + $0x1cc] ss:$12 sps:$4 sm:$0xff]  }
 0x4f4   : > { %v6844_v27 = vpop.f32.mrb[44].mxu0  ;;  %6985 = vmatpush3.bf16.msra.mxu1 %v4175_v62 }
 0x4f5   : > { %v6845_v22 = vpop.f32.mrb[45].mxu0  ;;  %7114 = vmatprep.subr.bf16.mxu1 %v9801_v26 }
 0x4f6   : > { %4472 = vmatpush1.bf16.msra.mxu0 %v9523_v24  ;;  %v9810_v7 = vadd.f32 %v6845_v22, %v6844_v27  ;;  %v6847_v32 = vpop.f32.mrb[46].mxu0  ;;  %v4217_v22 = vld [vmem:[#allocation3 + $0x208] sm:$0xff] }
 0x4f7   : > { %4473 = vmatprep.subr.bf16.mxu0 %v9555_v17  ;;  %v6848_v60 = vpop.f32.mrb[47].mxu0  ;;  %3258 = vmatmul.mubr.bf16.gmra.mrb[48].mxu1 %v9675_v53  ;;  %v9829_v17 = vld [vmem:[%s11564_s3 + $0x1c8] ss:$12 sps:$4 sm:$0xff]  }
 0x4f8   : > { %v9819_v47 = vadd.f32 %v6848_v60, %v6847_v32  ;;  %3267 = vmatprep.mubr.bf16.mxu1 %v11641_v34 }
 0x4f9   : > { %4405 = vmatmul.mubr.bf16.gmra.mrb[136].mxu0 %v9806_v6 }
 0x4fa   : > { %4474 = vmatpush1.bf16.msra.mxu0 %v9552_v20  ;;  %4414 = vmatprep.mubr.bf16.mxu0 %v9815_v16  ;;  %v9837_v20 = vld [vmem:[%s11564_s3 + $0x1e4] ss:$12 sps:$4 sm:$0xff]  }
 0x4fb   : > { %4475 = vmatprep.subr.bf16.mxu0 %v9591_v44 }
 0x4fc   : > { %v6850_v24 = vpop.f32.mrb[48].mxu0 }
 0x4fd   : > { %v6851_v57 = vpop.f32.mrb[49].mxu0 }
 0x4fe   : > { %4476 = vmatpush1.bf16.msra.mxu0 %v9572_v28  ;;  %v9832_v53 = vadd.f32 %v6851_v57, %v6850_v24  ;;  %v6853_v33 = vpop.f32.mrb[50].mxu0 }
 0x4ff   : > { %4477 = vmatprep.subr.bf16.mxu0 %v9606_v51  ;;  %v6854_v44 = vpop.f32.mrb[51].mxu0  ;;  %3268 = vmatmul.mubr.bf16.gmra.mrb[52].mxu1 %v9696_v38  ;;  %v9851_v51 = vld [vmem:[%s11564_s3 + $0x1e0] ss:$12 sps:$4 sm:$0xff]  }
 0x500   : > { %v9841_v49 = vadd.f32 %v6854_v44, %v6853_v33  ;;  %3277 = vmatprep.mubr.bf16.mxu1 %v11641_v34 }
 0x501   : > { %4415 = vmatmul.mubr.bf16.gmra.mrb[140].mxu0 %v9829_v17 }
 0x502   : > { %4478 = vmatpush1.bf16.msra.mxu0 %v9603_v10  ;;  %4424 = vmatprep.mubr.bf16.mxu0 %v9837_v20  ;;  %v9859_v10 = vld [vmem:[%s11564_s3 + $0x1fc] ss:$12 sps:$4 sm:$0xff]  }
 0x503   : > { %4479 = vmatprep.subr.bf16.mxu0 %v9638_v35 }
 0x504   : > { %v6856_v28 = vpop.f32.mrb[52].mxu0 }
 0x505   : > { %v6857_v37 = vpop.f32.mrb[53].mxu0 }
 0x506   : > { %4480 = vmatpush1.bf16.msra.mxu0 %v9627_v50  ;;  %v9854_v38 = vadd.f32 %v6857_v37, %v6856_v28  ;;  %v6859_v3 = vpop.f32.mrb[54].mxu0 }
 0x507   : > { %v6860_v61 = vpop.f32.mrb[55].mxu0  ;;  %3278 = vmatmul.mubr.bf16.gmra.mrb[56].mxu1 %v9702_v54  ;;  %v9877_v54 = vld [vmem:[%s11564_s3 + $0x214] ss:$12 sps:$4 sm:$0xff]  }
 0x508   : > { %v9862_v35 = vadd.f32 %v6860_v61, %v6859_v3  ;;  %3287 = vmatprep.mubr.bf16.mxu1 %v11641_v34 }
 0x509   : > { %4425 = vmatmul.mubr.bf16.gmra.mrb[144].mxu0 %v9851_v51 }
 0x50a   : > { %4434 = vmatprep.mubr.bf16.mxu0 %v9859_v10 }
 0x50c   : > { %v6862_v50 = vpop.f32.mrb[56].mxu0 }
 0x50d   : > { %v6863_v45 = vpop.f32.mrb[57].mxu0 }
 0x50e   : > { %v9872_v46 = vadd.f32 %v6863_v45, %v6862_v50  ;;  %v6865_v15 = vpop.f32.mrb[58].mxu0 }
 0x50f   : > { %v6866_v30 = vpop.f32.mrb[59].mxu0  ;;  %3288 = vmatmul.mubr.bf16.gmra.mrb[60].mxu1 %v9714_v48  ;;  %v9895_v48 = vld [vmem:[%s11564_s3 + $0x22c] ss:$12 sps:$4 sm:$0xff]  }
 0x510   : > { %v9880_v4 = vadd.f32 %v6866_v30, %v6865_v15  ;;  %4610 = vmatprep.mubr.bf16.mxu1 %v9720_v9 }
 0x511   : > { %4435 = vmatmul.mubr.bf16.gmra.mrb[148].mxu0 %v9870_v43 }
 0x512   : > { %4444 = vmatprep.mubr.bf16.mxu0 %v9877_v54 }
 0x514   : > { %v6868_v12 = vpop.f32.mrb[60].mxu0 }
 0x515   : > { %v6869_v19 = vpop.f32.mrb[61].mxu0 }
 0x516   : > { %v9890_v23 = vadd.f32 %v6869_v19, %v6868_v12  ;;  %v6871_v5 = vpop.f32.mrb[62].mxu0 }
 0x517   : > { %v6872_v9 = vpop.f32.mrb[63].mxu0  ;;  %4611 = vmatmul.mubr.bf16.vlgmr.msra.gmra.mrb[64].mxu1 %v9760_v1  ;;  %v9908_v1 = vld [vmem:[%s11564_s3 + $0x228] ss:$12 sps:$4 sm:$0xff]  }
 0x518   : > { %v9898_v2 = vadd.f32 %v6872_v9, %v6871_v5  ;;  %7115 = vmatpush3.bf16.msra.mxu1 %v9801_v26  ;;  %4618 = vmatprep.mubr.bf16.mxu1 %v9768_v18 }
 0x519   : > { %4445 = vmatmul.mubr.bf16.gmra.mrb[152].mxu0 %v9888_v58  ;;  %7116 = vmatprep.subr.bf16.mxu1 %v4205_v13 }
 0x51a   : > { %4454 = vmatprep.mubr.bf16.mxu0 %v9895_v48 }
 0x51c   : > { %v7068_v55 = vpop.f32.mrb[64].mxu0  ;;  %7117 = vmatpush3.bf16.msra.mxu1 %v4205_v13 }
 0x51d   : > { %v2254_v63 = vadd.f32 %v7068_v55, %v9763_v8  ;;  %v2245_v11 = vpop.f32.mrb[65].mxu0  ;;  %7118 = vmatprep.subr.bf16.mxu1 %v4208_v0 }
 0x51e   : > { %v2246_v36 = vadd.f32 %v9748_v21, %v2245_v11  ;;  %v7069_v18 = vpop.f32.mrb[66].mxu0 }
 0x51f   : > { %2316 = vst.msk [vmem:[#allocation4 + $0x40] sm:$0xff] %vm1311_vm0, %v2254_v63  ;;  %v2257_v56 = vadd.f32 %v7069_v18, %v9772_v31  ;;  %v2248_v29 = vpop.f32.mrb[67].mxu0  ;;  %4619 = vmatmul.mubr.bf16.gmra.mrb[68].mxu1 %v9782_v25  ;;  %v4214_v31 = vld [vmem:[#allocation3 + $0x1f0] sm:$0xff] }
 0x520   : > { %2310 = vst.msk [vmem:[#allocation4 + $0x10] sm:$0xff] %vm1311_vm0, %v2246_v36  ;;  %v2249_v8 = vadd.f32 %v9752_v40, %v2248_v29  ;;  %7119 = vmatpush3.bf16.msra.mxu1 %v4208_v0  ;;  %4626 = vmatprep.mubr.bf16.mxu1 %v9790_v59  ;;  %v9925_v40 = vld [vmem:[%s11564_s3 + $0x188] ss:$12 sps:$4 sm:$0xff]  }
 0x521   : > { %2319 = vst.msk [vmem:[#allocation4 + $0x58] sm:$0xff] %vm1311_vm0, %v2257_v56  ;;  %4455 = vmatmul.mubr.bf16.gmra.mrb[156].mxu0 %v9908_v1  ;;  %7120 = vmatprep.subr.bf16.mxu1 %v4211_v39 }
 0x522   : > { %2313 = vst.msk [vmem:[#allocation4 + $0x28] sm:$0xff] %vm1311_vm0, %v2249_v8  ;;  %4497 = vmatprep.mubr.bf16.mxu0 %v11641_v34 }
 0x524   : > { %v7072_v21 = vpop.f32.mrb[68].mxu0  ;;  %7121 = vmatpush3.bf16.msra.mxu1 %v4211_v39 }
 0x525   : > { %v2270_v25 = vadd.f32 %v7072_v21, %v9810_v7  ;;  %v2261_v42 = vpop.f32.mrb[69].mxu0  ;;  %7122 = vmatprep.subr.bf16.mxu1 %v4214_v31 }
 0x526   : > { %v2262_v59 = vadd.f32 %v9785_v14, %v2261_v42  ;;  %v7073_v41 = vpop.f32.mrb[70].mxu0 }
 0x527   : > { %2328 = vst.msk [vmem:[#allocation4 + $0xa0] sm:$0xff] %vm1311_vm0, %v2270_v25  ;;  %v2273_v62 = vadd.f32 %v7073_v41, %v9819_v47  ;;  %v2264_v27 = vpop.f32.mrb[71].mxu0  ;;  %4627 = vmatmul.mubr.bf16.gmra.mrb[72].mxu1 %v9806_v6  ;;  %v9948_v47 = vld [vmem:[%s11564_s3 + $0x1a0] ss:$12 sps:$4 sm:$0xff]  }
 0x528   : > { %2322 = vst.msk [vmem:[#allocation4 + $0x70] sm:$0xff] %vm1311_vm0, %v2262_v59  ;;  %v2265_v26 = vadd.f32 %v9794_v52, %v2264_v27  ;;  %7123 = vmatpush3.bf16.msra.mxu1 %v4214_v31  ;;  %4634 = vmatprep.mubr.bf16.mxu1 %v9815_v16  ;;  %v4220_v52 = vld [vmem:[#allocation3 + $0x220] sm:$0xff] }
 0x529   : > { %2331 = vst.msk [vmem:[#allocation4 + $0xb8] sm:$0xff] %vm1311_vm0, %v2273_v62  ;;  %4498 = vmatmul.mubr.bf16.vlgmr.msra.gmra.mrb[128].mxu0 %v9925_v40  ;;  %7124 = vmatprep.subr.bf16.mxu1 %v4217_v22  ;;  %v7428_v62 = vld [vmem:[%s11564_s3 + $0x200] ss:$12 sps:$4 sm:$0xff]  }
 0x52a   : > { %2325 = vst.msk [vmem:[#allocation4 + $0x88] sm:$0xff] %vm1311_vm0, %v2265_v26  ;;  %4507 = vmatprep.mubr.bf16.mxu0 %v11641_v34  ;;  %v9938_v14 = vpop.f32.mrb[0].mxu1 }
 0x52b   : > { %v9940_v6 = vpop.f32.mrb[1].mxu1 }
 0x52c   : > { %v7076_v7 = vpop.f32.mrb[72].mxu0  ;;  %7125 = vmatpush3.bf16.msra.mxu1 %v4217_v22  ;;  %v9942_v32 = vpop.f32.mrb[2].mxu1 }
 0x52d   : > { %v2286_v16 = vadd.f32 %v7076_v7, %v9854_v38  ;;  %v2277_v60 = vpop.f32.mrb[73].mxu0  ;;  %7126 = vmatprep.subr.bf16.mxu1 %v4220_v52  ;;  %v9950_v24 = vpop.f32.mrb[3].mxu1  ;;  %v4223_v38 = vld [vmem:[#allocation3 + $0x238] sm:$0xff] }
 0x52e   : > { %v2278_v57 = vadd.f32 %v9832_v53, %v2277_v60  ;;  %v7077_v33 = vpop.f32.mrb[74].mxu0 }
 0x52f   : > { %2340 = vst.msk [vmem:[#allocation4 + $0x100] sm:$0xff] %vm1311_vm0, %v2286_v16  ;;  %v2289_v44 = vadd.f32 %v7077_v33, %v9862_v35  ;;  %v2280_v28 = vpop.f32.mrb[75].mxu0  ;;  %4635 = vmatmul.mubr.bf16.gmra.mrb[76].mxu1 %v9829_v17  ;;  %v9973_v35 = vld [vmem:[%s11564_s3 + $0x1b8] ss:$12 sps:$4 sm:$0xff]  }
 0x530   : > { %2334 = vst.msk [vmem:[#allocation4 + $0xd0] sm:$0xff] %vm1311_vm0, %v2278_v57  ;;  %v2281_v37 = vadd.f32 %v9841_v49, %v2280_v28  ;;  %7127 = vmatpush3.bf16.msra.mxu1 %v4220_v52  ;;  %4642 = vmatprep.mubr.bf16.mxu1 %v9837_v20  ;;  %v7429_v33 = vld [vmem:[%s11564_s3 + $0x218] ss:$12 sps:$4 sm:$0xff]  }
 0x531   : > { %2343 = vst.msk [vmem:[#allocation4 + $0x118] sm:$0xff] %vm1311_vm0, %v2289_v44  ;;  %4508 = vmatmul.mubr.bf16.gmra.mrb[132].mxu0 %v9948_v47  ;;  %7128 = vmatprep.subr.bf16.mxu1 %v4223_v38 }
 0x532   : > { %2337 = vst.msk [vmem:[#allocation4 + $0xe8] sm:$0xff] %vm1311_vm0, %v2281_v37  ;;  %4517 = vmatprep.mubr.bf16.mxu0 %v11641_v34  ;;  %v9963_v53 = vpop.f32.mrb[4].mxu1 }
 0x533   : > { %v9965_v17 = vpop.f32.mrb[5].mxu1 }
 0x534   : > { %v7080_v3 = vpop.f32.mrb[76].mxu0  ;;  %7129 = vmatpush3.bf16.msra.mxu1 %v4223_v38  ;;  %v9967_v49 = vpop.f32.mrb[6].mxu1 }
 0x535   : > { %v2302_v61 = vadd.f32 %v7080_v3, %v9890_v23  ;;  %v2293_v20 = vpop.f32.mrb[77].mxu0  ;;  %v9975_v50 = vpop.f32.mrb[7].mxu1 }
 0x536   : > { %v2294_v45 = vadd.f32 %v9872_v46, %v2293_v20  ;;  %v7081_v15 = vpop.f32.mrb[78].mxu0 }
 0x537   : > { %2352 = vst.msk [vmem:[#allocation4 + $0x160] sm:$0xff] %vm1311_vm0, %v2302_v61  ;;  %v2305_v30 = vadd.f32 %v7081_v15, %v9898_v2  ;;  %v2296_v12 = vpop.f32.mrb[79].mxu0  ;;  %4643 = vmatmul.mubr.bf16.gmra.mrb[80].mxu1 %v9851_v51  ;;  %v7430_v15 = vld [vmem:[%s11564_s3 + $0x230] ss:$12 sps:$4 sm:$0xff]  }
 0x538   : > { %2346 = vst.msk [vmem:[#allocation4 + $0x130] sm:$0xff] %vm1311_vm0, %v2294_v45  ;;  %v2297_v19 = vadd.f32 %v9880_v4, %v2296_v12  ;;  %4650 = vmatprep.mubr.bf16.mxu1 %v9859_v10  ;;  %v9997_v10 = vld [vmem:[%s11564_s3 + $0x1d0] ss:$12 sps:$4 sm:$0xff]  }
 0x539   : > { %2355 = vst.msk [vmem:[#allocation4 + $0x178] sm:$0xff] %vm1311_vm0, %v2305_v30  ;;  %4518 = vmatmul.mubr.bf16.gmra.mrb[136].mxu0 %v9973_v35 }
 0x53a   : > { %2349 = vst.msk [vmem:[#allocation4 + $0x148] sm:$0xff] %vm1311_vm0, %v2297_v19  ;;  %4527 = vmatprep.mubr.bf16.mxu0 %v11641_v34  ;;  %v9988_v46 = vpop.f32.mrb[8].mxu1 }
 0x53b   : > { %v9990_v23 = vpop.f32.mrb[9].mxu1 }
 0x53c   : > { %v6906_v5 = vpop.f32.mrb[80].mxu0  ;;  %v9992_v51 = vpop.f32.mrb[10].mxu1 }
 0x53d   : > { %v6907_v9 = vpop.f32.mrb[81].mxu0  ;;  %v9999_v4 = vpop.f32.mrb[11].mxu1 }
 0x53e   : > { %v10001_v2 = vadd.f32 %v6907_v9, %v6906_v5  ;;  %v6909_v13 = vpop.f32.mrb[82].mxu0 }
 0x53f   : > { %v6910_v55 = vpop.f32.mrb[83].mxu0  ;;  %4651 = vmatmul.mubr.bf16.gmra.mrb[84].mxu1 %v9870_v43  ;;  %v7427_v43 = vld [vmem:[%s11564_s3 + $0x1e8] ss:$12 sps:$4 sm:$0xff]  }
 0x540   : > { %v10004_v0 = vadd.f32 %v6910_v55, %v6909_v13  ;;  %4658 = vmatprep.mubr.bf16.mxu1 %v9877_v54 }
 0x541   : > { %4528 = vmatmul.mubr.bf16.gmra.mrb[140].mxu0 %v9997_v10 }
 0x542   : > { %4537 = vmatprep.mubr.bf16.mxu0 %v11641_v34  ;;  %v10009_v63 = vpop.f32.mrb[12].mxu1 }
 0x543   : > { %v10011_v11 = vpop.f32.mrb[13].mxu1 }
 0x544   : > { %v6912_v36 = vpop.f32.mrb[84].mxu0  ;;  %v10013_v18 = vpop.f32.mrb[14].mxu1 }
 0x545   : > { %v6913_v56 = vpop.f32.mrb[85].mxu0  ;;  %v10018_v29 = vpop.f32.mrb[15].mxu1 }
 0x546   : > { %v10020_v8 = vadd.f32 %v6913_v56, %v6912_v36  ;;  %v6915_v54 = vpop.f32.mrb[86].mxu0 }
 0x547   : > { %v6916_v39 = vpop.f32.mrb[87].mxu0  ;;  %4659 = vmatmul.mubr.bf16.gmra.mrb[88].mxu1 %v9888_v58 }
 0x548   : > { %v10023_v21 = vadd.f32 %v6916_v39, %v6915_v54  ;;  %4666 = vmatprep.mubr.bf16.mxu1 %v9895_v48 }
 0x549   : > { %4538 = vmatmul.mubr.bf16.gmra.mrb[144].mxu0 %v7427_v43 }
 0x54a   : > { %4547 = vmatprep.mubr.bf16.mxu0 %v11641_v34  ;;  %v10027_v31 = vpop.f32.mrb[16].mxu1 }
 0x54b   : > { %v10029_v25 = vpop.f32.mrb[17].mxu1 }
 0x54c   : > { %v6918_v42 = vpop.f32.mrb[88].mxu0  ;;  %v10031_v59 = vpop.f32.mrb[18].mxu1 }
 0x54d   : > { %v6919_v41 = vpop.f32.mrb[89].mxu0  ;;  %v10036_v58 = vpop.f32.mrb[19].mxu1 }
 0x54e   : > { %v10038_v27 = vadd.f32 %v6919_v41, %v6918_v42  ;;  %v6921_v48 = vpop.f32.mrb[90].mxu0 }
 0x54f   : > { %v6922_v26 = vpop.f32.mrb[91].mxu0  ;;  %4667 = vmatmul.mubr.bf16.gmra.mrb[92].mxu1 %v9908_v1 }
 0x550   : > { %v10041_v22 = vadd.f32 %v6922_v26, %v6921_v48  ;;  %7130 = vmatprep.mubr.bf16.mxu1 %v9925_v40 }
 0x551   : > { %4548 = vmatmul.mubr.bf16.gmra.mrb[148].mxu0 %v7428_v62 }
 0x552   : > { %4557 = vmatprep.mubr.bf16.mxu0 %v11641_v34  ;;  %v10045_v7 = vpop.f32.mrb[20].mxu1 }
 0x553   : > { %v10047_v52 = vpop.f32.mrb[21].mxu1 }
 0x554   : > { %v6924_v16 = vpop.f32.mrb[92].mxu0  ;;  %v10049_v60 = vpop.f32.mrb[22].mxu1 }
 0x555   : > { %v6925_v57 = vpop.f32.mrb[93].mxu0  ;;  %v10054_v1 = vpop.f32.mrb[23].mxu1 }
 0x556   : > { %v10056_v44 = vadd.f32 %v6925_v57, %v6924_v16  ;;  %v6927_v40 = vpop.f32.mrb[94].mxu0 }
 0x557   : > { %v6928_v28 = vpop.f32.mrb[95].mxu0  ;;  %7131 = vmatmul.mubr.bf16.vlgmr.msra.gmra.mrb[96].mxu1 %v9948_v47 }
 0x558   : > { %v10059_v37 = vadd.f32 %v6928_v28, %v6927_v40  ;;  %7134 = vmatprep.mubr.bf16.mxu1 %v9973_v35 }
 0x559   : > { %4558 = vmatmul.mubr.bf16.gmra.mrb[152].mxu0 %v7429_v33 }
 0x55a   : > { %4567 = vmatprep.mubr.bf16.mxu0 %v11641_v34  ;;  %v10063_v38 = vpop.f32.mrb[24].mxu1 }
 0x55b   : > { %v10065_v3 = vpop.f32.mrb[25].mxu1 }
 0x55c   : > { %v6930_v61 = vpop.f32.mrb[96].mxu0  ;;  %v10067_v20 = vpop.f32.mrb[26].mxu1 }
 0x55d   : > { %v6931_v45 = vpop.f32.mrb[97].mxu0  ;;  %v10072_v47 = vpop.f32.mrb[27].mxu1 }
 0x55e   : > { %v10074_v30 = vadd.f32 %v6931_v45, %v6930_v61  ;;  %v6933_v35 = vpop.f32.mrb[98].mxu0 }
 0x55f   : > { %v6934_v12 = vpop.f32.mrb[99].mxu0  ;;  %7135 = vmatmul.mubr.bf16.gmra.mrb[100].mxu1 %v9997_v10 }
 0x560   : > { %v10077_v34 = vadd.f32 %v6934_v12, %v6933_v35  ;;  %7138 = vmatprep.mubr.bf16.mxu1 %v7427_v43 }
 0x561   : > { %4568 = vmatmul.mubr.bf16.gmra.mrb[156].mxu0 %v7430_v15 }
 0x562   : > { %v10079_v19 = vpop.f32.mrb[28].mxu1 }
 0x563   : > { %v10081_v5 = vpop.f32.mrb[29].mxu1 }
 0x564   : > { %v6936_v9 = vpop.f32.mrb[100].mxu0  ;;  %v10083_v13 = vpop.f32.mrb[30].mxu1 }
 0x565   : > { %v6937_v55 = vpop.f32.mrb[101].mxu0  ;;  %v10085_v36 = vpop.f32.mrb[31].mxu1 }
 0x566   : > { %v6938_v56 = vadd.f32 %v6937_v55, %v6936_v9  ;;  %v6939_v54 = vpop.f32.mrb[102].mxu0  ;;  %v3500_v9 = vld [vmem:[#allocation4 + $0x40] sm:$0xff] }
 0x567   : > { %v6940_v39 = vpop.f32.mrb[103].mxu0  ;;  %7139 = vmatmul.mubr.bf16.gmra.mrb[104].mxu1 %v7428_v62 }
 0x568   : > { %v10087_v42 = vadd.f32 %v6940_v39, %v6939_v54  ;;  %7142 = vmatprep.mubr.bf16.mxu1 %v7429_v33 }
 0x56c   : > { %v6942_v10 = vpop.f32.mrb[104].mxu0 }
 0x56d   : > { %v6943_v43 = vpop.f32.mrb[105].mxu0 }
 0x56e   : > { %v10089_v41 = vadd.f32 %v6943_v43, %v6942_v10  ;;  %v6945_v48 = vpop.f32.mrb[106].mxu0 }
 0x56f   : > { %v6946_v26 = vpop.f32.mrb[107].mxu0  ;;  %7143 = vmatmul.mubr.bf16.gmra.mrb[108].mxu1 %v7430_v15  ;;  %v3494_v15 = vld [vmem:[#allocation4 + $0x10] sm:$0xff] }
 0x570   : > { %v10091_v16 = vadd.f32 %v6946_v26, %v6945_v48  ;;  %v3503_v26 = vld [vmem:[#allocation4 + $0x58] sm:$0xff] }
 0x574   : > { %v6948_v57 = vpop.f32.mrb[108].mxu0 }
 0x575   : > { %v6949_v40 = vpop.f32.mrb[109].mxu0 }
 0x576   : > { %v10093_v28 = vadd.f32 %v6949_v40, %v6948_v57  ;;  %v6951_v61 = vpop.f32.mrb[110].mxu0 }
 0x577   : > { %v6952_v45 = vpop.f32.mrb[111].mxu0 }
 0x578   : > { %v10095_v35 = vadd.f32 %v6952_v45, %v6951_v61  ;;  %v3497_v61 = vld [vmem:[#allocation4 + $0x28] sm:$0xff] }
 0x57c   : > { %v7100_v62 = vpop.f32.mrb[112].mxu0 }
 0x57d   : > { %v3438_v33 = vadd.f32 %v7100_v62, %v10020_v8  ;;  %v3429_v12 = vpop.f32.mrb[113].mxu0  ;;  %v3512_v62 = vld [vmem:[#allocation4 + $0xa0] sm:$0xff] }
 0x57e   : > { %v3430_v55 = vadd.f32 %v10001_v2, %v3429_v12  ;;  %v7101_v54 = vpop.f32.mrb[114].mxu0 }
 0x57f   : > { %v3548_v39 = vadd.f32 %v3500_v9, %v3438_v33  ;;  %v3441_v10 = vadd.f32 %v7101_v54, %v10023_v21  ;;  %v3432_v43 = vpop.f32.mrb[115].mxu0  ;;  %v3506_v9 = vld [vmem:[#allocation4 + $0x70] sm:$0xff] }
 0x580   : > { %v3542_v48 = vadd.f32 %v3494_v15, %v3430_v55  ;;  %v3433_v57 = vadd.f32 %v10004_v0, %v3432_v43  ;;  %v3515_v15 = vld [vmem:[#allocation4 + $0xb8] sm:$0xff] }
 0x581   : > { %3596 = vst.msk [vmem:[#allocation4 + $0x40] sm:$0xff] %vm1311_vm0, %v3548_v39  ;;  %v3551_v40 = vadd.f32 %v3503_v26, %v3441_v10 }
 0x582   : > { %3590 = vst.msk [vmem:[#allocation4 + $0x10] sm:$0xff] %vm1311_vm0, %v3542_v48  ;;  %v3545_v8 = vadd.f32 %v3497_v61, %v3433_v57  ;;  %v3509_v48 = vld [vmem:[#allocation4 + $0x88] sm:$0xff] }
 0x583   : > { %3599 = vst.msk [vmem:[#allocation4 + $0x58] sm:$0xff] %vm1311_vm0, %v3551_v40 }
 0x584   : > { %3593 = vst.msk [vmem:[#allocation4 + $0x28] sm:$0xff] %vm1311_vm0, %v3545_v8  ;;  %v7104_v2 = vpop.f32.mrb[116].mxu0 }
 0x585   : > { %v3454_v45 = vadd.f32 %v7104_v2, %v10056_v44  ;;  %v3445_v21 = vpop.f32.mrb[117].mxu0 }
 0x586   : > { %v3446_v33 = vadd.f32 %v10038_v27, %v3445_v21  ;;  %v7105_v12 = vpop.f32.mrb[118].mxu0 }
 0x587   : > { %v3560_v0 = vadd.f32 %v3512_v62, %v3454_v45  ;;  %v3457_v55 = vadd.f32 %v7105_v12, %v10059_v37  ;;  %v3448_v54 = vpop.f32.mrb[119].mxu0  ;;  %v3524_v37 = vld [vmem:[#allocation4 + $0x100] sm:$0xff]  ;;  %v3527_v62 = vld [vmem:[#allocation4 + $0x118] sm:$0xff] }
 0x588   : > { %v3554_v39 = vadd.f32 %v3506_v9, %v3446_v33  ;;  %v3449_v10 = vadd.f32 %v10041_v22, %v3448_v54  ;;  %v3518_v22 = vld [vmem:[#allocation4 + $0xd0] sm:$0xff] }
 0x589   : > { %3608 = vst.msk [vmem:[#allocation4 + $0xa0] sm:$0xff] %vm1311_vm0, %v3560_v0  ;;  %v3563_v43 = vadd.f32 %v3515_v15, %v3457_v55  ;;  %v3521_v0 = vld [vmem:[#allocation4 + $0xe8] sm:$0xff]  ;;  %v3536_v55 = vld [vmem:[#allocation4 + $0x160] sm:$0xff]  ;;  %v3530_v15 = vld [vmem:[#allocation4 + $0x130] sm:$0xff] }
 0x58a   : > { %3602 = vst.msk [vmem:[#allocation4 + $0x70] sm:$0xff] %vm1311_vm0, %v3554_v39  ;;  %v3557_v44 = vadd.f32 %v3509_v48, %v3449_v10 }
 0x58b   : > { %3611 = vst.msk [vmem:[#allocation4 + $0xb8] sm:$0xff] %vm1311_vm0, %v3563_v43 }
 0x58c   : > { %3605 = vst.msk [vmem:[#allocation4 + $0x88] sm:$0xff] %vm1311_vm0, %v3557_v44  ;;  %v7108_v27 = vpop.f32.mrb[120].mxu0  ;;  %v3539_v44 = vld [vmem:[#allocation4 + $0x178] sm:$0xff] }
 0x58d   : > { %v3470_v26 = vadd.f32 %v7108_v27, %v6938_v56  ;;  %v3461_v57 = vpop.f32.mrb[121].mxu0 }
 0x58e   : > { %v3462_v40 = vadd.f32 %v10074_v30, %v3461_v57  ;;  %v7109_v61 = vpop.f32.mrb[122].mxu0  ;;  %v3533_v57 = vld [vmem:[#allocation4 + $0x148] sm:$0xff] }
 0x58f   : > { %v3572_v8 = vadd.f32 %v3524_v37, %v3470_v26  ;;  %v3473_v2 = vadd.f32 %v7109_v61, %v10087_v42  ;;  %v3464_v45 = vpop.f32.mrb[123].mxu0 }
 0x590   : > { %v3566_v21 = vadd.f32 %v3518_v22, %v3462_v40  ;;  %v3465_v33 = vadd.f32 %v10077_v34, %v3464_v45 }
 0x591   : > { %3620 = vst.msk [vmem:[#allocation4 + $0x100] sm:$0xff] %vm1311_vm0, %v3572_v8  ;;  %v3575_v12 = vadd.f32 %v3527_v62, %v3473_v2 }
 0x592   : > { %3614 = vst.msk [vmem:[#allocation4 + $0xd0] sm:$0xff] %vm1311_vm0, %v3566_v21  ;;  %v3569_v56 = vadd.f32 %v3521_v0, %v3465_v33 }
 0x593   : > { %3623 = vst.msk [vmem:[#allocation4 + $0x118] sm:$0xff] %vm1311_vm0, %v3575_v12 }
 0x594   : > { %3617 = vst.msk [vmem:[#allocation4 + $0xe8] sm:$0xff] %vm1311_vm0, %v3569_v56  ;;  %v7112_v30 = vpop.f32.mrb[124].mxu0 }
 0x595   : > { %v3486_v9 = vadd.f32 %v7112_v30, %v10093_v28  ;;  %v3477_v42 = vpop.f32.mrb[125].mxu0 }
 0x596   : > { %v3478_v54 = vadd.f32 %v10089_v41, %v3477_v42  ;;  %v7113_v39 = vpop.f32.mrb[126].mxu0 }
 0x597   : > { %v3584_v34 = vadd.f32 %v3536_v55, %v3486_v9  ;;  %v3489_v10 = vadd.f32 %v7113_v39, %v10095_v35  ;;  %v3480_v43 = vpop.f32.mrb[127].mxu0 }
 0x598   : > { %v3578_v48 = vadd.f32 %v3530_v15, %v3478_v54  ;;  %v3481_v27 = vadd.f32 %v10091_v16, %v3480_v43 }
 0x599   : > { %3632 = vst.msk [vmem:[#allocation4 + $0x160] sm:$0xff] %vm1311_vm0, %v3584_v34  ;;  %v3587_v26 = vadd.f32 %v3539_v44, %v3489_v10 }
 0x59a   : > { %3626 = vst.msk [vmem:[#allocation4 + $0x130] sm:$0xff] %vm1311_vm0, %v3578_v48  ;;  %v3581_v28 = vadd.f32 %v3533_v57, %v3481_v27 }
 0x59b   : > { %3635 = vst.msk [vmem:[#allocation4 + $0x178] sm:$0xff] %vm1311_vm0, %v3587_v26 }
 0x59c   : > { %3629 = vst.msk [vmem:[#allocation4 + $0x148] sm:$0xff] %vm1311_vm0, %v3581_v28 }
 0x5aa   : > { %v3219_v41 = vpop.f32.mrb[32].mxu1 }
 0x5ab   : > { %v10129_v37 = vadd.f32 %v3219_v41, %v9938_v14  ;;  %v3221_v35 = vpop.f32.mrb[33].mxu1 }
 0x5ac   : > { %v10132_v40 = vadd.f32 %v3221_v35, %v9940_v6  ;;  %v3223_v16 = vpop.f32.mrb[34].mxu1 }
 0x5ad   : > { %v10135_v61 = vadd.f32 %v3223_v16, %v9942_v32  ;;  %v3225_v8 = vpop.f32.mrb[35].mxu1 }
 0x5ae   : > { %v10138_v22 = vadd.f32 %v3225_v8, %v9950_v24 }
 0x5b2   : > { %v3229_v2 = vpop.f32.mrb[36].mxu1 }
 0x5b3   : > { %v10141_v45 = vadd.f32 %v3229_v2, %v9963_v53  ;;  %v3231_v21 = vpop.f32.mrb[37].mxu1 }
 0x5b4   : > { %v10144_v14 = vadd.f32 %v3231_v21, %v9965_v17  ;;  %v3233_v62 = vpop.f32.mrb[38].mxu1 }
 0x5b5   : > { %v10147_v6 = vadd.f32 %v3233_v62, %v9967_v49  ;;  %v3235_v33 = vpop.f32.mrb[39].mxu1 }
 0x5b6   : > { %v10150_v32 = vadd.f32 %v3235_v33, %v9975_v50 }
 0x5ba   : > { %v3239_v12 = vpop.f32.mrb[40].mxu1 }
 0x5bb   : > { %v10153_v24 = vadd.f32 %v3239_v12, %v9988_v46  ;;  %v3241_v0 = vpop.f32.mrb[41].mxu1 }
 0x5bc   : > { %v10156_v53 = vadd.f32 %v3241_v0, %v9990_v23  ;;  %v3243_v56 = vpop.f32.mrb[42].mxu1 }
 0x5bd   : > { %v10159_v17 = vadd.f32 %v3243_v56, %v9992_v51  ;;  %v3245_v30 = vpop.f32.mrb[43].mxu1 }
 0x5be   : > { %v10162_v49 = vadd.f32 %v3245_v30, %v9999_v4 }
 0x5c2   : > { %v3249_v9 = vpop.f32.mrb[44].mxu1 }
 0x5c3   : > { %v10165_v50 = vadd.f32 %v3249_v9, %v10009_v63  ;;  %v3251_v42 = vpop.f32.mrb[45].mxu1 }
 0x5c4   : > { %v10168_v46 = vadd.f32 %v3251_v42, %v10011_v11  ;;  %v3253_v55 = vpop.f32.mrb[46].mxu1 }
 0x5c5   : > { %v10171_v23 = vadd.f32 %v3253_v55, %v10013_v18  ;;  %v3255_v54 = vpop.f32.mrb[47].mxu1 }
 0x5c6   : > { %v10174_v51 = vadd.f32 %v3255_v54, %v10018_v29 }
 0x5ca   : > { %v3259_v39 = vpop.f32.mrb[48].mxu1 }
 0x5cb   : > { %v10177_v4 = vadd.f32 %v3259_v39, %v10027_v31  ;;  %v3261_v34 = vpop.f32.mrb[49].mxu1 }
 0x5cc   : > { %v10180_v63 = vadd.f32 %v3261_v34, %v10029_v25  ;;  %v3263_v15 = vpop.f32.mrb[50].mxu1 }
 0x5cd   : > { %v10183_v11 = vadd.f32 %v3263_v15, %v10031_v59  ;;  %v3265_v10 = vpop.f32.mrb[51].mxu1 }
 0x5ce   : > { %v10186_v18 = vadd.f32 %v3265_v10, %v10036_v58 }
 0x5d2   : > { %v3269_v43 = vpop.f32.mrb[52].mxu1 }
 0x5d3   : > { %v10189_v29 = vadd.f32 %v3269_v43, %v10045_v7  ;;  %v3271_v48 = vpop.f32.mrb[53].mxu1 }
 0x5d4   : > { %v10192_v31 = vadd.f32 %v3271_v48, %v10047_v52  ;;  %v3273_v44 = vpop.f32.mrb[54].mxu1 }
 0x5d5   : > { %v10195_v25 = vadd.f32 %v3273_v44, %v10049_v60  ;;  %v3275_v27 = vpop.f32.mrb[55].mxu1 }
 0x5d6   : > { %v10198_v59 = vadd.f32 %v3275_v27, %v10054_v1 }
 0x5da   : > { %v3279_v26 = vpop.f32.mrb[56].mxu1 }
 0x5db   : > { %v10201_v58 = vadd.f32 %v3279_v26, %v10063_v38  ;;  %v3281_v57 = vpop.f32.mrb[57].mxu1 }
 0x5dc   : > { %v10204_v7 = vadd.f32 %v3281_v57, %v10065_v3  ;;  %v3283_v28 = vpop.f32.mrb[58].mxu1 }
 0x5dd   : > { %v10207_v52 = vadd.f32 %v3283_v28, %v10067_v20  ;;  %v3285_v41 = vpop.f32.mrb[59].mxu1 }
 0x5de   : > { %v10210_v60 = vadd.f32 %v3285_v41, %v10072_v47 }
 0x5e2   : > { %v3289_v35 = vpop.f32.mrb[60].mxu1 }
 0x5e3   : > { %v10213_v1 = vadd.f32 %v3289_v35, %v10079_v19  ;;  %v3291_v16 = vpop.f32.mrb[61].mxu1 }
 0x5e4   : > { %v10216_v38 = vadd.f32 %v3291_v16, %v10081_v5  ;;  %v3293_v8 = vpop.f32.mrb[62].mxu1 }
 0x5e5   : > { %v10219_v3 = vadd.f32 %v3293_v8, %v10083_v13  ;;  %v3295_v2 = vpop.f32.mrb[63].mxu1 }
 0x5e6   : > { %v10222_v20 = vadd.f32 %v3295_v2, %v10085_v36 }
 0x5ea   : > { %v6986_v21 = vpop.f32.mrb[64].mxu1 }
 0x5eb   : > { %v6987_v47 = vpop.f32.mrb[65].mxu1 }
 0x5ec   : > { %v10224_v62 = vadd.f32 %v6987_v47, %v6986_v21  ;;  %v6989_v33 = vpop.f32.mrb[66].mxu1 }
 0x5ed   : > { %v6990_v19 = vpop.f32.mrb[67].mxu1 }
 0x5ee   : > { %v10226_v12 = vadd.f32 %v6990_v19, %v6989_v33 }
 0x5f2   : > { %v6992_v0 = vpop.f32.mrb[68].mxu1 }
 0x5f3   : > { %v6993_v5 = vpop.f32.mrb[69].mxu1 }
 0x5f4   : > { %v10228_v56 = vadd.f32 %v6993_v5, %v6992_v0  ;;  %v6995_v30 = vpop.f32.mrb[70].mxu1 }
 0x5f5   : > { %v6996_v13 = vpop.f32.mrb[71].mxu1 }
 0x5f6   : > { %v10230_v9 = vadd.f32 %v6996_v13, %v6995_v30 }
 0x5fa   : > { %v6998_v42 = vpop.f32.mrb[72].mxu1 }
 0x5fb   : > { %v6999_v55 = vpop.f32.mrb[73].mxu1 }
 0x5fc   : > { %v4499_v36 = vpop.f32.mrb[128].mxu0  ;;  %v10239_v54 = vadd.f32 %v6999_v55, %v6998_v42  ;;  %v7001_v39 = vpop.f32.mrb[74].mxu1 }
 0x5fd   : > { %v10242_v34 = vadd.f32 %v4499_v36, %v10129_v37  ;;  %v4501_v15 = vpop.f32.mrb[129].mxu0  ;;  %v7002_v10 = vpop.f32.mrb[75].mxu1 }
 0x5fe   : > { %v10245_v43 = vadd.f32 %v4501_v15, %v10132_v40  ;;  %v4503_v48 = vpop.f32.mrb[130].mxu0  ;;  %v10247_v44 = vadd.f32 %v7002_v10, %v7001_v39 }
 0x5ff   : > { %v10250_v27 = vadd.f32 %v4503_v48, %v10135_v61  ;;  %v4505_v26 = vpop.f32.mrb[131].mxu0  ;;  %4981 = vrot.lane.b32.xlu1 %v10242_v34, %s7478_s20  ;;  %4933 = vst.msk [vmem:[%s10237_s10] sm:$0xff] %vm4932_vm6, %v10242_v34 }
 0x600   : > { %v10258_v37 = vadd.f32 %v4505_v26, %v10138_v22  ;;  %5597 = vrot.lane.b32.xlu0 %v10245_v43, %s7485_s15 }
 0x601   : > { %4934 = vst.msk [vmem:[%s10237_s10 + $0x10] sm:$0xff] %vm4932_vm6, %v10250_v27 }
 0x602   : > { %v7004_v40 = vpop.f32.mrb[76].mxu1 }
 0x603   : > { %5078 = vrot.lane.b32.xlu1 %v10242_v34, %s7486_s19  ;;  %v7005_v61 = vpop.f32.mrb[77].mxu1 }
 0x604   : > { %v4509_v57 = vpop.f32.mrb[132].mxu0  ;;  %4983 = vrot.lane.b32.xlu0 %v10250_v27, %s7478_s20  ;;  %v10269_v22 = vadd.f32 %v7005_v61, %v7004_v40  ;;  %v7007_v28 = vpop.f32.mrb[78].mxu1 }
 0x605   : > { %v10272_v41 = vadd.f32 %v4509_v57, %v10141_v45  ;;  %v4511_v35 = vpop.f32.mrb[133].mxu0  ;;  %v7008_v16 = vpop.f32.mrb[79].mxu1 }
 0x606   : > { %v10275_v8 = vadd.f32 %v4511_v35, %v10144_v14  ;;  %v4513_v2 = vpop.f32.mrb[134].mxu0  ;;  %v10277_v21 = vadd.f32 %v7008_v16, %v7007_v28 }
 0x607   : > { %v10280_v47 = vadd.f32 %v4513_v2, %v10147_v6  ;;  %v4515_v33 = vpop.f32.mrb[135].mxu0  ;;  %5175 = vrot.lane.b32.xlu1 %v10242_v34, %s7487_s11  ;;  %4935 = vst.msk [vmem:[%s10237_s10 + $0x20] sm:$0xff] %vm4932_vm6, %v10272_v41 }
 0x608   : > { %v10288_v45 = vadd.f32 %v4515_v33, %v10150_v32  ;;  %5080 = vrot.lane.b32.xlu0 %v10250_v27, %s7486_s19 }
 0x609   : > { %4936 = vst.msk [vmem:[%s10237_s10 + $0x30] sm:$0xff] %vm4932_vm6, %v10280_v47 }
 0x60a   : > { %v7010_v14 = vpop.f32.mrb[80].mxu1 }
 0x60b   : > { %5272 = vrot.lane.b32.xlu1 %v10242_v34, %s7488_s12  ;;  %v7011_v6 = vpop.f32.mrb[81].mxu1 }
 0x60c   : > { %v4519_v19 = vpop.f32.mrb[136].mxu0  ;;  %5177 = vrot.lane.b32.xlu0 %v10250_v27, %s7487_s11  ;;  %v10299_v0 = vadd.f32 %v7011_v6, %v7010_v14  ;;  %v7013_v32 = vpop.f32.mrb[82].mxu1 }
 0x60d   : > { %v10302_v5 = vadd.f32 %v4519_v19, %v10153_v24  ;;  %v4521_v30 = vpop.f32.mrb[137].mxu0  ;;  %v7014_v13 = vpop.f32.mrb[83].mxu1 }
 0x60e   : > { %v10305_v42 = vadd.f32 %v4521_v30, %v10156_v53  ;;  %v4523_v55 = vpop.f32.mrb[138].mxu0  ;;  %v10307_v36 = vadd.f32 %v7014_v13, %v7013_v32 }
 0x60f   : > { %4880 = vst [vmem:[#allocation4 + $0x60] sm:$0xff] %v10302_v5  ;;  %v10311_v39 = vadd.f32 %v4523_v55, %v10159_v17  ;;  %v4525_v15 = vpop.f32.mrb[139].mxu0  ;;  %5369 = vrot.lane.b32.xlu1 %v10242_v34, %s7489_s13 }
 0x610   : > { %v10316_v24 = vadd.f32 %v4525_v15, %v10162_v49  ;;  %5274 = vrot.lane.b32.xlu0 %v10250_v27, %s7488_s12 }
 0x611   : > { %4883 = vst [vmem:[#allocation4 + $0x78] sm:$0xff] %v10311_v39 }
 0x612   : > { %v7016_v53 = vpop.f32.mrb[84].mxu1 }
 0x613   : > { %5466 = vrot.lane.b32.xlu1 %v10242_v34, %s7490_s28  ;;  %v7017_v17 = vpop.f32.mrb[85].mxu1 }
 0x614   : > { %v4529_v10 = vpop.f32.mrb[140].mxu0  ;;  %5371 = vrot.lane.b32.xlu0 %v10250_v27, %s7489_s13  ;;  %v10325_v48 = vadd.f32 %v7017_v17, %v7016_v53  ;;  %v7019_v49 = vpop.f32.mrb[86].mxu1 }
 0x615   : > { %v10328_v26 = vadd.f32 %v4529_v10, %v10165_v50  ;;  %v4531_v40 = vpop.f32.mrb[141].mxu0  ;;  %v7020_v61 = vpop.f32.mrb[87].mxu1 }
 0x616   : > { %v10331_v57 = vadd.f32 %v4531_v40, %v10168_v46  ;;  %v4533_v28 = vpop.f32.mrb[142].mxu0  ;;  %v10333_v35 = vadd.f32 %v7020_v61, %v7019_v49  ;;  %v4920_v16 = vld [vmem:[#allocation4 + $0x60] sm:$0xff] }
 0x617   : > { %4886 = vst [vmem:[#allocation4 + $0x90] sm:$0xff] %v10328_v26  ;;  %v10337_v2 = vadd.f32 %v4533_v28, %v10171_v23  ;;  %v4535_v33 = vpop.f32.mrb[143].mxu0  ;;  %5595 = vrot.lane.b32.xlu1 %v10242_v34, %s7485_s15  ;;  %4937 = vst.msk [vmem:[%s10237_s10 + $0x40] sm:$0xff] %vm4932_vm6, %v4920_v16 }
 0x618   : > { %4887 = vst [vmem:[#allocation4 + $0x98] sm:$0xff] %v10331_v57  ;;  %v10345_v50 = vadd.f32 %v4535_v33, %v10174_v51  ;;  %5468 = vrot.lane.b32.xlu0 %v10250_v27, %s7490_s28  ;;  %v4921_v46 = vld [vmem:[#allocation4 + $0x78] sm:$0xff] }
 0x619   : > { %4889 = vst [vmem:[#allocation4 + $0xa8] sm:$0xff] %v10337_v2  ;;  %4938 = vst.msk [vmem:[%s10237_s10 + $0x50] sm:$0xff] %vm4932_vm6, %v4921_v46 }
 0x61a   : > { %4890 = vst [vmem:[#allocation4 + $0xb0] sm:$0xff] %v10345_v50  ;;  %v7022_v23 = vpop.f32.mrb[88].mxu1 }
 0x61b   : > { %5741 = vrot.lane.b32.xlu1 %v10245_v43, %s7491_s14  ;;  %v7023_v34 = vpop.f32.mrb[89].mxu1 }
 0x61c   : > { %v4539_v14 = vpop.f32.mrb[144].mxu0  ;;  %5601 = vrot.lane.b32.xlu0 %v10258_v37, %s7485_s15  ;;  %v10357_v51 = vadd.f32 %v7023_v34, %v7022_v23  ;;  %v7025_v6 = vpop.f32.mrb[90].mxu1 }
 0x61d   : > { %v4844_v19 = vadd.f32 %v4539_v14, %v10177_v4  ;;  %v4541_v32 = vpop.f32.mrb[145].mxu0  ;;  %v7026_v30 = vpop.f32.mrb[91].mxu1 }
 0x61e   : > { %v10361_v13 = vadd.f32 %v4541_v32, %v10180_v63  ;;  %v4543_v55 = vpop.f32.mrb[146].mxu0  ;;  %v10363_v15 = vadd.f32 %v7026_v30, %v7025_v6  ;;  %v10365_v53 = vld [vmem:[#allocation4 + $0x90] sm:$0xff] }
 0x61f   : > { %4892 = vst [vmem:[#allocation4 + $0xc0] sm:$0xff] %v4844_v19  ;;  %v10368_v17 = vadd.f32 %v4543_v55, %v10183_v11  ;;  %v4545_v10 = vpop.f32.mrb[147].mxu0  ;;  %5837 = vrot.lane.b32.xlu1 %v10245_v43, %s7479_s21  ;;  %4939 = vst.msk [vmem:[%s10237_s10 + $0x60] sm:$0xff] %vm4932_vm6, %v10365_v53 }
 0x620   : > { %4893 = vst [vmem:[#allocation4 + $0xc8] sm:$0xff] %v10361_v13  ;;  %v4848_v4 = vadd.f32 %v4545_v10, %v10186_v18  ;;  %5743 = vrot.lane.b32.xlu0 %v10258_v37, %s7491_s14  ;;  %v10379_v63 = vld [vmem:[#allocation4 + $0xa8] sm:$0xff] }
 0x621   : > { %4895 = vst [vmem:[#allocation4 + $0xd8] sm:$0xff] %v10368_v17  ;;  %4940 = vst.msk [vmem:[%s10237_s10 + $0x70] sm:$0xff] %vm4932_vm6, %v10379_v63 }
 0x622   : > { %4896 = vst [vmem:[#allocation4 + $0xe0] sm:$0xff] %v4848_v4  ;;  %v7028_v11 = vpop.f32.mrb[92].mxu1 }
 0x623   : > { %5933 = vrot.lane.b32.xlu1 %v10245_v43, %s7481_s23  ;;  %v7029_v49 = vpop.f32.mrb[93].mxu1 }
 0x624   : > { %v4549_v40 = vpop.f32.mrb[148].mxu0  ;;  %5839 = vrot.lane.b32.xlu0 %v10258_v37, %s7479_s21  ;;  %v10389_v18 = vadd.f32 %v7029_v49, %v7028_v11  ;;  %v7031_v61 = vpop.f32.mrb[94].mxu1 }
 0x625   : > { %v4850_v28 = vadd.f32 %v4549_v40, %v10189_v29  ;;  %v4551_v16 = vpop.f32.mrb[149].mxu0  ;;  %v7032_v33 = vpop.f32.mrb[95].mxu1 }
 0x626   : > { %v4851_v46 = vadd.f32 %v4551_v16, %v10192_v31  ;;  %v4553_v23 = vpop.f32.mrb[150].mxu0  ;;  %v10393_v34 = vadd.f32 %v7032_v33, %v7031_v61  ;;  %v10395_v14 = vld [vmem:[#allocation4 + $0xc0] sm:$0xff]  ;;  %v4774_v61 = vld [vmem:[#allocation4 + $0x10] sm:$0xff] }
 0x627   : > { %4898 = vst [vmem:[#allocation4 + $0xf0] sm:$0xff] %v4850_v28  ;;  %v4853_v6 = vadd.f32 %v4553_v23, %v10195_v25  ;;  %v4555_v19 = vpop.f32.mrb[151].mxu0  ;;  %6029 = vrot.lane.b32.xlu1 %v10245_v43, %s7492_s22  ;;  %4941 = vst.msk [vmem:[%s10237_s10 + $0x80] sm:$0xff] %vm4932_vm6, %v10395_v14  ;;  %v4783_v23 = vld [vmem:[#allocation4 + $0x58] sm:$0xff] }
 0x628   : > { %4899 = vst [vmem:[#allocation4 + $0xf8] sm:$0xff] %v4851_v46  ;;  %v4854_v29 = vadd.f32 %v4555_v19, %v10198_v59  ;;  %5935 = vrot.lane.b32.xlu0 %v10258_v37, %s7481_s23  ;;  %v10406_v31 = vld [vmem:[#allocation4 + $0xd8] sm:$0xff]  ;;  %v4780_v59 = vld [vmem:[#allocation4 + $0x40] sm:$0xff] }
 0x629   : > { %4901 = vst [vmem:[#allocation4 + $0x108] sm:$0xff] %v4853_v6  ;;  %4942 = vst.msk [vmem:[%s10237_s10 + $0x90] sm:$0xff] %vm4932_vm6, %v10406_v31 }
 0x62a   : > { %4902 = vst [vmem:[#allocation4 + $0x110] sm:$0xff] %v4854_v29  ;;  %v7132_v25 = vpop.f32.mrb[96].mxu1 }
 0x62b   : > { %v4718_v32 = vadd.f32 %v7132_v25, %v10228_v56  ;;  %v4709_v30 = vpop.f32.mrb[97].mxu1  ;;  %6125 = vrot.lane.b32.xlu1 %v10245_v43, %s7493_s24 }
 0x62c   : > { %v4559_v55 = vpop.f32.mrb[152].mxu0  ;;  %v4710_v10 = vadd.f32 %v10224_v62, %v4709_v30  ;;  %v7133_v4 = vpop.f32.mrb[98].mxu1  ;;  %6031 = vrot.lane.b32.xlu0 %v10258_v37, %s7492_s22 }
 0x62d   : > { %v4856_v11 = vadd.f32 %v4559_v55, %v10201_v58  ;;  %v4561_v49 = vpop.f32.mrb[153].mxu0  ;;  %v4828_v40 = vadd.f32 %v4780_v59, %v4718_v32  ;;  %v4721_v56 = vadd.f32 %v7133_v4, %v10230_v9  ;;  %v4712_v28 = vpop.f32.mrb[99].mxu1  ;;  %v4777_v9 = vld [vmem:[#allocation4 + $0x28] sm:$0xff]  ;;  %v4792_v55 = vld [vmem:[#allocation4 + $0xa0] sm:$0xff] }
 0x62e   : > { %v4857_v16 = vadd.f32 %v4561_v49, %v10204_v7  ;;  %v4563_v33 = vpop.f32.mrb[154].mxu0  ;;  %v4822_v46 = vadd.f32 %v4774_v61, %v4710_v10  ;;  %v4713_v62 = vadd.f32 %v10226_v12, %v4712_v28  ;;  %v10421_v6 = vld [vmem:[#allocation4 + $0xf0] sm:$0xff] }
 0x62f   : > { %4904 = vst [vmem:[#allocation4 + $0x120] sm:$0xff] %v4856_v11  ;;  %v4859_v19 = vadd.f32 %v4563_v33, %v10207_v52  ;;  %v4565_v58 = vpop.f32.mrb[155].mxu0  ;;  %4876 = vst.msk [vmem:[#allocation4 + $0x40] sm:$0xff] %vm1311_vm0, %v4828_v40  ;;  %v4831_v29 = vadd.f32 %v4783_v23, %v4721_v56  ;;  %6221 = vrot.lane.b32.xlu1 %v10245_v43, %s7494_s25  ;;  %v4786_v40 = vld [vmem:[#allocation4 + $0x70] sm:$0xff] }
 0x630   : > { %4943 = vst.msk [vmem:[%s10237_s10 + $0xa0] sm:$0xff] %vm4932_vm6, %v10421_v6  ;;  %4905 = vst [vmem:[#allocation4 + $0x128] sm:$0xff] %v4857_v16  ;;  %v4860_v7 = vadd.f32 %v4565_v58, %v10210_v60  ;;  %v4825_v12 = vadd.f32 %v4777_v9, %v4713_v62  ;;  %6127 = vrot.lane.b32.xlu0 %v10258_v37, %s7493_s24  ;;  %v10434_v52 = vld [vmem:[#allocation4 + $0x108] sm:$0xff]  ;;  %v4795_v16 = vld [vmem:[#allocation4 + $0xb8] sm:$0xff] }
 0x631   : > { %4870 = vst.msk [vmem:[#allocation4 + $0x10] sm:$0xff] %vm1311_vm0, %v4822_v46  ;;  %4907 = vst [vmem:[#allocation4 + $0x138] sm:$0xff] %v4859_v19  ;;  %v4789_v62 = vld [vmem:[#allocation4 + $0x88] sm:$0xff]  ;;  %v4804_v19 = vld [vmem:[#allocation4 + $0x100] sm:$0xff] }
 0x632   : > { %4879 = vst.msk [vmem:[#allocation4 + $0x58] sm:$0xff] %vm1311_vm0, %v4831_v29  ;;  %4908 = vst [vmem:[#allocation4 + $0x140] sm:$0xff] %v4860_v7  ;;  %v7136_v25 = vpop.f32.mrb[100].mxu1  ;;  %v4798_v7 = vld [vmem:[#allocation4 + $0xd0] sm:$0xff] }
 0x633   : > { %4944 = vst.msk [vmem:[%s10237_s10 + $0xb0] sm:$0xff] %vm4932_vm6, %v10434_v52  ;;  %v4734_v60 = vadd.f32 %v7136_v25, %v10269_v22  ;;  %v4725_v32 = vpop.f32.mrb[101].mxu1  ;;  %6349 = vrot.lane.b32.xlu1 %v10245_v43, %s7495_s26 }
 0x634   : > { %4873 = vst.msk [vmem:[#allocation4 + $0x28] sm:$0xff] %vm1311_vm0, %v4825_v12  ;;  %v4569_v30 = vpop.f32.mrb[156].mxu0  ;;  %v4726_v59 = vadd.f32 %v10239_v54, %v4725_v32  ;;  %v7137_v10 = vpop.f32.mrb[102].mxu1  ;;  %6223 = vrot.lane.b32.xlu0 %v10258_v37, %s7494_s25 }
 0x635   : > { %v4862_v4 = vadd.f32 %v4569_v30, %v10213_v1  ;;  %v4571_v11 = vpop.f32.mrb[157].mxu0  ;;  %v4840_v49 = vadd.f32 %v4792_v55, %v4734_v60  ;;  %v4737_v22 = vadd.f32 %v7137_v10, %v10277_v21  ;;  %v4728_v61 = vpop.f32.mrb[103].mxu1 }
 0x636   : > { %v4863_v56 = vadd.f32 %v4571_v11, %v10216_v38  ;;  %v4573_v43 = vpop.f32.mrb[158].mxu0  ;;  %v4834_v28 = vadd.f32 %v4786_v40, %v4726_v59  ;;  %v4729_v54 = vadd.f32 %v10247_v44, %v4728_v61  ;;  %v10451_v33 = vld [vmem:[#allocation4 + $0x120] sm:$0xff] }
 0x637   : > { %4910 = vst [vmem:[#allocation4 + $0x150] sm:$0xff] %v4862_v4  ;;  %v4865_v1 = vadd.f32 %v4573_v43, %v10219_v3  ;;  %v4575_v46 = vpop.f32.mrb[159].mxu0  ;;  %4888 = vst.msk [vmem:[#allocation4 + $0xa0] sm:$0xff] %vm1311_vm0, %v4840_v49  ;;  %v4843_v23 = vadd.f32 %v4795_v16, %v4737_v22  ;;  %5599 = vrot.lane.b32.xlu1 %v10250_v27, %s7485_s15  ;;  %v4816_v4 = vld [vmem:[#allocation4 + $0x160] sm:$0xff]  ;;  %v4810_v22 = vld [vmem:[#allocation4 + $0x130] sm:$0xff] }
 0x638   : > { %4945 = vst.msk [vmem:[%s10237_s10 + $0xc0] sm:$0xff] %vm4932_vm6, %v10451_v33  ;;  %4911 = vst [vmem:[#allocation4 + $0x158] sm:$0xff] %v4863_v56  ;;  %v4866_v38 = vadd.f32 %v4575_v46, %v10222_v20  ;;  %v4837_v44 = vadd.f32 %v4789_v62, %v4729_v54  ;;  %5605 = vrot.lane.b32.xlu0 %v10275_v8, %s7485_s15  ;;  %v10464_v3 = vld [vmem:[#allocation4 + $0x138] sm:$0xff]  ;;  %v4813_v54 = vld [vmem:[#allocation4 + $0x148] sm:$0xff] }
 0x639   : > { %4882 = vst.msk [vmem:[#allocation4 + $0x70] sm:$0xff] %vm1311_vm0, %v4834_v28  ;;  %4913 = vst [vmem:[#allocation4 + $0x168] sm:$0xff] %v4865_v1  ;;  %v4819_v28 = vld [vmem:[#allocation4 + $0x178] sm:$0xff] }
 0x63a   : > { %4891 = vst.msk [vmem:[#allocation4 + $0xb8] sm:$0xff] %vm1311_vm0, %v4843_v23  ;;  %4914 = vst [vmem:[#allocation4 + $0x170] sm:$0xff] %v4866_v38  ;;  %v7140_v27 = vpop.f32.mrb[104].mxu1 }
 0x63b   : > { %4946 = vst.msk [vmem:[%s10237_s10 + $0xd0] sm:$0xff] %vm4932_vm6, %v10464_v3  ;;  %v4750_v20 = vadd.f32 %v7140_v27, %v10325_v48  ;;  %v4741_v21 = vpop.f32.mrb[105].mxu1  ;;  %6353 = vrot.lane.b32.xlu1 %v10258_v37, %s7495_s26  ;;  %v4807_v48 = vld [vmem:[#allocation4 + $0x118] sm:$0xff] }
 0x63c   : > { %4885 = vst.msk [vmem:[#allocation4 + $0x88] sm:$0xff] %vm1311_vm0, %v4837_v44  ;;  %v4742_v58 = vadd.f32 %v10299_v0, %v4741_v21  ;;  %v7141_v29 = vpop.f32.mrb[106].mxu1  ;;  %4987 = vrot.lane.b32.xlu0 %v10280_v47, %s7478_s20  ;;  %v4801_v0 = vld [vmem:[#allocation4 + $0xe8] sm:$0xff] }
 0x63d   : > { %v4852_v9 = vadd.f32 %v4804_v19, %v4750_v20  ;;  %v4753_v12 = vadd.f32 %v7141_v29, %v10333_v35  ;;  %v4744_v25 = vpop.f32.mrb[107].mxu1 }
 0x63e   : > { %v4846_v60 = vadd.f32 %v4798_v7, %v4742_v58  ;;  %v4745_v32 = vadd.f32 %v10307_v36, %v4744_v25  ;;  %v10479_v30 = vld [vmem:[#allocation4 + $0x150] sm:$0xff] }
 0x63f   : > { %4900 = vst.msk [vmem:[#allocation4 + $0x100] sm:$0xff] %vm1311_vm0, %v4852_v9  ;;  %v4855_v37 = vadd.f32 %v4807_v48, %v4753_v12  ;;  %4985 = vrot.lane.b32.xlu1 %v10272_v41, %s7478_s20 }
 0x640   : > { %4947 = vst.msk [vmem:[%s10237_s10 + $0xe0] sm:$0xff] %vm4932_vm6, %v10479_v30  ;;  %v4849_v35 = vadd.f32 %v4801_v0, %v4745_v32  ;;  %5084 = vrot.lane.b32.xlu0 %v10280_v47, %s7486_s19  ;;  %v10490_v55 = vld [vmem:[#allocation4 + $0x168] sm:$0xff] }
 0x641   : > { %4894 = vst.msk [vmem:[#allocation4 + $0xd0] sm:$0xff] %vm1311_vm0, %v4846_v60  ;;  %4903 = vst.msk [vmem:[#allocation4 + $0x118] sm:$0xff] %vm1311_vm0, %v4855_v37 }
 0x642   : > { %4948 = vst.msk [vmem:[%s10237_s10 + $0xf0] sm:$0xff] %vm4932_vm6, %v10490_v55  ;;  %v7144_v36 = vpop.f32.mrb[108].mxu1 }
 0x643   : > { %4897 = vst.msk [vmem:[#allocation4 + $0xe8] sm:$0xff] %vm1311_vm0, %v4849_v35  ;;  %v4766_v59 = vadd.f32 %v7144_v36, %v10389_v18  ;;  %v4757_v10 = vpop.f32.mrb[109].mxu1  ;;  %5082 = vrot.lane.b32.xlu1 %v10272_v41, %s7486_s19 }
 0x644   : > { %v4758_v11 = vadd.f32 %v10357_v51, %v4757_v10  ;;  %v7145_v49 = vpop.f32.mrb[110].mxu1  ;;  %5181 = vrot.lane.b32.xlu0 %v10280_v47, %s7487_s11 }
 0x645   : > { %v4864_v40 = vadd.f32 %v4816_v4, %v4766_v59  ;;  %v4769_v61 = vadd.f32 %v7145_v49, %v10393_v34  ;;  %v4760_v56 = vpop.f32.mrb[111].mxu1 }
 0x646   : > { %v4858_v43 = vadd.f32 %v4810_v22, %v4758_v11  ;;  %v4761_v18 = vadd.f32 %v10363_v15, %v4760_v56 }
 0x647   : > { %4912 = vst.msk [vmem:[#allocation4 + $0x160] sm:$0xff] %vm1311_vm0, %v4864_v40  ;;  %v4867_v16 = vadd.f32 %v4819_v28, %v4769_v61  ;;  %5179 = vrot.lane.b32.xlu1 %v10272_v41, %s7487_s11 }
 0x648   : > { %4906 = vst.msk [vmem:[#allocation4 + $0x130] sm:$0xff] %vm1311_vm0, %v4858_v43  ;;  %v4861_v51 = vadd.f32 %v4813_v54, %v4761_v18  ;;  %5278 = vrot.lane.b32.xlu0 %v10280_v47, %s7488_s12 }
 0x649   : > { %4915 = vst.msk [vmem:[#allocation4 + $0x178] sm:$0xff] %vm1311_vm0, %v4867_v16 }
 0x64a   : > { %4909 = vst.msk [vmem:[#allocation4 + $0x148] sm:$0xff] %vm1311_vm0, %v4861_v51  ;;  %vm5029_vm0 = vcmask 261248  }
 0x64b   : > { %5276 = vrot.lane.b32.xlu1 %v10272_v41, %s7488_s12 }
 0x64c   : > { %5375 = vrot.lane.b32.xlu0 %v10280_v47, %s7489_s13 }
 0x64f   : > { %5373 = vrot.lane.b32.xlu1 %v10272_v41, %s7489_s13 }
 0x650   : > { %5472 = vrot.lane.b32.xlu0 %v10280_v47, %s7490_s28 }
 0x653   : > { %5470 = vrot.lane.b32.xlu1 %v10272_v41, %s7490_s28 }
 0x654   : > { %5609 = vrot.lane.b32.xlu0 %v10288_v45, %s7485_s15 }
 0x657   : > { %5603 = vrot.lane.b32.xlu1 %v10272_v41, %s7485_s15 }
 0x658   : > { %5747 = vrot.lane.b32.xlu0 %v10288_v45, %s7491_s14 }
 0x65b   : > { %5745 = vrot.lane.b32.xlu1 %v10275_v8, %s7491_s14 }
 0x65c   : > { %5843 = vrot.lane.b32.xlu0 %v10288_v45, %s7479_s21 }
 0x65f   : > { %5841 = vrot.lane.b32.xlu1 %v10275_v8, %s7479_s21 }
 0x660   : > { %5939 = vrot.lane.b32.xlu0 %v10288_v45, %s7481_s23 }
 0x663   : > { %5937 = vrot.lane.b32.xlu1 %v10275_v8, %s7481_s23 }
 0x664   : > { %6035 = vrot.lane.b32.xlu0 %v10288_v45, %s7492_s22 }
 0x667   : > { %6033 = vrot.lane.b32.xlu1 %v10275_v8, %s7492_s22 }
 0x668   : > { %6131 = vrot.lane.b32.xlu0 %v10288_v45, %s7493_s24 }
 0x66b   : > { %6129 = vrot.lane.b32.xlu1 %v10275_v8, %s7493_s24 }
 0x66c   : > { %6227 = vrot.lane.b32.xlu0 %v10288_v45, %s7494_s25 }
 0x66f   : > { %6225 = vrot.lane.b32.xlu1 %v10275_v8, %s7494_s25 }
 0x670   : > { %5613 = vrot.lane.b32.xlu0 %v10305_v42, %s7485_s15 }
 0x671   : > { %v4982_v41 = vpop.permute.xlu1 %4981 }
 0x672   : > { %5030 = vst.msk [vmem:[%s10237_s10] sm:$0xff] %vm5029_vm0, %v4982_v41  ;;  %v5598_v15 = vpop.permute.xlu0 %5597 }
 0x673   : > { %6357 = vrot.lane.b32.xlu1 %v10275_v8, %s7495_s26 }
 0x674   : > { %4991 = vrot.lane.b32.xlu0 %v10311_v39, %s7478_s20 }
 0x675   : > { %v5079_v34 = vpop.permute.xlu1 %5078 }
 0x676   : > { %5127 = vst.msk [vmem:[%s10237_s10] sm:$0xff] %vm5126_vm7, %v5079_v34  ;;  %v4984_v1 = vpop.permute.xlu0 %4983 }
 0x677   : > { %5031 = vst.msk [vmem:[%s10237_s10 + $0x10] sm:$0xff] %vm5029_vm0, %v4984_v1  ;;  %5607 = vrot.lane.b32.xlu1 %v10280_v47, %s7485_s15 }
 0x678   : > { %5088 = vrot.lane.b32.xlu0 %v10311_v39, %s7486_s19 }
 0x679   : > { %v5176_v8 = vpop.permute.xlu1 %5175 }
 0x67a   : > { %5224 = vst.msk [vmem:[%s10237_s10] sm:$0xff] %vm5223_vm8, %v5176_v8  ;;  %v5081_v46 = vpop.permute.xlu0 %5080 }
 0x67b   : > { %5128 = vst.msk [vmem:[%s10237_s10 + $0x10] sm:$0xff] %vm5126_vm7, %v5081_v46  ;;  %6361 = vrot.lane.b32.xlu1 %v10288_v45, %s7495_s26 }
 0x67c   : > { %5185 = vrot.lane.b32.xlu0 %v10311_v39, %s7487_s11 }
 0x67d   : > { %v5273_v47 = vpop.permute.xlu1 %5272 }
 0x67e   : > { %5321 = vst.msk [vmem:[%s10237_s10] sm:$0xff] %vm5320_vm10, %v5273_v47  ;;  %v5178_v23 = vpop.permute.xlu0 %5177  ;;  %v5715_v47 = vld [vmem:[#allocation4 + $0x98] sm:$0xff] }
 0x67f   : > { %5225 = vst.msk [vmem:[%s10237_s10 + $0x10] sm:$0xff] %vm5223_vm8, %v5178_v23  ;;  %4989 = vrot.lane.b32.xlu1 %v10302_v5, %s7478_s20  ;;  %v6196_v23 = vld [vmem:[#allocation4 + $0xb0] sm:$0xff] }
 0x680   : > { %5282 = vrot.lane.b32.xlu0 %v10311_v39, %s7488_s12 }
 0x681   : > { %v5370_v45 = vpop.permute.xlu1 %5369 }
 0x682   : > { %5418 = vst.msk [vmem:[%s10237_s10] sm:$0xff] %vm5417_vm9, %v5370_v45  ;;  %v5275_v62 = vpop.permute.xlu0 %5274 }
 0x683   : > { %5322 = vst.msk [vmem:[%s10237_s10 + $0x10] sm:$0xff] %vm5320_vm10, %v5275_v62  ;;  %5086 = vrot.lane.b32.xlu1 %v10302_v5, %s7486_s19 }
 0x684   : > { %5379 = vrot.lane.b32.xlu0 %v10311_v39, %s7489_s13 }
 0x685   : > { %v5467_v38 = vpop.permute.xlu1 %5466 }
 0x686   : > { %5515 = vst.msk [vmem:[%s10237_s10] sm:$0xff] %vm5514_vm11, %v5467_v38  ;;  %v5372_v44 = vpop.permute.xlu0 %5371 }
 0x687   : > { %5419 = vst.msk [vmem:[%s10237_s10 + $0x10] sm:$0xff] %vm5417_vm9, %v5372_v44  ;;  %5183 = vrot.lane.b32.xlu1 %v10302_v5, %s7487_s11 }
 0x688   : > { %5476 = vrot.lane.b32.xlu0 %v10311_v39, %s7490_s28 }
 0x689   : > { %v5596_v27 = vpop.permute.xlu1 %5595 }
 0x68a   : > { %v5660_v20 = vsel %vm5659_vm1, %v5596_v27, %v5598_v15  ;;  %v5469_v21 = vpop.permute.xlu0 %5468 }
 0x68b   : > { %5693 = vst.msk [vmem:[%s10237_s10] sm:$0xff] %vm5692_vm12, %v5660_v20  ;;  %5280 = vrot.lane.b32.xlu1 %v10302_v5, %s7488_s12 }
 0x68c   : > { %5516 = vst.msk [vmem:[%s10237_s10 + $0x10] sm:$0xff] %vm5514_vm11, %v5469_v21  ;;  %5617 = vrot.lane.b32.xlu0 %v10316_v24, %s7485_s15 }
 0x68d   : > { %v5742_v19 = vpop.permute.xlu1 %5741 }
 0x68e   : > { %5789 = vst.msk [vmem:[%s10237_s10 + $0x8] sm:$0xff] %vm4932_vm6, %v5742_v19  ;;  %v5602_v58 = vpop.permute.xlu0 %5601 }
 0x68f   : > { %5377 = vrot.lane.b32.xlu1 %v10302_v5, %s7489_s13 }
 0x690   : > { %5751 = vrot.lane.b32.xlu0 %v10316_v24, %s7491_s14 }
 0x691   : > { %v5838_v29 = vpop.permute.xlu1 %5837 }
 0x692   : > { %5885 = vst.msk [vmem:[%s10237_s10 + $0x8] sm:$0xff] %vm5029_vm0, %v5838_v29  ;;  %v5744_v9 = vpop.permute.xlu0 %5743 }
 0x693   : > { %5790 = vst.msk [vmem:[%s10237_s10 + $0x18] sm:$0xff] %vm4932_vm6, %v5744_v9  ;;  %5474 = vrot.lane.b32.xlu1 %v10302_v5, %s7490_s28 }
 0x694   : > { %5847 = vrot.lane.b32.xlu0 %v10316_v24, %s7479_s21 }
 0x695   : > { %v5934_v7 = vpop.permute.xlu1 %5933 }
 0x696   : > { %5981 = vst.msk [vmem:[%s10237_s10 + $0x8] sm:$0xff] %vm5126_vm7, %v5934_v7  ;;  %v5840_v12 = vpop.permute.xlu0 %5839 }
 0x697   : > { %5886 = vst.msk [vmem:[%s10237_s10 + $0x18] sm:$0xff] %vm5029_vm0, %v5840_v12  ;;  %5611 = vrot.lane.b32.xlu1 %v10302_v5, %s7485_s15 }
 0x698   : > { %5943 = vrot.lane.b32.xlu0 %v10316_v24, %s7481_s23 }
 0x699   : > { %v6030_v25 = vpop.permute.xlu1 %6029 }
 0x69a   : > { %6077 = vst.msk [vmem:[%s10237_s10 + $0x8] sm:$0xff] %vm5223_vm8, %v6030_v25  ;;  %v5936_v60 = vpop.permute.xlu0 %5935  ;;  %v10816_v25 = vld [vmem:[#allocation4 + $0xe0] sm:$0xff] }
 0x69b   : > { %5982 = vst.msk [vmem:[%s10237_s10 + $0x18] sm:$0xff] %vm5126_vm7, %v5936_v60  ;;  %5749 = vrot.lane.b32.xlu1 %v10305_v42, %s7491_s14 }
 0x69c   : > { %6039 = vrot.lane.b32.xlu0 %v10316_v24, %s7492_s22 }
 0x69d   : > { %v6126_v48 = vpop.permute.xlu1 %6125 }
 0x69e   : > { %6173 = vst.msk [vmem:[%s10237_s10 + $0x8] sm:$0xff] %vm5320_vm10, %v6126_v48  ;;  %v6032_v5 = vpop.permute.xlu0 %6031 }
 0x69f   : > { %6078 = vst.msk [vmem:[%s10237_s10 + $0x18] sm:$0xff] %vm5223_vm8, %v6032_v5  ;;  %5845 = vrot.lane.b32.xlu1 %v10305_v42, %s7479_s21 }
 0x6a0   : > { %6135 = vrot.lane.b32.xlu0 %v10316_v24, %s7493_s24 }
 0x6a1   : > { %v6222_v32 = vpop.permute.xlu1 %6221 }
 0x6a2   : > { %6269 = vst.msk [vmem:[%s10237_s10 + $0x8] sm:$0xff] %vm5417_vm9, %v6222_v32  ;;  %v6128_v37 = vpop.permute.xlu0 %6127 }
 0x6a3   : > { %6174 = vst.msk [vmem:[%s10237_s10 + $0x18] sm:$0xff] %vm5320_vm10, %v6128_v37  ;;  %5941 = vrot.lane.b32.xlu1 %v10305_v42, %s7481_s23 }
 0x6a4   : > { %6231 = vrot.lane.b32.xlu0 %v10316_v24, %s7494_s25 }
 0x6a5   : > { %v10654_v0 = vpop.permute.xlu1 %6349 }
 0x6a6   : > { %v6224_v35 = vpop.permute.xlu0 %6223 }
 0x6a7   : > { %6270 = vst.msk [vmem:[%s10237_s10 + $0x18] sm:$0xff] %vm5417_vm9, %v6224_v35  ;;  %6037 = vrot.lane.b32.xlu1 %v10305_v42, %s7492_s22 }
 0x6a8   : > { %5621 = vrot.lane.b32.xlu0 %v10331_v57, %s7485_s15 }
 0x6a9   : > { %v5600_v36 = vpop.permute.xlu1 %5599 }
 0x6aa   : > { %v5661_v59 = vsel %vm5659_vm1, %v5600_v36, %v5602_v58  ;;  %v5606_v10 = vpop.permute.xlu0 %5605 }
 0x6ab   : > { %5694 = vst.msk [vmem:[%s10237_s10 + $0x10] sm:$0xff] %vm5692_vm12, %v5661_v59  ;;  %6133 = vrot.lane.b32.xlu1 %v10305_v42, %s7493_s24 }
 0x6ac   : > { %4995 = vrot.lane.b32.xlu0 %v10337_v2, %s7478_s20 }
 0x6ad   : > { %v10669_v4 = vpop.permute.xlu1 %6353 }
 0x6ae   : > { %v4988_v11 = vpop.permute.xlu0 %4987 }
 0x6af   : > { %5033 = vst.msk [vmem:[%s10237_s10 + $0x30] sm:$0xff] %vm5029_vm0, %v4988_v11  ;;  %6229 = vrot.lane.b32.xlu1 %v10305_v42, %s7494_s25 }
 0x6b0   : > { %5092 = vrot.lane.b32.xlu0 %v10337_v2, %s7486_s19 }
 0x6b1   : > { %v4986_v57 = vpop.permute.xlu1 %4985 }
 0x6b2   : > { %5032 = vst.msk [vmem:[%s10237_s10 + $0x20] sm:$0xff] %vm5029_vm0, %v4986_v57  ;;  %v5085_v49 = vpop.permute.xlu0 %5084 }
 0x6b3   : > { %5130 = vst.msk [vmem:[%s10237_s10 + $0x30] sm:$0xff] %vm5126_vm7, %v5085_v49  ;;  %6365 = vrot.lane.b32.xlu1 %v10305_v42, %s7495_s26 }
 0x6b4   : > { %5189 = vrot.lane.b32.xlu0 %v10337_v2, %s7487_s11 }
 0x6b5   : > { %v5083_v40 = vpop.permute.xlu1 %5082 }
 0x6b6   : > { %5129 = vst.msk [vmem:[%s10237_s10 + $0x20] sm:$0xff] %vm5126_vm7, %v5083_v40  ;;  %v5182_v22 = vpop.permute.xlu0 %5181 }
 0x6b7   : > { %5227 = vst.msk [vmem:[%s10237_s10 + $0x30] sm:$0xff] %vm5223_vm8, %v5182_v22  ;;  %5615 = vrot.lane.b32.xlu1 %v10311_v39, %s7485_s15 }
 0x6b8   : > { %5286 = vrot.lane.b32.xlu0 %v10337_v2, %s7488_s12 }
 0x6b9   : > { %v5180_v61 = vpop.permute.xlu1 %5179 }
 0x6ba   : > { %5226 = vst.msk [vmem:[%s10237_s10 + $0x20] sm:$0xff] %vm5223_vm8, %v5180_v61  ;;  %v5279_v42 = vpop.permute.xlu0 %5278  ;;  %v10875_v61 = vld [vmem:[#allocation4 + $0x40] sm:$0xff] }
 0x6bb   : > { %5324 = vst.msk [vmem:[%s10237_s10 + $0x30] sm:$0xff] %vm5320_vm10, %v5279_v42  ;;  %6369 = vrot.lane.b32.xlu1 %v10316_v24, %s7495_s26 }
 0x6bc   : > { %5383 = vrot.lane.b32.xlu0 %v10337_v2, %s7489_s13 }
 0x6bd   : > { %v5277_v56 = vpop.permute.xlu1 %5276 }
 0x6be   : > { %5323 = vst.msk [vmem:[%s10237_s10 + $0x20] sm:$0xff] %vm5320_vm10, %v5277_v56  ;;  %v5376_v39 = vpop.permute.xlu0 %5375 }
 0x6bf   : > { %5421 = vst.msk [vmem:[%s10237_s10 + $0x30] sm:$0xff] %vm5417_vm9, %v5376_v39  ;;  %4993 = vrot.lane.b32.xlu1 %v10328_v26, %s7478_s20  ;;  %v5717_v39 = vld [vmem:[#allocation4 + $0xc8] sm:$0xff] }
 0x6c0   : > { %5480 = vrot.lane.b32.xlu0 %v10337_v2, %s7490_s28 }
 0x6c1   : > { %v5374_v43 = vpop.permute.xlu1 %5373 }
 0x6c2   : > { %5420 = vst.msk [vmem:[%s10237_s10 + $0x20] sm:$0xff] %vm5417_vm9, %v5374_v43  ;;  %v5473_v24 = vpop.permute.xlu0 %5472  ;;  %v10884_v43 = vld [vmem:[#allocation4 + $0xf8] sm:$0xff] }
 0x6c3   : > { %5518 = vst.msk [vmem:[%s10237_s10 + $0x30] sm:$0xff] %vm5514_vm11, %v5473_v24  ;;  %5090 = vrot.lane.b32.xlu1 %v10328_v26, %s7486_s19 }
 0x6c4   : > { %5625 = vrot.lane.b32.xlu0 %v10345_v50, %s7485_s15 }
 0x6c5   : > { %v5471_v28 = vpop.permute.xlu1 %5470 }
 0x6c6   : > { %5517 = vst.msk [vmem:[%s10237_s10 + $0x20] sm:$0xff] %vm5514_vm11, %v5471_v28  ;;  %v5610_v18 = vpop.permute.xlu0 %5609  ;;  %v10893_v28 = vld [vmem:[#allocation4 + $0x10] sm:$0xff] }
 0x6c7   : > { %5187 = vrot.lane.b32.xlu1 %v10328_v26, %s7487_s11 }
 0x6c8   : > { %5755 = vrot.lane.b32.xlu0 %v10345_v50, %s7491_s14 }
 0x6c9   : > { %v5604_v2 = vpop.permute.xlu1 %5603 }
 0x6ca   : > { %v5662_v16 = vsel %vm5659_vm1, %v5604_v2, %v5606_v10  ;;  %v5748_v54 = vpop.permute.xlu0 %5747 }
 0x6cb   : > { %5695 = vst.msk [vmem:[%s10237_s10 + $0x20] sm:$0xff] %vm5692_vm12, %v5662_v16  ;;  %5284 = vrot.lane.b32.xlu1 %v10328_v26, %s7488_s12 }
 0x6cc   : > { %5792 = vst.msk [vmem:[%s10237_s10 + $0x38] sm:$0xff] %vm4932_vm6, %v5748_v54  ;;  %5851 = vrot.lane.b32.xlu0 %v10345_v50, %s7479_s21 }
 0x6cd   : > { %v5746_v51 = vpop.permute.xlu1 %5745 }
 0x6ce   : > { %5791 = vst.msk [vmem:[%s10237_s10 + $0x28] sm:$0xff] %vm4932_vm6, %v5746_v51  ;;  %v5844_v41 = vpop.permute.xlu0 %5843 }
 0x6cf   : > { %5888 = vst.msk [vmem:[%s10237_s10 + $0x38] sm:$0xff] %vm5029_vm0, %v5844_v41  ;;  %5381 = vrot.lane.b32.xlu1 %v10328_v26, %s7489_s13 }
 0x6d0   : > { %5947 = vrot.lane.b32.xlu0 %v10345_v50, %s7481_s23 }
 0x6d1   : > { %v5842_v15 = vpop.permute.xlu1 %5841 }
 0x6d2   : > { %5887 = vst.msk [vmem:[%s10237_s10 + $0x28] sm:$0xff] %vm5029_vm0, %v5842_v15  ;;  %v5940_v34 = vpop.permute.xlu0 %5939 }
 0x6d3   : > { %5984 = vst.msk [vmem:[%s10237_s10 + $0x38] sm:$0xff] %vm5126_vm7, %v5940_v34  ;;  %5478 = vrot.lane.b32.xlu1 %v10365_v53, %s7490_s28 }
 0x6d4   : > { %6043 = vrot.lane.b32.xlu0 %v10345_v50, %s7492_s22 }
 0x6d5   : > { %v5938_v1 = vpop.permute.xlu1 %5937 }
 0x6d6   : > { %5983 = vst.msk [vmem:[%s10237_s10 + $0x28] sm:$0xff] %vm5126_vm7, %v5938_v1  ;;  %v6036_v26 = vpop.permute.xlu0 %6035 }
 0x6d7   : > { %6080 = vst.msk [vmem:[%s10237_s10 + $0x38] sm:$0xff] %vm5223_vm8, %v6036_v26  ;;  %5619 = vrot.lane.b32.xlu1 %v10365_v53, %s7485_s15 }
 0x6d8   : > { %6139 = vrot.lane.b32.xlu0 %v10345_v50, %s7493_s24 }
 0x6d9   : > { %v6034_v8 = vpop.permute.xlu1 %6033 }
 0x6da   : > { %6079 = vst.msk [vmem:[%s10237_s10 + $0x28] sm:$0xff] %vm5223_vm8, %v6034_v8  ;;  %v6132_v46 = vpop.permute.xlu0 %6131 }
 0x6db   : > { %6176 = vst.msk [vmem:[%s10237_s10 + $0x38] sm:$0xff] %vm5320_vm10, %v6132_v46  ;;  %5753 = vrot.lane.b32.xlu1 %v5715_v47, %s7491_s14 }
 0x6dc   : > { %6235 = vrot.lane.b32.xlu0 %v6196_v23, %s7494_s25 }
 0x6dd   : > { %v6130_v45 = vpop.permute.xlu1 %6129 }
 0x6de   : > { %6175 = vst.msk [vmem:[%s10237_s10 + $0x28] sm:$0xff] %vm5320_vm10, %v6130_v45  ;;  %v6228_v53 = vpop.permute.xlu0 %6227 }
 0x6df   : > { %6272 = vst.msk [vmem:[%s10237_s10 + $0x38] sm:$0xff] %vm5417_vm9, %v6228_v53  ;;  %5849 = vrot.lane.b32.xlu1 %v5715_v47, %s7479_s21  ;;  %v6292_v53 = vld [vmem:[#allocation4 + $0x58] sm:$0xff] }
 0x6e0   : > { %5629 = vrot.lane.b32.xlu0 %v10361_v13, %s7485_s15 }
 0x6e1   : > { %v6226_v50 = vpop.permute.xlu1 %6225 }
 0x6e2   : > { %6271 = vst.msk [vmem:[%s10237_s10 + $0x28] sm:$0xff] %vm5417_vm9, %v6226_v50  ;;  %v5614_v62 = vpop.permute.xlu0 %5613 }
 0x6e3   : > { %5945 = vrot.lane.b32.xlu1 %v5715_v47, %s7481_s23 }
 0x6e4   : > { %4999 = vrot.lane.b32.xlu0 %v10368_v17, %s7478_s20 }
 0x6e5   : > { %v10774_v38 = vpop.permute.xlu1 %6357 }
 0x6e6   : > { %v4992_v44 = vpop.permute.xlu0 %4991 }
 0x6e7   : > { %5035 = vst.msk [vmem:[%s10237_s10 + $0x50] sm:$0xff] %vm5029_vm0, %v4992_v44  ;;  %6041 = vrot.lane.b32.xlu1 %v5715_v47, %s7492_s22 }
 0x6e8   : > { %5096 = vrot.lane.b32.xlu0 %v10368_v17, %s7486_s19 }
 0x6e9   : > { %v5608_v13 = vpop.permute.xlu1 %5607 }
 0x6ea   : > { %v5663_v27 = vsel %vm5659_vm1, %v5608_v13, %v5610_v18  ;;  %v5089_v20 = vpop.permute.xlu0 %5088  ;;  %v10962_v13 = vld [vmem:[#allocation4 + $0x110] sm:$0xff] }
 0x6eb   : > { %5696 = vst.msk [vmem:[%s10237_s10 + $0x30] sm:$0xff] %vm5692_vm12, %v5663_v27  ;;  %6137 = vrot.lane.b32.xlu1 %v5715_v47, %s7493_s24 }
 0x6ec   : > { %5132 = vst.msk [vmem:[%s10237_s10 + $0x50] sm:$0xff] %vm5126_vm7, %v5089_v20  ;;  %5193 = vrot.lane.b32.xlu0 %v10406_v31, %s7487_s11 }
 0x6ed   : > { %v10789_v21 = vpop.permute.xlu1 %6361 }
 0x6ee   : > { %v5186_v19 = vpop.permute.xlu0 %5185 }
 0x6ef   : > { %5229 = vst.msk [vmem:[%s10237_s10 + $0x50] sm:$0xff] %vm5223_vm8, %v5186_v19  ;;  %6233 = vrot.lane.b32.xlu1 %v5715_v47, %s7494_s25 }
 0x6f0   : > { %5290 = vrot.lane.b32.xlu0 %v10406_v31, %s7488_s12 }
 0x6f1   : > { %v4990_v17 = vpop.permute.xlu1 %4989 }
 0x6f2   : > { %5034 = vst.msk [vmem:[%s10237_s10 + $0x40] sm:$0xff] %vm5029_vm0, %v4990_v17  ;;  %v5283_v58 = vpop.permute.xlu0 %5282 }
 0x6f3   : > { %5326 = vst.msk [vmem:[%s10237_s10 + $0x50] sm:$0xff] %vm5320_vm10, %v5283_v58  ;;  %6373 = vrot.lane.b32.xlu1 %v5715_v47, %s7495_s26 }
 0x6f4   : > { %5387 = vrot.lane.b32.xlu0 %v10406_v31, %s7489_s13 }
 0x6f5   : > { %v5087_v29 = vpop.permute.xlu1 %5086 }
 0x6f6   : > { %5131 = vst.msk [vmem:[%s10237_s10 + $0x40] sm:$0xff] %vm5126_vm7, %v5087_v29  ;;  %v5380_v9 = vpop.permute.xlu0 %5379 }
 0x6f7   : > { %5423 = vst.msk [vmem:[%s10237_s10 + $0x50] sm:$0xff] %vm5417_vm9, %v5380_v9  ;;  %5623 = vrot.lane.b32.xlu1 %v10379_v63, %s7485_s15 }
 0x6f8   : > { %5484 = vrot.lane.b32.xlu0 %v10406_v31, %s7490_s28 }
 0x6f9   : > { %v5184_v7 = vpop.permute.xlu1 %5183 }
 0x6fa   : > { %5228 = vst.msk [vmem:[%s10237_s10 + $0x40] sm:$0xff] %vm5223_vm8, %v5184_v7  ;;  %v5477_v12 = vpop.permute.xlu0 %5476 }
 0x6fb   : > { %5520 = vst.msk [vmem:[%s10237_s10 + $0x50] sm:$0xff] %vm5514_vm11, %v5477_v12  ;;  %6377 = vrot.lane.b32.xlu1 %v6196_v23, %s7495_s26 }
 0x6fc   : > { %5633 = vrot.lane.b32.xlu0 %v10816_v25, %s7485_s15 }
 0x6fd   : > { %v5281_v63 = vpop.permute.xlu1 %5280 }
 0x6fe   : > { %5325 = vst.msk [vmem:[%s10237_s10 + $0x40] sm:$0xff] %vm5320_vm10, %v5281_v63  ;;  %v10822_v60 = vpop.permute.xlu0 %5617 }
 0x6ff   : > { %4997 = vrot.lane.b32.xlu1 %v10395_v14, %s7478_s20 }
 0x700   : > { %5759 = vrot.lane.b32.xlu0 %v10816_v25, %s7491_s14 }
 0x701   : > { %v5378_v48 = vpop.permute.xlu1 %5377 }
 0x702   : > { %5422 = vst.msk [vmem:[%s10237_s10 + $0x40] sm:$0xff] %vm5417_vm9, %v5378_v48  ;;  %v5752_v5 = vpop.permute.xlu0 %5751 }
 0x703   : > { %5794 = vst.msk [vmem:[%s10237_s10 + $0x58] sm:$0xff] %vm4932_vm6, %v5752_v5  ;;  %5094 = vrot.lane.b32.xlu1 %v10395_v14, %s7486_s19 }
 0x704   : > { %5855 = vrot.lane.b32.xlu0 %v10816_v25, %s7479_s21 }
 0x705   : > { %v5475_v32 = vpop.permute.xlu1 %5474 }
 0x706   : > { %5519 = vst.msk [vmem:[%s10237_s10 + $0x40] sm:$0xff] %vm5514_vm11, %v5475_v32  ;;  %v5848_v37 = vpop.permute.xlu0 %5847  ;;  %v6288_v32 = vld [vmem:[#allocation4 + $0x28] sm:$0xff] }
 0x707   : > { %5890 = vst.msk [vmem:[%s10237_s10 + $0x58] sm:$0xff] %vm5029_vm0, %v5848_v37  ;;  %5191 = vrot.lane.b32.xlu1 %v10395_v14, %s7487_s11 }
 0x708   : > { %5951 = vrot.lane.b32.xlu0 %v10816_v25, %s7481_s23 }
 0x709   : > { %v5612_v35 = vpop.permute.xlu1 %5611 }
 0x70a   : > { %v5664_v36 = vsel %vm5659_vm1, %v5612_v35, %v5614_v62  ;;  %v5944_v59 = vpop.permute.xlu0 %5943 }
 0x70b   : > { %5697 = vst.msk [vmem:[%s10237_s10 + $0x40] sm:$0xff] %vm5692_vm12, %v5664_v36  ;;  %5288 = vrot.lane.b32.xlu1 %v10395_v14, %s7488_s12 }
 0x70c   : > { %5986 = vst.msk [vmem:[%s10237_s10 + $0x58] sm:$0xff] %vm5126_vm7, %v5944_v59  ;;  %6047 = vrot.lane.b32.xlu0 %v10816_v25, %s7492_s22 }
 0x70d   : > { %v5750_v10 = vpop.permute.xlu1 %5749 }
 0x70e   : > { %5793 = vst.msk [vmem:[%s10237_s10 + $0x48] sm:$0xff] %vm4932_vm6, %v5750_v10  ;;  %v6040_v11 = vpop.permute.xlu0 %6039  ;;  %v11036_v10 = vld [vmem:[#allocation4 + $0xa0] sm:$0xff] }
 0x70f   : > { %6082 = vst.msk [vmem:[%s10237_s10 + $0x58] sm:$0xff] %vm5223_vm8, %v6040_v11  ;;  %5385 = vrot.lane.b32.xlu1 %v10395_v14, %s7489_s13 }
 0x710   : > { %6143 = vrot.lane.b32.xlu0 %v10816_v25, %s7493_s24 }
 0x711   : > { %v5846_v57 = vpop.permute.xlu1 %5845 }
 0x712   : > { %5889 = vst.msk [vmem:[%s10237_s10 + $0x48] sm:$0xff] %vm5029_vm0, %v5846_v57  ;;  %v6136_v49 = vpop.permute.xlu0 %6135 }
 0x713   : > { %6178 = vst.msk [vmem:[%s10237_s10 + $0x58] sm:$0xff] %vm5320_vm10, %v6136_v49  ;;  %5482 = vrot.lane.b32.xlu1 %v10395_v14, %s7490_s28 }
 0x714   : > { %6239 = vrot.lane.b32.xlu0 %v10816_v25, %s7494_s25 }
 0x715   : > { %v5942_v40 = vpop.permute.xlu1 %5941 }
 0x716   : > { %5985 = vst.msk [vmem:[%s10237_s10 + $0x48] sm:$0xff] %vm5126_vm7, %v5942_v40  ;;  %v6232_v22 = vpop.permute.xlu0 %6231  ;;  %v11048_v40 = vld [vmem:[#allocation4 + $0x128] sm:$0xff] }
 0x717   : > { %6274 = vst.msk [vmem:[%s10237_s10 + $0x58] sm:$0xff] %vm5417_vm9, %v6232_v22  ;;  %5627 = vrot.lane.b32.xlu1 %v10395_v14, %s7485_s15 }
 0x718   : > { %6359 = vrot.lane.b32.xlu0 %v10875_v61, %s7495_s26 }
 0x719   : > { %v6038_v42 = vpop.permute.xlu1 %6037 }
 0x71a   : > { %6081 = vst.msk [vmem:[%s10237_s10 + $0x48] sm:$0xff] %vm5223_vm8, %v6038_v42  ;;  %v10881_v56 = vpop.permute.xlu0 %5621  ;;  %v11058_v42 = vld [vmem:[#allocation4 + $0x70] sm:$0xff] }
 0x71b   : > { %5757 = vrot.lane.b32.xlu1 %v5717_v39, %s7491_s14 }
 0x71c   : > { %5637 = vrot.lane.b32.xlu0 %v10884_v43, %s7485_s15 }
 0x71d   : > { %v6134_v14 = vpop.permute.xlu1 %6133 }
 0x71e   : > { %6177 = vst.msk [vmem:[%s10237_s10 + $0x48] sm:$0xff] %vm5320_vm10, %v6134_v14  ;;  %v4996_v24 = vpop.permute.xlu0 %4995 }
 0x71f   : > { %5037 = vst.msk [vmem:[%s10237_s10 + $0x70] sm:$0xff] %vm5029_vm0, %v4996_v24  ;;  %5853 = vrot.lane.b32.xlu1 %v5717_v39, %s7479_s21 }
 0x720   : > { %6351 = vrot.lane.b32.xlu0 %v10893_v28, %s7495_s26 }
 0x721   : > { %v6230_v18 = vpop.permute.xlu1 %6229 }
 0x722   : > { %6273 = vst.msk [vmem:[%s10237_s10 + $0x48] sm:$0xff] %vm5417_vm9, %v6230_v18  ;;  %v5093_v2 = vpop.permute.xlu0 %5092 }
 0x723   : > { %5134 = vst.msk [vmem:[%s10237_s10 + $0x70] sm:$0xff] %vm5126_vm7, %v5093_v2  ;;  %5949 = vrot.lane.b32.xlu1 %v5717_v39, %s7481_s23 }
 0x724   : > { %5003 = vrot.lane.b32.xlu0 %v10434_v52, %s7478_s20 }
 0x725   : > { %v10904_v16 = vpop.permute.xlu1 %6365 }
 0x726   : > { %v5190_v54 = vpop.permute.xlu0 %5189 }
 0x727   : > { %5231 = vst.msk [vmem:[%s10237_s10 + $0x70] sm:$0xff] %vm5223_vm8, %v5190_v54  ;;  %6045 = vrot.lane.b32.xlu1 %v5717_v39, %s7492_s22 }
 0x728   : > { %5100 = vrot.lane.b32.xlu0 %v10434_v52, %s7486_s19 }
 0x729   : > { %v5616_v51 = vpop.permute.xlu1 %5615 }
 0x72a   : > { %v5665_v41 = vsel %vm5659_vm1, %v5616_v51, %v10822_v60  ;;  %v5287_v15 = vpop.permute.xlu0 %5286 }
 0x72b   : > { %5698 = vst.msk [vmem:[%s10237_s10 + $0x50] sm:$0xff] %vm5692_vm12, %v5665_v41  ;;  %6141 = vrot.lane.b32.xlu1 %v5717_v39, %s7493_s24 }
 0x72c   : > { %5328 = vst.msk [vmem:[%s10237_s10 + $0x70] sm:$0xff] %vm5320_vm10, %v5287_v15  ;;  %5197 = vrot.lane.b32.xlu0 %v10434_v52, %s7487_s11 }
 0x72d   : > { %v10920_v34 = vpop.permute.xlu1 %6369 }
 0x72e   : > { %v5384_v1 = vpop.permute.xlu0 %5383 }
 0x72f   : > { %5425 = vst.msk [vmem:[%s10237_s10 + $0x70] sm:$0xff] %vm5417_vm9, %v5384_v1  ;;  %6237 = vrot.lane.b32.xlu1 %v5717_v39, %s7494_s25 }
 0x730   : > { %5294 = vrot.lane.b32.xlu0 %v10434_v52, %s7488_s12 }
 0x731   : > { %v4994_v26 = vpop.permute.xlu1 %4993 }
 0x732   : > { %5036 = vst.msk [vmem:[%s10237_s10 + $0x60] sm:$0xff] %vm5029_vm0, %v4994_v26  ;;  %v5481_v8 = vpop.permute.xlu0 %5480 }
 0x733   : > { %5522 = vst.msk [vmem:[%s10237_s10 + $0x70] sm:$0xff] %vm5514_vm11, %v5481_v8  ;;  %6381 = vrot.lane.b32.xlu1 %v5717_v39, %s7495_s26 }
 0x734   : > { %5391 = vrot.lane.b32.xlu0 %v10434_v52, %s7489_s13 }
 0x735   : > { %v5091_v46 = vpop.permute.xlu1 %5090 }
 0x736   : > { %5133 = vst.msk [vmem:[%s10237_s10 + $0x60] sm:$0xff] %vm5126_vm7, %v5091_v46  ;;  %v10936_v47 = vpop.permute.xlu0 %5625  ;;  %v6300_v46 = vld [vmem:[#allocation4 + $0xb8] sm:$0xff] }
 0x737   : > { %5631 = vrot.lane.b32.xlu1 %v10406_v31, %s7485_s15 }
 0x738   : > { %5488 = vrot.lane.b32.xlu0 %v10434_v52, %s7490_s28 }
 0x739   : > { %v5188_v23 = vpop.permute.xlu1 %5187 }
 0x73a   : > { %5230 = vst.msk [vmem:[%s10237_s10 + $0x60] sm:$0xff] %vm5223_vm8, %v5188_v23  ;;  %v5756_v45 = vpop.permute.xlu0 %5755 }
 0x73b   : > { %5796 = vst.msk [vmem:[%s10237_s10 + $0x78] sm:$0xff] %vm4932_vm6, %v5756_v45  ;;  %6385 = vrot.lane.b32.xlu1 %v10816_v25, %s7495_s26 }
 0x73c   : > { %6363 = vrot.lane.b32.xlu0 %v6292_v53, %s7495_s26 }
 0x73d   : > { %v5285_v50 = vpop.permute.xlu1 %5284 }
 0x73e   : > { %5327 = vst.msk [vmem:[%s10237_s10 + $0x60] sm:$0xff] %vm5320_vm10, %v5285_v50  ;;  %v5852_v31 = vpop.permute.xlu0 %5851  ;;  %v11134_v50 = vld [vmem:[#allocation4 + $0x140] sm:$0xff] }
 0x73f   : > { %5892 = vst.msk [vmem:[%s10237_s10 + $0x78] sm:$0xff] %vm5029_vm0, %v5852_v31  ;;  %5001 = vrot.lane.b32.xlu1 %v10421_v6, %s7478_s20 }
 0x740   : > { %6500 = vrot.lane.b32.xlu0 %v6292_v53, %s7496_s27 }
 0x741   : > { %v5382_v62 = vpop.permute.xlu1 %5381 }
 0x742   : > { %5424 = vst.msk [vmem:[%s10237_s10 + $0x60] sm:$0xff] %vm5417_vm9, %v5382_v62  ;;  %v5948_v44 = vpop.permute.xlu0 %5947 }
 0x743   : > { %5988 = vst.msk [vmem:[%s10237_s10 + $0x78] sm:$0xff] %vm5126_vm7, %v5948_v44  ;;  %5098 = vrot.lane.b32.xlu1 %v10421_v6, %s7486_s19 }
 0x744   : > { %5641 = vrot.lane.b32.xlu0 %v10962_v13, %s7485_s15 }
 0x745   : > { %v5479_v27 = vpop.permute.xlu1 %5478 }
 0x746   : > { %5521 = vst.msk [vmem:[%s10237_s10 + $0x60] sm:$0xff] %vm5514_vm11, %v5479_v27  ;;  %v6044_v20 = vpop.permute.xlu0 %6043 }
 0x747   : > { %6084 = vst.msk [vmem:[%s10237_s10 + $0x78] sm:$0xff] %vm5223_vm8, %v6044_v20  ;;  %5195 = vrot.lane.b32.xlu1 %v10421_v6, %s7487_s11 }
 0x748   : > { %5763 = vrot.lane.b32.xlu0 %v10962_v13, %s7491_s14 }
 0x749   : > { %v5620_v19 = vpop.permute.xlu1 %5619 }
 0x74a   : > { %v5666_v17 = vsel %vm5659_vm1, %v5620_v19, %v10881_v56  ;;  %v6140_v58 = vpop.permute.xlu0 %6139 }
 0x74b   : > { %5699 = vst.msk [vmem:[%s10237_s10 + $0x60] sm:$0xff] %vm5692_vm12, %v5666_v17  ;;  %5292 = vrot.lane.b32.xlu1 %v10421_v6, %s7488_s12 }
 0x74c   : > { %6180 = vst.msk [vmem:[%s10237_s10 + $0x78] sm:$0xff] %vm5320_vm10, %v6140_v58  ;;  %5859 = vrot.lane.b32.xlu0 %v10962_v13, %s7479_s21 }
 0x74d   : > { %v5754_v29 = vpop.permute.xlu1 %5753 }
 0x74e   : > { %5795 = vst.msk [vmem:[%s10237_s10 + $0x68] sm:$0xff] %vm4932_vm6, %v5754_v29  ;;  %v6236_v9 = vpop.permute.xlu0 %6235 }
 0x74f   : > { %6276 = vst.msk [vmem:[%s10237_s10 + $0x78] sm:$0xff] %vm5417_vm9, %v6236_v9  ;;  %5389 = vrot.lane.b32.xlu1 %v10421_v6, %s7489_s13 }
 0x750   : > { %5955 = vrot.lane.b32.xlu0 %v10962_v13, %s7481_s23 }
 0x751   : > { %v5850_v7 = vpop.permute.xlu1 %5849 }
 0x752   : > { %5891 = vst.msk [vmem:[%s10237_s10 + $0x68] sm:$0xff] %vm5029_vm0, %v5850_v7  ;;  %v10994_v12 = vpop.permute.xlu0 %5629 }
 0x753   : > { %5486 = vrot.lane.b32.xlu1 %v10421_v6, %s7490_s28 }
 0x754   : > { %6051 = vrot.lane.b32.xlu0 %v10962_v13, %s7492_s22 }
 0x755   : > { %v5946_v25 = vpop.permute.xlu1 %5945 }
 0x756   : > { %5987 = vst.msk [vmem:[%s10237_s10 + $0x68] sm:$0xff] %vm5126_vm7, %v5946_v25  ;;  %v5000_v63 = vpop.permute.xlu0 %4999 }
 0x757   : > { %5039 = vst.msk [vmem:[%s10237_s10 + $0x90] sm:$0xff] %vm5029_vm0, %v5000_v63  ;;  %5635 = vrot.lane.b32.xlu1 %v10421_v6, %s7485_s15  ;;  %v6296_v63 = vld [vmem:[#allocation4 + $0x88] sm:$0xff] }
 0x758   : > { %6147 = vrot.lane.b32.xlu0 %v10962_v13, %s7493_s24 }
 0x759   : > { %v6042_v60 = vpop.permute.xlu1 %6041 }
 0x75a   : > { %6083 = vst.msk [vmem:[%s10237_s10 + $0x68] sm:$0xff] %vm5223_vm8, %v6042_v60  ;;  %v5097_v48 = vpop.permute.xlu0 %5096 }
 0x75b   : > { %5136 = vst.msk [vmem:[%s10237_s10 + $0x90] sm:$0xff] %vm5126_vm7, %v5097_v48  ;;  %6498 = vrot.lane.b32.xlu1 %v10875_v61, %s7496_s27 }
 0x75c   : > { %6243 = vrot.lane.b32.xlu0 %v10962_v13, %s7494_s25 }
 0x75d   : > { %v6138_v5 = vpop.permute.xlu1 %6137 }
 0x75e   : > { %6179 = vst.msk [vmem:[%s10237_s10 + $0x68] sm:$0xff] %vm5320_vm10, %v6138_v5  ;;  %v5194_v6 = vpop.permute.xlu0 %5193 }
 0x75f   : > { %5233 = vst.msk [vmem:[%s10237_s10 + $0x90] sm:$0xff] %vm5223_vm8, %v5194_v6  ;;  %5761 = vrot.lane.b32.xlu1 %v10884_v43, %s7491_s14  ;;  %v11212_v6 = vld [vmem:[#allocation4 + $0x100] sm:$0xff] }
 0x760   : > { %6355 = vrot.lane.b32.xlu0 %v6288_v32, %s7495_s26 }
 0x761   : > { %v6234_v37 = vpop.permute.xlu1 %6233 }
 0x762   : > { %6275 = vst.msk [vmem:[%s10237_s10 + $0x68] sm:$0xff] %vm5417_vm9, %v6234_v37  ;;  %v5291_v35 = vpop.permute.xlu0 %5290 }
 0x763   : > { %5330 = vst.msk [vmem:[%s10237_s10 + $0x90] sm:$0xff] %vm5320_vm10, %v5291_v35  ;;  %5857 = vrot.lane.b32.xlu1 %v10884_v43, %s7479_s21  ;;  %v11222_v35 = vld [vmem:[#allocation4 + $0x158] sm:$0xff] }
 0x764   : > { %6496 = vrot.lane.b32.xlu0 %v6288_v32, %s7496_s27 }
 0x765   : > { %v11030_v36 = vpop.permute.xlu1 %6373 }
 0x766   : > { %v5388_v59 = vpop.permute.xlu0 %5387 }
 0x767   : > { %5427 = vst.msk [vmem:[%s10237_s10 + $0x90] sm:$0xff] %vm5417_vm9, %v5388_v59  ;;  %5953 = vrot.lane.b32.xlu1 %v10884_v43, %s7481_s23 }
 0x768   : > { %6375 = vrot.lane.b32.xlu0 %v11036_v10, %s7495_s26 }
 0x769   : > { %v5624_v11 = vpop.permute.xlu1 %5623 }
 0x76a   : > { %v5667_v57 = vsel %vm5659_vm1, %v5624_v11, %v10936_v47  ;;  %v5485_v49 = vpop.permute.xlu0 %5484  ;;  %v11232_v11 = vld [vmem:[#allocation4 + $0xd0] sm:$0xff] }
 0x76b   : > { %5700 = vst.msk [vmem:[%s10237_s10 + $0x70] sm:$0xff] %vm5692_vm12, %v5667_v57  ;;  %6049 = vrot.lane.b32.xlu1 %v10884_v43, %s7492_s22 }
 0x76c   : > { %5524 = vst.msk [vmem:[%s10237_s10 + $0x90] sm:$0xff] %vm5514_vm11, %v5485_v49  ;;  %5645 = vrot.lane.b32.xlu0 %v11048_v40, %s7485_s15 }
 0x76d   : > { %v11052_v22 = vpop.permute.xlu1 %6377 }
 0x76e   : > { %v11054_v61 = vpop.permute.xlu0 %5633 }
 0x76f   : > { %6145 = vrot.lane.b32.xlu1 %v10884_v43, %s7493_s24 }
 0x770   : > { %6367 = vrot.lane.b32.xlu0 %v11058_v42, %s7495_s26 }
 0x771   : > { %v4998_v56 = vpop.permute.xlu1 %4997 }
 0x772   : > { %5038 = vst.msk [vmem:[%s10237_s10 + $0x80] sm:$0xff] %vm5029_vm0, %v4998_v56  ;;  %v5760_v39 = vpop.permute.xlu0 %5759 }
 0x773   : > { %5798 = vst.msk [vmem:[%s10237_s10 + $0x98] sm:$0xff] %vm4932_vm6, %v5760_v39  ;;  %6241 = vrot.lane.b32.xlu1 %v10884_v43, %s7494_s25 }
 0x774   : > { %5007 = vrot.lane.b32.xlu0 %v10464_v3, %s7478_s20 }
 0x775   : > { %v5095_v14 = vpop.permute.xlu1 %5094 }
 0x776   : > { %5135 = vst.msk [vmem:[%s10237_s10 + $0x80] sm:$0xff] %vm5126_vm7, %v5095_v14  ;;  %v5856_v24 = vpop.permute.xlu0 %5855 }
 0x777   : > { %5894 = vst.msk [vmem:[%s10237_s10 + $0x98] sm:$0xff] %vm5029_vm0, %v5856_v24  ;;  %6389 = vrot.lane.b32.xlu1 %v10884_v43, %s7495_s26 }
 0x778   : > { %5104 = vrot.lane.b32.xlu0 %v10464_v3, %s7486_s19 }
 0x779   : > { %v5192_v18 = vpop.permute.xlu1 %5191 }
 0x77a   : > { %5232 = vst.msk [vmem:[%s10237_s10 + $0x80] sm:$0xff] %vm5223_vm8, %v5192_v18  ;;  %v5952_v2 = vpop.permute.xlu0 %5951 }
 0x77b   : > { %5990 = vst.msk [vmem:[%s10237_s10 + $0x98] sm:$0xff] %vm5126_vm7, %v5952_v2  ;;  %6494 = vrot.lane.b32.xlu1 %v10893_v28, %s7496_s27 }
 0x77c   : > { %5201 = vrot.lane.b32.xlu0 %v10464_v3, %s7487_s11 }
 0x77d   : > { %v5289_v54 = vpop.permute.xlu1 %5288 }
 0x77e   : > { %5329 = vst.msk [vmem:[%s10237_s10 + $0x80] sm:$0xff] %vm5320_vm10, %v5289_v54  ;;  %v6048_v43 = vpop.permute.xlu0 %6047 }
 0x77f   : > { %6086 = vst.msk [vmem:[%s10237_s10 + $0x98] sm:$0xff] %vm5223_vm8, %v6048_v43  ;;  %5639 = vrot.lane.b32.xlu1 %v10434_v52, %s7485_s15 }
 0x780   : > { %5298 = vrot.lane.b32.xlu0 %v10464_v3, %s7488_s12 }
 0x781   : > { %v5386_v51 = vpop.permute.xlu1 %5385 }
 0x782   : > { %5426 = vst.msk [vmem:[%s10237_s10 + $0x80] sm:$0xff] %vm5417_vm9, %v5386_v51  ;;  %v6144_v28 = vpop.permute.xlu0 %6143 }
 0x783   : > { %6182 = vst.msk [vmem:[%s10237_s10 + $0x98] sm:$0xff] %vm5320_vm10, %v6144_v28  ;;  %6393 = vrot.lane.b32.xlu1 %v10962_v13, %s7495_s26 }
 0x784   : > { %5395 = vrot.lane.b32.xlu0 %v10464_v3, %s7489_s13 }
 0x785   : > { %v5483_v41 = vpop.permute.xlu1 %5482 }
 0x786   : > { %5523 = vst.msk [vmem:[%s10237_s10 + $0x80] sm:$0xff] %vm5514_vm11, %v5483_v41  ;;  %v6240_v52 = vpop.permute.xlu0 %6239  ;;  %v6308_v41 = vld [vmem:[#allocation4 + $0x118] sm:$0xff] }
 0x787   : > { %6278 = vst.msk [vmem:[%s10237_s10 + $0x98] sm:$0xff] %vm5417_vm9, %v6240_v52  ;;  %5005 = vrot.lane.b32.xlu1 %v10451_v33, %s7478_s20 }
 0x788   : > { %5492 = vrot.lane.b32.xlu0 %v10464_v3, %s7490_s28 }
 0x789   : > { %v5628_v15 = vpop.permute.xlu1 %5627 }
 0x78a   : > { %v5668_v1 = vsel %vm5659_vm1, %v5628_v15, %v10994_v12  ;;  %v6360_v26 = vpop.permute.xlu0 %6359 }
 0x78b   : > { %5701 = vst.msk [vmem:[%s10237_s10 + $0x80] sm:$0xff] %vm5692_vm12, %v5668_v1  ;;  %v6416_v8 = vsel %vm6413_vm13, %v10774_v38, %v6360_v26  ;;  %5102 = vrot.lane.b32.xlu1 %v10451_v33, %s7486_s19 }
 0x78c   : > { %6448 = vst.msk [vmem:[%s10237_s10 + $0x28] sm:$0xff] %vm5514_vm11, %v6416_v8  ;;  %6379 = vrot.lane.b32.xlu0 %v6300_v46, %s7495_s26  ;;  %v11310_v8 = vld [vmem:[#allocation4 + $0x170] sm:$0xff] }
 0x78d   : > { %v5758_v47 = vpop.permute.xlu1 %5757 }
 0x78e   : > { %5797 = vst.msk [vmem:[%s10237_s10 + $0x88] sm:$0xff] %vm4932_vm6, %v5758_v47  ;;  %v11123_v23 = vpop.permute.xlu0 %5637 }
 0x78f   : > { %5199 = vrot.lane.b32.xlu1 %v10451_v33, %s7487_s11 }
 0x790   : > { %6508 = vrot.lane.b32.xlu0 %v6300_v46, %s7496_s27 }
 0x791   : > { %v5854_v38 = vpop.permute.xlu1 %5853 }
 0x792   : > { %5893 = vst.msk [vmem:[%s10237_s10 + $0x88] sm:$0xff] %vm5029_vm0, %v5854_v38  ;;  %v6352_v45 = vpop.permute.xlu0 %6351 }
 0x793   : > { %v6414_v53 = vsel %vm6413_vm13, %v10654_v0, %v6352_v45  ;;  %5296 = vrot.lane.b32.xlu1 %v10451_v33, %s7488_s12 }
 0x794   : > { %6446 = vst.msk [vmem:[%s10237_s10 + $0x8] sm:$0xff] %vm5514_vm11, %v6414_v53  ;;  %5649 = vrot.lane.b32.xlu0 %v11134_v50, %s7485_s15 }
 0x795   : > { %v5950_v31 = vpop.permute.xlu1 %5949 }
 0x796   : > { %5989 = vst.msk [vmem:[%s10237_s10 + $0x88] sm:$0xff] %vm5126_vm7, %v5950_v31  ;;  %v5004_v62 = vpop.permute.xlu0 %5003 }
 0x797   : > { %5041 = vst.msk [vmem:[%s10237_s10 + $0xb0] sm:$0xff] %vm5029_vm0, %v5004_v62  ;;  %5393 = vrot.lane.b32.xlu1 %v10451_v33, %s7489_s13 }
 0x798   : > { %5767 = vrot.lane.b32.xlu0 %v11134_v50, %s7491_s14 }
 0x799   : > { %v6046_v0 = vpop.permute.xlu1 %6045 }
 0x79a   : > { %6085 = vst.msk [vmem:[%s10237_s10 + $0x88] sm:$0xff] %vm5223_vm8, %v6046_v0  ;;  %v5101_v44 = vpop.permute.xlu0 %5100 }
 0x79b   : > { %5138 = vst.msk [vmem:[%s10237_s10 + $0xb0] sm:$0xff] %vm5126_vm7, %v5101_v44  ;;  %5490 = vrot.lane.b32.xlu1 %v10451_v33, %s7490_s28 }
 0x79c   : > { %5863 = vrot.lane.b32.xlu0 %v11134_v50, %s7479_s21 }
 0x79d   : > { %v6142_v13 = vpop.permute.xlu1 %6141 }
 0x79e   : > { %6181 = vst.msk [vmem:[%s10237_s10 + $0x88] sm:$0xff] %vm5320_vm10, %v6142_v13  ;;  %v5198_v27 = vpop.permute.xlu0 %5197 }
 0x79f   : > { %5235 = vst.msk [vmem:[%s10237_s10 + $0xb0] sm:$0xff] %vm5223_vm8, %v5198_v27  ;;  %5643 = vrot.lane.b32.xlu1 %v10451_v33, %s7485_s15 }
 0x7a0   : > { %5959 = vrot.lane.b32.xlu0 %v11134_v50, %s7481_s23 }
 0x7a1   : > { %v6238_v20 = vpop.permute.xlu1 %6237 }
 0x7a2   : > { %6277 = vst.msk [vmem:[%s10237_s10 + $0x88] sm:$0xff] %vm5417_vm9, %v6238_v20  ;;  %v5295_v19 = vpop.permute.xlu0 %5294 }
 0x7a3   : > { %5332 = vst.msk [vmem:[%s10237_s10 + $0xb0] sm:$0xff] %vm5320_vm10, %v5295_v19  ;;  %6506 = vrot.lane.b32.xlu1 %v11036_v10, %s7496_s27  ;;  %v6304_v19 = vld [vmem:[#allocation4 + $0xe8] sm:$0xff] }
 0x7a4   : > { %6055 = vrot.lane.b32.xlu0 %v11134_v50, %s7492_s22 }
 0x7a5   : > { %v11172_v17 = vpop.permute.xlu1 %6381 }
 0x7a6   : > { %v5392_v33 = vpop.permute.xlu0 %5391 }
 0x7a7   : > { %5429 = vst.msk [vmem:[%s10237_s10 + $0xb0] sm:$0xff] %vm5417_vm9, %v5392_v33  ;;  %5765 = vrot.lane.b32.xlu1 %v11048_v40, %s7491_s14 }
 0x7a8   : > { %6151 = vrot.lane.b32.xlu0 %v11134_v50, %s7493_s24 }
 0x7a9   : > { %v5632_v58 = vpop.permute.xlu1 %5631 }
 0x7aa   : > { %v5669_v29 = vsel %vm5659_vm1, %v5632_v58, %v11054_v61  ;;  %v5489_v9 = vpop.permute.xlu0 %5488 }
 0x7ab   : > { %5702 = vst.msk [vmem:[%s10237_s10 + $0x90] sm:$0xff] %vm5692_vm12, %v5669_v29  ;;  %5861 = vrot.lane.b32.xlu1 %v11048_v40, %s7479_s21 }
 0x7ac   : > { %5526 = vst.msk [vmem:[%s10237_s10 + $0xb0] sm:$0xff] %vm5514_vm11, %v5489_v9  ;;  %6247 = vrot.lane.b32.xlu0 %v11134_v50, %s7494_s25  ;;  %v6314_v9 = vld [vmem:[#allocation4 + $0x160] sm:$0xff] }
 0x7ad   : > { %v11190_v7 = vpop.permute.xlu1 %6385 }
 0x7ae   : > { %v6364_v12 = vpop.permute.xlu0 %6363 }
 0x7af   : > { %v6417_v25 = vsel %vm6413_vm13, %v10789_v21, %v6364_v12  ;;  %5957 = vrot.lane.b32.xlu1 %v11048_v40, %s7481_s23 }
 0x7b0   : > { %6449 = vst.msk [vmem:[%s10237_s10 + $0x38] sm:$0xff] %vm5514_vm11, %v6417_v25  ;;  %6371 = vrot.lane.b32.xlu0 %v6296_v63, %s7495_s26 }
 0x7b1   : > { %v5002_v60 = vpop.permute.xlu1 %5001 }
 0x7b2   : > { %5040 = vst.msk [vmem:[%s10237_s10 + $0xa0] sm:$0xff] %vm5029_vm0, %v5002_v60  ;;  %v6501_v48 = vpop.permute.xlu0 %6500 }
 0x7b3   : > { %6545 = vst.msk [vmem:[%s10237_s10 + $0x38] sm:$0xff] %vm5692_vm12, %v6501_v48  ;;  %6053 = vrot.lane.b32.xlu1 %v11048_v40, %s7492_s22 }
 0x7b4   : > { %6504 = vrot.lane.b32.xlu0 %v6296_v63, %s7496_s27  ;;  %v6310_v63 = vld [vmem:[#allocation4 + $0x130] sm:$0xff] }
 0x7b5   : > { %v5099_v21 = vpop.permute.xlu1 %5098 }
 0x7b6   : > { %5137 = vst.msk [vmem:[%s10237_s10 + $0xa0] sm:$0xff] %vm5126_vm7, %v5099_v21  ;;  %v11208_v5 = vpop.permute.xlu0 %5641  ;;  %v6316_v21 = vld [vmem:[#allocation4 + $0x178] sm:$0xff] }
 0x7b7   : > { %6149 = vrot.lane.b32.xlu1 %v11048_v40, %s7493_s24 }
 0x7b8   : > { %6391 = vrot.lane.b32.xlu0 %v11212_v6, %s7495_s26 }
 0x7b9   : > { %v5196_v32 = vpop.permute.xlu1 %5195 }
 0x7ba   : > { %5234 = vst.msk [vmem:[%s10237_s10 + $0xa0] sm:$0xff] %vm5223_vm8, %v5196_v32  ;;  %v5764_v37 = vpop.permute.xlu0 %5763 }
 0x7bb   : > { %5800 = vst.msk [vmem:[%s10237_s10 + $0xb8] sm:$0xff] %vm4932_vm6, %v5764_v37  ;;  %6245 = vrot.lane.b32.xlu1 %v11048_v40, %s7494_s25  ;;  %v6312_v37 = vld [vmem:[#allocation4 + $0x148] sm:$0xff] }
 0x7bc   : > { %5653 = vrot.lane.b32.xlu0 %v11222_v35, %s7485_s15 }
 0x7bd   : > { %v5293_v59 = vpop.permute.xlu1 %5292 }
 0x7be   : > { %5331 = vst.msk [vmem:[%s10237_s10 + $0xa0] sm:$0xff] %vm5320_vm10, %v5293_v59  ;;  %v5860_v10 = vpop.permute.xlu0 %5859 }
 0x7bf   : > { %5896 = vst.msk [vmem:[%s10237_s10 + $0xb8] sm:$0xff] %vm5029_vm0, %v5860_v10  ;;  %6397 = vrot.lane.b32.xlu1 %v11048_v40, %s7495_s26 }
 0x7c0   : > { %6383 = vrot.lane.b32.xlu0 %v11232_v11, %s7495_s26 }
 0x7c1   : > { %v5390_v57 = vpop.permute.xlu1 %5389 }
 0x7c2   : > { %5428 = vst.msk [vmem:[%s10237_s10 + $0xa0] sm:$0xff] %vm5417_vm9, %v5390_v57  ;;  %v5956_v49 = vpop.permute.xlu0 %5955 }
 0x7c3   : > { %5992 = vst.msk [vmem:[%s10237_s10 + $0xb8] sm:$0xff] %vm5126_vm7, %v5956_v49  ;;  %6502 = vrot.lane.b32.xlu1 %v11058_v42, %s7496_s27 }
 0x7c4   : > { %5011 = vrot.lane.b32.xlu0 %v10490_v55, %s7478_s20 }
 0x7c5   : > { %v5487_v40 = vpop.permute.xlu1 %5486 }
 0x7c6   : > { %5525 = vst.msk [vmem:[%s10237_s10 + $0xa0] sm:$0xff] %vm5514_vm11, %v5487_v40  ;;  %v6052_v61 = vpop.permute.xlu0 %6051 }
 0x7c7   : > { %6088 = vst.msk [vmem:[%s10237_s10 + $0xb8] sm:$0xff] %vm5223_vm8, %v6052_v61  ;;  %5647 = vrot.lane.b32.xlu1 %v10464_v3, %s7485_s15 }
 0x7c8   : > { %5108 = vrot.lane.b32.xlu0 %v10490_v55, %s7486_s19 }
 0x7c9   : > { %v5636_v56 = vpop.permute.xlu1 %5635 }
 0x7ca   : > { %v5670_v42 = vsel %vm5659_vm1, %v5636_v56, %v11123_v23  ;;  %v6148_v39 = vpop.permute.xlu0 %6147 }
 0x7cb   : > { %5703 = vst.msk [vmem:[%s10237_s10 + $0xa0] sm:$0xff] %vm5692_vm12, %v5670_v42  ;;  %6401 = vrot.lane.b32.xlu1 %v11134_v50, %s7495_s26 }
 0x7cc   : > { %6184 = vst.msk [vmem:[%s10237_s10 + $0xb8] sm:$0xff] %vm5320_vm10, %v6148_v39  ;;  %5205 = vrot.lane.b32.xlu0 %v10490_v55, %s7487_s11 }
 0x7cd   : > { %v6499_v3 = vpop.permute.xlu1 %6498 }
 0x7ce   : > { %6544 = vst.msk [vmem:[%s10237_s10 + $0x28] sm:$0xff] %vm5692_vm12, %v6499_v3  ;;  %v6244_v14 = vpop.permute.xlu0 %6243 }
 0x7cf   : > { %6280 = vst.msk [vmem:[%s10237_s10 + $0xb8] sm:$0xff] %vm5417_vm9, %v6244_v14  ;;  %5009 = vrot.lane.b32.xlu1 %v10479_v30, %s7478_s20 }
 0x7d0   : > { %5302 = vrot.lane.b32.xlu0 %v10490_v55, %s7488_s12 }
 0x7d1   : > { %v5762_v24 = vpop.permute.xlu1 %5761 }
 0x7d2   : > { %5799 = vst.msk [vmem:[%s10237_s10 + $0xa8] sm:$0xff] %vm4932_vm6, %v5762_v24  ;;  %v6356_v18 = vpop.permute.xlu0 %6355 }
 0x7d3   : > { %v6415_v2 = vsel %vm6413_vm13, %v10669_v4, %v6356_v18  ;;  %5106 = vrot.lane.b32.xlu1 %v10479_v30, %s7486_s19 }
 0x7d4   : > { %6447 = vst.msk [vmem:[%s10237_s10 + $0x18] sm:$0xff] %vm5514_vm11, %v6415_v2  ;;  %5399 = vrot.lane.b32.xlu0 %v10490_v55, %s7489_s13 }
 0x7d5   : > { %v5858_v54 = vpop.permute.xlu1 %5857 }
 0x7d6   : > { %5895 = vst.msk [vmem:[%s10237_s10 + $0xa8] sm:$0xff] %vm5029_vm0, %v5858_v54  ;;  %v6497_v43 = vpop.permute.xlu0 %6496 }
 0x7d7   : > { %6543 = vst.msk [vmem:[%s10237_s10 + $0x18] sm:$0xff] %vm5692_vm12, %v6497_v43  ;;  %5203 = vrot.lane.b32.xlu1 %v10479_v30, %s7487_s11 }
 0x7d8   : > { %5496 = vrot.lane.b32.xlu0 %v10490_v55, %s7490_s28 }
 0x7d9   : > { %v5954_v4 = vpop.permute.xlu1 %5953 }
 0x7da   : > { %5991 = vst.msk [vmem:[%s10237_s10 + $0xa8] sm:$0xff] %vm5126_vm7, %v5954_v4  ;;  %v6376_v51 = vpop.permute.xlu0 %6375 }
 0x7db   : > { %v6420_v28 = vsel %vm6413_vm13, %v11030_v36, %v6376_v51  ;;  %5300 = vrot.lane.b32.xlu1 %v10479_v30, %s7488_s12 }
 0x7dc   : > { %6452 = vst.msk [vmem:[%s10237_s10 + $0x68] sm:$0xff] %vm5514_vm11, %v6420_v28  ;;  %6395 = vrot.lane.b32.xlu0 %v6308_v41, %s7495_s26 }
 0x7dd   : > { %v6050_v52 = vpop.permute.xlu1 %6049 }
 0x7de   : > { %6087 = vst.msk [vmem:[%s10237_s10 + $0xa8] sm:$0xff] %vm5223_vm8, %v6050_v52  ;;  %v11299_v15 = vpop.permute.xlu0 %5645 }
 0x7df   : > { %5397 = vrot.lane.b32.xlu1 %v10479_v30, %s7489_s13 }
 0x7e0   : > { %6516 = vrot.lane.b32.xlu0 %v6308_v41, %s7496_s27 }
 0x7e1   : > { %v6146_v36 = vpop.permute.xlu1 %6145 }
 0x7e2   : > { %6183 = vst.msk [vmem:[%s10237_s10 + $0xa8] sm:$0xff] %vm5320_vm10, %v6146_v36  ;;  %v6368_v1 = vpop.permute.xlu0 %6367 }
 0x7e3   : > { %v6418_v26 = vsel %vm6413_vm13, %v10904_v16, %v6368_v1  ;;  %5494 = vrot.lane.b32.xlu1 %v10479_v30, %s7490_s28 }
 0x7e4   : > { %6450 = vst.msk [vmem:[%s10237_s10 + $0x48] sm:$0xff] %vm5514_vm11, %v6418_v26  ;;  %5657 = vrot.lane.b32.xlu0 %v11310_v8, %s7485_s15 }
 0x7e5   : > { %v6242_v46 = vpop.permute.xlu1 %6241 }
 0x7e6   : > { %6279 = vst.msk [vmem:[%s10237_s10 + $0xa8] sm:$0xff] %vm5417_vm9, %v6242_v46  ;;  %v5008_v47 = vpop.permute.xlu0 %5007 }
 0x7e7   : > { %5043 = vst.msk [vmem:[%s10237_s10 + $0xd0] sm:$0xff] %vm5029_vm0, %v5008_v47  ;;  %5651 = vrot.lane.b32.xlu1 %v10479_v30, %s7485_s15 }
 0x7e8   : > { %5771 = vrot.lane.b32.xlu0 %v11310_v8, %s7491_s14 }
 0x7e9   : > { %v11324_v16 = vpop.permute.xlu1 %6389 }
 0x7ea   : > { %v5105_v23 = vpop.permute.xlu0 %5104 }
 0x7eb   : > { %5140 = vst.msk [vmem:[%s10237_s10 + $0xd0] sm:$0xff] %vm5126_vm7, %v5105_v23  ;;  %6514 = vrot.lane.b32.xlu1 %v11212_v6, %s7496_s27 }
 0x7ec   : > { %5867 = vrot.lane.b32.xlu0 %v11310_v8, %s7479_s21 }
 0x7ed   : > { %v6495_v38 = vpop.permute.xlu1 %6494 }
 0x7ee   : > { %6542 = vst.msk [vmem:[%s10237_s10 + $0x8] sm:$0xff] %vm5692_vm12, %v6495_v38  ;;  %v5202_v30 = vpop.permute.xlu0 %5201 }
 0x7ef   : > { %5237 = vst.msk [vmem:[%s10237_s10 + $0xd0] sm:$0xff] %vm5223_vm8, %v5202_v30  ;;  %5769 = vrot.lane.b32.xlu1 %v11222_v35, %s7491_s14 }
 0x7f0   : > { %5963 = vrot.lane.b32.xlu0 %v11310_v8, %s7481_s23 }
 0x7f1   : > { %v5640_v45 = vpop.permute.xlu1 %5639 }
 0x7f2   : > { %v5671_v53 = vsel %vm5659_vm1, %v5640_v45, %v11208_v5  ;;  %v5299_v50 = vpop.permute.xlu0 %5298 }
 0x7f3   : > { %5704 = vst.msk [vmem:[%s10237_s10 + $0xb0] sm:$0xff] %vm5692_vm12, %v5671_v53  ;;  %5865 = vrot.lane.b32.xlu1 %v11222_v35, %s7479_s21 }
 0x7f4   : > { %5334 = vst.msk [vmem:[%s10237_s10 + $0xd0] sm:$0xff] %vm5320_vm10, %v5299_v50  ;;  %6059 = vrot.lane.b32.xlu0 %v11310_v8, %s7492_s22 }
 0x7f5   : > { %v11350_v31 = vpop.permute.xlu1 %6393 }
 0x7f6   : > { %v5396_v62 = vpop.permute.xlu0 %5395 }
 0x7f7   : > { %5431 = vst.msk [vmem:[%s10237_s10 + $0xd0] sm:$0xff] %vm5417_vm9, %v5396_v62  ;;  %5961 = vrot.lane.b32.xlu1 %v11222_v35, %s7481_s23 }
 0x7f8   : > { %6155 = vrot.lane.b32.xlu0 %v11310_v8, %s7493_s24 }
 0x7f9   : > { %v5006_v0 = vpop.permute.xlu1 %5005 }
 0x7fa   : > { %5042 = vst.msk [vmem:[%s10237_s10 + $0xc0] sm:$0xff] %vm5029_vm0, %v5006_v0  ;;  %v5493_v44 = vpop.permute.xlu0 %5492 }
 0x7fb   : > { %5528 = vst.msk [vmem:[%s10237_s10 + $0xd0] sm:$0xff] %vm5514_vm11, %v5493_v44  ;;  %6057 = vrot.lane.b32.xlu1 %v11222_v35, %s7492_s22 }
 0x7fc   : > { %6251 = vrot.lane.b32.xlu0 %v11310_v8, %s7494_s25 }
 0x7fd   : > { %v5103_v13 = vpop.permute.xlu1 %5102 }
 0x7fe   : > { %5139 = vst.msk [vmem:[%s10237_s10 + $0xc0] sm:$0xff] %vm5126_vm7, %v5103_v13  ;;  %v6380_v27 = vpop.permute.xlu0 %6379 }
 0x7ff   : > { %v6421_v20 = vsel %vm6413_vm13, %v11052_v22, %v6380_v27  ;;  %6153 = vrot.lane.b32.xlu1 %v11222_v35, %s7493_s24 }
 0x800   : > { %6453 = vst.msk [vmem:[%s10237_s10 + $0x78] sm:$0xff] %vm5514_vm11, %v6421_v20  ;;  %6387 = vrot.lane.b32.xlu0 %v6304_v19, %s7495_s26 }
 0x801   : > { %v5200_v33 = vpop.permute.xlu1 %5199 }
 0x802   : > { %5236 = vst.msk [vmem:[%s10237_s10 + $0xc0] sm:$0xff] %vm5223_vm8, %v5200_v33  ;;  %v6509_v58 = vpop.permute.xlu0 %6508 }
 0x803   : > { %6549 = vst.msk [vmem:[%s10237_s10 + $0x78] sm:$0xff] %vm5692_vm12, %v6509_v58  ;;  %6249 = vrot.lane.b32.xlu1 %v11222_v35, %s7494_s25 }
 0x804   : > { %6512 = vrot.lane.b32.xlu0 %v6304_v19, %s7496_s27 }
 0x805   : > { %v5297_v22 = vpop.permute.xlu1 %5296 }
 0x806   : > { %5333 = vst.msk [vmem:[%s10237_s10 + $0xc0] sm:$0xff] %vm5320_vm10, %v5297_v22  ;;  %v11384_v29 = vpop.permute.xlu0 %5649 }
 0x807   : > { %6405 = vrot.lane.b32.xlu1 %v11222_v35, %s7495_s26 }
 0x808   : > { %6407 = vrot.lane.b32.xlu0 %v6314_v9, %s7495_s26 }
 0x809   : > { %v5394_v12 = vpop.permute.xlu1 %5393 }
 0x80a   : > { %5430 = vst.msk [vmem:[%s10237_s10 + $0xc0] sm:$0xff] %vm5417_vm9, %v5394_v12  ;;  %v5768_v25 = vpop.permute.xlu0 %5767 }
 0x80b   : > { %5802 = vst.msk [vmem:[%s10237_s10 + $0xd8] sm:$0xff] %vm4932_vm6, %v5768_v25  ;;  %6510 = vrot.lane.b32.xlu1 %v11232_v11, %s7496_s27 }
 0x80c   : > { %6399 = vrot.lane.b32.xlu0 %v6310_v63, %s7495_s26 }
 0x80d   : > { %v5491_v60 = vpop.permute.xlu1 %5490 }
 0x80e   : > { %5527 = vst.msk [vmem:[%s10237_s10 + $0xc0] sm:$0xff] %vm5514_vm11, %v5491_v60  ;;  %v5864_v48 = vpop.permute.xlu0 %5863 }
 0x80f   : > { %5898 = vst.msk [vmem:[%s10237_s10 + $0xd8] sm:$0xff] %vm5029_vm0, %v5864_v48  ;;  %5655 = vrot.lane.b32.xlu1 %v10490_v55, %s7485_s15 }
 0x810   : > { %6411 = vrot.lane.b32.xlu0 %v6316_v21, %s7495_s26 }
 0x811   : > { %v5644_v5 = vpop.permute.xlu1 %5643 }
 0x812   : > { %v5672_v6 = vsel %vm5659_vm1, %v5644_v5, %v11299_v15  ;;  %v5960_v32 = vpop.permute.xlu0 %5959 }
 0x813   : > { %5705 = vst.msk [vmem:[%s10237_s10 + $0xc0] sm:$0xff] %vm5692_vm12, %v5672_v6  ;;  %6409 = vrot.lane.b32.xlu1 %v11310_v8, %s7495_s26 }
 0x814   : > { %5994 = vst.msk [vmem:[%s10237_s10 + $0xd8] sm:$0xff] %vm5126_vm7, %v5960_v32  ;;  %6403 = vrot.lane.b32.xlu0 %v6312_v37, %s7495_s26 }
 0x815   : > { %v6507_v55 = vpop.permute.xlu1 %6506 }
 0x816   : > { %6548 = vst.msk [vmem:[%s10237_s10 + $0x68] sm:$0xff] %vm5692_vm12, %v6507_v55  ;;  %v6056_v35 = vpop.permute.xlu0 %6055 }
 0x817   : > { %6090 = vst.msk [vmem:[%s10237_s10 + $0xd8] sm:$0xff] %vm5223_vm8, %v6056_v35  ;;  %6518 = vrot.lane.b32.xlu1 %v6310_v63, %s7496_s27 }
 0x818   : > { %6520 = vrot.lane.b32.xlu0 %v6312_v37, %s7496_s27 }
 0x819   : > { %v5766_v59 = vpop.permute.xlu1 %5765 }
 0x81a   : > { %5801 = vst.msk [vmem:[%s10237_s10 + $0xc8] sm:$0xff] %vm4932_vm6, %v5766_v59  ;;  %v6152_v10 = vpop.permute.xlu0 %6151 }
 0x81b   : > { %6186 = vst.msk [vmem:[%s10237_s10 + $0xd8] sm:$0xff] %vm5320_vm10, %v6152_v10  ;;  %6522 = vrot.lane.b32.xlu1 %v6314_v9, %s7496_s27 }
 0x81c   : > { %6524 = vrot.lane.b32.xlu0 %v6316_v21, %s7496_s27 }
 0x81d   : > { %v5862_v11 = vpop.permute.xlu1 %5861 }
 0x81e   : > { %5897 = vst.msk [vmem:[%s10237_s10 + $0xc8] sm:$0xff] %vm5029_vm0, %v5862_v11  ;;  %v6248_v57 = vpop.permute.xlu0 %6247 }
 0x81f   : > { %6282 = vst.msk [vmem:[%s10237_s10 + $0xd8] sm:$0xff] %vm5417_vm9, %v6248_v57 }
 0x821   : > { %v5958_v49 = vpop.permute.xlu1 %5957 }
 0x822   : > { %5993 = vst.msk [vmem:[%s10237_s10 + $0xc8] sm:$0xff] %vm5126_vm7, %v5958_v49  ;;  %v6372_v40 = vpop.permute.xlu0 %6371 }
 0x823   : > { %v6419_v61 = vsel %vm6413_vm13, %v10920_v34, %v6372_v40 }
 0x824   : > { %6451 = vst.msk [vmem:[%s10237_s10 + $0x58] sm:$0xff] %vm5514_vm11, %v6419_v61 }
 0x825   : > { %v6054_v56 = vpop.permute.xlu1 %6053 }
 0x826   : > { %6089 = vst.msk [vmem:[%s10237_s10 + $0xc8] sm:$0xff] %vm5223_vm8, %v6054_v56  ;;  %v6505_v42 = vpop.permute.xlu0 %6504 }
 0x827   : > { %6547 = vst.msk [vmem:[%s10237_s10 + $0x58] sm:$0xff] %vm5692_vm12, %v6505_v42 }
 0x829   : > { %v6150_v39 = vpop.permute.xlu1 %6149 }
 0x82a   : > { %6185 = vst.msk [vmem:[%s10237_s10 + $0xc8] sm:$0xff] %vm5320_vm10, %v6150_v39  ;;  %v6392_v3 = vpop.permute.xlu0 %6391 }
 0x82b   : > { %v6424_v14 = vsel %vm6413_vm13, %v11324_v16, %v6392_v3 }
 0x82c   : > { %6456 = vst.msk [vmem:[%s10237_s10 + $0xa8] sm:$0xff] %vm5514_vm11, %v6424_v14 }
 0x82d   : > { %v6246_v34 = vpop.permute.xlu1 %6245 }
 0x82e   : > { %6281 = vst.msk [vmem:[%s10237_s10 + $0xc8] sm:$0xff] %vm5417_vm9, %v6246_v34  ;;  %v5654_v24 = vpop.permute.xlu0 %5653 }
 0x831   : > { %v11446_v18 = vpop.permute.xlu1 %6397 }
 0x832   : > { %v6384_v2 = vpop.permute.xlu0 %6383 }
 0x833   : > { %v6422_v54 = vsel %vm6413_vm13, %v11172_v17, %v6384_v2 }
 0x834   : > { %6454 = vst.msk [vmem:[%s10237_s10 + $0x88] sm:$0xff] %vm5514_vm11, %v6422_v54 }
 0x835   : > { %v6503_v43 = vpop.permute.xlu1 %6502 }
 0x836   : > { %6546 = vst.msk [vmem:[%s10237_s10 + $0x48] sm:$0xff] %vm5692_vm12, %v6503_v43  ;;  %v5012_v4 = vpop.permute.xlu0 %5011 }
 0x837   : > { %5045 = vst.msk [vmem:[%s10237_s10 + $0xf0] sm:$0xff] %vm5029_vm0, %v5012_v4 }
 0x839   : > { %v5648_v51 = vpop.permute.xlu1 %5647 }
 0x83a   : > { %v5673_v28 = vsel %vm5659_vm1, %v5648_v51, %v11384_v29  ;;  %v5109_v41 = vpop.permute.xlu0 %5108 }
 0x83b   : > { %5706 = vst.msk [vmem:[%s10237_s10 + $0xd0] sm:$0xff] %vm5692_vm12, %v5673_v28 }
 0x83c   : > { %5142 = vst.msk [vmem:[%s10237_s10 + $0xf0] sm:$0xff] %vm5126_vm7, %v5109_v41 }
 0x83d   : > { %v11462_v17 = vpop.permute.xlu1 %6401 }
 0x83e   : > { %v5206_v52 = vpop.permute.xlu0 %5205 }
 0x83f   : > { %5239 = vst.msk [vmem:[%s10237_s10 + $0xf0] sm:$0xff] %vm5223_vm8, %v5206_v52 }
 0x841   : > { %v5010_v15 = vpop.permute.xlu1 %5009 }
 0x842   : > { %5044 = vst.msk [vmem:[%s10237_s10 + $0xe0] sm:$0xff] %vm5029_vm0, %v5010_v15  ;;  %v5303_v36 = vpop.permute.xlu0 %5302 }
 0x843   : > { %5336 = vst.msk [vmem:[%s10237_s10 + $0xf0] sm:$0xff] %vm5320_vm10, %v5303_v36 }
 0x845   : > { %v5107_v1 = vpop.permute.xlu1 %5106 }
 0x846   : > { %5141 = vst.msk [vmem:[%s10237_s10 + $0xe0] sm:$0xff] %vm5126_vm7, %v5107_v1  ;;  %v5400_v26 = vpop.permute.xlu0 %5399 }
 0x847   : > { %5433 = vst.msk [vmem:[%s10237_s10 + $0xf0] sm:$0xff] %vm5417_vm9, %v5400_v26 }
 0x849   : > { %v5204_v8 = vpop.permute.xlu1 %5203 }
 0x84a   : > { %5238 = vst.msk [vmem:[%s10237_s10 + $0xe0] sm:$0xff] %vm5223_vm8, %v5204_v8  ;;  %v5497_v46 = vpop.permute.xlu0 %5496 }
 0x84b   : > { %5530 = vst.msk [vmem:[%s10237_s10 + $0xf0] sm:$0xff] %vm5514_vm11, %v5497_v46 }
 0x84d   : > { %v5301_v47 = vpop.permute.xlu1 %5300 }
 0x84e   : > { %5335 = vst.msk [vmem:[%s10237_s10 + $0xe0] sm:$0xff] %vm5320_vm10, %v5301_v47  ;;  %v6396_v16 = vpop.permute.xlu0 %6395 }
 0x84f   : > { %v6425_v23 = vsel %vm6413_vm13, %v11350_v31, %v6396_v16 }
 0x850   : > { %6457 = vst.msk [vmem:[%s10237_s10 + $0xb8] sm:$0xff] %vm5514_vm11, %v6425_v23 }
 0x851   : > { %v5398_v38 = vpop.permute.xlu1 %5397 }
 0x852   : > { %5432 = vst.msk [vmem:[%s10237_s10 + $0xe0] sm:$0xff] %vm5417_vm9, %v5398_v38  ;;  %v6517_v30 = vpop.permute.xlu0 %6516 }
 0x853   : > { %6553 = vst.msk [vmem:[%s10237_s10 + $0xb8] sm:$0xff] %vm5692_vm12, %v6517_v30 }
 0x855   : > { %v5495_v45 = vpop.permute.xlu1 %5494 }
 0x856   : > { %5529 = vst.msk [vmem:[%s10237_s10 + $0xe0] sm:$0xff] %vm5514_vm11, %v5495_v45  ;;  %v5658_v53 = vpop.permute.xlu0 %5657 }
 0x859   : > { %v5652_v50 = vpop.permute.xlu1 %5651 }
 0x85a   : > { %v5674_v31 = vsel %vm5659_vm1, %v5652_v50, %v5654_v24  ;;  %v5772_v62 = vpop.permute.xlu0 %5771 }
 0x85b   : > { %5707 = vst.msk [vmem:[%s10237_s10 + $0xe0] sm:$0xff] %vm5692_vm12, %v5674_v31 }
 0x85c   : > { %5804 = vst.msk [vmem:[%s10237_s10 + $0xf8] sm:$0xff] %vm4932_vm6, %v5772_v62 }
 0x85d   : > { %v6515_v0 = vpop.permute.xlu1 %6514 }
 0x85e   : > { %6552 = vst.msk [vmem:[%s10237_s10 + $0xa8] sm:$0xff] %vm5692_vm12, %v6515_v0  ;;  %v5868_v44 = vpop.permute.xlu0 %5867 }
 0x85f   : > { %5900 = vst.msk [vmem:[%s10237_s10 + $0xf8] sm:$0xff] %vm5029_vm0, %v5868_v44 }
 0x861   : > { %v5770_v13 = vpop.permute.xlu1 %5769 }
 0x862   : > { %5803 = vst.msk [vmem:[%s10237_s10 + $0xe8] sm:$0xff] %vm4932_vm6, %v5770_v13  ;;  %v5964_v27 = vpop.permute.xlu0 %5963 }
 0x863   : > { %5996 = vst.msk [vmem:[%s10237_s10 + $0xf8] sm:$0xff] %vm5126_vm7, %v5964_v27 }
 0x865   : > { %v5866_v20 = vpop.permute.xlu1 %5865 }
 0x866   : > { %5899 = vst.msk [vmem:[%s10237_s10 + $0xe8] sm:$0xff] %vm5029_vm0, %v5866_v20  ;;  %v6060_v19 = vpop.permute.xlu0 %6059 }
 0x867   : > { %6092 = vst.msk [vmem:[%s10237_s10 + $0xf8] sm:$0xff] %vm5223_vm8, %v6060_v19 }
 0x869   : > { %v5962_v33 = vpop.permute.xlu1 %5961 }
 0x86a   : > { %5995 = vst.msk [vmem:[%s10237_s10 + $0xe8] sm:$0xff] %vm5126_vm7, %v5962_v33  ;;  %v6156_v58 = vpop.permute.xlu0 %6155 }
 0x86b   : > { %6188 = vst.msk [vmem:[%s10237_s10 + $0xf8] sm:$0xff] %vm5320_vm10, %v6156_v58 }
 0x86d   : > { %v6058_v22 = vpop.permute.xlu1 %6057 }
 0x86e   : > { %6091 = vst.msk [vmem:[%s10237_s10 + $0xe8] sm:$0xff] %vm5223_vm8, %v6058_v22  ;;  %v6252_v29 = vpop.permute.xlu0 %6251 }
 0x86f   : > { %6284 = vst.msk [vmem:[%s10237_s10 + $0xf8] sm:$0xff] %vm5417_vm9, %v6252_v29 }
 0x871   : > { %v6154_v9 = vpop.permute.xlu1 %6153 }
 0x872   : > { %6187 = vst.msk [vmem:[%s10237_s10 + $0xe8] sm:$0xff] %vm5320_vm10, %v6154_v9  ;;  %v6388_v12 = vpop.permute.xlu0 %6387 }
 0x873   : > { %v6423_v25 = vsel %vm6413_vm13, %v11190_v7, %v6388_v12 }
 0x874   : > { %6455 = vst.msk [vmem:[%s10237_s10 + $0x98] sm:$0xff] %vm5514_vm11, %v6423_v25 }
 0x875   : > { %v6250_v63 = vpop.permute.xlu1 %6249 }
 0x876   : > { %6283 = vst.msk [vmem:[%s10237_s10 + $0xe8] sm:$0xff] %vm5417_vm9, %v6250_v63  ;;  %v6513_v60 = vpop.permute.xlu0 %6512 }
 0x877   : > { %6551 = vst.msk [vmem:[%s10237_s10 + $0x98] sm:$0xff] %vm5692_vm12, %v6513_v60 }
 0x879   : > { %v6406_v48 = vpop.permute.xlu1 %6405 }
 0x87a   : > { %v6408_v21 = vpop.permute.xlu0 %6407 }
 0x87b   : > { %v6428_v5 = vsel %vm6413_vm13, %v6406_v48, %v6408_v21 }
 0x87c   : > { %6460 = vst.msk [vmem:[%s10237_s10 + $0xe8] sm:$0xff] %vm5514_vm11, %v6428_v5 }
 0x87d   : > { %v6511_v6 = vpop.permute.xlu1 %6510 }
 0x87e   : > { %6550 = vst.msk [vmem:[%s10237_s10 + $0x88] sm:$0xff] %vm5692_vm12, %v6511_v6  ;;  %v6400_v7 = vpop.permute.xlu0 %6399 }
 0x87f   : > { %v6426_v32 = vsel %vm6413_vm13, %v11446_v18, %v6400_v7 }
 0x880   : > { %6458 = vst.msk [vmem:[%s10237_s10 + $0xc8] sm:$0xff] %vm5514_vm11, %v6426_v32 }
 0x881   : > { %v5656_v37 = vpop.permute.xlu1 %5655 }
 0x882   : > { %v5675_v55 = vsel %vm5659_vm1, %v5656_v37, %v5658_v53  ;;  %v6412_v35 = vpop.permute.xlu0 %6411 }
 0x883   : > { %5708 = vst.msk [vmem:[%s10237_s10 + $0xf0] sm:$0xff] %vm5692_vm12, %v5675_v55 }
 0x885   : > { %v6410_v59 = vpop.permute.xlu1 %6409 }
 0x886   : > { %v6429_v10 = vsel %vm6413_vm13, %v6410_v59, %v6412_v35  ;;  %v6404_v11 = vpop.permute.xlu0 %6403 }
 0x887   : > { %6461 = vst.msk [vmem:[%s10237_s10 + $0xf8] sm:$0xff] %vm5514_vm11, %v6429_v10  ;;  %v6427_v57 = vsel %vm6413_vm13, %v11462_v17, %v6404_v11 }
 0x888   : > { %6459 = vst.msk [vmem:[%s10237_s10 + $0xd8] sm:$0xff] %vm5514_vm11, %v6427_v57 }
 0x889   : > { %v6519_v49 = vpop.permute.xlu1 %6518 }
 0x88a   : > { %6554 = vst.msk [vmem:[%s10237_s10 + $0xc8] sm:$0xff] %vm5692_vm12, %v6519_v49  ;;  %v6521_v40 = vpop.permute.xlu0 %6520 }
 0x88b   : > { %6555 = vst.msk [vmem:[%s10237_s10 + $0xd8] sm:$0xff] %vm5692_vm12, %v6521_v40 }
 0x88d   : > { %v6523_v61 = vpop.permute.xlu1 %6522 }
 0x88e   : > { %6556 = vst.msk [vmem:[%s10237_s10 + $0xe8] sm:$0xff] %vm5692_vm12, %v6523_v61  ;;  %v6525_v56 = vpop.permute.xlu0 %6524 }
 0x88f   : > { %6557 = vst.msk [vmem:[%s10237_s10 + $0xf8] sm:$0xff] %vm5692_vm12, %v6525_v56 }
 0x890 PF: > { %s14_s17 = sadd.s32 1, %s7457_s17   ;;  %s11673_s15 = smov %s7453_s16 }
 0x891   : > { %p11_p5 = scmp.ge.s32.totalorder %s14_s17, 4   ;;  %s11674_s16 = smov %s11676_s18 }
 0x893   :  { %13 = sbr.rel (!%p11_p5) target bundleno = 2 (0x2), region = 71 }

</bundles_post_ra>
